<compile_context>
chip_gen: v5e
topology: v5e:2x2
jax: 0.10.0
libtpu: 0.0.40
codegen_flags: <defaults>
</compile_context>

<pallas_src>
import jax
import jax.numpy as jnp
from jax.experimental import pallas as pl
from jax.experimental.pallas import tpu as pltpu


def porpoise_amil_kernel(n_ref, x_ref, w1_ref, b1_ref, wab_ref, bab_ref,
                         wc_ref, m_out_ref, m_sc, l_sc, acc_sc):
    i = pl.program_id(0)

    @pl.when(i == 0)
    def _():
        m_sc[...] = jnp.full_like(m_sc, -jnp.inf)
        l_sc[...] = jnp.zeros_like(l_sc)
        acc_sc[...] = jnp.zeros_like(acc_sc)

    x = x_ref[...]                       # keep incoming dtype; MXU accumulates f32
    tile_n = x.shape[0]

    # fc: Linear(feat_input, H1) + ReLU   (Dropout is identity at inference)
    h = jnp.dot(x, w1_ref[...], preferred_element_type=jnp.float32) + b1_ref[...]
    h = jnp.maximum(h, 0.0)

    # Rows past the true bag length are (a) ragged padding or (b) unspecified
    # data from the out-of-bounds boundary block (x is NOT padded on the host).
    # Zero them in h so they contribute exactly 0 to the pooled numerator even
    # if the OOB block contained inf/nan, and force their logits to -inf below.
    row = i * tile_n + jax.lax.broadcasted_iota(jnp.int32, (tile_n, 1), 0)
    valid = row < n_ref[0]
    h = jnp.where(valid, h, 0.0)

    # Attn_Net_Gated with fused gating matmul.  wab = [wa | 0.5*wb], so a single
    # tanh gives both branches: a = tanh(z_a), sigmoid(z_b) = 0.5*(tanh(0.5*z_b)+1).
    z = jnp.dot(h, wab_ref[...], preferred_element_type=jnp.float32) + bab_ref[...]
    t = jnp.tanh(z)                                      # one EUP pass, (TN, 2*H2)
    H2 = z.shape[1] // 2
    gate = t[:, :H2] * (t[:, H2:] + 1.0)                 # == tanh(z_a) * 2*sigmoid(z_b)
    # wc was pre-scaled by 0.5 on the host; attention_c's bias is dropped since
    # the softmax over the bag is shift-invariant (exact cancellation).
    logit = jnp.dot(gate, wc_ref[...],
                    preferred_element_type=jnp.float32)               # (TN, 1)
    logit = jnp.where(valid, logit, -jnp.inf)

    # Online softmax over the bag, fused with attention pooling M = softmax(A)^T h.
    m_prev = m_sc[...]                                                    # (1, 1)
    m_new = jnp.maximum(m_prev, jnp.max(logit, axis=0, keepdims=True))    # (1, 1)
    alpha = jnp.exp(m_prev - m_new)                                       # (1, 1)
    p = jnp.exp(logit - m_new)                                            # (TN, 1)
    l_sc[...] = alpha * l_sc[...] + jnp.sum(p, axis=0, keepdims=True)
    # p^T @ h on the MXU instead of a VPU broadcast + sublane reduce.
    acc_sc[...] = alpha * acc_sc[...] + jax.lax.dot_general(
        p, h, dimension_numbers=(((0,), (0,)), ((), ())),
        preferred_element_type=jnp.float32)                               # (1, H1)
    m_sc[...] = m_new

    @pl.when(i == pl.num_programs(0) - 1)
    def _():
        m_out_ref[...] = (acc_sc[...] / l_sc[...]).astype(m_out_ref.dtype)


def porpoise_amil_forward(x, params, *, tile_n=256):
    N, F = x.shape
    H1 = params["w1"].shape[1]
    H2 = params["wa"].shape[1]

    # Fuse the gating weights; pre-scale the sigmoid branch by 0.5 so a single
    # tanh in the kernel covers both nonlinearities.  Fold the remaining 0.5 of
    # sigmoid into attention_c's weight, and drop its bias (softmax-invariant).
    wab = jnp.concatenate([params["wa"], 0.5 * params["wb"]], axis=1)   # (H1, 2*H2)
    bab = jnp.concatenate([params["ba"], 0.5 * params["bb"]], axis=1)   # (1, 2*H2)
    wc_half = 0.5 * params["wc"]                                        # (H2, 1)

    # No host-side padding: ragged tail is masked inside the kernel.
    n_valid = jnp.array([N], dtype=jnp.int32)
    grid = (pl.cdiv(N, tile_n),)

    def full(shape):
        return pl.BlockSpec(shape, lambda i, n: (0, 0))

    in_specs = [
        pl.BlockSpec((tile_n, F), lambda i, n: (i, 0)),   # x, streamed over the bag
        full((F, H1)), full((1, H1)),                     # fc Linear
        full((H1, 2 * H2)), full((1, 2 * H2)),            # fused attention_a|b Linear
        full((H2, 1)),                                    # attention_c weight (0.5*wc)
    ]
    out_spec = pl.BlockSpec((1, H1), lambda i, n: (0, 0))

    M = pl.pallas_call(
        porpoise_amil_kernel,
        out_shape=jax.ShapeDtypeStruct((1, H1), jnp.float32),
        grid_spec=pltpu.PrefetchScalarGridSpec(
            num_scalar_prefetch=1,
            grid=grid,
            in_specs=in_specs,
            out_specs=out_spec,
            scratch_shapes=[
                pltpu.VMEM((1, 1), jnp.float32),    # running max m
                pltpu.VMEM((1, 1), jnp.float32),    # running denom l
                pltpu.VMEM((1, H1), jnp.float32),   # running numerator acc
            ],
        ),
        compiler_params=pltpu.CompilerParams(dimension_semantics=("arbitrary",)),
    )(n_valid, x, params["w1"], params["b1"], wab, bab, wc_half)

    # Tiny classifier kept outside the kernel (kernel output stays lane-dense).
    return M @ params["wcls"] + params["bcls"]


def reference_forward(x, p):
    # Pure-JAX mirror of PorpoiseAMIL.forward (eval mode).
    h = jnp.maximum(x @ p["w1"] + p["b1"], 0.0)
    a = jnp.tanh(h @ p["wa"] + p["ba"])
    b = jax.nn.sigmoid(h @ p["wb"] + p["bb"])
    A = (a * b) @ p["wc"] + p["bc"]        # (N, 1)
    A = jax.nn.softmax(A.T, axis=1)        # (1, N)
    M = A @ h                              # (1, H1)
    return M @ p["wcls"] + p["bcls"]       # (1, n_classes)


def xavier_normal(key, fan_in, fan_out):
    # nn.init.xavier_normal_: std = sqrt(2 / (fan_in + fan_out)); stored as (in, out).
    std = jnp.sqrt(2.0 / (fan_in + fan_out))
    return std * jax.random.normal(key, (fan_in, fan_out), jnp.float32)


if __name__ == "__main__":
    key = jax.random.PRNGKey(0)
    # size_arg='small' -> [feat_input, 512, 256]; small synthetic feat_input=256.
    feat_input, H1, H2, n_classes = 256, 512, 256, 2
    N = 500  # ragged bag size (not a multiple of tile_n) to exercise the OOB mask

    ks = jax.random.split(key, 6)
    params = {
        "w1": xavier_normal(ks[0], feat_input, H1), "b1": jnp.zeros((1, H1), jnp.float32),
        "wa": xavier_normal(ks[1], H1, H2),         "ba": jnp.zeros((1, H2), jnp.float32),
        "wb": xavier_normal(ks[2], H1, H2),         "bb": jnp.zeros((1, H2), jnp.float32),
        "wc": xavier_normal(ks[3], H2, 1),          "bc": jnp.zeros((1, 1), jnp.float32),
        "wcls": xavier_normal(ks[4], H1, n_classes), "bcls": jnp.zeros((1, n_classes), jnp.float32),
    }
    x = jax.random.normal(ks[5], (N, feat_input), jnp.float32)

    out = porpoise_amil_forward(x, params, tile_n=256)
    out = jax.block_until_ready(out)

    ref = reference_forward(x, params)
    assert out.shape == (1, n_classes)
    assert jnp.allclose(out, ref, atol=1e-4, rtol=1e-4), (out, ref)
    print("KERNEL_OK")
</pallas_src>

<mosaic_0001>
module attributes {stable_mosaic.version = 11 : i64} {
  func.func @porpoise_amil_kernel(%arg0: i32, %arg1: memref<1xi32, #tpu.memory_space<smem>>, %arg2: memref<256x256xf32, #tpu.memory_space<vmem>>, %arg3: memref<256x512xf32, #tpu.memory_space<vmem>>, %arg4: memref<1x512xf32, #tpu.memory_space<vmem>>, %arg5: memref<512x512xf32, #tpu.memory_space<vmem>>, %arg6: memref<1x512xf32, #tpu.memory_space<vmem>>, %arg7: memref<256x1xf32, #tpu.memory_space<vmem>>, %arg8: memref<1x512xf32, #tpu.memory_space<vmem>>, %arg9: memref<1x1xf32, #tpu.memory_space<vmem>>, %arg10: memref<1x1xf32, #tpu.memory_space<vmem>>, %arg11: memref<1x512xf32, #tpu.memory_space<vmem>>) attributes {dimension_semantics = [#tpu.dimension_semantics<arbitrary>], iteration_bounds = array<i64: 2>, scalar_prefetch = 1 : i64, scratch_operands = 3 : i64, tpu.core_type = #tpu.core_type<tc>, window_params = [{transform_indices = @transform_0, window_bounds = array<i64: 256, 256>}, {pipeline_mode = #tpu.pipeline_mode<synchronous>, transform_indices = @transform_1, window_bounds = array<i64: 256, 512>}, {pipeline_mode = #tpu.pipeline_mode<synchronous>, transform_indices = @transform_2, window_bounds = array<i64: 1, 512>}, {pipeline_mode = #tpu.pipeline_mode<synchronous>, transform_indices = @transform_3, window_bounds = array<i64: 512, 512>}, {pipeline_mode = #tpu.pipeline_mode<synchronous>, transform_indices = @transform_4, window_bounds = array<i64: 1, 512>}, {pipeline_mode = #tpu.pipeline_mode<synchronous>, transform_indices = @transform_5, window_bounds = array<i64: 256, 1>}, {pipeline_mode = #tpu.pipeline_mode<synchronous>, transform_indices = @transform_6, window_bounds = array<i64: 1, 512>}]} {
    %c0_i32 = arith.constant 0 : i32
    %0 = arith.cmpi eq, %arg0, %c0_i32 : i32
    %1 = arith.extui %0 : i1 to i32
    %c0_i32_0 = arith.constant 0 : i32
    %2 = arith.cmpi ne, %1, %c0_i32_0 : i32
    scf.if %2 {
      %cst_35 = arith.constant 0xFF800000 : f32
      %62 = vector.broadcast %cst_35 : f32 to vector<1x1xf32>
      %c0_36 = arith.constant 0 : index
      %c0_37 = arith.constant 0 : index
      %63 = vector.load %arg9[%c0_36, %c0_37] : memref<1x1xf32, #tpu.memory_space<vmem>>, vector<1x1xf32>
      tpu.vector_store %arg9[%c0_36, %c0_37], %62 {strides = array<i32>} : memref<1x1xf32, #tpu.memory_space<vmem>>, vector<1x1xf32>,
      %cst_38 = arith.constant 0.000000e+00 : f32
      %64 = vector.broadcast %cst_38 : f32 to vector<1x1xf32>
      %c0_39 = arith.constant 0 : index
      %c0_40 = arith.constant 0 : index
      %65 = vector.load %arg10[%c0_39, %c0_40] : memref<1x1xf32, #tpu.memory_space<vmem>>, vector<1x1xf32>
      tpu.vector_store %arg10[%c0_39, %c0_40], %64 {strides = array<i32>} : memref<1x1xf32, #tpu.memory_space<vmem>>, vector<1x1xf32>,
      %cst_41 = arith.constant 0.000000e+00 : f32
      %66 = vector.broadcast %cst_41 : f32 to vector<1x512xf32>
      %c0_42 = arith.constant 0 : index
      %c0_43 = arith.constant 0 : index
      %67 = vector.load %arg11[%c0_42, %c0_43] : memref<1x512xf32, #tpu.memory_space<vmem>>, vector<1x512xf32>
      tpu.vector_store %arg11[%c0_42, %c0_43], %66 {strides = array<i32>} : memref<1x512xf32, #tpu.memory_space<vmem>>, vector<1x512xf32>,
    } else {
    }
    %c0 = arith.constant 0 : index
    %c0_1 = arith.constant 0 : index
    %3 = vector.load %arg2[%c0, %c0_1] : memref<256x256xf32, #tpu.memory_space<vmem>>, vector<256x256xf32>
    %c0_2 = arith.constant 0 : index
    %c0_3 = arith.constant 0 : index
    %4 = vector.load %arg3[%c0_2, %c0_3] : memref<256x512xf32, #tpu.memory_space<vmem>>, vector<256x512xf32>
    %cst = arith.constant dense<0.000000e+00> : vector<256x512xf32>
    %5 = tpu.matmul %3, %4, %cst {dimension_numbers = #tpu.dot_dimension_numbers<[1], [0], [0], [1], [0, 0, 1, 1], [], []>} : vector<256x256xf32>, vector<256x512xf32>, vector<256x512xf32> -> vector<256x512xf32>
    %c0_4 = arith.constant 0 : index
    %c0_5 = arith.constant 0 : index
    %6 = vector.load %arg4[%c0_4, %c0_5] : memref<1x512xf32, #tpu.memory_space<vmem>>, vector<1x512xf32>
    %7 = vector.broadcast %6 : vector<1x512xf32> to vector<256x512xf32>
    %8 = arith.addf %5, %7 : vector<256x512xf32>
    %cst_6 = arith.constant 0.000000e+00 : f32
    %9 = vector.broadcast %cst_6 : f32 to vector<256x512xf32>
    %10 = arith.maximumf %8, %9 : vector<256x512xf32>
    %c256_i32 = arith.constant 256 : i32
    %11 = arith.muli %arg0, %c256_i32 : i32
    %12 = tpu.iota {dimensions = array<i32: 0>} : vector<256x1xi32>
    %13 = vector.broadcast %11 : i32 to vector<256x1xi32>
    %14 = arith.addi %13, %12 : vector<256x1xi32>
    %c0_7 = arith.constant 0 : index
    %15 = memref.load %arg1[%c0_7] : memref<1xi32, #tpu.memory_space<smem>>
    %16 = vector.broadcast %15 : i32 to vector<256x1xi32>
    %17 = arith.cmpi slt, %14, %16 : vector<256x1xi32>
    %cst_8 = arith.constant 0.000000e+00 : f32
    %18 = vector.shape_cast %17 : vector<256x1xi1> to vector<256x1xi1>
    %19 = vector.broadcast %18 : vector<256x1xi1> to vector<256x512xi1>
    %20 = vector.broadcast %cst_8 : f32 to vector<256x512xf32>
    %21 = arith.select %19, %10, %20 : vector<256x512xi1>, vector<256x512xf32>
    %c0_9 = arith.constant 0 : index
    %c0_10 = arith.constant 0 : index
    %22 = vector.load %arg5[%c0_9, %c0_10] : memref<512x512xf32, #tpu.memory_space<vmem>>, vector<512x512xf32>
    %cst_11 = arith.constant dense<0.000000e+00> : vector<256x512xf32>
    %23 = tpu.matmul %21, %22, %cst_11 {dimension_numbers = #tpu.dot_dimension_numbers<[1], [0], [0], [1], [0, 0, 1, 1], [], []>} : vector<256x512xf32>, vector<512x512xf32>, vector<256x512xf32> -> vector<256x512xf32>
    %c0_12 = arith.constant 0 : index
    %c0_13 = arith.constant 0 : index
    %24 = vector.load %arg6[%c0_12, %c0_13] : memref<1x512xf32, #tpu.memory_space<vmem>>, vector<1x512xf32>
    %25 = vector.broadcast %24 : vector<1x512xf32> to vector<256x512xf32>
    %26 = arith.addf %23, %25 : vector<256x512xf32>
    %27 = math.tanh %26 : vector<256x512xf32>
    %28 = vector.extract_strided_slice %27 {offsets = [0, 0], sizes = [256, 256], strides = [1, 1]} : vector<256x512xf32> to vector<256x256xf32>
    %29 = vector.extract_strided_slice %27 {offsets = [0, 256], sizes = [256, 256], strides = [1, 1]} : vector<256x512xf32> to vector<256x256xf32>
    %cst_14 = arith.constant 1.000000e+00 : f32
    %30 = vector.broadcast %cst_14 : f32 to vector<256x256xf32>
    %31 = arith.addf %29, %30 : vector<256x256xf32>
    %32 = arith.mulf %28, %31 : vector<256x256xf32>
    %c0_15 = arith.constant 0 : index
    %c0_16 = arith.constant 0 : index
    %33 = vector.load %arg7[%c0_15, %c0_16] : memref<256x1xf32, #tpu.memory_space<vmem>>, vector<256x1xf32>
    %cst_17 = arith.constant dense<0.000000e+00> : vector<256x1xf32>
    %34 = tpu.matmul %32, %33, %cst_17 {dimension_numbers = #tpu.dot_dimension_numbers<[1], [0], [0], [1], [0, 0, 1, 1], [], []>} : vector<256x256xf32>, vector<256x1xf32>, vector<256x1xf32> -> vector<256x1xf32>
    %cst_18 = arith.constant 0xFF800000 : f32
    %35 = vector.broadcast %cst_18 : f32 to vector<256x1xf32>
    %36 = arith.select %17, %34, %35 : vector<256x1xi1>, vector<256x1xf32>
    %c0_19 = arith.constant 0 : index
    %c0_20 = arith.constant 0 : index
    %37 = vector.load %arg9[%c0_19, %c0_20] : memref<1x1xf32, #tpu.memory_space<vmem>>, vector<1x1xf32>
    %cst_21 = arith.constant dense<0xFF800000> : vector<1xf32>
    %38 = vector.multi_reduction <maximumf>, %36, %cst_21 [0] : vector<256x1xf32> to vector<1xf32>
    %39 = vector.shape_cast %38 : vector<1xf32> to vector<1x1xf32>
    %40 = arith.maximumf %37, %39 : vector<1x1xf32>
    %41 = arith.subf %37, %40 : vector<1x1xf32>
    %42 = math.exp %41 : vector<1x1xf32>
    %43 = vector.broadcast %40 : vector<1x1xf32> to vector<256x1xf32>
    %44 = arith.subf %36, %43 : vector<256x1xf32>
    %45 = math.exp %44 : vector<256x1xf32>
    %c0_22 = arith.constant 0 : index
    %c0_23 = arith.constant 0 : index
    %46 = vector.load %arg10[%c0_22, %c0_23] : memref<1x1xf32, #tpu.memory_space<vmem>>, vector<1x1xf32>
    %47 = arith.mulf %42, %46 : vector<1x1xf32>
    %cst_24 = arith.constant dense<0.000000e+00> : vector<1xf32>
    %48 = vector.multi_reduction <add>, %45, %cst_24 [0] : vector<256x1xf32> to vector<1xf32>
    %49 = vector.shape_cast %48 : vector<1xf32> to vector<1x1xf32>
    %50 = arith.addf %47, %49 : vector<1x1xf32>
    %c0_25 = arith.constant 0 : index
    %c0_26 = arith.constant 0 : index
    %51 = vector.load %arg10[%c0_25, %c0_26] : memref<1x1xf32, #tpu.memory_space<vmem>>, vector<1x1xf32>
    tpu.vector_store %arg10[%c0_25, %c0_26], %50 {strides = array<i32>} : memref<1x1xf32, #tpu.memory_space<vmem>>, vector<1x1xf32>,
    %c0_27 = arith.constant 0 : index
    %c0_28 = arith.constant 0 : index
    %52 = vector.load %arg11[%c0_27, %c0_28] : memref<1x512xf32, #tpu.memory_space<vmem>>, vector<1x512xf32>
    %53 = vector.broadcast %42 : vector<1x1xf32> to vector<1x512xf32>
    %54 = arith.mulf %53, %52 : vector<1x512xf32>
    %cst_29 = arith.constant dense<0.000000e+00> : vector<1x512xf32>
    %55 = tpu.matmul %45, %21, %cst_29 {dimension_numbers = #tpu.dot_dimension_numbers<[0], [0], [1], [1], [0, 1, 1, 1], [], []>} : vector<256x1xf32>, vector<256x512xf32>, vector<1x512xf32> -> vector<1x512xf32>
    %56 = arith.addf %54, %55 : vector<1x512xf32>
    %c0_30 = arith.constant 0 : index
    %c0_31 = arith.constant 0 : index
    %57 = vector.load %arg11[%c0_30, %c0_31] : memref<1x512xf32, #tpu.memory_space<vmem>>, vector<1x512xf32>
    tpu.vector_store %arg11[%c0_30, %c0_31], %56 {strides = array<i32>} : memref<1x512xf32, #tpu.memory_space<vmem>>, vector<1x512xf32>,
    %c0_32 = arith.constant 0 : index
    %c0_33 = arith.constant 0 : index
    %58 = vector.load %arg9[%c0_32, %c0_33] : memref<1x1xf32, #tpu.memory_space<vmem>>, vector<1x1xf32>
    tpu.vector_store %arg9[%c0_32, %c0_33], %40 {strides = array<i32>} : memref<1x1xf32, #tpu.memory_space<vmem>>, vector<1x1xf32>,
    %c1_i32 = arith.constant 1 : i32
    %59 = arith.cmpi eq, %arg0, %c1_i32 : i32
    %60 = arith.extui %59 : i1 to i32
    %c0_i32_34 = arith.constant 0 : i32
    %61 = arith.cmpi ne, %60, %c0_i32_34 : i32
    scf.if %61 {
      %c0_35 = arith.constant 0 : index
      %c0_36 = arith.constant 0 : index
      %62 = vector.load %arg11[%c0_35, %c0_36] : memref<1x512xf32, #tpu.memory_space<vmem>>, vector<1x512xf32>
      %c0_37 = arith.constant 0 : index
      %c0_38 = arith.constant 0 : index
      %63 = vector.load %arg10[%c0_37, %c0_38] : memref<1x1xf32, #tpu.memory_space<vmem>>, vector<1x1xf32>
      %64 = vector.broadcast %63 : vector<1x1xf32> to vector<1x512xf32>
      %65 = arith.divf %62, %64 : vector<1x512xf32>
      %c0_39 = arith.constant 0 : index
      %c0_40 = arith.constant 0 : index
      %66 = vector.load %arg8[%c0_39, %c0_40] : memref<1x512xf32, #tpu.memory_space<vmem>>, vector<1x512xf32>
      tpu.vector_store %arg8[%c0_39, %c0_40], %65 {strides = array<i32>} : memref<1x512xf32, #tpu.memory_space<vmem>>, vector<1x512xf32>,
    } else {
    }
    return
  }
  func.func @transform_0(%arg0: i32, %arg1: memref<1xi32, #tpu.memory_space<smem>>) -> (i32, i32) {
    %c0_i32 = arith.constant 0 : i32
    %c0_i32_0 = arith.constant 0 : i32
    return %arg0, %c0_i32 : i32, i32
  }
  func.func @transform_1(%arg0: i32, %arg1: memref<1xi32, #tpu.memory_space<smem>>) -> (i32, i32) {
    %c0_i32 = arith.constant 0 : i32
    %c0_i32_0 = arith.constant 0 : i32
    %c0_i32_1 = arith.constant 0 : i32
    return %c0_i32, %c0_i32_0 : i32, i32
  }
  func.func @transform_2(%arg0: i32, %arg1: memref<1xi32, #tpu.memory_space<smem>>) -> (i32, i32) {
    %c0_i32 = arith.constant 0 : i32
    %c0_i32_0 = arith.constant 0 : i32
    %c0_i32_1 = arith.constant 0 : i32
    return %c0_i32, %c0_i32_0 : i32, i32
  }
  func.func @transform_3(%arg0: i32, %arg1: memref<1xi32, #tpu.memory_space<smem>>) -> (i32, i32) {
    %c0_i32 = arith.constant 0 : i32
    %c0_i32_0 = arith.constant 0 : i32
    %c0_i32_1 = arith.constant 0 : i32
    return %c0_i32, %c0_i32_0 : i32, i32
  }
  func.func @transform_4(%arg0: i32, %arg1: memref<1xi32, #tpu.memory_space<smem>>) -> (i32, i32) {
    %c0_i32 = arith.constant 0 : i32
    %c0_i32_0 = arith.constant 0 : i32
    %c0_i32_1 = arith.constant 0 : i32
    return %c0_i32, %c0_i32_0 : i32, i32
  }
  func.func @transform_5(%arg0: i32, %arg1: memref<1xi32, #tpu.memory_space<smem>>) -> (i32, i32) {
    %c0_i32 = arith.constant 0 : i32
    %c0_i32_0 = arith.constant 0 : i32
    %c0_i32_1 = arith.constant 0 : i32
    return %c0_i32, %c0_i32_0 : i32, i32
  }
  func.func @transform_6(%arg0: i32, %arg1: memref<1xi32, #tpu.memory_space<smem>>) -> (i32, i32) {
    %c0_i32 = arith.constant 0 : i32
    %c0_i32_0 = arith.constant 0 : i32
    %c0_i32_1 = arith.constant 0 : i32
    return %c0_i32, %c0_i32_0 : i32, i32
  }
}

</mosaic_0001>

<bundles_post_ra>
// kernel: tpu_custom_call.1
= control target key start
LH: loop header
LB: loop body
LE: loop exit
PB: predicated region body
PF: predicated region fallthrough
CT: control target
= control target key end

     0   :  { %s12088_s0 = inlined_call_operand.<no memory space> [shape: s32[1], index: 0, kind: input, shape index: {}]   ;;  %s12089_s1 = inlined_call_operand.hbm [shape: f32[500,256], index: 1, kind: input, shape index: {}]   ;;  %s12090_s2 = inlined_call_operand.hbm [shape: f32[256,512], index: 2, kind: input, shape index: {}]   ;;  %s12091_s3 = inlined_call_operand.vmem [shape: f32[1,512], index: 3, kind: input, shape index: {}]   ;;  %s12092_s4 = inlined_call_operand.hbm [shape: f32[512,512], index: 4, kind: input, shape index: {}]   ;;  %s12093_s5 = inlined_call_operand.vmem [shape: f32[1,512], index: 5, kind: input, shape index: {}]   ;;  %s12094_s6 = inlined_call_operand.vmem [shape: f32[256,1], index: 6, kind: input, shape index: {}]   ;;  %s12095_s7 = inlined_call_operand.hbm [shape: f32[1,512], index: 7, kind: output, shape index: {}]  }
   0x1   :  { %12 = sst [smem:[#allocation6]] %s12088_s0 }
   0x2   :  { %13 = vsyncpa [#allocation8], 0 }
   0x3   :  { %15 = vsyncpa [#allocation8 + $0x1], 0 }
   0x4   :  { %16 = vsyncpa [#allocation11], 0 }
   0x5   :  { %17 = vsyncpa [#allocation9], 0  ;;  %s6532_s26 = smov 0   ;;  %s6534_s27 = smov 0  }
   0x6   :  { %s6536_s28 = smov 0   ;;  %s6538_s29 = smov 0  }
   0x7 LB: > { %s6551_s0 = sadd.s32 4294967295, %s6473_s29   ;;  %s6554_s30 = sadd.s32 1, %s6473_s29   ;;  %s6473_s29 = sphi %s6538_s29, %s14371_s29   ;;  %s6469_s28 = sphi %s6536_s28, %s14370_s28   ;;  %s6465_s27 = sphi %s6534_s27, %s14369_s27   ;;  %s6461_s26 = sphi %s6532_s26, %s14368_s26  }
   0x8   : > { %s27_s8 = ssub.s32 %s6473_s29, %s6554_s30  ;;  %s30_s9 = sadd.s32 1, %s6469_s28 }
   0x9   : > { %p28_p0 = scmp.eq.s32.totalorder %s27_s8, 0  ;;  %p37_p1 = scmp.ne.s32.totalorder %s6469_s28, %s6465_s27 }
   0xa   : > { %p38_p2 = scmp.eq.s32.totalorder %s6473_s29, 0  ;;  %p43_p3 = scmp.ne.s32.totalorder %s6465_s27, %s6461_s26 }
   0xb   : > { %s6564_s10 = scalar_select %p28_p0, %s6469_s28, %s30_s9  }
   0xc   : > { %p6566_p4 = por %p38_p2, %p37_p1  ;;  %p44_p5 = scmp.eq.s32.totalorder %s6551_s0, 0 }
   0xd   : > { %p5077_p6 = scmp.ge.s32.totalorder %s6473_s29, 1  ;;  %p180_p7 = scmp.lt.s32.totalorder %s6473_s29, 3 }
   0xe   : > { %p6575_p8 = por %p44_p5, %p43_p3  ;;  %s191_s16 = sshll.u32 %s12090_s2, 4  ;;  %s192_s16 = int_to_ptr.hbm [resolvable:$true] %s191_s16 }
   0xf   : > { %p6580_p10 = pnand %p5077_p6, %p180_p7  ;;  %s6475_s17 = smov [#allocation10]  }
  0x10   : > { %s193_s18 = sshll.u32 %s6475_s17, 4  ;;  %s208_s21 = sshll.u32 %s12092_s4, 4  ;;  %s194_s18 = int_to_ptr.vmem [resolvable:$true] %s193_s18  ;;  %s209_s21 = int_to_ptr.hbm [resolvable:$true] %s208_s21 }
  0x11   : > { %p5855_p11 = pneg %p6580_p10  ;;  %s6476_s22 = smov 512  }
  0x12   : > { %s6477_s23 = smov 32   ;;  %s6478_s24 = smov [#allocation12]  }
  0x13   : > { %p5856_p12 = pnand %p5855_p11, %p44_p5  ;;  %s210_s25 = sshll.u32 %s6478_s24, 4  ;;  %s211_s25 = int_to_ptr.vmem [resolvable:$true] %s210_s25 }
  0x14   : > { %p5080_p13 = scmp.ge.s32.totalorder %s6473_s29, 2 }
  0x15   : > { %5858 = dma.hbm_to_vmem [thread:$0]  (!%p5856_p12), %s192_s16, 16384, %s194_s18, [#allocation11], %s6476_s22, %s6476_s22, %s6477_s23  }
  0x16   : > { %5861 = dma.hbm_to_vmem [thread:$0]  (!%p5856_p12), %s209_s21, 32768, %s211_s25, [#allocation11], %s6476_s22, %s6476_s22, %s6477_s23  }
  0x17   : > { %226 = sbr.rel (%p5080_p13) target bundleno = 64 (0x40), region = 36 }
  0x1c   : > { %229 = sbr.rel (!%p6566_p4) target bundleno = 64 (0x40), region = 40  ;;  %s230_s26 = sand.u32 (%p6566_p4), 1, %s6469_s28  }
  0x1d   : > { %s5082_s8 = sshll.u32 (%p6566_p4), %s6473_s29, 5  ;;  %s5081_s9 = sshll.u32 (%p6566_p4), %s230_s26, 9 }
  0x1e   : > { %s236_s14 = ssub.s32 (%p6566_p4), 63, %s5082_s8  ;;  %s6602_s18 = scalar_lea.sflag (%p6566_p4), [#allocation8], %s230_s26 }
  0x1f   : > { %p237_p0 = scmp.lt.s32.totalorder (%p6566_p4), %s236_s14, 32  ;;  %s234_s19 = scalar_lea.vmem (%p6566_p4), [#allocation7], %s5081_s9 }
  0x21   : > { %s14373_s14 = smov (!%p237_p0, %s236_s14), 32 }
  0x22   : > { %s5741_s15 = sshll.u32 %s14373_s14, 4 }
  0x23   : > { %s241_s16 = ssub.s32 512, %s5741_s15 }
  0x24   : > { %s242_s17 = sshll.u32 %s241_s16, 4 }
  0x25   : > { %243 = vsyncadd %s6602_s18, %s242_s17  ;;  %p6605_p1 = scmp.ne.s32.totalorder %s5741_s15, 0  ;;  %s5743_s20 = sshll.u32 %s6473_s29, 9 }
  0x26   : > { %s247_s23 = scalar_lea.hbm %s12089_s1, %s5743_s20  ;;  %s6613_s24 = sshll.u32 %s234_s19, 4  ;;  %s252_s24 = int_to_ptr.vmem [resolvable:$true] %s6613_s24 }
  0x27   : > { %s249_s25 = sshll.u32 %s247_s23, 4  ;;  %s5089_s26 = sshll.u32 %s14373_s14, 8  ;;  %s6616_s25 = int_to_ptr.hbm [resolvable:$true] %s249_s25 }
  0x28   : > { %s6364_s8 = sshra.s32 %s6616_s25, 4  ;;  %s6366_s9 = sshrl.u32 %s5089_s26, 4  ;;  %s6365_s8 = int_to_ptr.hbm [resolvable:$true] %s6364_s8 }
  0x29   : > { %s6371_s15 = scalar_lea.hbm %s6365_s8, %s6366_s9  ;;  %s6375_s17 = scalar_lea.hbm %s12089_s1, 1008 }
  0x2a   : > { %p6372_p2 = scmp.ne.s32.totalorder %s6365_s8, %s6371_s15  ;;  %p6376_p6 = scmp.lt.s32.totalorder %s6365_s8, %s12089_s1 }
  0x2b   : > { %p6377_p7 = scmp.lt.s32.totalorder %s6375_s17, %s6371_s15 }
  0x2c   : > { %p6373_p3 = pnand %p6372_p2, %p6605_p1 }
  0x2d   : > { %p6378_p11 = por %p6377_p7, %p6376_p6 }
  0x2e   : > { %p6374_p4 = pneg %p6373_p3 }
  0x30   : > { %p6379_p12 = pnand %p6378_p11, %p6374_p4 }
  0x32   : > { %6382 = shalt.err (!%p6379_p12)
}
  0x33   : > { %s6383_s21 = sshra.s32 %s252_s24, 4  ;;  %s6479_s23 = smov [#allocation7]   ;;  %s6384_s21 = int_to_ptr.vmem [resolvable:$true] %s6383_s21 }
  0x34   : > { %s6390_s22 = scalar_lea.vmem %s6384_s21, %s6366_s9  ;;  %s6394_s29 = scalar_lea.vmem %s6479_s23, 1024 }
  0x35   : > { %p6391_p13 = scmp.ne.s32.totalorder %s6384_s21, %s6390_s22  ;;  %p6396_p3 = scmp.lt.s32.totalorder %s6394_s29, %s6390_s22 }
  0x37   : > { %p6392_p0 = pnand %p6391_p13, %p6605_p1 }
  0x39   : > { %p6393_p2 = pneg %p6392_p0 }
  0x3b   : > { %p6398_p9 = pnand %p6396_p3, %p6393_p2 }
  0x3d   : > { %6401 = shalt.err (!%p6398_p9)
}
  0x3e   : > { %s6480_s8 = smov 256   ;;  %s6481_s15 = smov 16  }
  0x3f   : > { %257 = dma.hbm_to_vmem [thread:$0]  (%p6605_p1), %s6616_s25, %s5089_s26, %s252_s24, %s6602_s18, %s6480_s8, %s6480_s8, %s6481_s15  }
  0x40 PF: > { %263 = sbr.rel (%p6580_p10) target bundleno = 2504 (0x9c8), region = 44 }
  0x45   : > { %s265_s9 = sand.u32 1, %s6465_s27  }
  0x46   : > { %s5091_s16 = sshll.u32 %s265_s9, 9  ;;  %s266_s17 = scalar_lea.sflag [#allocation8], %s265_s9 }
  0x47   : > { %s6645_s19 = scalar_lea.vmem [#allocation7], %s5091_s16 }
  0x48   : > { %6448 = dma.done.wait (%p6575_p8), %s266_s17, 8192  }
  0x49   : > { %6450 = vsyncadd (%p6575_p8), %s266_s17, 4294959104 }
  0x4a   : > { %6452 = dma.done.wait (%p44_p5), [#allocation11], 49152  }
  0x4b   : > { %6454 = vsyncadd (%p44_p5), [#allocation11], 4294918144  ;;  %p12644_p9 = scmp.ne.s32.totalorder %s6551_s0, 0 }
  0x4d   : > { %313 = sbr.rel (%p12644_p9) target bundleno = 86 (0x56), region = 60 }
  0x52   : > { %vm314_vm0 = vcmask 0   ;;  %v317_v0 = vlaneseq  ;;  %v6482_v1 = vmov -inf   ;;  %v6483_v2 = vmov 0.0  }
  0x53   : > { %315 = vst.msk [vmem:[#allocation2] sm:$0x1] %vm314_vm0, %v6482_v1 }
  0x54   : > { %316 = vst.msk [vmem:[#allocation3] sm:$0x1] %vm314_vm0, %v6483_v2  ;;  %vm319_vm1 = vcmp.lt.s32.totalorder %v317_v0, 512 }
  0x55   : > { %321 = vst.msk [vmem:[#allocation4] sm:$0xf] %vm319_vm1, %v6483_v2 }
  0x56 PF: > { %v446_v3 = vld [vmem:[#allocation10 + $0x1e0] sm:$0xff]  ;;  %v6661_v36 = vld [vmem:[%s6645_s19 + $0x170] sm:$0xff]  ;;  %v6664_v37 = vld [vmem:[%s6645_s19 + $0x8] sm:$0xff]  ;;  %s1623_s14 = sld [smem:[#allocation6]]  ;;  %s5095_s18 = sshll.u32 %s6551_s0, 8 }
  0x57   : > { %v510_v4 = vld [vmem:[#allocation10 + $0x3e0] sm:$0xff]  ;;  %524 = vmatpush.msra.mxu0 %v446_v3  ;;  %5744 = vmatpush.msra.mxu2 %v446_v3  ;;  %v6667_v38 = vld [vmem:[%s6645_s19 + $0x178] sm:$0xff]  ;;  %v447_v39 = vld [vmem:[#allocation10 + $0x1e8] sm:$0xff]  ;;  %p5736_p5 = scmp.ne.s32.totalorder %s6551_s0, 1 }
  0x58   : > { %v442_v5 = vld [vmem:[#allocation10 + $0x1c0] sm:$0xff]  ;;  %637 = vmatpush.msra.mxu1 %v510_v4  ;;  %5760 = vmatpush.msra.mxu3 %v510_v4  ;;  %v511_v40 = vld [vmem:[#allocation10 + $0x3e8] sm:$0xff]  ;;  %v448_v43 = vld [vmem:[#allocation10 + $0x1f0] sm:$0xff] }
  0x59   : > { %v506_v6 = vld [vmem:[#allocation10 + $0x3c0] sm:$0xff]  ;;  %525 = vmatpush.msra.mxu0 %v442_v5  ;;  %5745 = vmatpush.msra.mxu2 %v442_v5  ;;  %v443_v41 = vld [vmem:[#allocation10 + $0x1c8] sm:$0xff]  ;;  %v512_v44 = vld [vmem:[#allocation10 + $0x3f0] sm:$0xff] }
  0x5a   : > { %v438_v7 = vld [vmem:[#allocation10 + $0x1a0] sm:$0xff]  ;;  %638 = vmatpush.msra.mxu1 %v506_v6  ;;  %5761 = vmatpush.msra.mxu3 %v506_v6  ;;  %v507_v42 = vld [vmem:[#allocation10 + $0x3c8] sm:$0xff]  ;;  %v6674_v47 = vld [vmem:[%s6645_s19 + $0x10] sm:$0xff] }
  0x5b   : > { %v502_v8 = vld [vmem:[#allocation10 + $0x3a0] sm:$0xff]  ;;  %526 = vmatpush.msra.mxu0 %v438_v7  ;;  %5746 = vmatpush.msra.mxu2 %v438_v7  ;;  %v439_v45 = vld [vmem:[#allocation10 + $0x1a8] sm:$0xff]  ;;  %v6680_v49 = vld [vmem:[%s6645_s19 + $0x18] sm:$0xff] }
  0x5c   : > { %v434_v9 = vld [vmem:[#allocation10 + $0x180] sm:$0xff]  ;;  %639 = vmatpush.msra.mxu1 %v502_v8  ;;  %5762 = vmatpush.msra.mxu3 %v502_v8  ;;  %v503_v46 = vld [vmem:[#allocation10 + $0x3a8] sm:$0xff]  ;;  %v6693_v58 = vld [vmem:[%s6645_s19 + $0x190] sm:$0xff] }
  0x5d   : > { %v498_v10 = vld [vmem:[#allocation10 + $0x380] sm:$0xff]  ;;  %527 = vmatpush.msra.mxu0 %v434_v9  ;;  %5747 = vmatpush.msra.mxu2 %v434_v9  ;;  %v6683_v50 = vld [vmem:[%s6645_s19 + $0x188] sm:$0xff]  ;;  %v6699_v60 = vld [vmem:[%s6645_s19 + $0x198] sm:$0xff] }
  0x5e   : > { %v430_v11 = vld [vmem:[#allocation10 + $0x160] sm:$0xff]  ;;  %640 = vmatpush.msra.mxu1 %v498_v10  ;;  %5763 = vmatpush.msra.mxu3 %v498_v10  ;;  %v435_v51 = vld [vmem:[#allocation10 + $0x188] sm:$0xff]  ;;  %v444_v1 = vld [vmem:[#allocation10 + $0x1d0] sm:$0xff] }
  0x5f   : > { %v494_v12 = vld [vmem:[#allocation10 + $0x360] sm:$0xff]  ;;  %528 = vmatpush.msra.mxu0 %v430_v11  ;;  %5748 = vmatpush.msra.mxu2 %v430_v11  ;;  %v499_v52 = vld [vmem:[#allocation10 + $0x388] sm:$0xff]  ;;  %v508_v2 = vld [vmem:[#allocation10 + $0x3d0] sm:$0xff] }
  0x60   : > { %v426_v13 = vld [vmem:[#allocation10 + $0x140] sm:$0xff]  ;;  %641 = vmatpush.msra.mxu1 %v494_v12  ;;  %5764 = vmatpush.msra.mxu3 %v494_v12  ;;  %v431_v53 = vld [vmem:[#allocation10 + $0x168] sm:$0xff]  ;;  %v6706_v5 = vld [vmem:[%s6645_s19 + $0x30] sm:$0xff] }
  0x61   : > { %v490_v14 = vld [vmem:[#allocation10 + $0x340] sm:$0xff]  ;;  %529 = vmatpush.msra.mxu0 %v426_v13  ;;  %5749 = vmatpush.msra.mxu2 %v426_v13  ;;  %v495_v54 = vld [vmem:[#allocation10 + $0x368] sm:$0xff]  ;;  %v6712_v7 = vld [vmem:[%s6645_s19 + $0x38] sm:$0xff] }
  0x62   : > { %v422_v15 = vld [vmem:[#allocation10 + $0x120] sm:$0xff]  ;;  %642 = vmatpush.msra.mxu1 %v490_v14  ;;  %5765 = vmatpush.msra.mxu3 %v490_v14  ;;  %v427_v55 = vld [vmem:[#allocation10 + $0x148] sm:$0xff]  ;;  %v440_v13 = vld [vmem:[#allocation10 + $0x1b0] sm:$0xff] }
  0x63   : > { %v486_v16 = vld [vmem:[#allocation10 + $0x320] sm:$0xff]  ;;  %530 = vmatpush.msra.mxu0 %v422_v15  ;;  %5750 = vmatpush.msra.mxu2 %v422_v15  ;;  %v491_v56 = vld [vmem:[#allocation10 + $0x348] sm:$0xff]  ;;  %v504_v14 = vld [vmem:[#allocation10 + $0x3b0] sm:$0xff] }
  0x64   : > { %v418_v17 = vld [vmem:[#allocation10 + $0x100] sm:$0xff]  ;;  %643 = vmatpush.msra.mxu1 %v486_v16  ;;  %5766 = vmatpush.msra.mxu3 %v486_v16  ;;  %v6696_v59 = vld [vmem:[%s6645_s19 + $0x28] sm:$0xff] }
  0x65   : > { %v482_v18 = vld [vmem:[#allocation10 + $0x300] sm:$0xff]  ;;  %531 = vmatpush.msra.mxu0 %v418_v17  ;;  %5751 = vmatpush.msra.mxu2 %v418_v17  ;;  %v423_v61 = vld [vmem:[#allocation10 + $0x128] sm:$0xff] }
  0x66   : > { %v414_v19 = vld [vmem:[#allocation10 + $0xe0] sm:$0xff]  ;;  %644 = vmatpush.msra.mxu1 %v482_v18  ;;  %5767 = vmatpush.msra.mxu3 %v482_v18  ;;  %v487_v62 = vld [vmem:[#allocation10 + $0x328] sm:$0xff]  ;;  %v6725_v18 = vld [vmem:[%s6645_s19 + $0x1b0] sm:$0xff] }
  0x67   : > { %v478_v20 = vld [vmem:[#allocation10 + $0x2e0] sm:$0xff]  ;;  %532 = vmatpush.msra.mxu0 %v414_v19  ;;  %5752 = vmatpush.msra.mxu2 %v414_v19  ;;  %v419_v63 = vld [vmem:[#allocation10 + $0x108] sm:$0xff]  ;;  %12645 = vst [vmem:[#allocation17_spill] sm:$0xff] %v6725_v18 }
  0x68   : > { %v410_v21 = vld [vmem:[#allocation10 + $0xc0] sm:$0xff]  ;;  %645 = vmatpush.msra.mxu1 %v478_v20  ;;  %5768 = vmatpush.msra.mxu3 %v478_v20  ;;  %v483_v0 = vld [vmem:[#allocation10 + $0x308] sm:$0xff]  ;;  %v6731_v20 = vld [vmem:[%s6645_s19 + $0x1b8] sm:$0xff] }
  0x69   : > { %v474_v22 = vld [vmem:[#allocation10 + $0x2c0] sm:$0xff]  ;;  %533 = vmatpush.msra.mxu0 %v410_v21  ;;  %5753 = vmatpush.msra.mxu2 %v410_v21  ;;  %v415_v3 = vld [vmem:[#allocation10 + $0xe8] sm:$0xff]  ;;  %12646 = vst [vmem:[#allocation18_spill] sm:$0xff] %v6731_v20 }
  0x6a   : > { %v406_v23 = vld [vmem:[#allocation10 + $0xa0] sm:$0xff]  ;;  %646 = vmatpush.msra.mxu1 %v474_v22  ;;  %5769 = vmatpush.msra.mxu3 %v474_v22  ;;  %v479_v4 = vld [vmem:[#allocation10 + $0x2e8] sm:$0xff] }
  0x6b   : > { %v470_v24 = vld [vmem:[#allocation10 + $0x2a0] sm:$0xff]  ;;  %534 = vmatpush.msra.mxu0 %v406_v23  ;;  %5754 = vmatpush.msra.mxu2 %v406_v23  ;;  %v6715_v8 = vld [vmem:[%s6645_s19 + $0x1a8] sm:$0xff] }
  0x6c   : > { %v402_v25 = vld [vmem:[#allocation10 + $0x80] sm:$0xff]  ;;  %647 = vmatpush.msra.mxu1 %v470_v24  ;;  %5770 = vmatpush.msra.mxu3 %v470_v24  ;;  %v411_v9 = vld [vmem:[#allocation10 + $0xc8] sm:$0xff] }
  0x6d   : > { %v466_v26 = vld [vmem:[#allocation10 + $0x280] sm:$0xff]  ;;  %535 = vmatpush.msra.mxu0 %v402_v25  ;;  %5755 = vmatpush.msra.mxu2 %v402_v25  ;;  %v475_v10 = vld [vmem:[#allocation10 + $0x2c8] sm:$0xff]  ;;  %v436_v25 = vld [vmem:[#allocation10 + $0x190] sm:$0xff] }
  0x6e   : > { %v398_v27 = vld [vmem:[#allocation10 + $0x60] sm:$0xff]  ;;  %648 = vmatpush.msra.mxu1 %v466_v26  ;;  %5771 = vmatpush.msra.mxu3 %v466_v26  ;;  %v407_v11 = vld [vmem:[#allocation10 + $0xa8] sm:$0xff]  ;;  %v500_v26 = vld [vmem:[#allocation10 + $0x390] sm:$0xff] }
  0x6f   : > { %v462_v28 = vld [vmem:[#allocation10 + $0x260] sm:$0xff]  ;;  %536 = vmatpush.msra.mxu0 %v398_v27  ;;  %5756 = vmatpush.msra.mxu2 %v398_v27  ;;  %v471_v12 = vld [vmem:[#allocation10 + $0x2a8] sm:$0xff] }
  0x70   : > { %v394_v29 = vld [vmem:[#allocation10 + $0x40] sm:$0xff]  ;;  %649 = vmatpush.msra.mxu1 %v462_v28  ;;  %5772 = vmatpush.msra.mxu3 %v462_v28  ;;  %v403_v15 = vld [vmem:[#allocation10 + $0x88] sm:$0xff] }
  0x71   : > { %v458_v30 = vld [vmem:[#allocation10 + $0x240] sm:$0xff]  ;;  %537 = vmatpush.msra.mxu0 %v394_v29  ;;  %5757 = vmatpush.msra.mxu2 %v394_v29  ;;  %v467_v16 = vld [vmem:[#allocation10 + $0x288] sm:$0xff]  ;;  %v6738_v29 = vld [vmem:[%s6645_s19 + $0x50] sm:$0xff] }
  0x72   : > { %v390_v31 = vld [vmem:[#allocation10 + $0x20] sm:$0xff]  ;;  %650 = vmatpush.msra.mxu1 %v458_v30  ;;  %5773 = vmatpush.msra.mxu3 %v458_v30  ;;  %v6728_v19 = vld [vmem:[%s6645_s19 + $0x48] sm:$0xff] }
  0x73   : > { %v454_v32 = vld [vmem:[#allocation10 + $0x220] sm:$0xff]  ;;  %538 = vmatpush.msra.mxu0 %v390_v31  ;;  %5758 = vmatpush.msra.mxu2 %v390_v31  ;;  %v399_v21 = vld [vmem:[#allocation10 + $0x68] sm:$0xff]  ;;  %v6744_v31 = vld [vmem:[%s6645_s19 + $0x58] sm:$0xff] }
  0x74   : > { %v386_v33 = vld [vmem:[#allocation10] sm:$0xff]  ;;  %651 = vmatpush.msra.mxu1 %v454_v32  ;;  %5774 = vmatpush.msra.mxu3 %v454_v32  ;;  %v463_v22 = vld [vmem:[#allocation10 + $0x268] sm:$0xff] }
  0x75   : > { %v450_v34 = vld [vmem:[#allocation10 + $0x200] sm:$0xff]  ;;  %539 = vmatpush.msra.mxu0 %v386_v33  ;;  %5759 = vmatpush.msra.mxu2 %v386_v33  ;;  %v395_v23 = vld [vmem:[#allocation10 + $0x48] sm:$0xff] }
  0x76   : > { %v6658_v35 = vld [vmem:[%s6645_s19] sm:$0xff]  ;;  %652 = vmatpush.msra.mxu1 %v450_v34  ;;  %5775 = vmatpush.msra.mxu3 %v450_v34  ;;  %v459_v24 = vld [vmem:[#allocation10 + $0x248] sm:$0xff] }
  0x77   : > { %540 = vmatmul.f32.vlgmr.msra.gmra.mxu0 %v6658_v35  ;;  %609 = vmatmul.f32.vlgmr.msra.gmra.mxu2 %v6661_v36  ;;  %v6677_v48 = vld [vmem:[%s6645_s19 + $0x180] sm:$0xff]  ;;  %v391_v27 = vld [vmem:[#allocation10 + $0x28] sm:$0xff] }
  0x78   : > { %653 = vmatmul.f32.vlgmr.msra.gmra.mxu1 %v6664_v37  ;;  %722 = vmatmul.f32.vlgmr.msra.gmra.mxu3 %v6667_v38  ;;  %v6690_v57 = vld [vmem:[%s6645_s19 + $0x20] sm:$0xff]  ;;  %v455_v28 = vld [vmem:[#allocation10 + $0x228] sm:$0xff] }
  0x79   : > { %750 = vmatpush.msra.mxu2 %v447_v39  ;;  %863 = vmatpush.msra.mxu3 %v511_v40  ;;  %v6709_v6 = vld [vmem:[%s6645_s19 + $0x1a0] sm:$0xff]  ;;  %v6747_v32 = vld [vmem:[%s6645_s19 + $0x1c8] sm:$0xff]  ;;  %v6757_v40 = vld [vmem:[%s6645_s19 + $0x1d0] sm:$0xff] }
  0x7a   : > { %976 = vmatpush.msrb.mxu0 %v448_v43  ;;  %1089 = vmatpush.msrb.mxu1 %v512_v44  ;;  %v6722_v17 = vld [vmem:[%s6645_s19 + $0x40] sm:$0xff]  ;;  %12648 = vst [vmem:[#allocation20_spill] sm:$0xff] %v6747_v32  ;;  %v387_v33 = vld [vmem:[#allocation10 + $0x8] sm:$0xff]  ;;  %v432_v43 = vld [vmem:[#allocation10 + $0x170] sm:$0xff] }
  0x7b   : > { %751 = vmatpush.msra.mxu2 %v443_v41  ;;  %864 = vmatpush.msra.mxu3 %v507_v42  ;;  %v6741_v30 = vld [vmem:[%s6645_s19 + $0x1c0] sm:$0xff]  ;;  %v451_v34 = vld [vmem:[#allocation10 + $0x208] sm:$0xff]  ;;  %12649 = vst [vmem:[#allocation21_spill] sm:$0xff] %v6757_v40  ;;  %v6763_v42 = vld [vmem:[%s6645_s19 + $0x1d8] sm:$0xff] }
  0x7c   : > { %977 = vmatpush.msrb.mxu0 %v444_v1  ;;  %1090 = vmatpush.msrb.mxu1 %v508_v2  ;;  %12647 = vst [vmem:[#allocation19_spill] sm:$0xff] %v6741_v30  ;;  %v6754_v39 = vld [vmem:[%s6645_s19 + $0x60] sm:$0xff]  ;;  %v6760_v41 = vld [vmem:[%s6645_s19 + $0x68] sm:$0xff]  ;;  %v496_v44 = vld [vmem:[#allocation10 + $0x370] sm:$0xff] }
  0x7d   : > { %752 = vmatpush.msra.mxu2 %v439_v45  ;;  %865 = vmatpush.msra.mxu3 %v503_v46  ;;  %12650 = vst [vmem:[#allocation22_spill] sm:$0xff] %v6763_v42  ;;  %v6770_v45 = vld [vmem:[%s6645_s19 + $0x70] sm:$0xff]  ;;  %v6773_v46 = vld [vmem:[%s6645_s19 + $0x1e0] sm:$0xff]  ;;  %v449_v1 = vld [vmem:[#allocation10 + $0x1f8] sm:$0xff] }
  0x7e   : > { %978 = vmatpush.msrb.mxu0 %v440_v13  ;;  %1091 = vmatpush.msrb.mxu1 %v504_v14  ;;  %12651 = vst [vmem:[#allocation23_spill] sm:$0xff] %v6773_v46  ;;  %v513_v2 = vld [vmem:[#allocation10 + $0x3f8] sm:$0xff]  ;;  %v6812_v13 = vld [vmem:[%s6645_s19 + $0xa0] sm:$0xff]  ;;  %v6815_v14 = vld [vmem:[%s6645_s19 + $0xa8] sm:$0xff] }
  0x7f   : > { %543 = vmatmul.f32.gmra.mxu0 %v6674_v47  ;;  %612 = vmatmul.f32.gmra.mxu2 %v6677_v48 }
  0x80   : > { %656 = vmatmul.f32.gmra.mxu1 %v6680_v49  ;;  %725 = vmatmul.f32.gmra.mxu3 %v6683_v50 }
  0x81   : > { %753 = vmatpush.msra.mxu2 %v435_v51  ;;  %866 = vmatpush.msra.mxu3 %v499_v52  ;;  %v6776_v51 = vld [vmem:[%s6645_s19 + $0x78] sm:$0xff]  ;;  %v6779_v52 = vld [vmem:[%s6645_s19 + $0x1e8] sm:$0xff] }
  0x82   : > { %979 = vmatpush.msrb.mxu0 %v436_v25  ;;  %1092 = vmatpush.msrb.mxu1 %v500_v26  ;;  %12652 = vst [vmem:[#allocation24_spill] sm:$0xff] %v6779_v52  ;;  %v6832_v25 = vld [vmem:[%s6645_s19 + $0xc0] sm:$0xff]  ;;  %v6835_v26 = vld [vmem:[%s6645_s19 + $0xc8] sm:$0xff] }
  0x83   : > { %754 = vmatpush.msra.mxu2 %v431_v53  ;;  %867 = vmatpush.msra.mxu3 %v495_v54  ;;  %v428_v53 = vld [vmem:[#allocation10 + $0x150] sm:$0xff] }
  0x84   : > { %980 = vmatpush.msrb.mxu0 %v432_v43  ;;  %1093 = vmatpush.msrb.mxu1 %v496_v44  ;;  %v492_v54 = vld [vmem:[#allocation10 + $0x350] sm:$0xff]  ;;  %v433_v43 = vld [vmem:[#allocation10 + $0x178] sm:$0xff]  ;;  %v6852_v44 = vld [vmem:[%s6645_s19 + $0xe0] sm:$0xff] }
  0x85   : > { %755 = vmatpush.msra.mxu2 %v427_v55  ;;  %868 = vmatpush.msra.mxu3 %v491_v56  ;;  %v6786_v55 = vld [vmem:[%s6645_s19 + $0x80] sm:$0xff]  ;;  %v6789_v56 = vld [vmem:[%s6645_s19 + $0x1f0] sm:$0xff] }
  0x86   : > { %981 = vmatpush.msrb.mxu0 %v428_v53  ;;  %1094 = vmatpush.msrb.mxu1 %v492_v54  ;;  %12653 = vst [vmem:[#allocation25_spill] sm:$0xff] %v6789_v56  ;;  %v6855_v53 = vld [vmem:[%s6645_s19 + $0xe8] sm:$0xff]  ;;  %v497_v54 = vld [vmem:[#allocation10 + $0x378] sm:$0xff] }
  0x87   : > { %546 = vmatmul.f32.gmra.mxu0 %v6690_v57  ;;  %615 = vmatmul.f32.gmra.mxu2 %v6693_v58 }
  0x88   : > { %659 = vmatmul.f32.gmra.mxu1 %v6696_v59  ;;  %728 = vmatmul.f32.gmra.mxu3 %v6699_v60 }
  0x89   : > { %756 = vmatpush.msra.mxu2 %v423_v61  ;;  %869 = vmatpush.msra.mxu3 %v487_v62  ;;  %v6792_v61 = vld [vmem:[%s6645_s19 + $0x88] sm:$0xff]  ;;  %v6795_v62 = vld [vmem:[%s6645_s19 + $0x1f8] sm:$0xff] }
  0x8a   : > { %12654 = vst [vmem:[#allocation26_spill] sm:$0xff] %v6795_v62 }
  0x8b   : > { %757 = vmatpush.msra.mxu2 %v419_v63  ;;  %870 = vmatpush.msra.mxu3 %v483_v0  ;;  %v6802_v63 = vld [vmem:[%s6645_s19 + $0x90] sm:$0xff]  ;;  %v6805_v0 = vld [vmem:[%s6645_s19 + $0x98] sm:$0xff] }
  0x8d   : > { %758 = vmatpush.msra.mxu2 %v415_v3  ;;  %871 = vmatpush.msra.mxu3 %v479_v4  ;;  %v445_v3 = vld [vmem:[#allocation10 + $0x1d8] sm:$0xff] }
  0x8e   : > { %v509_v4 = vld [vmem:[#allocation10 + $0x3d8] sm:$0xff] }
  0x8f   : > { %549 = vmatmul.f32.gmra.mxu0 %v6706_v5  ;;  %618 = vmatmul.f32.gmra.mxu2 %v6709_v6 }
  0x90   : > { %662 = vmatmul.f32.gmra.mxu1 %v6712_v7  ;;  %731 = vmatmul.f32.gmra.mxu3 %v6715_v8 }
  0x91   : > { %759 = vmatpush.msra.mxu2 %v411_v9  ;;  %872 = vmatpush.msra.mxu3 %v475_v10  ;;  %v424_v9 = vld [vmem:[#allocation10 + $0x130] sm:$0xff] }
  0x92   : > { %v488_v10 = vld [vmem:[#allocation10 + $0x330] sm:$0xff]  ;;  %982 = vmatpush.msrb.mxu0 %v424_v9 }
  0x93   : > { %760 = vmatpush.msra.mxu2 %v407_v11  ;;  %873 = vmatpush.msra.mxu3 %v471_v12  ;;  %v441_v11 = vld [vmem:[#allocation10 + $0x1b8] sm:$0xff]  ;;  %v408_v9 = vld [vmem:[#allocation10 + $0xb0] sm:$0xff] }
  0x94   : > { %1095 = vmatpush.msrb.mxu1 %v488_v10  ;;  %v505_v12 = vld [vmem:[#allocation10 + $0x3b8] sm:$0xff]  ;;  %v472_v10 = vld [vmem:[#allocation10 + $0x2b0] sm:$0xff] }
  0x95   : > { %761 = vmatpush.msra.mxu2 %v403_v15  ;;  %874 = vmatpush.msra.mxu3 %v467_v16  ;;  %v420_v15 = vld [vmem:[#allocation10 + $0x110] sm:$0xff] }
  0x96   : > { %v484_v16 = vld [vmem:[#allocation10 + $0x310] sm:$0xff]  ;;  %983 = vmatpush.msrb.mxu0 %v420_v15 }
  0x97   : > { %552 = vmatmul.f32.gmra.mxu0 %v6722_v17  ;;  %621 = vmatmul.f32.gmra.mxu2 %v6725_v18  ;;  %v481_v18 = vld [vmem:[#allocation10 + $0x2f8] sm:$0xff] }
  0x98   : > { %665 = vmatmul.f32.gmra.mxu1 %v6728_v19  ;;  %734 = vmatmul.f32.gmra.mxu3 %v6731_v20  ;;  %v6989_v20 = vld [vmem:[%s6645_s19 + $0x168] sm:$0xff] }
  0x99   : > { %762 = vmatpush.msra.mxu2 %v399_v21  ;;  %875 = vmatpush.msra.mxu3 %v463_v22  ;;  %v6822_v21 = vld [vmem:[%s6645_s19 + $0xb0] sm:$0xff]  ;;  %v6825_v22 = vld [vmem:[%s6645_s19 + $0xb8] sm:$0xff] }
  0x9a   : > { %1096 = vmatpush.msrb.mxu1 %v484_v16  ;;  %v6879_v16 = vld [vmem:[%s6645_s19 + $0x100] sm:$0xff] }
  0x9b   : > { %763 = vmatpush.msra.mxu2 %v395_v23  ;;  %876 = vmatpush.msra.mxu3 %v459_v24  ;;  %v437_v23 = vld [vmem:[#allocation10 + $0x198] sm:$0xff] }
  0x9c   : > { %v501_v24 = vld [vmem:[#allocation10 + $0x398] sm:$0xff] }
  0x9d   : > { %764 = vmatpush.msra.mxu2 %v391_v27  ;;  %877 = vmatpush.msra.mxu3 %v455_v28  ;;  %v416_v27 = vld [vmem:[#allocation10 + $0xf0] sm:$0xff] }
  0x9e   : > { %v480_v28 = vld [vmem:[#allocation10 + $0x2f0] sm:$0xff]  ;;  %984 = vmatpush.msrb.mxu0 %v416_v27 }
  0x9f   : > { %555 = vmatmul.f32.gmra.mxu0 %v6738_v29  ;;  %624 = vmatmul.f32.gmra.mxu2 %v6741_v30 }
  0xa0   : > { %668 = vmatmul.f32.gmra.mxu1 %v6744_v31  ;;  %737 = vmatmul.f32.gmra.mxu3 %v6747_v32 }
  0xa1   : > { %765 = vmatpush.msra.mxu2 %v387_v33  ;;  %878 = vmatpush.msra.mxu3 %v451_v34  ;;  %v6842_v33 = vld [vmem:[%s6645_s19 + $0xd0] sm:$0xff]  ;;  %v6845_v34 = vld [vmem:[%s6645_s19 + $0xd8] sm:$0xff] }
  0xa2   : > { %1097 = vmatpush.msrb.mxu1 %v480_v28  ;;  %12655 = vst [vmem:[#allocation27_spill] sm:$0xff] %v6842_v33  ;;  %v493_v28 = vld [vmem:[#allocation10 + $0x358] sm:$0xff] }
  0xa3   : > { %12656 = vst [vmem:[#allocation28_spill] sm:$0xff] %v6845_v34 }
  0xa7   : > { %558 = vmatmul.f32.gmra.mxu0 %v6754_v39  ;;  %627 = vmatmul.f32.gmra.mxu2 %v6757_v40  ;;  %v456_v40 = vld [vmem:[#allocation10 + $0x230] sm:$0xff] }
  0xa8   : > { %671 = vmatmul.f32.gmra.mxu1 %v6760_v41  ;;  %740 = vmatmul.f32.gmra.mxu3 %v6763_v42  ;;  %v392_v42 = vld [vmem:[#allocation10 + $0x30] sm:$0xff] }
  0xaf   : > { %561 = vmatmul.f32.gmra.mxu0 %v6770_v45  ;;  %630 = vmatmul.f32.gmra.mxu2 %v6773_v46  ;;  %v6931_v46 = vld [vmem:[%s6645_s19 + $0x130] sm:$0xff] }
  0xb0   : > { %674 = vmatmul.f32.gmra.mxu1 %v6776_v51  ;;  %743 = vmatmul.f32.gmra.mxu3 %v6779_v52  ;;  %v6921_v52 = vld [vmem:[%s6645_s19 + $0x128] sm:$0xff] }
  0xb7   : > { %564 = vmatmul.f32.gmra.mxu0 %v6786_v55  ;;  %633 = vmatmul.f32.gmra.mxu2 %v6789_v56 }
  0xb8   : > { %677 = vmatmul.f32.gmra.mxu1 %v6792_v61  ;;  %746 = vmatmul.f32.gmra.mxu3 %v6795_v62 }
  0xbf   : > { %567 = vmatmul.f32.gmra.mxu0 %v6802_v63  ;;  %766 = vmatmul.f32.vlgmr.msra.gmra.mxu2 %v6658_v35 }
  0xc0   : > { %680 = vmatmul.f32.gmra.mxu1 %v6805_v0  ;;  %879 = vmatmul.f32.vlgmr.msra.gmra.mxu3 %v6664_v37 }
  0xc1   : > { %1202 = vmatpush.msra.mxu2 %v449_v1  ;;  %1315 = vmatpush.msra.mxu3 %v513_v2  ;;  %v412_v1 = vld [vmem:[#allocation10 + $0xd0] sm:$0xff] }
  0xc2   : > { %v476_v2 = vld [vmem:[#allocation10 + $0x2d0] sm:$0xff]  ;;  %985 = vmatpush.msrb.mxu0 %v412_v1 }
  0xc3   : > { %1203 = vmatpush.msra.mxu2 %v445_v3  ;;  %1316 = vmatpush.msra.mxu3 %v509_v4  ;;  %v6862_v3 = vld [vmem:[%s6645_s19 + $0xf0] sm:$0xff]  ;;  %v6865_v4 = vld [vmem:[%s6645_s19 + $0xf8] sm:$0xff] }
  0xc4   : > { %1098 = vmatpush.msrb.mxu1 %v476_v2  ;;  %986 = vmatpush.msrb.mxu0 %v408_v9  ;;  %v6897_v9 = vld [vmem:[%s6645_s19 + $0x110] sm:$0xff] }
  0xc5   : > { %1204 = vmatpush.msra.mxu2 %v441_v11  ;;  %1317 = vmatpush.msra.mxu3 %v505_v12  ;;  %v429_v11 = vld [vmem:[#allocation10 + $0x158] sm:$0xff] }
  0xc6   : > { %1099 = vmatpush.msrb.mxu1 %v472_v10  ;;  %v6874_v12 = vld [vmem:[%s12091_s3] sm:$0xf] }
  0xc7   : > { %570 = vmatmul.f32.gmra.mxu0 %v6812_v13  ;;  %769 = vmatmul.f32.gmra.mxu2 %v6674_v47  ;;  %v6887_v27 = vperm.slane %v6874_v12, 0 }
  0xc8   : > { %683 = vmatmul.f32.gmra.mxu1 %v6815_v14  ;;  %882 = vmatmul.f32.gmra.mxu3 %v6680_v49 }
  0xc9   : > { %1205 = vmatpush.msra.mxu2 %v437_v23  ;;  %1318 = vmatpush.msra.mxu3 %v501_v24  ;;  %v6884_v24 = vld [vmem:[%s6645_s19 + $0x108] sm:$0xff] }
  0xcb   : > { %1206 = vmatpush.msra.mxu2 %v433_v43  ;;  %1319 = vmatpush.msra.mxu3 %v497_v54 }
  0xcd   : > { %1207 = vmatpush.msra.mxu2 %v429_v11  ;;  %1320 = vmatpush.msra.mxu3 %v493_v28  ;;  %v404_v28 = vld [vmem:[#allocation10 + $0x90] sm:$0xff] }
  0xce   : > { %987 = vmatpush.msrb.mxu0 %v404_v28  ;;  %v400_v28 = vld [vmem:[#allocation10 + $0x70] sm:$0xff] }
  0xcf   : > { %573 = vmatmul.f32.gmra.mxu0 %v6822_v21  ;;  %772 = vmatmul.f32.gmra.mxu2 %v6690_v57 }
  0xd0   : > { %686 = vmatmul.f32.gmra.mxu1 %v6825_v22  ;;  %885 = vmatmul.f32.gmra.mxu3 %v6696_v59 }
  0xd1   : > { %988 = vmatpush.msrb.mxu0 %v400_v28  ;;  %v6938_v28 = vld [vmem:[%s6645_s19 + $0x138] sm:$0xff] }
  0xd7   : > { %576 = vmatmul.f32.gmra.mxu0 %v6832_v25  ;;  %775 = vmatmul.f32.gmra.mxu2 %v6706_v5 }
  0xd8   : > { %689 = vmatmul.f32.gmra.mxu1 %v6835_v26  ;;  %888 = vmatmul.f32.gmra.mxu3 %v6712_v7 }
  0xdf   : > { %579 = vmatmul.f32.gmra.mxu0 %v6842_v33  ;;  %778 = vmatmul.f32.gmra.mxu2 %v6722_v17 }
  0xe0   : > { %692 = vmatmul.f32.gmra.mxu1 %v6845_v34  ;;  %891 = vmatmul.f32.gmra.mxu3 %v6728_v19 }
  0xe7   : > { %582 = vmatmul.f32.gmra.mxu0 %v6852_v44  ;;  %781 = vmatmul.f32.gmra.mxu2 %v6738_v29 }
  0xe8   : > { %695 = vmatmul.f32.gmra.mxu1 %v6855_v53  ;;  %894 = vmatmul.f32.gmra.mxu3 %v6744_v31 }
  0xef   : > { %585 = vmatmul.f32.gmra.mxu0 %v6862_v3  ;;  %784 = vmatmul.f32.gmra.mxu2 %v6754_v39 }
  0xf0   : > { %698 = vmatmul.f32.gmra.mxu1 %v6865_v4  ;;  %897 = vmatmul.f32.gmra.mxu3 %v6760_v41 }
  0xf4   : > { %v6876_v15 = vpop.f32.mrf.mxu0 }
  0xf5   : > { %12657 = vst [vmem:[#allocation29_spill] sm:$0xff] %v6876_v15  ;;  %v6881_v23 = vpop.f32.mrf.mxu1  ;;  %v468_v15 = vld [vmem:[#allocation10 + $0x290] sm:$0xff] }
  0xf6   : > { %12658 = vst [vmem:[#allocation30_spill] sm:$0xff] %v6881_v23  ;;  %v6904_v23 = vld [vmem:[%s6645_s19 + $0x118] sm:$0xff]  ;;  %1100 = vmatpush.msrb.mxu1 %v468_v15 }
  0xf7   : > { %588 = vmatmul.f32.gmra.mxu0 %v6879_v16  ;;  %787 = vmatmul.f32.gmra.mxu2 %v6770_v45  ;;  %v489_v15 = vld [vmem:[#allocation10 + $0x338] sm:$0xff] }
  0xf8   : > { %701 = vmatmul.f32.gmra.mxu1 %v6884_v24  ;;  %900 = vmatmul.f32.gmra.mxu3 %v6776_v51 }
  0xf9   : > { %1321 = vmatpush.msra.mxu3 %v489_v15 }
  0xfa   : > { %v610_v43 = vpop.f32.mrf.mxu2 }
  0xfb   : > { %v611_v54 = vadd.f32 %v610_v43, %v6887_v27  ;;  %v723_v1 = vpop.f32.mrf.mxu3  ;;  %v425_v43 = vld [vmem:[#allocation10 + $0x138] sm:$0xff] }
  0xfc   : > { %v6894_v2 = vpop.f32.mrf.mxu0  ;;  %1208 = vmatpush.msra.mxu2 %v425_v43  ;;  %v464_v43 = vld [vmem:[#allocation10 + $0x270] sm:$0xff] }
  0xfd   : > { %12659 = vst [vmem:[#allocation31_spill] sm:$0xff] %v6894_v2  ;;  %v6899_v10 = vadd.f32 %v723_v1, %v611_v54  ;;  %v6901_v11 = vpop.f32.mrf.mxu1  ;;  %v6914_v2 = vld [vmem:[%s6645_s19 + $0x120] sm:$0xff]  ;;  %1101 = vmatpush.msrb.mxu1 %v464_v43  ;;  %v388_v43 = vld [vmem:[#allocation10 + $0x10] sm:$0xff] }
  0xfe   : > { %12661 = vst [vmem:[#allocation33_spill] sm:$0xff] %v6901_v11 }
  0xff   : > { %12660 = vst [vmem:[#allocation32_spill] sm:$0xff] %v6899_v10  ;;  %591 = vmatmul.f32.gmra.mxu0 %v6897_v9  ;;  %790 = vmatmul.f32.gmra.mxu2 %v6786_v55 }
 0x100   : > { %704 = vmatmul.f32.gmra.mxu1 %v6904_v23  ;;  %903 = vmatmul.f32.gmra.mxu3 %v6792_v61 }
 0x102   : > { %v613_v54 = vpop.f32.mrf.mxu2 }
 0x103   : > { %v614_v1 = vadd.f32 %v613_v54, %v6887_v27  ;;  %v726_v10 = vpop.f32.mrf.mxu3  ;;  %v396_v54 = vld [vmem:[#allocation10 + $0x50] sm:$0xff] }
 0x104   : > { %v6911_v11 = vpop.f32.mrf.mxu0  ;;  %989 = vmatpush.msrb.mxu0 %v396_v54 }
 0x105   : > { %12662 = vst [vmem:[#allocation34_spill] sm:$0xff] %v6911_v11  ;;  %v6916_v62 = vadd.f32 %v726_v10, %v614_v1  ;;  %v6918_v56 = vpop.f32.mrf.mxu1  ;;  %v460_v1 = vld [vmem:[#allocation10 + $0x250] sm:$0xff] }
 0x106   : > { %12664 = vst [vmem:[#allocation36_spill] sm:$0xff] %v6918_v56  ;;  %1102 = vmatpush.msrb.mxu1 %v460_v1  ;;  %990 = vmatpush.msrb.mxu0 %v392_v42  ;;  %v6948_v1 = vld [vmem:[%s6645_s19 + $0x140] sm:$0xff] }
 0x107   : > { %12663 = vst [vmem:[#allocation35_spill] sm:$0xff] %v6916_v62  ;;  %594 = vmatmul.f32.gmra.mxu0 %v6914_v2  ;;  %793 = vmatmul.f32.gmra.mxu2 %v6802_v63 }
 0x108   : > { %707 = vmatmul.f32.gmra.mxu1 %v6921_v52  ;;  %906 = vmatmul.f32.gmra.mxu3 %v6805_v0 }
 0x109   : > { %1103 = vmatpush.msrb.mxu1 %v456_v40  ;;  %991 = vmatpush.msrb.mxu0 %v388_v43  ;;  %v485_v43 = vld [vmem:[#allocation10 + $0x318] sm:$0xff] }
 0x10a   : > { %v616_v10 = vpop.f32.mrf.mxu2  ;;  %1322 = vmatpush.msra.mxu3 %v485_v43  ;;  %v417_v43 = vld [vmem:[#allocation10 + $0xf8] sm:$0xff] }
 0x10b   : > { %v617_v62 = vadd.f32 %v616_v10, %v6887_v27  ;;  %v729_v56 = vpop.f32.mrf.mxu3  ;;  %v452_v10 = vld [vmem:[#allocation10 + $0x210] sm:$0xff] }
 0x10c   : > { %v6928_v11 = vpop.f32.mrf.mxu0  ;;  %1104 = vmatpush.msrb.mxu1 %v452_v10  ;;  %1323 = vmatpush.msra.mxu3 %v481_v18 }
 0x10d   : > { %12665 = vst [vmem:[#allocation37_spill] sm:$0xff] %v6928_v11  ;;  %v6933_v32 = vadd.f32 %v729_v56, %v617_v62  ;;  %v6935_v15 = vpop.f32.mrf.mxu1  ;;  %v421_v56 = vld [vmem:[#allocation10 + $0x118] sm:$0xff]  ;;  %v6955_v11 = vld [vmem:[%s6645_s19 + $0x148] sm:$0xff] }
 0x10e   : > { %12667 = vst [vmem:[#allocation39_spill] sm:$0xff] %v6935_v15  ;;  %1209 = vmatpush.msra.mxu2 %v421_v56 }
 0x10f   : > { %12666 = vst [vmem:[#allocation38_spill] sm:$0xff] %v6933_v32  ;;  %597 = vmatmul.f32.gmra.mxu0 %v6931_v46  ;;  %796 = vmatmul.f32.gmra.mxu2 %v6812_v13 }
 0x110   : > { %710 = vmatmul.f32.gmra.mxu1 %v6938_v28  ;;  %909 = vmatmul.f32.gmra.mxu3 %v6815_v14 }
 0x111   : > { %1210 = vmatpush.msra.mxu2 %v417_v43 }
 0x112   : > { %v619_v62 = vpop.f32.mrf.mxu2 }
 0x113   : > { %v620_v42 = vadd.f32 %v619_v62, %v6887_v27  ;;  %v732_v54 = vpop.f32.mrf.mxu3 }
 0x114   : > { %v6945_v40 = vpop.f32.mrf.mxu0 }
 0x115   : > { %12668 = vst [vmem:[#allocation40_spill] sm:$0xff] %v6945_v40  ;;  %v6950_v32 = vadd.f32 %v732_v54, %v620_v42  ;;  %v6952_v15 = vpop.f32.mrf.mxu1  ;;  %v6965_v54 = vld [vmem:[%s6645_s19 + $0x150] sm:$0xff]  ;;  %v6972_v40 = vld [vmem:[%s6645_s19 + $0x158] sm:$0xff] }
 0x116   : > { %12670 = vst [vmem:[#allocation42_spill] sm:$0xff] %v6952_v15 }
 0x117   : > { %12669 = vst [vmem:[#allocation41_spill] sm:$0xff] %v6950_v32  ;;  %600 = vmatmul.f32.gmra.mxu0 %v6948_v1  ;;  %799 = vmatmul.f32.gmra.mxu2 %v6822_v21 }
 0x118   : > { %713 = vmatmul.f32.gmra.mxu1 %v6955_v11  ;;  %912 = vmatmul.f32.gmra.mxu3 %v6825_v22 }
 0x11a   : > { %v622_v10 = vpop.f32.mrf.mxu2 }
 0x11b   : > { %v623_v56 = vadd.f32 %v622_v10, %v6887_v27  ;;  %v735_v62 = vpop.f32.mrf.mxu3 }
 0x11c   : > { %v6962_v42 = vpop.f32.mrf.mxu0 }
 0x11d   : > { %12671 = vst [vmem:[#allocation43_spill] sm:$0xff] %v6962_v42  ;;  %v6967_v32 = vadd.f32 %v735_v62, %v623_v56  ;;  %v6969_v15 = vpop.f32.mrf.mxu1 }
 0x11e   : > { %12673 = vst [vmem:[#allocation45_spill] sm:$0xff] %v6969_v15 }
 0x11f   : > { %12672 = vst [vmem:[#allocation44_spill] sm:$0xff] %v6967_v32  ;;  %603 = vmatmul.f32.gmra.mxu0 %v6965_v54  ;;  %802 = vmatmul.f32.gmra.mxu2 %v6832_v25  ;;  %v6982_v32 = vld [vmem:[%s6645_s19 + $0x160] sm:$0xff] }
 0x120   : > { %716 = vmatmul.f32.gmra.mxu1 %v6972_v40  ;;  %915 = vmatmul.f32.gmra.mxu3 %v6835_v26 }
 0x122   : > { %v625_v10 = vpop.f32.mrf.mxu2 }
 0x123   : > { %v626_v42 = vadd.f32 %v625_v10, %v6887_v27  ;;  %v738_v56 = vpop.f32.mrf.mxu3 }
 0x124   : > { %v6979_v62 = vpop.f32.mrf.mxu0 }
 0x125   : > { %12674 = vst [vmem:[#allocation46_spill] sm:$0xff] %v6979_v62  ;;  %v6984_v15 = vadd.f32 %v738_v56, %v626_v42  ;;  %v6986_v30 = vpop.f32.mrf.mxu1 }
 0x126   : > { %12676 = vst [vmem:[#allocation48_spill] sm:$0xff] %v6986_v30  ;;  %v413_v30 = vld [vmem:[#allocation10 + $0xd8] sm:$0xff] }
 0x127   : > { %12675 = vst [vmem:[#allocation47_spill] sm:$0xff] %v6984_v15  ;;  %606 = vmatmul.f32.gmra.mxu0 %v6982_v32  ;;  %805 = vmatmul.f32.gmra.mxu2 %v6842_v33 }
 0x128   : > { %719 = vmatmul.f32.gmra.mxu1 %v6989_v20  ;;  %918 = vmatmul.f32.gmra.mxu3 %v6845_v34 }
 0x129   : > { %1211 = vmatpush.msra.mxu2 %v413_v30 }
 0x12a   : > { %v628_v43 = vpop.f32.mrf.mxu2 }
 0x12b   : > { %v629_v10 = vadd.f32 %v628_v43, %v6887_v27  ;;  %v741_v62 = vpop.f32.mrf.mxu3 }
 0x12c   : > { %v6996_v42 = vpop.f32.mrf.mxu0 }
 0x12d   : > { %v6998_v56 = vadd.f32 %v741_v62, %v629_v10  ;;  %v7000_v15 = vpop.f32.mrf.mxu1 }
 0x12e   : > { %12678 = vst [vmem:[#allocation50_spill] sm:$0xff] %v7000_v15  ;;  %v1973_v15 = vld [vmem:[#allocation12 + $0x3e0] sm:$0xff] }
 0x12f   : > { %12677 = vst [vmem:[#allocation49_spill] sm:$0xff] %v6998_v56  ;;  %808 = vmatmul.f32.gmra.mxu2 %v6852_v44  ;;  %992 = vmatmul.f32.vlgmr.msrb.gmra.mxu0 %v6658_v35  ;;  %v477_v35 = vld [vmem:[#allocation10 + $0x2d8] sm:$0xff]  ;;  %v1909_v56 = vld [vmem:[#allocation12 + $0x1e0] sm:$0xff] }
 0x130   : > { %921 = vmatmul.f32.gmra.mxu3 %v6855_v53  ;;  %1105 = vmatmul.f32.vlgmr.msrb.gmra.mxu1 %v6664_v37 }
 0x131   : > { %1324 = vmatpush.msra.mxu3 %v477_v35  ;;  %2115 = vmatpush.msra.mxu0 %v1909_v56 }
 0x132   : > { %v631_v18 = vpop.f32.mrf.mxu2  ;;  %2228 = vmatpush.msra.mxu1 %v1973_v15 }
 0x133   : > { %v632_v43 = vadd.f32 %v631_v18, %v6887_v27  ;;  %v744_v34 = vpop.f32.mrf.mxu3 }
 0x134   : > { %v7007_v33 = vpop.f32.mrf.mxu0 }
 0x135   : > { %v7009_v62 = vadd.f32 %v744_v34, %v632_v43  ;;  %v7011_v10 = vpop.f32.mrf.mxu1 }
 0x137   : > { %12679 = vst [vmem:[#allocation51_spill] sm:$0xff] %v7009_v62  ;;  %811 = vmatmul.f32.gmra.mxu2 %v6862_v3  ;;  %995 = vmatmul.f32.gmra.mxu0 %v6674_v47  ;;  %v7027_v47 = vperm.slane %v6874_v12, 1  ;;  %v1905_v12 = vld [vmem:[#allocation12 + $0x1c0] sm:$0xff] }
 0x138   : > { %924 = vmatmul.f32.gmra.mxu3 %v6865_v4  ;;  %1108 = vmatmul.f32.gmra.mxu1 %v6680_v49  ;;  %v409_v49 = vld [vmem:[#allocation10 + $0xb8] sm:$0xff] }
 0x139   : > { %1212 = vmatpush.msra.mxu2 %v409_v49  ;;  %2116 = vmatpush.msra.mxu0 %v1905_v12 }
 0x13a   : > { %v634_v37 = vpop.f32.mrf.mxu2 }
 0x13b   : > { %v635_v30 = vadd.f32 %v634_v37, %v6887_v27  ;;  %v747_v34 = vpop.f32.mrf.mxu3 }
 0x13c   : > { %v7018_v18 = vpop.f32.mrf.mxu0 }
 0x13d   : > { %v7020_v43 = vadd.f32 %v747_v34, %v635_v30  ;;  %v7022_v62 = vpop.f32.mrf.mxu1 }
 0x13f   : > { %12680 = vst [vmem:[#allocation52_spill] sm:$0xff] %v7020_v43  ;;  %814 = vmatmul.f32.gmra.mxu2 %v6879_v16  ;;  %998 = vmatmul.f32.gmra.mxu0 %v6690_v57  ;;  %v473_v57 = vld [vmem:[#allocation10 + $0x2b8] sm:$0xff]  ;;  %v1969_v43 = vld [vmem:[#allocation12 + $0x3c0] sm:$0xff] }
 0x140   : > { %927 = vmatmul.f32.gmra.mxu3 %v6884_v24  ;;  %1111 = vmatmul.f32.gmra.mxu1 %v6696_v59 }
 0x141   : > { %1325 = vmatpush.msra.mxu3 %v473_v57  ;;  %2229 = vmatpush.msra.mxu1 %v1969_v43 }
 0x142   : > { %v767_v15 = vpop.f32.mrf.mxu2 }
 0x143   : > { %v768_v56 = vadd.f32 %v767_v15, %v7027_v47  ;;  %v880_v35 = vpop.f32.mrf.mxu3 }
 0x144   : > { %v7032_v37 = vpop.f32.mrf.mxu0 }
 0x145   : > { %v7034_v30 = vadd.f32 %v880_v35, %v768_v56  ;;  %v7036_v34 = vpop.f32.mrf.mxu1 }
 0x146   : > { %12681 = vst [vmem:[#allocation53_spill] sm:$0xff] %v7036_v34 }
 0x147   : > { %817 = vmatmul.f32.gmra.mxu2 %v6897_v9  ;;  %1001 = vmatmul.f32.gmra.mxu0 %v6706_v5  ;;  %v405_v5 = vld [vmem:[#allocation10 + $0x98] sm:$0xff] }
 0x148   : > { %930 = vmatmul.f32.gmra.mxu3 %v6904_v23  ;;  %1114 = vmatmul.f32.gmra.mxu1 %v6712_v7 }
 0x149   : > { %1213 = vmatpush.msra.mxu2 %v405_v5 }
 0x14a   : > { %v770_v59 = vpop.f32.mrf.mxu2 }
 0x14b   : > { %v771_v49 = vadd.f32 %v770_v59, %v7027_v47  ;;  %v883_v15 = vpop.f32.mrf.mxu3 }
 0x14c   : > { %v7043_v56 = vpop.f32.mrf.mxu0 }
 0x14d   : > { %v7045_v35 = vadd.f32 %v883_v15, %v771_v49  ;;  %v7047_v34 = vpop.f32.mrf.mxu1  ;;  %v1901_v15 = vld [vmem:[#allocation12 + $0x1a0] sm:$0xff] }
 0x14e   : > { %12682 = vst [vmem:[#allocation54_spill] sm:$0xff] %v7047_v34  ;;  %v1965_v34 = vld [vmem:[#allocation12 + $0x3a0] sm:$0xff]  ;;  %2117 = vmatpush.msra.mxu0 %v1901_v15 }
 0x14f   : > { %820 = vmatmul.f32.gmra.mxu2 %v6914_v2  ;;  %1004 = vmatmul.f32.gmra.mxu0 %v6722_v17  ;;  %v469_v17 = vld [vmem:[#allocation10 + $0x298] sm:$0xff] }
 0x150   : > { %933 = vmatmul.f32.gmra.mxu3 %v6921_v52  ;;  %1117 = vmatmul.f32.gmra.mxu1 %v6728_v19 }
 0x151   : > { %1326 = vmatpush.msra.mxu3 %v469_v17  ;;  %2230 = vmatpush.msra.mxu1 %v1965_v34 }
 0x152   : > { %v773_v7 = vpop.f32.mrf.mxu2 }
 0x153   : > { %v774_v43 = vadd.f32 %v773_v7, %v7027_v47  ;;  %v886_v57 = vpop.f32.mrf.mxu3 }
 0x154   : > { %v7054_v12 = vpop.f32.mrf.mxu0 }
 0x155   : > { %v7056_v59 = vadd.f32 %v886_v57, %v774_v43  ;;  %v7058_v49 = vpop.f32.mrf.mxu1 }
 0x156   : > { %12683 = vst [vmem:[#allocation55_spill] sm:$0xff] %v7058_v49 }
 0x157   : > { %823 = vmatmul.f32.gmra.mxu2 %v6931_v46  ;;  %1007 = vmatmul.f32.gmra.mxu0 %v6738_v29  ;;  %v401_v29 = vld [vmem:[#allocation10 + $0x78] sm:$0xff] }
 0x158   : > { %936 = vmatmul.f32.gmra.mxu3 %v6938_v28  ;;  %1120 = vmatmul.f32.gmra.mxu1 %v6744_v31 }
 0x159   : > { %1214 = vmatpush.msra.mxu2 %v401_v29 }
 0x15a   : > { %v776_v19 = vpop.f32.mrf.mxu2 }
 0x15b   : > { %v777_v5 = vadd.f32 %v776_v19, %v7027_v47  ;;  %v889_v7 = vpop.f32.mrf.mxu3 }
 0x15c   : > { %v7065_v43 = vpop.f32.mrf.mxu0 }
 0x15d   : > { %v7067_v57 = vadd.f32 %v889_v7, %v777_v5  ;;  %v7069_v49 = vpop.f32.mrf.mxu1  ;;  %v1897_v7 = vld [vmem:[#allocation12 + $0x180] sm:$0xff] }
 0x15e   : > { %12684 = vst [vmem:[#allocation56_spill] sm:$0xff] %v7069_v49  ;;  %v1961_v49 = vld [vmem:[#allocation12 + $0x380] sm:$0xff]  ;;  %2118 = vmatpush.msra.mxu0 %v1897_v7 }
 0x15f   : > { %826 = vmatmul.f32.gmra.mxu2 %v6948_v1  ;;  %1010 = vmatmul.f32.gmra.mxu0 %v6754_v39  ;;  %v465_v39 = vld [vmem:[#allocation10 + $0x278] sm:$0xff] }
 0x160   : > { %939 = vmatmul.f32.gmra.mxu3 %v6955_v11  ;;  %1123 = vmatmul.f32.gmra.mxu1 %v6760_v41 }
 0x161   : > { %1327 = vmatpush.msra.mxu3 %v465_v39  ;;  %2231 = vmatpush.msra.mxu1 %v1961_v49 }
 0x162   : > { %v779_v31 = vpop.f32.mrf.mxu2 }
 0x163   : > { %v780_v34 = vadd.f32 %v779_v31, %v7027_v47  ;;  %v892_v17 = vpop.f32.mrf.mxu3 }
 0x164   : > { %v7076_v15 = vpop.f32.mrf.mxu0 }
 0x165   : > { %v7078_v19 = vadd.f32 %v892_v17, %v780_v34  ;;  %v7080_v5 = vpop.f32.mrf.mxu1 }
 0x166   : > { %12685 = vst [vmem:[#allocation57_spill] sm:$0xff] %v7080_v5 }
 0x167   : > { %829 = vmatmul.f32.gmra.mxu2 %v6965_v54  ;;  %1013 = vmatmul.f32.gmra.mxu0 %v6770_v45  ;;  %v397_v45 = vld [vmem:[#allocation10 + $0x58] sm:$0xff] }
 0x168   : > { %942 = vmatmul.f32.gmra.mxu3 %v6972_v40  ;;  %1126 = vmatmul.f32.gmra.mxu1 %v6776_v51 }
 0x169   : > { %1215 = vmatpush.msra.mxu2 %v397_v45 }
 0x16a   : > { %v782_v41 = vpop.f32.mrf.mxu2 }
 0x16b   : > { %v783_v29 = vadd.f32 %v782_v41, %v7027_v47  ;;  %v895_v31 = vpop.f32.mrf.mxu3 }
 0x16c   : > { %v7087_v34 = vpop.f32.mrf.mxu0 }
 0x16d   : > { %v7089_v17 = vadd.f32 %v895_v31, %v783_v29  ;;  %v7091_v5 = vpop.f32.mrf.mxu1  ;;  %v1893_v31 = vld [vmem:[#allocation12 + $0x160] sm:$0xff] }
 0x16e   : > { %12686 = vst [vmem:[#allocation58_spill] sm:$0xff] %v7091_v5  ;;  %v1957_v5 = vld [vmem:[#allocation12 + $0x360] sm:$0xff]  ;;  %2119 = vmatpush.msra.mxu0 %v1893_v31 }
 0x16f   : > { %832 = vmatmul.f32.gmra.mxu2 %v6982_v32  ;;  %1016 = vmatmul.f32.gmra.mxu0 %v6786_v55  ;;  %v461_v55 = vld [vmem:[#allocation10 + $0x258] sm:$0xff] }
 0x170   : > { %945 = vmatmul.f32.gmra.mxu3 %v6989_v20  ;;  %1129 = vmatmul.f32.gmra.mxu1 %v6792_v61 }
 0x171   : > { %1328 = vmatpush.msra.mxu3 %v461_v55  ;;  %2232 = vmatpush.msra.mxu1 %v1957_v5 }
 0x172   : > { %v785_v51 = vpop.f32.mrf.mxu2 }
 0x173   : > { %v786_v49 = vadd.f32 %v785_v51, %v7027_v47  ;;  %v898_v39 = vpop.f32.mrf.mxu3 }
 0x174   : > { %v7098_v7 = vpop.f32.mrf.mxu0 }
 0x175   : > { %v7100_v41 = vadd.f32 %v898_v39, %v786_v49  ;;  %v7102_v29 = vpop.f32.mrf.mxu1 }
 0x177   : > { %835 = vmatmul.f32.gmra.mxu2 %v6661_v36  ;;  %1019 = vmatmul.f32.gmra.mxu0 %v6802_v63 }
 0x178   : > { %948 = vmatmul.f32.gmra.mxu3 %v6667_v38  ;;  %1132 = vmatmul.f32.gmra.mxu1 %v6805_v0  ;;  %v393_v38 = vld [vmem:[#allocation10 + $0x38] sm:$0xff] }
 0x179   : > { %1216 = vmatpush.msra.mxu2 %v393_v38 }
 0x17a   : > { %v788_v61 = vpop.f32.mrf.mxu2 }
 0x17b   : > { %v789_v45 = vadd.f32 %v788_v61, %v7027_v47  ;;  %v901_v51 = vpop.f32.mrf.mxu3 }
 0x17c   : > { %v7109_v49 = vpop.f32.mrf.mxu0 }
 0x17d   : > { %v7111_v39 = vadd.f32 %v901_v51, %v789_v45  ;;  %v7113_v36 = vpop.f32.mrf.mxu1 }
 0x17e   : > { %12687 = vst [vmem:[#allocation59_spill] sm:$0xff] %v7113_v36 }
 0x17f   : > { %838 = vmatmul.f32.gmra.mxu2 %v6677_v48  ;;  %1022 = vmatmul.f32.gmra.mxu0 %v6812_v13  ;;  %v457_v48 = vld [vmem:[#allocation10 + $0x238] sm:$0xff]  ;;  %v1953_v13 = vld [vmem:[#allocation12 + $0x340] sm:$0xff] }
 0x180   : > { %951 = vmatmul.f32.gmra.mxu3 %v6683_v50  ;;  %1135 = vmatmul.f32.gmra.mxu1 %v6815_v14  ;;  %v1889_v50 = vld [vmem:[#allocation12 + $0x140] sm:$0xff] }
 0x181   : > { %1329 = vmatpush.msra.mxu3 %v457_v48  ;;  %2120 = vmatpush.msra.mxu0 %v1889_v50 }
 0x182   : > { %v791_v63 = vpop.f32.mrf.mxu2  ;;  %2233 = vmatpush.msra.mxu1 %v1953_v13  ;;  %v12694_v13 = vld [vmem:[#allocation17_spill] sm:$0xff] }
 0x183   : > { %v792_v0 = vadd.f32 %v791_v63, %v7027_v47  ;;  %v904_v5 = vpop.f32.mrf.mxu3 }
 0x184   : > { %v7120_v55 = vpop.f32.mrf.mxu0 }
 0x185   : > { %12688 = vst [vmem:[#allocation60_spill] sm:$0xff] %v7120_v55  ;;  %v7122_v31 = vadd.f32 %v904_v5, %v792_v0  ;;  %v7124_v61 = vpop.f32.mrf.mxu1 }
 0x186   : > { %12689 = vst [vmem:[#allocation61_spill] sm:$0xff] %v7124_v61 }
 0x187   : > { %841 = vmatmul.f32.gmra.mxu2 %v6693_v58  ;;  %1025 = vmatmul.f32.gmra.mxu0 %v6822_v21 }
 0x188   : > { %954 = vmatmul.f32.gmra.mxu3 %v6699_v60  ;;  %1138 = vmatmul.f32.gmra.mxu1 %v6825_v22  ;;  %v389_v60 = vld [vmem:[#allocation10 + $0x18] sm:$0xff] }
 0x189   : > { %1217 = vmatpush.msra.mxu2 %v389_v60 }
 0x18a   : > { %v794_v14 = vpop.f32.mrf.mxu2 }
 0x18b   : > { %v795_v45 = vadd.f32 %v794_v14, %v7027_v47  ;;  %v907_v51 = vpop.f32.mrf.mxu3  ;;  %v1949_v14 = vld [vmem:[#allocation12 + $0x320] sm:$0xff] }
 0x18c   : > { %v7131_v38 = vpop.f32.mrf.mxu0  ;;  %2234 = vmatpush.msra.mxu1 %v1949_v14 }
 0x18d   : > { %12690 = vst [vmem:[#allocation62_spill] sm:$0xff] %v7131_v38  ;;  %v7133_v63 = vadd.f32 %v907_v51, %v795_v45  ;;  %v7135_v58 = vpop.f32.mrf.mxu1  ;;  %v12697_v45 = vld [vmem:[#allocation28_spill] sm:$0xff]  ;;  %v7383_v38 = vld [vmem:[%s6645_s19 + $0x1e8] sm:$0xff] }
 0x18e   : > { %12691 = vst [vmem:[#allocation63_spill] sm:$0xff] %v7135_v58 }
 0x18f   : > { %844 = vmatmul.f32.gmra.mxu2 %v6709_v6  ;;  %1028 = vmatmul.f32.gmra.mxu0 %v6832_v25  ;;  %v12695_v6 = vld [vmem:[#allocation27_spill] sm:$0xff]  ;;  %12752 = vst [vmem:[#allocation100_spill] sm:$0xff] %v7383_v38 }
 0x190   : > { %957 = vmatmul.f32.gmra.mxu3 %v6715_v8  ;;  %1141 = vmatmul.f32.gmra.mxu1 %v6835_v26  ;;  %v453_v25 = vld [vmem:[#allocation10 + $0x218] sm:$0xff]  ;;  %v1885_v8 = vld [vmem:[#allocation12 + $0x120] sm:$0xff]  ;;  %v12696_v26 = vld [vmem:[#allocation18_spill] sm:$0xff] }
 0x191   : > { %1330 = vmatpush.msra.mxu3 %v453_v25  ;;  %2121 = vmatpush.msra.mxu0 %v1885_v8 }
 0x192   : > { %v797_v21 = vpop.f32.mrf.mxu2 }
 0x193   : > { %v798_v22 = vadd.f32 %v797_v21, %v7027_v47  ;;  %v910_v0 = vpop.f32.mrf.mxu3 }
 0x194   : > { %v7142_v5 = vpop.f32.mrf.mxu0 }
 0x195   : > { %12692 = vst [vmem:[#allocation64_spill] sm:$0xff] %v7142_v5  ;;  %v7144_v48 = vadd.f32 %v910_v0, %v798_v22  ;;  %v7146_v50 = vpop.f32.mrf.mxu1  ;;  %v1921_v5 = vld [vmem:[#allocation12 + $0x240] sm:$0xff] }
 0x196   : > { %12693 = vst [vmem:[#allocation65_spill] sm:$0xff] %v7146_v50  ;;  %v1937_v50 = vld [vmem:[#allocation12 + $0x2c0] sm:$0xff] }
 0x197   : > { %847 = vmatmul.f32.gmra.mxu2 %v12694_v13  ;;  %1031 = vmatmul.f32.gmra.mxu0 %v12695_v6  ;;  %v12700_v6 = vld [vmem:[#allocation19_spill] sm:$0xff] }
 0x198   : > { %960 = vmatmul.f32.gmra.mxu3 %v12696_v26  ;;  %1144 = vmatmul.f32.gmra.mxu1 %v12697_v45  ;;  %v12701_v26 = vld [vmem:[#allocation20_spill] sm:$0xff] }
 0x19a   : > { %v800_v51 = vpop.f32.mrf.mxu2 }
 0x19b   : > { %v801_v60 = vadd.f32 %v800_v51, %v7027_v47  ;;  %v913_v21 = vpop.f32.mrf.mxu3 }
 0x19c   : > { %v7153_v22 = vpop.f32.mrf.mxu0 }
 0x19d   : > { %12698 = vst [vmem:[#allocation17_spill] sm:$0xff] %v7153_v22  ;;  %v7155_v0 = vadd.f32 %v913_v21, %v801_v60  ;;  %v7157_v13 = vpop.f32.mrf.mxu1  ;;  %v12704_v21 = vld [vmem:[#allocation21_spill] sm:$0xff] }
 0x19e   : > { %12699 = vst [vmem:[#allocation27_spill] sm:$0xff] %v7157_v13  ;;  %v12705_v13 = vld [vmem:[#allocation22_spill] sm:$0xff]  ;;  %v2101_v22 = vld [vmem:[#allocation12 + $0x7e0] sm:$0xff] }
 0x19f   : > { %850 = vmatmul.f32.gmra.mxu2 %v12700_v6  ;;  %1034 = vmatmul.f32.gmra.mxu0 %v6852_v44  ;;  %v1881_v6 = vld [vmem:[#allocation12 + $0x100] sm:$0xff] }
 0x1a0   : > { %963 = vmatmul.f32.gmra.mxu3 %v12701_v26  ;;  %1147 = vmatmul.f32.gmra.mxu1 %v6855_v53  ;;  %v1945_v44 = vld [vmem:[#allocation12 + $0x300] sm:$0xff] }
 0x1a1   : > { %2122 = vmatpush.msra.mxu0 %v1881_v6  ;;  %2235 = vmatpush.msra.mxu1 %v1945_v44 }
 0x1a2   : > { %v803_v25 = vpop.f32.mrf.mxu2 }
 0x1a3   : > { %v804_v8 = vadd.f32 %v803_v25, %v7027_v47  ;;  %v916_v14 = vpop.f32.mrf.mxu3 }
 0x1a4   : > { %v7164_v45 = vpop.f32.mrf.mxu0 }
 0x1a5   : > { %12702 = vst [vmem:[#allocation18_spill] sm:$0xff] %v7164_v45  ;;  %v7166_v51 = vadd.f32 %v916_v14, %v804_v8  ;;  %v7168_v60 = vpop.f32.mrf.mxu1 }
 0x1a6   : > { %12703 = vst [vmem:[#allocation28_spill] sm:$0xff] %v7168_v60 }
 0x1a7   : > { %853 = vmatmul.f32.gmra.mxu2 %v12704_v21  ;;  %1037 = vmatmul.f32.gmra.mxu0 %v6862_v3  ;;  %v12708_v21 = vld [vmem:[#allocation23_spill] sm:$0xff]  ;;  %v12709_v3 = vld [vmem:[#allocation24_spill] sm:$0xff] }
 0x1a8   : > { %966 = vmatmul.f32.gmra.mxu3 %v12705_v13  ;;  %1150 = vmatmul.f32.gmra.mxu1 %v6865_v4 }
 0x1aa   : > { %v806_v53 = vpop.f32.mrf.mxu2 }
 0x1ab   : > { %v807_v26 = vadd.f32 %v806_v53, %v7027_v47  ;;  %v919_v25 = vpop.f32.mrf.mxu3 }
 0x1ac   : > { %v7175_v8 = vpop.f32.mrf.mxu0 }
 0x1ad   : > { %12706 = vst [vmem:[#allocation19_spill] sm:$0xff] %v7175_v8  ;;  %v7177_v14 = vadd.f32 %v919_v25, %v807_v26  ;;  %v7179_v60 = vpop.f32.mrf.mxu1  ;;  %v12712_v25 = vld [vmem:[#allocation25_spill] sm:$0xff]  ;;  %v7403_v8 = vld [vmem:[%s6645_s19 + $0x1f0] sm:$0xff] }
 0x1ae   : > { %12707 = vst [vmem:[#allocation20_spill] sm:$0xff] %v7179_v60 }
 0x1af   : > { %856 = vmatmul.f32.gmra.mxu2 %v12708_v21  ;;  %1040 = vmatmul.f32.gmra.mxu0 %v6879_v16  ;;  %v1877_v16 = vld [vmem:[#allocation12 + $0xe0] sm:$0xff]  ;;  %12757 = vst [vmem:[#allocation103_spill] sm:$0xff] %v7403_v8 }
 0x1b0   : > { %969 = vmatmul.f32.gmra.mxu3 %v12709_v3  ;;  %1153 = vmatmul.f32.gmra.mxu1 %v6884_v24  ;;  %v1941_v21 = vld [vmem:[#allocation12 + $0x2e0] sm:$0xff]  ;;  %v12713_v3 = vld [vmem:[#allocation26_spill] sm:$0xff] }
 0x1b1   : > { %2123 = vmatpush.msra.mxu0 %v1877_v16  ;;  %2236 = vmatpush.msra.mxu1 %v1941_v21  ;;  %v2033_v16 = vld [vmem:[#allocation12 + $0x5c0] sm:$0xff] }
 0x1b2   : > { %v809_v4 = vpop.f32.mrf.mxu2  ;;  %v2097_v21 = vld [vmem:[#allocation12 + $0x7c0] sm:$0xff] }
 0x1b3   : > { %v810_v13 = vadd.f32 %v809_v4, %v7027_v47  ;;  %v922_v6 = vpop.f32.mrf.mxu3  ;;  %2237 = vmatpush.msra.mxu1 %v1937_v50  ;;  %v2025_v50 = vld [vmem:[#allocation12 + $0x580] sm:$0xff] }
 0x1b4   : > { %v7186_v44 = vpop.f32.mrf.mxu0 }
 0x1b5   : > { %12710 = vst [vmem:[#allocation21_spill] sm:$0xff] %v7186_v44  ;;  %v7188_v53 = vadd.f32 %v922_v6, %v810_v13  ;;  %v7190_v26 = vpop.f32.mrf.mxu1  ;;  %v6273_v44 = vld [vmem:[%s6645_s19 + $0xc0] sm:$0xff] }
 0x1b6   : > { %12711 = vst [vmem:[#allocation22_spill] sm:$0xff] %v7190_v26  ;;  %v7332_v26 = vld [vmem:[%s6645_s19 + $0x1b8] sm:$0xff] }
 0x1b7   : > { %859 = vmatmul.f32.gmra.mxu2 %v12712_v25  ;;  %1043 = vmatmul.f32.gmra.mxu0 %v6897_v9  ;;  %v2037_v9 = vld [vmem:[#allocation12 + $0x5e0] sm:$0xff] }
 0x1b8   : > { %972 = vmatmul.f32.gmra.mxu3 %v12713_v3  ;;  %1156 = vmatmul.f32.gmra.mxu1 %v6904_v23  ;;  %v6234_v3 = vld [vmem:[%s6645_s19] sm:$0xff]  ;;  %v6235_v23 = vld [vmem:[%s6645_s19 + $0x8] sm:$0xff] }
 0x1ba   : > { %v812_v24 = vpop.f32.mrf.mxu2 }
 0x1bb   : > { %v813_v4 = vadd.f32 %v812_v24, %v7027_v47  ;;  %v925_v13 = vpop.f32.mrf.mxu3 }
 0x1bc   : > { %v7197_v6 = vpop.f32.mrf.mxu0 }
 0x1bd   : > { %12714 = vst [vmem:[#allocation23_spill] sm:$0xff] %v7197_v6  ;;  %v7199_v45 = vadd.f32 %v925_v13, %v813_v4  ;;  %v7201_v25 = vpop.f32.mrf.mxu1  ;;  %v2029_v4 = vld [vmem:[#allocation12 + $0x5a0] sm:$0xff] }
 0x1be   : > { %12715 = vst [vmem:[#allocation24_spill] sm:$0xff] %v7201_v25  ;;  %v1857_v6 = vld [vmem:[#allocation12 + $0x40] sm:$0xff] }
 0x1bf   : > { %1046 = vmatmul.f32.gmra.mxu0 %v6914_v2  ;;  %1218 = vmatmul.f32.vlgmr.msra.gmra.mxu2 %v6234_v3 }
 0x1c0   : > { %1159 = vmatmul.f32.gmra.mxu1 %v6921_v52  ;;  %1331 = vmatmul.f32.vlgmr.msra.gmra.mxu3 %v6235_v23  ;;  %v6236_v23 = vld [vmem:[%s6645_s19 + $0x10] sm:$0xff] }
 0x1c1   : > { %2341 = vmatpush.msra.mxu2 %v2037_v9  ;;  %2454 = vmatpush.msra.mxu3 %v2101_v22  ;;  %v2093_v22 = vld [vmem:[#allocation12 + $0x7a0] sm:$0xff] }
 0x1c2   : > { %v815_v24 = vpop.f32.mrf.mxu2  ;;  %v1873_v9 = vld [vmem:[#allocation12 + $0xc0] sm:$0xff] }
 0x1c3   : > { %v816_v13 = vadd.f32 %v815_v24, %v7027_v47  ;;  %v928_v25 = vpop.f32.mrf.mxu3  ;;  %2342 = vmatpush.msra.mxu2 %v2033_v16  ;;  %2455 = vmatpush.msra.mxu3 %v2097_v21  ;;  %v6237_v16 = vld [vmem:[%s6645_s19 + $0x18] sm:$0xff] }
 0x1c4   : > { %v7208_v2 = vpop.f32.mrf.mxu0  ;;  %2124 = vmatpush.msra.mxu0 %v1873_v9 }
 0x1c5   : > { %12716 = vst [vmem:[#allocation25_spill] sm:$0xff] %v7208_v2  ;;  %v7210_v3 = vadd.f32 %v928_v25, %v816_v13  ;;  %v7212_v52 = vpop.f32.mrf.mxu1  ;;  %2343 = vmatpush.msra.mxu2 %v2029_v4  ;;  %2456 = vmatpush.msra.mxu3 %v2093_v22  ;;  %v7310_v2 = vld [vmem:[%s6645_s19 + $0x1a0] sm:$0xff] }
 0x1c6   : > { %12717 = vst [vmem:[#allocation26_spill] sm:$0xff] %v7212_v52  ;;  %v1861_v52 = vld [vmem:[#allocation12 + $0x60] sm:$0xff] }
 0x1c7   : > { %1049 = vmatmul.f32.gmra.mxu0 %v6931_v46  ;;  %1221 = vmatmul.f32.gmra.mxu2 %v6236_v23  ;;  %v6239_v23 = vld [vmem:[%s6645_s19 + $0x28] sm:$0xff] }
 0x1c8   : > { %1162 = vmatmul.f32.gmra.mxu1 %v6938_v28  ;;  %1334 = vmatmul.f32.gmra.mxu3 %v6237_v16  ;;  %v6238_v28 = vld [vmem:[%s6645_s19 + $0x20] sm:$0xff] }
 0x1c9   : > { %2344 = vmatpush.msra.mxu2 %v2025_v50  ;;  %v6241_v50 = vld [vmem:[%s6645_s19 + $0x38] sm:$0xff] }
 0x1ca   : > { %v818_v25 = vpop.f32.mrf.mxu2 }
 0x1cb   : > { %v819_v21 = vadd.f32 %v818_v25, %v7027_v47  ;;  %v931_v24 = vpop.f32.mrf.mxu3 }
 0x1cc   : > { %v7219_v4 = vpop.f32.mrf.mxu0 }
 0x1cd   : > { %12718 = vst [vmem:[#allocation66_spill] sm:$0xff] %v7219_v4  ;;  %v7221_v46 = vadd.f32 %v931_v24, %v819_v21  ;;  %v7223_v13 = vpop.f32.mrf.mxu1  ;;  %v6253_v4 = vld [vmem:[%s6645_s19 + $0x70] sm:$0xff] }
 0x1ce   : > { %12720 = vst [vmem:[#allocation68_spill] sm:$0xff] %v7223_v13  ;;  %v7276_v13 = vld [vmem:[%s6645_s19 + $0x180] sm:$0xff] }
 0x1cf   : > { %12719 = vst [vmem:[#allocation67_spill] sm:$0xff] %v7221_v46  ;;  %1052 = vmatmul.f32.gmra.mxu0 %v6948_v1  ;;  %1224 = vmatmul.f32.gmra.mxu2 %v6238_v28  ;;  %v6240_v1 = vld [vmem:[%s6645_s19 + $0x30] sm:$0xff]  ;;  %v1869_v28 = vld [vmem:[#allocation12 + $0xa0] sm:$0xff]  ;;  %v7400_v46 = vstv %s5095_s18 }
 0x1d0   : > { %1165 = vmatmul.f32.gmra.mxu1 %v6955_v11  ;;  %1337 = vmatmul.f32.gmra.mxu3 %v6239_v23  ;;  %v2089_v11 = vld [vmem:[#allocation12 + $0x780] sm:$0xff] }
 0x1d1   : > { %v1933_v23 = vld [vmem:[#allocation12 + $0x2a0] sm:$0xff]  ;;  %2457 = vmatpush.msra.mxu3 %v2089_v11  ;;  %2125 = vmatpush.msra.mxu0 %v1869_v28  ;;  %v6243_v11 = vld [vmem:[%s6645_s19 + $0x48] sm:$0xff] }
 0x1d2   : > { %v821_v22 = vpop.f32.mrf.mxu2  ;;  %2238 = vmatpush.msra.mxu1 %v1933_v23  ;;  %v2021_v28 = vld [vmem:[#allocation12 + $0x560] sm:$0xff] }
 0x1d3   : > { %v822_v9 = vadd.f32 %v821_v22, %v7027_v47  ;;  %v934_v16 = vpop.f32.mrf.mxu3  ;;  %2345 = vmatpush.msra.mxu2 %v2021_v28  ;;  %v7264_v28 = vld [vmem:[%s6645_s19 + $0x178] sm:$0xff] }
 0x1d4   : > { %v7230_v25 = vpop.f32.mrf.mxu0 }
 0x1d5   : > { %12721 = vst [vmem:[#allocation69_spill] sm:$0xff] %v7230_v25  ;;  %v7232_v21 = vadd.f32 %v934_v16, %v822_v9  ;;  %v7234_v24 = vpop.f32.mrf.mxu1 }
 0x1d6   : > { %12723 = vst [vmem:[#allocation71_spill] sm:$0xff] %v7234_v24 }
 0x1d7   : > { %12722 = vst [vmem:[#allocation70_spill] sm:$0xff] %v7232_v21  ;;  %1055 = vmatmul.f32.gmra.mxu0 %v6965_v54  ;;  %1227 = vmatmul.f32.gmra.mxu2 %v6240_v1  ;;  %v7361_v21 = vld [vmem:[%s6645_s19 + $0x1d0] sm:$0xff] }
 0x1d8   : > { %1168 = vmatmul.f32.gmra.mxu1 %v6972_v40  ;;  %1340 = vmatmul.f32.gmra.mxu3 %v6241_v50  ;;  %v6242_v40 = vld [vmem:[%s6645_s19 + $0x40] sm:$0xff] }
 0x1da   : > { %v824_v22 = vpop.f32.mrf.mxu2 }
 0x1db   : > { %v825_v9 = vadd.f32 %v824_v22, %v7027_v47  ;;  %v937_v16 = vpop.f32.mrf.mxu3 }
 0x1dc   : > { %v7241_v24 = vpop.f32.mrf.mxu0 }
 0x1dd   : > { %12724 = vst [vmem:[#allocation72_spill] sm:$0xff] %v7241_v24  ;;  %v7243_v54 = vadd.f32 %v937_v16, %v825_v9  ;;  %v7245_v1 = vpop.f32.mrf.mxu1  ;;  %v1929_v24 = vld [vmem:[#allocation12 + $0x280] sm:$0xff] }
 0x1de   : > { %12726 = vst [vmem:[#allocation74_spill] sm:$0xff] %v7245_v1  ;;  %v7259_v1 = vld [vmem:[%s6645_s19 + $0x170] sm:$0xff]  ;;  %2239 = vmatpush.msra.mxu1 %v1929_v24  ;;  %v6251_v24 = vld [vmem:[%s6645_s19 + $0x68] sm:$0xff] }
 0x1df   : > { %12725 = vst [vmem:[#allocation73_spill] sm:$0xff] %v7243_v54  ;;  %1058 = vmatmul.f32.gmra.mxu0 %v6982_v32  ;;  %1230 = vmatmul.f32.gmra.mxu2 %v6242_v40  ;;  %v2085_v40 = vld [vmem:[#allocation12 + $0x760] sm:$0xff]  ;;  %v6261_v54 = vld [vmem:[%s6645_s19 + $0x90] sm:$0xff] }
 0x1e0   : > { %1171 = vmatmul.f32.gmra.mxu1 %v6989_v20  ;;  %1343 = vmatmul.f32.gmra.mxu3 %v6243_v11  ;;  %v6245_v20 = vld [vmem:[%s6645_s19 + $0x50] sm:$0xff]  ;;  %v1865_v11 = vld [vmem:[#allocation12 + $0x80] sm:$0xff] }
 0x1e1   : > { %2458 = vmatpush.msra.mxu3 %v2085_v40  ;;  %2126 = vmatpush.msra.mxu0 %v1865_v11  ;;  %v7281_v40 = vld [vmem:[%s6645_s19 + $0x188] sm:$0xff]  ;;  %v2017_v11 = vld [vmem:[#allocation12 + $0x540] sm:$0xff] }
 0x1e2   : > { %v827_v23 = vpop.f32.mrf.mxu2  ;;  %2346 = vmatpush.msra.mxu2 %v2017_v11  ;;  %v7298_v11 = vld [vmem:[%s6645_s19 + $0x198] sm:$0xff] }
 0x1e3   : > { %v828_v50 = vadd.f32 %v827_v23, %v7027_v47  ;;  %v940_v22 = vpop.f32.mrf.mxu3  ;;  %v6247_v23 = vld [vmem:[%s6645_s19 + $0x58] sm:$0xff]  ;;  %2127 = vmatpush.msra.mxu0 %v1861_v52  ;;  %v7315_v52 = vld [vmem:[%s6645_s19 + $0x1a8] sm:$0xff] }
 0x1e4   : > { %v7252_v9 = vpop.f32.mrf.mxu0 }
 0x1e5   : > { %12727 = vst [vmem:[#allocation75_spill] sm:$0xff] %v7252_v9  ;;  %v7254_v16 = vadd.f32 %v940_v22, %v828_v50  ;;  %v7256_v32 = vpop.f32.mrf.mxu1  ;;  %2128 = vmatpush.msra.mxu0 %v1857_v6  ;;  %v1913_v6 = vld [vmem:[#allocation12 + $0x200] sm:$0xff] }
 0x1e6   : > { %12729 = vst [vmem:[#allocation77_spill] sm:$0xff] %v7256_v32 }
 0x1e7   : > { %12728 = vst [vmem:[#allocation76_spill] sm:$0xff] %v7254_v16  ;;  %1061 = vmatmul.f32.gmra.mxu0 %v7259_v1  ;;  %1233 = vmatmul.f32.gmra.mxu2 %v6245_v20  ;;  %v1925_v16 = vld [vmem:[#allocation12 + $0x260] sm:$0xff] }
 0x1e8   : > { %1174 = vmatmul.f32.gmra.mxu1 %v7264_v28  ;;  %1346 = vmatmul.f32.gmra.mxu3 %v6247_v23  ;;  %v6249_v23 = vld [vmem:[%s6645_s19 + $0x60] sm:$0xff] }
 0x1e9   : > { %2240 = vmatpush.msra.mxu1 %v1925_v16  ;;  %v6259_v16 = vld [vmem:[%s6645_s19 + $0x88] sm:$0xff] }
 0x1ea   : > { %v830_v50 = vpop.f32.mrf.mxu2 }
 0x1eb   : > { %v831_v22 = vadd.f32 %v830_v50, %v7027_v47  ;;  %v943_v20 = vpop.f32.mrf.mxu3  ;;  %2241 = vmatpush.msra.mxu1 %v1921_v5  ;;  %v6265_v5 = vld [vmem:[%s6645_s19 + $0xa0] sm:$0xff] }
 0x1ec   : > { %v7269_v32 = vpop.f32.mrf.mxu0 }
 0x1ed   : > { %12730 = vst [vmem:[#allocation78_spill] sm:$0xff] %v7269_v32  ;;  %v7271_v9 = vadd.f32 %v943_v20, %v831_v22  ;;  %v7273_v25 = vpop.f32.mrf.mxu1 }
 0x1ee   : > { %12732 = vst [vmem:[#allocation80_spill] sm:$0xff] %v7273_v25 }
 0x1ef   : > { %12731 = vst [vmem:[#allocation79_spill] sm:$0xff] %v7271_v9  ;;  %1064 = vmatmul.f32.gmra.mxu0 %v7276_v13  ;;  %1236 = vmatmul.f32.gmra.mxu2 %v6249_v23  ;;  %v7293_v23 = vld [vmem:[%s6645_s19 + $0x190] sm:$0xff] }
 0x1f0   : > { %1177 = vmatmul.f32.gmra.mxu1 %v7281_v40  ;;  %1349 = vmatmul.f32.gmra.mxu3 %v6251_v24  ;;  %v2081_v24 = vld [vmem:[#allocation12 + $0x740] sm:$0xff] }
 0x1f1   : > { %2459 = vmatpush.msra.mxu3 %v2081_v24  ;;  %v2013_v24 = vld [vmem:[#allocation12 + $0x520] sm:$0xff] }
 0x1f2   : > { %v833_v50 = vpop.f32.mrf.mxu2  ;;  %2347 = vmatpush.msra.mxu2 %v2013_v24  ;;  %v6263_v24 = vld [vmem:[%s6645_s19 + $0x98] sm:$0xff] }
 0x1f3   : > { %v834_v22 = vadd.f32 %v833_v50, %v7027_v47  ;;  %v946_v20 = vpop.f32.mrf.mxu3  ;;  %v6255_v50 = vld [vmem:[%s6645_s19 + $0x78] sm:$0xff] }
 0x1f4   : > { %v7286_v25 = vpop.f32.mrf.mxu0 }
 0x1f5   : > { %12733 = vst [vmem:[#allocation81_spill] sm:$0xff] %v7286_v25  ;;  %v7288_v32 = vadd.f32 %v946_v20, %v834_v22  ;;  %v7290_v9 = vpop.f32.mrf.mxu1 }
 0x1f6   : > { %12735 = vst [vmem:[#allocation83_spill] sm:$0xff] %v7290_v9 }
 0x1f7   : > { %12734 = vst [vmem:[#allocation82_spill] sm:$0xff] %v7288_v32  ;;  %1067 = vmatmul.f32.gmra.mxu0 %v7293_v23  ;;  %1239 = vmatmul.f32.gmra.mxu2 %v6253_v4 }
 0x1f8   : > { %1180 = vmatmul.f32.gmra.mxu1 %v7298_v11  ;;  %1352 = vmatmul.f32.gmra.mxu3 %v6255_v50  ;;  %v6257_v50 = vld [vmem:[%s6645_s19 + $0x80] sm:$0xff] }
 0x1fa   : > { %v836_v22 = vpop.f32.mrf.mxu2 }
 0x1fb   : > { %v837_v20 = vadd.f32 %v836_v22, %v7027_v47  ;;  %v949_v4 = vpop.f32.mrf.mxu3 }
 0x1fc   : > { %v7303_v9 = vpop.f32.mrf.mxu0 }
 0x1fd   : > { %12736 = vst [vmem:[#allocation84_spill] sm:$0xff] %v7303_v9  ;;  %v7305_v25 = vadd.f32 %v949_v4, %v837_v20  ;;  %v7307_v32 = vpop.f32.mrf.mxu1 }
 0x1fe   : > { %12738 = vst [vmem:[#allocation86_spill] sm:$0xff] %v7307_v32 }
 0x1ff   : > { %12737 = vst [vmem:[#allocation85_spill] sm:$0xff] %v7305_v25  ;;  %1070 = vmatmul.f32.gmra.mxu0 %v7310_v2  ;;  %1242 = vmatmul.f32.gmra.mxu2 %v6257_v50  ;;  %v7327_v50 = vld [vmem:[%s6645_s19 + $0x1b0] sm:$0xff] }
 0x200   : > { %1183 = vmatmul.f32.gmra.mxu1 %v7315_v52  ;;  %1355 = vmatmul.f32.gmra.mxu3 %v6259_v16  ;;  %v2077_v16 = vld [vmem:[#allocation12 + $0x720] sm:$0xff] }
 0x201   : > { %2460 = vmatpush.msra.mxu3 %v2077_v16  ;;  %v1849_v16 = vld [vmem:[#allocation12] sm:$0xff] }
 0x202   : > { %v839_v22 = vpop.f32.mrf.mxu2 }
 0x203   : > { %v840_v20 = vadd.f32 %v839_v22, %v7027_v47  ;;  %v952_v4 = vpop.f32.mrf.mxu3 }
 0x204   : > { %v7320_v32 = vpop.f32.mrf.mxu0 }
 0x205   : > { %12739 = vst [vmem:[#allocation87_spill] sm:$0xff] %v7320_v32  ;;  %v7322_v9 = vadd.f32 %v952_v4, %v840_v20  ;;  %v7324_v25 = vpop.f32.mrf.mxu1  ;;  %v1917_v32 = vld [vmem:[#allocation12 + $0x220] sm:$0xff] }
 0x206   : > { %12741 = vst [vmem:[#allocation89_spill] sm:$0xff] %v7324_v25  ;;  %v1853_v25 = vld [vmem:[#allocation12 + $0x20] sm:$0xff]  ;;  %2242 = vmatpush.msra.mxu1 %v1917_v32 }
 0x207   : > { %12740 = vst [vmem:[#allocation88_spill] sm:$0xff] %v7322_v9  ;;  %1073 = vmatmul.f32.gmra.mxu0 %v7327_v50  ;;  %1245 = vmatmul.f32.gmra.mxu2 %v6261_v54 }
 0x208   : > { %1186 = vmatmul.f32.gmra.mxu1 %v7332_v26  ;;  %1358 = vmatmul.f32.gmra.mxu3 %v6263_v24  ;;  %v7344_v24 = vld [vmem:[%s6645_s19 + $0x1c0] sm:$0xff] }
 0x209   : > { %2129 = vmatpush.msra.mxu0 %v1853_v25  ;;  %2243 = vmatpush.msra.mxu1 %v1913_v6  ;;  %v2009_v25 = vld [vmem:[#allocation12 + $0x500] sm:$0xff] }
 0x20a   : > { %v842_v22 = vpop.f32.mrf.mxu2  ;;  %2348 = vmatpush.msra.mxu2 %v2009_v25  ;;  %v2073_v6 = vld [vmem:[#allocation12 + $0x700] sm:$0xff]  ;;  %v6271_v25 = vld [vmem:[%s6645_s19 + $0xb8] sm:$0xff] }
 0x20b   : > { %v843_v20 = vadd.f32 %v842_v22, %v7027_v47  ;;  %v955_v4 = vpop.f32.mrf.mxu3  ;;  %v7349_v22 = vld [vmem:[%s6645_s19 + $0x1c8] sm:$0xff]  ;;  %2130 = vmatpush.msra.mxu0 %v1849_v16  ;;  %v6269_v16 = vld [vmem:[%s6645_s19 + $0xb0] sm:$0xff]  ;;  %2461 = vmatpush.msra.mxu3 %v2073_v6 }
 0x20c   : > { %v7337_v54 = vpop.f32.mrf.mxu0  ;;  %v6275_v6 = vld [vmem:[%s6645_s19 + $0xc8] sm:$0xff] }
 0x20d   : > { %12742 = vst [vmem:[#allocation90_spill] sm:$0xff] %v7337_v54  ;;  %v7339_v9 = vadd.f32 %v955_v4, %v843_v20  ;;  %v7341_v58 = vpop.f32.mrf.mxu1  ;;  %v6267_v20 = vld [vmem:[%s6645_s19 + $0xa8] sm:$0xff] }
 0x20e   : > { %12744 = vst [vmem:[#allocation92_spill] sm:$0xff] %v7341_v58 }
 0x20f   : > { %12743 = vst [vmem:[#allocation91_spill] sm:$0xff] %v7339_v9  ;;  %1076 = vmatmul.f32.gmra.mxu0 %v7344_v24  ;;  %1248 = vmatmul.f32.gmra.mxu2 %v6265_v5 }
 0x210   : > { %1189 = vmatmul.f32.gmra.mxu1 %v7349_v22  ;;  %1361 = vmatmul.f32.gmra.mxu3 %v6267_v20  ;;  %v7366_v20 = vld [vmem:[%s6645_s19 + $0x1d8] sm:$0xff] }
 0x212   : > { %v845_v32 = vpop.f32.mrf.mxu2 }
 0x213   : > { %v846_v4 = vadd.f32 %v845_v32, %v7027_v47  ;;  %v958_v58 = vpop.f32.mrf.mxu3 }
 0x214   : > { %v7354_v54 = vpop.f32.mrf.mxu0 }
 0x215   : > { %12745 = vst [vmem:[#allocation93_spill] sm:$0xff] %v7354_v54  ;;  %v7356_v5 = vadd.f32 %v958_v58, %v846_v4  ;;  %v7358_v9 = vpop.f32.mrf.mxu1 }
 0x216   : > { %12747 = vst [vmem:[#allocation95_spill] sm:$0xff] %v7358_v9 }
 0x217   : > { %12746 = vst [vmem:[#allocation94_spill] sm:$0xff] %v7356_v5  ;;  %1079 = vmatmul.f32.gmra.mxu0 %v7361_v21  ;;  %1251 = vmatmul.f32.gmra.mxu2 %v6269_v16  ;;  %v7378_v5 = vld [vmem:[%s6645_s19 + $0x1e0] sm:$0xff] }
 0x218   : > { %1192 = vmatmul.f32.gmra.mxu1 %v7366_v20  ;;  %1364 = vmatmul.f32.gmra.mxu3 %v6271_v25  ;;  %12751 = vst [vmem:[#allocation99_spill] sm:$0xff] %v7378_v5  ;;  %v12108_v25 = vlaneseq }
 0x21a   : > { %v848_v58 = vpop.f32.mrf.mxu2 }
 0x21b   : > { %v849_v32 = vadd.f32 %v848_v58, %v7027_v47  ;;  %v961_v4 = vpop.f32.mrf.mxu3  ;;  %v2005_v58 = vld [vmem:[#allocation12 + $0x4e0] sm:$0xff] }
 0x21c   : > { %v7371_v9 = vpop.f32.mrf.mxu0  ;;  %2349 = vmatpush.msra.mxu2 %v2005_v58  ;;  %v6277_v58 = vld [vmem:[%s6645_s19 + $0xd0] sm:$0xff] }
 0x21d   : > { %12748 = vst [vmem:[#allocation96_spill] sm:$0xff] %v7371_v9  ;;  %v7373_v54 = vadd.f32 %v961_v4, %v849_v32  ;;  %v7375_v16 = vpop.f32.mrf.mxu1  ;;  %v7392_v9 = vshrl.u32 %v12108_v25, 7  ;;  %v6279_v25 = vld [vmem:[%s6645_s19 + $0xd8] sm:$0xff] }
 0x21e   : > { %12750 = vst [vmem:[#allocation98_spill] sm:$0xff] %v7375_v16 }
 0x21f   : > { %12749 = vst [vmem:[#allocation97_spill] sm:$0xff] %v7373_v54  ;;  %1082 = vmatmul.f32.gmra.mxu0 %v7378_v5  ;;  %1254 = vmatmul.f32.gmra.mxu2 %v6273_v44  ;;  %v12754_v54 = vld [vmem:[#allocation29_spill] sm:$0xff]  ;;  %v6283_v5 = vld [vmem:[%s6645_s19 + $0xf8] sm:$0xff] }
 0x220   : > { %1195 = vmatmul.f32.gmra.mxu1 %v7383_v38  ;;  %1367 = vmatmul.f32.gmra.mxu3 %v6275_v6  ;;  %v542_v6 = vadd.f32 %v12754_v54, %v6887_v27  ;;  %v1591_v54 = vadd.s32 %v7400_v46, %v7392_v9 }
 0x222   : > { %v851_v32 = vpop.f32.mrf.mxu2 }
 0x223   : > { %v852_v4 = vadd.f32 %v851_v32, %v7027_v47  ;;  %v964_v16 = vpop.f32.mrf.mxu3  ;;  %v2069_v32 = vld [vmem:[#allocation12 + $0x6e0] sm:$0xff] }
 0x224   : > { %v7389_v44 = vpop.f32.mrf.mxu0  ;;  %2462 = vmatpush.msra.mxu3 %v2069_v32 }
 0x225   : > { %12753 = vst [vmem:[#allocation101_spill] sm:$0xff] %v7389_v44  ;;  %v7396_v60 = vadd.f32 %v964_v16, %v852_v4  ;;  %v7398_v61 = vpop.f32.mrf.mxu1  ;;  %v7408_v44 = vld [vmem:[%s6645_s19 + $0x1f8] sm:$0xff]  ;;  %v12759_v16 = vld [vmem:[#allocation30_spill] sm:$0xff] }
 0x226   : > { %12756 = vst [vmem:[#allocation102_spill] sm:$0xff] %v7398_v61  ;;  %v655_v4 = vadd.f32 %v12759_v16, %v542_v6  ;;  %v7415_v61 = vstv %s1623_s14  ;;  %v12765_v6 = vld [vmem:[#allocation31_spill] sm:$0xff] }
 0x227   : > { %12755 = vst [vmem:[#allocation29_spill] sm:$0xff] %v7396_v60  ;;  %1085 = vmatmul.f32.gmra.mxu0 %v7403_v8  ;;  %1257 = vmatmul.f32.gmra.mxu2 %v6277_v58  ;;  %vm7421_vm2 = vcmp.lt.s32.totalorder %v1591_v54, %v7415_v61  ;;  %v545_v16 = vadd.f32 %v12765_v6, %v6887_v27  ;;  %v6281_v54 = vld [vmem:[%s6645_s19 + $0xe8] sm:$0xff]  ;;  %v2001_v6 = vld [vmem:[#allocation12 + $0x4c0] sm:$0xff] }
 0x228   : > { %12758 = vst [vmem:[#allocation104_spill] sm:$0xff] %v7408_v44  ;;  %1198 = vmatmul.f32.gmra.mxu1 %v7408_v44  ;;  %1370 = vmatmul.f32.gmra.mxu3 %v6279_v25  ;;  %v12761_v44 = vmov 0  ;;  %v1559_v25 = vadd.s32 8, %v7392_v9  ;;  %v7426_v36 = vmax.f32 %v655_v4, 0.0  ;;  %v12769_v4 = vld [vmem:[#allocation33_spill] sm:$0xff] }
 0x229   : > { %v12762_v44 = vsel %vm7421_vm2, 4294967295, %v12761_v44  ;;  %2350 = vmatpush.msra.mxu2 %v2001_v6 }
 0x22a   : > { %v854_v60 = vpop.f32.mrf.mxu2  ;;  %12763 = vst [vmem:[#allocation105_spill] sm:$0xff] %v12762_v44  ;;  %v1910_v44 = vld [vmem:[#allocation12 + $0x1e8] sm:$0xff] }
 0x22b   : > { %v855_v58 = vadd.f32 %v854_v60, %v7027_v47  ;;  %v967_v8 = vpop.f32.mrf.mxu3  ;;  %12764 = vst [vmem:[#allocation106_spill] sm:$0xff] %v7426_v36  ;;  %v7435_v60 = vmax.f32 %v7034_v30, 0.0  ;;  %2567 = vmatpush.msrb.mxu0 %v1910_v44 }
 0x22c   : > { %v7418_v55 = vpop.f32.mrf.mxu0 }
 0x22d   : > { %12760 = vst [vmem:[#allocation30_spill] sm:$0xff] %v7418_v55  ;;  %v7430_v38 = vadd.f32 %v967_v8, %v855_v58  ;;  %v7432_v32 = vpop.f32.mrf.mxu1  ;;  %v6280_v55 = vld [vmem:[%s6645_s19 + $0xe0] sm:$0xff]  ;;  %v1592_v8 = vadd.s32 %v7400_v46, %v1559_v25  ;;  %v658_v58 = vadd.f32 %v12769_v4, %v545_v16  ;;  %v12775_v25 = vld [vmem:[#allocation34_spill] sm:$0xff] }
 0x22e   : > { %12767 = vst [vmem:[#allocation107_spill] sm:$0xff] %v7432_v32  ;;  %v548_v16 = vadd.f32 %v12775_v25, %v6887_v27 }
 0x22f   : > { %12766 = vst [vmem:[#allocation31_spill] sm:$0xff] %v7430_v38  ;;  %1260 = vmatmul.f32.gmra.mxu2 %v6280_v55  ;;  %5096 = vmatmul.msk.f32.vlgmr.msra.gmra.mxu0 %vm7421_vm2, %v7426_v36  ;;  %vm7451_vm3 = vcmp.lt.s32.totalorder %v1592_v8, %v7415_v61  ;;  %v7456_v36 = vmax.f32 %v658_v58, 0.0  ;;  %v2065_v8 = vld [vmem:[#allocation12 + $0x6c0] sm:$0xff]  ;;  %v1974_v58 = vld [vmem:[#allocation12 + $0x3e8] sm:$0xff] }
 0x230   : > { %12768 = vst [vmem:[#allocation108_spill] sm:$0xff] %v7435_v60  ;;  %1373 = vmatmul.f32.gmra.mxu3 %v6281_v54  ;;  %5128 = vmatmul.msk.f32.vlgmr.msra.gmra.mxu1 %vm7421_vm2, %v7435_v60  ;;  %v12771_v54 = vmov 0  ;;  %v1560_v60 = vadd.s32 16, %v7392_v9 }
 0x231   : > { %v12772_v54 = vsel %vm7451_vm3, 4294967295, %v12771_v54  ;;  %12774 = vst [vmem:[#allocation110_spill] sm:$0xff] %v7456_v36  ;;  %2463 = vmatpush.msra.mxu3 %v2065_v8  ;;  %2680 = vmatpush.msrb.mxu1 %v1974_v58 }
 0x232   : > { %v857_v30 = vpop.f32.mrf.mxu2  ;;  %12773 = vst [vmem:[#allocation109_spill] sm:$0xff] %v12772_v54 }
 0x233   : > { %v858_v55 = vadd.f32 %v857_v30, %v7027_v47  ;;  %v970_v32 = vpop.f32.mrf.mxu3  ;;  %v7465_v30 = vmax.f32 %v7045_v35, 0.0 }
 0x234   : > { %v7448_v38 = vpop.f32.mrf.mxu0 }
 0x235   : > { %12770 = vst [vmem:[#allocation33_spill] sm:$0xff] %v7448_v38  ;;  %v7460_v4 = vadd.f32 %v970_v32, %v858_v55  ;;  %v7462_v6 = vpop.f32.mrf.mxu1  ;;  %v6282_v38 = vld [vmem:[%s6645_s19 + $0xf0] sm:$0xff]  ;;  %v1593_v32 = vadd.s32 %v7400_v46, %v1560_v60  ;;  %v12779_v55 = vld [vmem:[#allocation36_spill] sm:$0xff]  ;;  %v1561_v60 = vadd.s32 24, %v7392_v9 }
 0x236   : > { %12777 = vst [vmem:[#allocation111_spill] sm:$0xff] %v7462_v6  ;;  %v661_v35 = vadd.f32 %v12779_v55, %v548_v16  ;;  %v12785_v16 = vld [vmem:[#allocation37_spill] sm:$0xff] }
 0x237   : > { %12776 = vst [vmem:[#allocation34_spill] sm:$0xff] %v7460_v4  ;;  %1263 = vmatmul.f32.gmra.mxu2 %v6282_v38  ;;  %5097 = vmatmul.msk.f32.gmra.mxu0 %vm7451_vm3, %v7456_v36  ;;  %vm7481_vm4 = vcmp.lt.s32.totalorder %v1593_v32, %v7415_v61  ;;  %v551_v44 = vadd.f32 %v12785_v16, %v6887_v27  ;;  %v6284_v55 = vld [vmem:[%s6645_s19 + $0x100] sm:$0xff]  ;;  %v7504_v32 = vld [vmem:[%s12091_s3] sm:$0xf]  ;;  %v1906_v4 = vld [vmem:[#allocation12 + $0x1c8] sm:$0xff] }
 0x238   : > { %12778 = vst [vmem:[#allocation112_spill] sm:$0xff] %v7465_v30  ;;  %1376 = vmatmul.f32.gmra.mxu3 %v6283_v5  ;;  %5129 = vmatmul.msk.f32.gmra.mxu1 %vm7451_vm3, %v7465_v30  ;;  %v12781_v5 = vmov 0  ;;  %v7486_v30 = vmax.f32 %v661_v35, 0.0  ;;  %v7507_v35 = vperm.slane %v7504_v32, 3  ;;  %v1997_v16 = vld [vmem:[#allocation12 + $0x4a0] sm:$0xff] }
 0x239   : > { %v12782_v5 = vsel %vm7481_vm4, 4294967295, %v12781_v5  ;;  %2351 = vmatpush.msra.mxu2 %v1997_v16  ;;  %2568 = vmatpush.msrb.mxu0 %v1906_v4 }
 0x23a   : > { %v860_v38 = vpop.f32.mrf.mxu2  ;;  %12783 = vst [vmem:[#allocation113_spill] sm:$0xff] %v12782_v5  ;;  %v6288_v5 = vld [vmem:[%s6645_s19 + $0x118] sm:$0xff] }
 0x23b   : > { %v861_v25 = vadd.f32 %v860_v38, %v7027_v47  ;;  %v973_v6 = vpop.f32.mrf.mxu3  ;;  %12784 = vst [vmem:[#allocation114_spill] sm:$0xff] %v7486_v30  ;;  %v7495_v47 = vmax.f32 %v7056_v59, 0.0  ;;  %v1594_v59 = vadd.s32 %v7400_v46, %v1561_v60  ;;  %v12789_v38 = vld [vmem:[#allocation39_spill] sm:$0xff]  ;;  %v12795_v60 = vld [vmem:[#allocation40_spill] sm:$0xff] }
 0x23c   : > { %v7478_v36 = vpop.f32.mrf.mxu0 }
 0x23d   : > { %12780 = vst [vmem:[#allocation36_spill] sm:$0xff] %v7478_v36  ;;  %v7490_v8 = vadd.f32 %v973_v6, %v861_v25  ;;  %v7492_v58 = vpop.f32.mrf.mxu1  ;;  %v6286_v6 = vld [vmem:[%s6645_s19 + $0x108] sm:$0xff]  ;;  %v664_v25 = vadd.f32 %v12789_v38, %v551_v44  ;;  %vm7519_vm5 = vcmp.lt.s32.totalorder %v1594_v59, %v7415_v61  ;;  %v554_v44 = vadd.f32 %v12795_v60, %v6887_v27  ;;  %v2061_v59 = vld [vmem:[#allocation12 + $0x6a0] sm:$0xff] }
 0x23e   : > { %12787 = vst [vmem:[#allocation115_spill] sm:$0xff] %v7492_v58  ;;  %2464 = vmatpush.msra.mxu3 %v2061_v59 }
 0x23f   : > { %12786 = vst [vmem:[#allocation37_spill] sm:$0xff] %v7490_v8  ;;  %1266 = vmatmul.f32.gmra.mxu2 %v6284_v55  ;;  %5098 = vmatmul.msk.f32.gmra.mxu0 %vm7481_vm4, %v7486_v30  ;;  %v7524_v8 = vmax.f32 %v664_v25, 0.0  ;;  %v1970_v25 = vld [vmem:[#allocation12 + $0x3c8] sm:$0xff] }
 0x240   : > { %12788 = vst [vmem:[#allocation116_spill] sm:$0xff] %v7495_v47  ;;  %1379 = vmatmul.f32.gmra.mxu3 %v6286_v6  ;;  %5130 = vmatmul.msk.f32.gmra.mxu1 %vm7481_vm4, %v7495_v47  ;;  %v12791_v6 = vmov 0  ;;  %v1562_v47 = vadd.s32 32, %v7392_v9 }
 0x241   : > { %v12792_v6 = vsel %vm7519_vm5, 4294967295, %v12791_v6  ;;  %12794 = vst [vmem:[#allocation118_spill] sm:$0xff] %v7524_v8  ;;  %2681 = vmatpush.msrb.mxu1 %v1970_v25 }
 0x242   : > { %v1219_v55 = vpop.f32.mrf.mxu2  ;;  %12793 = vst [vmem:[#allocation117_spill] sm:$0xff] %v12792_v6  ;;  %v6292_v6 = vld [vmem:[%s6645_s19 + $0x138] sm:$0xff] }
 0x243   : > { %v1220_v58 = vadd.f32 %v1219_v55, %v7507_v35  ;;  %v1332_v36 = vpop.f32.mrf.mxu3  ;;  %v7533_v55 = vmax.f32 %v7067_v57, 0.0 }
 0x244   : > { %v7516_v30 = vpop.f32.mrf.mxu0 }
 0x245   : > { %12790 = vst [vmem:[#allocation39_spill] sm:$0xff] %v7516_v30  ;;  %v7528_v38 = vadd.f32 %v1332_v36, %v1220_v58  ;;  %v7530_v16 = vpop.f32.mrf.mxu1  ;;  %v6287_v30 = vld [vmem:[%s6645_s19 + $0x110] sm:$0xff]  ;;  %v1595_v36 = vadd.s32 %v7400_v46, %v1562_v47  ;;  %v1563_v47 = vadd.s32 40, %v7392_v9 }
 0x246   : > { %12796 = vst [vmem:[#allocation40_spill] sm:$0xff] %v7530_v16  ;;  %v12798_v58 = vld [vmem:[#allocation42_spill] sm:$0xff] }
 0x247   : > { %12797 = vst [vmem:[#allocation119_spill] sm:$0xff] %v7533_v55  ;;  %1269 = vmatmul.f32.gmra.mxu2 %v6287_v30  ;;  %5099 = vmatmul.msk.f32.gmra.mxu0 %vm7519_vm5, %v7524_v8  ;;  %v667_v57 = vadd.f32 %v12798_v58, %v554_v44  ;;  %vm7549_vm6 = vcmp.lt.s32.totalorder %v1595_v36, %v7415_v61  ;;  %v12804_v44 = vld [vmem:[#allocation43_spill] sm:$0xff]  ;;  %v7563_v58 = vmax.f32 %v7078_v19, 0.0  ;;  %v6290_v36 = vld [vmem:[%s6645_s19 + $0x128] sm:$0xff] }
 0x248   : > { %1382 = vmatmul.f32.gmra.mxu3 %v6288_v5  ;;  %5131 = vmatmul.msk.f32.gmra.mxu1 %vm7519_vm5, %v7533_v55  ;;  %v12800_v5 = vmov 0  ;;  %v557_v4 = vadd.f32 %v12804_v44, %v6887_v27  ;;  %v1993_v44 = vld [vmem:[#allocation12 + $0x480] sm:$0xff] }
 0x249   : > { %v12801_v5 = vsel %vm7549_vm6, 4294967295, %v12800_v5  ;;  %v7554_v55 = vmax.f32 %v667_v57, 0.0  ;;  %12806 = vst [vmem:[#allocation122_spill] sm:$0xff] %v7563_v58  ;;  %v12807_v57 = vld [vmem:[#allocation45_spill] sm:$0xff]  ;;  %2352 = vmatpush.msra.mxu2 %v1993_v44 }
 0x24a   : > { %v1222_v30 = vpop.f32.mrf.mxu2  ;;  %12802 = vst [vmem:[#allocation120_spill] sm:$0xff] %v12801_v5  ;;  %v1902_v5 = vld [vmem:[#allocation12 + $0x1a8] sm:$0xff] }
 0x24b   : > { %v1223_v60 = vadd.f32 %v1222_v30, %v7507_v35  ;;  %v1335_v16 = vpop.f32.mrf.mxu3  ;;  %12803 = vst [vmem:[#allocation121_spill] sm:$0xff] %v7554_v55  ;;  %v6289_v30 = vld [vmem:[%s6645_s19 + $0x120] sm:$0xff]  ;;  %2569 = vmatpush.msrb.mxu0 %v1902_v5  ;;  %v563_v5 = vadd.f32 %v6996_v42, %v6887_v27 }
 0x24c   : > { %v7546_v8 = vpop.f32.mrf.mxu0 }
 0x24d   : > { %12799 = vst [vmem:[#allocation42_spill] sm:$0xff] %v7546_v8  ;;  %v7558_v59 = vadd.f32 %v1335_v16, %v1223_v60  ;;  %v7560_v25 = vpop.f32.mrf.mxu1  ;;  %v1596_v16 = vadd.s32 %v7400_v46, %v1563_v47  ;;  %v670_v60 = vadd.f32 %v12807_v57, %v557_v4  ;;  %v12813_v47 = vld [vmem:[#allocation46_spill] sm:$0xff] }
 0x24e   : > { %12805 = vst [vmem:[#allocation43_spill] sm:$0xff] %v7560_v25  ;;  %v560_v4 = vadd.f32 %v12813_v47, %v6887_v27 }
 0x24f   : > { %1272 = vmatmul.f32.gmra.mxu2 %v6289_v30  ;;  %5100 = vmatmul.msk.f32.gmra.mxu0 %vm7549_vm6, %v7554_v55  ;;  %vm7579_vm7 = vcmp.lt.s32.totalorder %v1596_v16, %v7415_v61  ;;  %v7584_v55 = vmax.f32 %v670_v60, 0.0  ;;  %v2057_v16 = vld [vmem:[#allocation12 + $0x680] sm:$0xff]  ;;  %v1966_v60 = vld [vmem:[#allocation12 + $0x3a8] sm:$0xff] }
 0x250   : > { %1385 = vmatmul.f32.gmra.mxu3 %v6290_v36  ;;  %5132 = vmatmul.msk.f32.gmra.mxu1 %vm7549_vm6, %v7563_v58  ;;  %v12809_v36 = vmov 0  ;;  %v1564_v58 = vadd.s32 48, %v7392_v9 }
 0x251   : > { %v12810_v36 = vsel %vm7579_vm7, 4294967295, %v12809_v36  ;;  %12812 = vst [vmem:[#allocation124_spill] sm:$0xff] %v7584_v55  ;;  %2465 = vmatpush.msra.mxu3 %v2057_v16  ;;  %2682 = vmatpush.msrb.mxu1 %v1966_v60  ;;  %v7623_v60 = vmax.f32 %v7100_v41, 0.0 }
 0x252   : > { %v1225_v19 = vpop.f32.mrf.mxu2  ;;  %12811 = vst [vmem:[#allocation123_spill] sm:$0xff] %v12810_v36 }
 0x253   : > { %v1226_v30 = vadd.f32 %v1225_v19, %v7507_v35  ;;  %v1338_v25 = vpop.f32.mrf.mxu3  ;;  %v7593_v19 = vmax.f32 %v7089_v17, 0.0  ;;  %12823 = vst [vmem:[#allocation129_spill] sm:$0xff] %v7623_v60 }
 0x254   : > { %v7576_v8 = vpop.f32.mrf.mxu0 }
 0x255   : > { %12808 = vst [vmem:[#allocation45_spill] sm:$0xff] %v7576_v8  ;;  %v7588_v57 = vadd.f32 %v1338_v25, %v1226_v30  ;;  %v7590_v44 = vpop.f32.mrf.mxu1  ;;  %v6291_v8 = vld [vmem:[%s6645_s19 + $0x130] sm:$0xff]  ;;  %v1597_v25 = vadd.s32 %v7400_v46, %v1564_v58  ;;  %v12816_v30 = vld [vmem:[#allocation48_spill] sm:$0xff]  ;;  %v1565_v58 = vadd.s32 56, %v7392_v9 }
 0x256   : > { %12814 = vst [vmem:[#allocation46_spill] sm:$0xff] %v7590_v44  ;;  %v673_v17 = vadd.f32 %v12816_v30, %v560_v4  ;;  %v6293_v30 = vld [vmem:[%s6645_s19 + $0x140] sm:$0xff] }
 0x257   : > { %12815 = vst [vmem:[#allocation125_spill] sm:$0xff] %v7593_v19  ;;  %1275 = vmatmul.f32.gmra.mxu2 %v6291_v8  ;;  %5101 = vmatmul.msk.f32.gmra.mxu0 %vm7579_vm7, %v7584_v55  ;;  %vm7609_vm8 = vcmp.lt.s32.totalorder %v1597_v25, %v7415_v61  ;;  %v6294_v25 = vld [vmem:[%s6645_s19 + $0x148] sm:$0xff]  ;;  %v1598_v42 = vadd.s32 %v7400_v46, %v1565_v58 }
 0x258   : > { %1388 = vmatmul.f32.gmra.mxu3 %v6292_v6  ;;  %5133 = vmatmul.msk.f32.gmra.mxu1 %vm7579_vm7, %v7593_v19  ;;  %v12818_v6 = vmov 0  ;;  %v7614_v19 = vmax.f32 %v673_v17, 0.0  ;;  %v566_v58 = vadd.f32 %v7007_v33, %v6887_v27 }
 0x259   : > { %v12819_v6 = vsel %vm7609_vm8, 4294967295, %v12818_v6  ;;  %vm7639_vm9 = vcmp.lt.s32.totalorder %v1598_v42, %v7415_v61  ;;  %v2053_v42 = vld [vmem:[#allocation12 + $0x660] sm:$0xff] }
 0x25a   : > { %v1228_v8 = vpop.f32.mrf.mxu2  ;;  %12820 = vst [vmem:[#allocation126_spill] sm:$0xff] %v12819_v6  ;;  %2466 = vmatpush.msra.mxu3 %v2053_v42  ;;  %v7683_v42 = vmax.f32 %v7122_v31, 0.0 }
 0x25b   : > { %v1229_v47 = vadd.f32 %v1228_v8, %v7507_v35  ;;  %v1341_v44 = vpop.f32.mrf.mxu3  ;;  %12821 = vst [vmem:[#allocation127_spill] sm:$0xff] %v7614_v19  ;;  %v1989_v8 = vld [vmem:[#allocation12 + $0x460] sm:$0xff] }
 0x25c   : > { %v7606_v55 = vpop.f32.mrf.mxu0  ;;  %2353 = vmatpush.msra.mxu2 %v1989_v8  ;;  %v7653_v8 = vmax.f32 %v7111_v39, 0.0  ;;  %v679_v39 = vadd.f32 %v7011_v10, %v566_v58  ;;  %v569_v10 = vadd.f32 %v7018_v18, %v6887_v27  ;;  %12838 = vst [vmem:[#allocation138_spill] sm:$0xff] %v7683_v42 }
 0x25d   : > { %12817 = vst [vmem:[#allocation48_spill] sm:$0xff] %v7606_v55  ;;  %v7618_v4 = vadd.f32 %v1341_v44, %v1229_v47  ;;  %v7620_v16 = vpop.f32.mrf.mxu1  ;;  %v12824_v44 = vld [vmem:[#allocation50_spill] sm:$0xff]  ;;  %v1566_v55 = vadd.s32 64, %v7392_v9 }
 0x25e   : > { %12822 = vst [vmem:[#allocation128_spill] sm:$0xff] %v7620_v16  ;;  %v676_v17 = vadd.f32 %v12824_v44, %v563_v5 }
 0x25f   : > { %1278 = vmatmul.f32.gmra.mxu2 %v6293_v30  ;;  %5102 = vmatmul.msk.f32.gmra.mxu0 %vm7609_vm8, %v7614_v19  ;;  %12831 = vst [vmem:[#allocation133_spill] sm:$0xff] %v7653_v8  ;;  %v6296_v19 = vld [vmem:[%s6645_s19 + $0x158] sm:$0xff]  ;;  %v1599_v33 = vadd.s32 %v7400_v46, %v1566_v55  ;;  %v1567_v55 = vadd.s32 72, %v7392_v9 }
 0x260   : > { %1391 = vmatmul.f32.gmra.mxu3 %v6294_v25  ;;  %5134 = vmatmul.msk.f32.gmra.mxu1 %vm7609_vm8, %v7623_v60  ;;  %v12826_v25 = vmov 0  ;;  %v7644_v60 = vmax.f32 %v676_v17, 0.0  ;;  %v1962_v17 = vld [vmem:[#allocation12 + $0x388] sm:$0xff] }
 0x261   : > { %v12827_v25 = vsel %vm7639_vm9, 4294967295, %v12826_v25  ;;  %2683 = vmatpush.msrb.mxu1 %v1962_v17  ;;  %vm7669_vm10 = vcmp.lt.s32.totalorder %v1599_v33, %v7415_v61  ;;  %v6297_v17 = vld [vmem:[%s6645_s19 + $0x160] sm:$0xff]  ;;  %v6298_v33 = vld [vmem:[%s6645_s19 + $0x168] sm:$0xff]  ;;  %v1600_v18 = vadd.s32 %v7400_v46, %v1567_v55 }
 0x262   : > { %v1231_v41 = vpop.f32.mrf.mxu2  ;;  %12828 = vst [vmem:[#allocation130_spill] sm:$0xff] %v12827_v25 }
 0x263   : > { %v1232_v47 = vadd.f32 %v1231_v41, %v7507_v35  ;;  %v1344_v30 = vpop.f32.mrf.mxu3  ;;  %12829 = vst [vmem:[#allocation131_spill] sm:$0xff] %v7644_v60  ;;  %v6295_v41 = vld [vmem:[%s6645_s19 + $0x150] sm:$0xff]  ;;  %vm7699_vm11 = vcmp.lt.s32.totalorder %v1600_v18, %v7415_v61  ;;  %v2049_v18 = vld [vmem:[#allocation12 + $0x640] sm:$0xff] }
 0x264   : > { %v7636_v16 = vpop.f32.mrf.mxu0  ;;  %2467 = vmatpush.msra.mxu3 %v2049_v18 }
 0x265   : > { %12825 = vst [vmem:[#allocation50_spill] sm:$0xff] %v7636_v16  ;;  %v7648_v5 = vadd.f32 %v1344_v30, %v1232_v47  ;;  %v7650_v44 = vpop.f32.mrf.mxu1  ;;  %v1898_v16 = vld [vmem:[#allocation12 + $0x188] sm:$0xff] }
 0x266   : > { %12830 = vst [vmem:[#allocation132_spill] sm:$0xff] %v7650_v44  ;;  %2570 = vmatpush.msrb.mxu0 %v1898_v16 }
 0x267   : > { %1281 = vmatmul.f32.gmra.mxu2 %v6295_v41  ;;  %5103 = vmatmul.msk.f32.gmra.mxu0 %vm7639_vm9, %v7644_v60 }
 0x268   : > { %1394 = vmatmul.f32.gmra.mxu3 %v6296_v19  ;;  %5135 = vmatmul.msk.f32.gmra.mxu1 %vm7639_vm9, %v7653_v8  ;;  %v12833_v19 = vmov 0  ;;  %v7674_v8 = vmax.f32 %v679_v39, 0.0  ;;  %v682_v39 = vadd.f32 %v7022_v62, %v569_v10  ;;  %v572_v62 = vadd.f32 %v7032_v37, %v6887_v27 }
 0x269   : > { %v12834_v19 = vsel %vm7669_vm10, 4294967295, %v12833_v19 }
 0x26a   : > { %v1234_v47 = vpop.f32.mrf.mxu2  ;;  %12835 = vst [vmem:[#allocation135_spill] sm:$0xff] %v12834_v19 }
 0x26b   : > { %v1235_v30 = vadd.f32 %v1234_v47, %v7507_v35  ;;  %v1347_v41 = vpop.f32.mrf.mxu3  ;;  %12836 = vst [vmem:[#allocation136_spill] sm:$0xff] %v7674_v8  ;;  %v1985_v47 = vld [vmem:[#allocation12 + $0x440] sm:$0xff] }
 0x26c   : > { %v7666_v44 = vpop.f32.mrf.mxu0  ;;  %2354 = vmatpush.msra.mxu2 %v1985_v47  ;;  %v7713_v47 = vmax.f32 %v7133_v63, 0.0 }
 0x26d   : > { %12832 = vst [vmem:[#allocation134_spill] sm:$0xff] %v7666_v44  ;;  %v7678_v16 = vadd.f32 %v1347_v41, %v1235_v30  ;;  %v7680_v58 = vpop.f32.mrf.mxu1  ;;  %v7704_v44 = vmax.f32 %v682_v39, 0.0  ;;  %v1958_v39 = vld [vmem:[#allocation12 + $0x368] sm:$0xff] }
 0x26e   : > { %12837 = vst [vmem:[#allocation137_spill] sm:$0xff] %v7680_v58  ;;  %v12840_v58 = vmov 0  ;;  %2684 = vmatpush.msrb.mxu1 %v1958_v39 }
 0x26f   : > { %1284 = vmatmul.f32.gmra.mxu2 %v6297_v17  ;;  %5104 = vmatmul.msk.f32.gmra.mxu0 %vm7669_vm10, %v7674_v8  ;;  %v12841_v58 = vsel %vm7699_vm11, 4294967295, %v12840_v58  ;;  %12843 = vst [vmem:[#allocation141_spill] sm:$0xff] %v7704_v44  ;;  %v12940_v8 = vld [vmem:[#allocation17_spill] sm:$0xff] }
 0x270   : > { %1397 = vmatmul.f32.gmra.mxu3 %v6298_v33  ;;  %5136 = vmatmul.msk.f32.gmra.mxu1 %vm7669_vm10, %v7683_v42  ;;  %12842 = vst [vmem:[#allocation140_spill] sm:$0xff] %v12841_v58  ;;  %v1568_v33 = vadd.s32 80, %v7392_v9 }
 0x271   : > { %12845 = vst [vmem:[#allocation143_spill] sm:$0xff] %v7713_v47 }
 0x272   : > { %v1237_v30 = vpop.f32.mrf.mxu2  ;;  %v1601_v37 = vadd.s32 %v7400_v46, %v1568_v33  ;;  %v575_v33 = vadd.f32 %v7043_v56, %v6887_v27 }
 0x273   : > { %v1238_v31 = vadd.f32 %v1237_v30, %v7507_v35  ;;  %v1350_v41 = vpop.f32.mrf.mxu3  ;;  %v1894_v30 = vld [vmem:[#allocation12 + $0x168] sm:$0xff] }
 0x274   : > { %v7696_v17 = vpop.f32.mrf.mxu0  ;;  %2571 = vmatpush.msrb.mxu0 %v1894_v30  ;;  %vm7729_vm12 = vcmp.lt.s32.totalorder %v1601_v37, %v7415_v61  ;;  %v7743_v30 = vmax.f32 %v7144_v48, 0.0  ;;  %v1981_v37 = vld [vmem:[#allocation12 + $0x420] sm:$0xff] }
 0x275   : > { %12839 = vst [vmem:[#allocation139_spill] sm:$0xff] %v7696_v17  ;;  %v7708_v55 = vadd.f32 %v1350_v41, %v1238_v31  ;;  %v7710_v10 = vpop.f32.mrf.mxu1  ;;  %v12846_v31 = vld [vmem:[#allocation53_spill] sm:$0xff]  ;;  %2355 = vmatpush.msra.mxu2 %v1981_v37  ;;  %v7773_v37 = vmax.f32 %v7155_v0, 0.0 }
 0x276   : > { %12844 = vst [vmem:[#allocation142_spill] sm:$0xff] %v7710_v10  ;;  %v685_v63 = vadd.f32 %v12846_v31, %v572_v62 }
 0x277   : > { %1287 = vmatmul.f32.gmra.mxu2 %v7259_v1  ;;  %5105 = vmatmul.msk.f32.gmra.mxu0 %vm7699_vm11, %v7704_v44  ;;  %12853 = vst [vmem:[#allocation147_spill] sm:$0xff] %v7743_v30 }
 0x278   : > { %1400 = vmatmul.f32.gmra.mxu3 %v7264_v28  ;;  %5137 = vmatmul.msk.f32.gmra.mxu1 %vm7699_vm11, %v7713_v47  ;;  %v12848_v28 = vmov 0  ;;  %v1569_v47 = vadd.s32 88, %v7392_v9  ;;  %v7734_v44 = vmax.f32 %v685_v63, 0.0  ;;  %12861 = vst [vmem:[#allocation151_spill] sm:$0xff] %v7773_v37 }
 0x279   : > { %v12849_v28 = vsel %vm7729_vm12, 4294967295, %v12848_v28 }
 0x27a   : > { %v1240_v1 = vpop.f32.mrf.mxu2  ;;  %12850 = vst [vmem:[#allocation144_spill] sm:$0xff] %v12849_v28  ;;  %v1602_v56 = vadd.s32 %v7400_v46, %v1569_v47  ;;  %v578_v47 = vadd.f32 %v7054_v12, %v6887_v27 }
 0x27b   : > { %v1241_v41 = vadd.f32 %v1240_v1, %v7507_v35  ;;  %v1353_v10 = vpop.f32.mrf.mxu3  ;;  %12851 = vst [vmem:[#allocation145_spill] sm:$0xff] %v7734_v44  ;;  %v12856_v1 = vmov 0 }
 0x27c   : > { %v7726_v17 = vpop.f32.mrf.mxu0  ;;  %vm7759_vm13 = vcmp.lt.s32.totalorder %v1602_v56, %v7415_v61  ;;  %v2045_v56 = vld [vmem:[#allocation12 + $0x620] sm:$0xff] }
 0x27d   : > { %12847 = vst [vmem:[#allocation53_spill] sm:$0xff] %v7726_v17  ;;  %v7738_v62 = vadd.f32 %v1353_v10, %v1241_v41  ;;  %v7740_v18 = vpop.f32.mrf.mxu1  ;;  %v12854_v10 = vld [vmem:[#allocation54_spill] sm:$0xff]  ;;  %v12857_v1 = vsel %vm7759_vm13, 4294967295, %v12856_v1  ;;  %2468 = vmatpush.msra.mxu3 %v2045_v56 }
 0x27e   : > { %12852 = vst [vmem:[#allocation146_spill] sm:$0xff] %v7740_v18  ;;  %v688_v39 = vadd.f32 %v12854_v10, %v575_v33  ;;  %v1571_v18 = vadd.s32 104, %v7392_v9 }
 0x27f   : > { %1290 = vmatmul.f32.gmra.mxu2 %v7276_v13  ;;  %5106 = vmatmul.msk.f32.gmra.mxu0 %vm7729_vm12, %v7734_v44  ;;  %12858 = vst [vmem:[#allocation148_spill] sm:$0xff] %v12857_v1  ;;  %v8038_v44 = vmax.f32 %v7558_v59, 0.0 }
 0x280   : > { %1403 = vmatmul.f32.gmra.mxu3 %v7281_v40  ;;  %5138 = vmatmul.msk.f32.gmra.mxu1 %vm7729_vm12, %v7743_v30  ;;  %v1570_v40 = vadd.s32 96, %v7392_v9  ;;  %v7764_v41 = vmax.f32 %v688_v39, 0.0  ;;  %v1954_v39 = vld [vmem:[#allocation12 + $0x348] sm:$0xff] }
 0x281   : > { %2685 = vmatpush.msrb.mxu1 %v1954_v39  ;;  %v12870_v39 = vld [vmem:[#allocation56_spill] sm:$0xff] }
 0x282   : > { %v1243_v31 = vpop.f32.mrf.mxu2  ;;  %12859 = vst [vmem:[#allocation149_spill] sm:$0xff] %v7764_v41  ;;  %v1603_v12 = vadd.s32 %v7400_v46, %v1570_v40  ;;  %v581_v40 = vadd.f32 %v7065_v43, %v6887_v27  ;;  %v1604_v43 = vadd.s32 %v7400_v46, %v1571_v18  ;;  %v584_v18 = vadd.f32 %v7076_v15, %v6887_v27 }
 0x283   : > { %v1244_v48 = vadd.f32 %v1243_v31, %v7507_v35  ;;  %v1356_v13 = vpop.f32.mrf.mxu3  ;;  %v1890_v31 = vld [vmem:[#allocation12 + $0x148] sm:$0xff] }
 0x284   : > { %v7756_v63 = vpop.f32.mrf.mxu0  ;;  %2572 = vmatpush.msrb.mxu0 %v1890_v31  ;;  %vm7789_vm14 = vcmp.lt.s32.totalorder %v1603_v12, %v7415_v61  ;;  %v7803_v31 = vmax.f32 %v7166_v51, 0.0  ;;  %v694_v12 = vadd.f32 %v12870_v39, %v581_v40  ;;  %vm7819_vm15 = vcmp.lt.s32.totalorder %v1604_v43, %v7415_v61  ;;  %v2041_v43 = vld [vmem:[#allocation12 + $0x600] sm:$0xff] }
 0x285   : > { %12855 = vst [vmem:[#allocation54_spill] sm:$0xff] %v7756_v63  ;;  %v7768_v33 = vadd.f32 %v1356_v13, %v1244_v48  ;;  %v7770_v10 = vpop.f32.mrf.mxu1  ;;  %v12862_v48 = vld [vmem:[#allocation55_spill] sm:$0xff]  ;;  %v7833_v39 = vmax.f32 %v7177_v14, 0.0  ;;  %2469 = vmatpush.msra.mxu3 %v2041_v43 }
 0x286   : > { %12860 = vst [vmem:[#allocation150_spill] sm:$0xff] %v7770_v10  ;;  %v691_v0 = vadd.f32 %v12862_v48, %v578_v47 }
 0x287   : > { %1293 = vmatmul.f32.gmra.mxu2 %v7293_v23  ;;  %5107 = vmatmul.msk.f32.gmra.mxu0 %vm7759_vm13, %v7764_v41  ;;  %12869 = vst [vmem:[#allocation155_spill] sm:$0xff] %v7803_v31  ;;  %v2102_v41 = vld [vmem:[#allocation12 + $0x7e8] sm:$0xff] }
 0x288   : > { %1406 = vmatmul.f32.gmra.mxu3 %v7298_v11  ;;  %5139 = vmatmul.msk.f32.gmra.mxu1 %vm7759_vm13, %v7773_v37  ;;  %v12864_v11 = vmov 0  ;;  %v7794_v37 = vmax.f32 %v691_v0, 0.0  ;;  %12877 = vst [vmem:[#allocation159_spill] sm:$0xff] %v7833_v39 }
 0x289   : > { %v12865_v11 = vsel %vm7789_vm14, 4294967295, %v12864_v11 }
 0x28a   : > { %v1246_v23 = vpop.f32.mrf.mxu2  ;;  %12866 = vst [vmem:[#allocation152_spill] sm:$0xff] %v12865_v11 }
 0x28b   : > { %v1247_v13 = vadd.f32 %v1246_v23, %v7507_v35  ;;  %v1359_v10 = vpop.f32.mrf.mxu3  ;;  %12867 = vst [vmem:[#allocation153_spill] sm:$0xff] %v7794_v37  ;;  %v12872_v23 = vmov 0 }
 0x28c   : > { %v7786_v63 = vpop.f32.mrf.mxu0  ;;  %v12873_v23 = vsel %vm7819_vm15, 4294967295, %v12872_v23 }
 0x28d   : > { %12863 = vst [vmem:[#allocation55_spill] sm:$0xff] %v7786_v63  ;;  %v7798_v47 = vadd.f32 %v1359_v10, %v1247_v13  ;;  %v7800_v56 = vpop.f32.mrf.mxu1  ;;  %v1977_v10 = vld [vmem:[#allocation12 + $0x400] sm:$0xff]  ;;  %v7824_v13 = vmax.f32 %v694_v12, 0.0  ;;  %v1950_v12 = vld [vmem:[#allocation12 + $0x328] sm:$0xff] }
 0x28e   : > { %12868 = vst [vmem:[#allocation154_spill] sm:$0xff] %v7800_v56  ;;  %2356 = vmatpush.msra.mxu2 %v1977_v10  ;;  %2686 = vmatpush.msrb.mxu1 %v1950_v12  ;;  %v1573_v56 = vadd.s32 120, %v7392_v9  ;;  %v12914_v63 = vld [vmem:[#allocation62_spill] sm:$0xff] }
 0x28f   : > { %1296 = vmatmul.f32.gmra.mxu2 %v7310_v2  ;;  %5108 = vmatmul.msk.f32.gmra.mxu0 %vm7789_vm14, %v7794_v37  ;;  %12874 = vst [vmem:[#allocation156_spill] sm:$0xff] %v12873_v23  ;;  %v2038_v37 = vld [vmem:[#allocation12 + $0x5e8] sm:$0xff] }
 0x290   : > { %1409 = vmatmul.f32.gmra.mxu3 %v7315_v52  ;;  %5140 = vmatmul.msk.f32.gmra.mxu1 %vm7789_vm14, %v7803_v31  ;;  %v1572_v52 = vadd.s32 112, %v7392_v9  ;;  %12875 = vst [vmem:[#allocation157_spill] sm:$0xff] %v7824_v13  ;;  %v599_v31 = vadd.f32 %v12914_v63, %v6887_v27  ;;  %v12921_v63 = vld [vmem:[#allocation70_spill] sm:$0xff] }
 0x292   : > { %v1249_v51 = vpop.f32.mrf.mxu2  ;;  %v1605_v15 = vadd.s32 %v7400_v46, %v1572_v52  ;;  %v587_v52 = vadd.f32 %v7087_v34, %v6887_v27  ;;  %v1606_v34 = vadd.s32 %v7400_v46, %v1573_v56  ;;  %v590_v56 = vadd.f32 %v7098_v7, %v6887_v27 }
 0x293   : > { %v1250_v48 = vadd.f32 %v1249_v51, %v7507_v35  ;;  %v1362_v2 = vpop.f32.mrf.mxu3  ;;  %v1886_v51 = vld [vmem:[#allocation12 + $0x128] sm:$0xff] }
 0x294   : > { %v7816_v0 = vpop.f32.mrf.mxu0  ;;  %2573 = vmatpush.msrb.mxu0 %v1886_v51  ;;  %vm7849_vm0 = vcmp.lt.s32.totalorder %v1605_v15, %v7415_v61  ;;  %v7863_v51 = vmax.f32 %v7188_v53, 0.0  ;;  %vm7879_vm1 = vcmp.lt.s32.totalorder %v1606_v34, %v7415_v61  ;;  %v1882_v34 = vld [vmem:[#allocation12 + $0x108] sm:$0xff] }
 0x295   : > { %12871 = vst [vmem:[#allocation56_spill] sm:$0xff] %v7816_v0  ;;  %v7828_v40 = vadd.f32 %v1362_v2, %v1250_v48  ;;  %v7830_v10 = vpop.f32.mrf.mxu1  ;;  %v12878_v48 = vld [vmem:[#allocation57_spill] sm:$0xff] }
 0x296   : > { %12876 = vst [vmem:[#allocation158_spill] sm:$0xff] %v7830_v10  ;;  %v697_v14 = vadd.f32 %v12878_v48, %v584_v18  ;;  %2574 = vmatpush.msrb.mxu0 %v1882_v34  ;;  %v7923_v34 = vmax.f32 %v7210_v3, 0.0 }
 0x297   : > { %1299 = vmatmul.f32.gmra.mxu2 %v7327_v50  ;;  %5109 = vmatmul.msk.f32.gmra.mxu0 %vm7819_vm15, %v7824_v13  ;;  %12885 = vst [vmem:[#allocation163_spill] sm:$0xff] %v7863_v51  ;;  %v8402_v58 = vmax.f32 %v7828_v40, 0.0 }
 0x298   : > { %1412 = vmatmul.f32.gmra.mxu3 %v7332_v26  ;;  %5141 = vmatmul.msk.f32.gmra.mxu1 %vm7819_vm15, %v7833_v39  ;;  %v12880_v26 = vmov 0  ;;  %v7854_v39 = vmax.f32 %v697_v14, 0.0  ;;  %12898 = vst [vmem:[#allocation170_spill] sm:$0xff] %v7923_v34 }
 0x299   : > { %v12881_v26 = vsel %vm7849_vm0, 4294967295, %v12880_v26 }
 0x29a   : > { %v1252_v50 = vpop.f32.mrf.mxu2  ;;  %12882 = vst [vmem:[#allocation160_spill] sm:$0xff] %v12881_v26 }
 0x29b   : > { %v1253_v2 = vadd.f32 %v1252_v50, %v7507_v35  ;;  %v1365_v10 = vpop.f32.mrf.mxu3  ;;  %12883 = vst [vmem:[#allocation161_spill] sm:$0xff] %v7854_v39 }
 0x29c   : > { %v7846_v0 = vpop.f32.mrf.mxu0 }
 0x29d   : > { %12879 = vst [vmem:[#allocation57_spill] sm:$0xff] %v7846_v0  ;;  %v7858_v18 = vadd.f32 %v1365_v10, %v1253_v2  ;;  %v7860_v43 = vpop.f32.mrf.mxu1  ;;  %v12886_v10 = vld [vmem:[#allocation58_spill] sm:$0xff] }
 0x29e   : > { %12884 = vst [vmem:[#allocation162_spill] sm:$0xff] %v7860_v43  ;;  %v700_v12 = vadd.f32 %v12886_v10, %v587_v52  ;;  %v7893_v10 = vmax.f32 %v7199_v45, 0.0 }
 0x29f   : > { %1302 = vmatmul.f32.gmra.mxu2 %v7344_v24  ;;  %5110 = vmatmul.msk.f32.gmra.mxu0 %vm7849_vm0, %v7854_v39  ;;  %v12888_v24 = vmov 0  ;;  %v12911_v39 = vld [vmem:[#allocation104_spill] sm:$0xff] }
 0x2a0   : > { %1415 = vmatmul.f32.gmra.mxu3 %v7349_v22  ;;  %5142 = vmatmul.msk.f32.gmra.mxu1 %vm7849_vm0, %v7863_v51  ;;  %v12889_v24 = vsel %vm7879_vm1, 4294967295, %v12888_v24  ;;  %v1574_v22 = vadd.s32 128, %v7392_v9  ;;  %v7884_v50 = vmax.f32 %v700_v12, 0.0  ;;  %12893 = vst [vmem:[#allocation167_spill] sm:$0xff] %v7893_v10  ;;  %v703_v12 = vadd.f32 %v7102_v29, %v590_v56  ;;  %v1942_v51 = vld [vmem:[#allocation12 + $0x2e8] sm:$0xff] }
 0x2a1   : > { %12890 = vst [vmem:[#allocation164_spill] sm:$0xff] %v12889_v24  ;;  %v593_v29 = vadd.f32 %v7109_v49, %v6887_v27 }
 0x2a2   : > { %v1255_v15 = vpop.f32.mrf.mxu2  ;;  %12891 = vst [vmem:[#allocation165_spill] sm:$0xff] %v7884_v50  ;;  %v1607_v7 = vadd.s32 %v7400_v46, %v1574_v22 }
 0x2a3   : > { %v1256_v53 = vadd.f32 %v1255_v15, %v7507_v35  ;;  %v1368_v48 = vpop.f32.mrf.mxu3  ;;  %v1946_v15 = vld [vmem:[#allocation12 + $0x308] sm:$0xff] }
 0x2a4   : > { %v7876_v14 = vpop.f32.mrf.mxu0  ;;  %2687 = vmatpush.msrb.mxu1 %v1946_v15  ;;  %vm7909_vm0 = vcmp.lt.s32.totalorder %v1607_v7, %v7415_v61  ;;  %v12899_v15 = vld [vmem:[#allocation99_spill] sm:$0xff]  ;;  %v12900_v7 = vld [vmem:[#allocation100_spill] sm:$0xff] }
 0x2a5   : > { %12887 = vst [vmem:[#allocation58_spill] sm:$0xff] %v7876_v14  ;;  %v7888_v2 = vadd.f32 %v1368_v48, %v1256_v53  ;;  %v7890_v52 = vpop.f32.mrf.mxu1  ;;  %v7914_v14 = vmax.f32 %v703_v12, 0.0  ;;  %v12901_v12 = vld [vmem:[#allocation59_spill] sm:$0xff] }
 0x2a6   : > { %12892 = vst [vmem:[#allocation166_spill] sm:$0xff] %v7890_v52  ;;  %v12894_v52 = vmov 0  ;;  %2688 = vmatpush.msrb.mxu1 %v1942_v51  ;;  %v12920_v51 = vld [vmem:[#allocation21_spill] sm:$0xff] }
 0x2a7   : > { %1305 = vmatmul.f32.gmra.mxu2 %v7361_v21  ;;  %5111 = vmatmul.msk.f32.gmra.mxu0 %vm7879_vm1, %v7884_v50  ;;  %v12895_v52 = vsel %vm7909_vm0, 4294967295, %v12894_v52  ;;  %12897 = vst [vmem:[#allocation169_spill] sm:$0xff] %v7914_v14  ;;  %v12908_v50 = vld [vmem:[#allocation67_spill] sm:$0xff] }
 0x2a8   : > { %1418 = vmatmul.f32.gmra.mxu3 %v7366_v20  ;;  %5143 = vmatmul.msk.f32.gmra.mxu1 %vm7879_vm1, %v7893_v10  ;;  %12896 = vst [vmem:[#allocation168_spill] sm:$0xff] %v12895_v52  ;;  %v1575_v20 = vadd.s32 136, %v7392_v9  ;;  %v7958_v0 = vmax.f32 %v12908_v50, 0.0  ;;  %v12913_v50 = vld [vmem:[#allocation20_spill] sm:$0xff] }
 0x2aa   : > { %v1258_v45 = vpop.f32.mrf.mxu2  ;;  %v1608_v49 = vadd.s32 %v7400_v46, %v1575_v20  ;;  %v12906_v20 = vld [vmem:[#allocation60_spill] sm:$0xff]  ;;  %12909 = vst [vmem:[#allocation59_spill] sm:$0xff] %v7958_v0 }
 0x2ab   : > { %v1259_v21 = vadd.f32 %v1258_v45, %v7507_v35  ;;  %v1371_v53 = vpop.f32.mrf.mxu3  ;;  %v706_v45 = vadd.f32 %v12901_v12, %v593_v29  ;;  %v596_v29 = vadd.f32 %v12906_v20, %v6887_v27 }
 0x2ac   : > { %v7906_v48 = vpop.f32.mrf.mxu0  ;;  %vm7942_vm1 = vcmp.lt.s32.totalorder %v1608_v49, %v7415_v61  ;;  %v12910_v49 = vld [vmem:[#allocation103_spill] sm:$0xff] }
 0x2ad   : > { %v7918_v22 = vadd.f32 %v1371_v53, %v1259_v21  ;;  %v7920_v56 = vpop.f32.mrf.mxu1  ;;  %v7936_v21 = vperm.slane %v7504_v32, 2  ;;  %v12907_v32 = vld [vmem:[#allocation19_spill] sm:$0xff] }
 0x2af   : > { %1308 = vmatmul.f32.gmra.mxu2 %v12899_v15  ;;  %5112 = vmatmul.msk.f32.gmra.mxu0 %vm7909_vm0, %v7914_v14  ;;  %v7947_v14 = vmax.f32 %v706_v45, 0.0  ;;  %v994_v12 = vadd.f32 %v12907_v32, %v7936_v21  ;;  %v1878_v45 = vld [vmem:[#allocation12 + $0xe8] sm:$0xff] }
 0x2b0   : > { %1421 = vmatmul.f32.gmra.mxu3 %v12900_v7  ;;  %5144 = vmatmul.msk.f32.gmra.mxu1 %vm7909_vm0, %v7923_v34  ;;  %v12902_v7 = vmov 0  ;;  %v1576_v34 = vadd.s32 144, %v7392_v9 }
 0x2b1   : > { %v12903_v7 = vsel %vm7942_vm1, 4294967295, %v12902_v7  ;;  %12905 = vst [vmem:[#allocation100_spill] sm:$0xff] %v7947_v14  ;;  %v1107_v32 = vadd.f32 %v12913_v50, %v994_v12  ;;  %2575 = vmatpush.msrb.mxu0 %v1878_v45  ;;  %v997_v45 = vadd.f32 %v12920_v51, %v7936_v21  ;;  %v2098_v51 = vld [vmem:[#allocation12 + $0x7c8] sm:$0xff] }
 0x2b2   : > { %v1261_v3 = vpop.f32.mrf.mxu2  ;;  %12904 = vst [vmem:[#allocation99_spill] sm:$0xff] %v12903_v7 }
 0x2b3   : > { %v1262_v53 = vadd.f32 %v1261_v3, %v7507_v35  ;;  %v1374_v15 = vpop.f32.mrf.mxu3  ;;  %v7984_v12 = vmax.f32 %v1107_v32, 0.0  ;;  %v2034_v32 = vld [vmem:[#allocation12 + $0x5c8] sm:$0xff] }
 0x2b4   : > { %v7939_v43 = vpop.f32.mrf.mxu0 }
 0x2b5   : > { %v7953_v10 = vadd.f32 %v1374_v15, %v1262_v53  ;;  %v7955_v3 = vpop.f32.mrf.mxu1  ;;  %v1609_v53 = vadd.s32 %v7400_v46, %v1576_v34  ;;  %v12912_v15 = vld [vmem:[#allocation61_spill] sm:$0xff]  ;;  %v1577_v34 = vadd.s32 152, %v7392_v9  ;;  %12919 = vst [vmem:[#allocation67_spill] sm:$0xff] %v7984_v12 }
 0x2b6   : > { %v709_v20 = vadd.f32 %v12912_v15, %v596_v29 }
 0x2b7   : > { %1311 = vmatmul.f32.gmra.mxu2 %v12910_v49  ;;  %5113 = vmatmul.msk.f32.gmra.mxu0 %vm7942_vm1, %v7947_v14  ;;  %vm7977_vm0 = vcmp.lt.s32.totalorder %v1609_v53, %v7415_v61  ;;  %v7996_v53 = vmax.f32 %v7528_v38, 0.0  ;;  %v1610_v38 = vadd.s32 %v7400_v46, %v1577_v34  ;;  %v12928_v34 = vmov 0 }
 0x2b8   : > { %1424 = vmatmul.f32.gmra.mxu3 %v12911_v39  ;;  %5145 = vmatmul.msk.f32.gmra.mxu1 %vm7942_vm1, %v7958_v0  ;;  %v12915_v0 = vmov 0  ;;  %v7982_v29 = vmax.f32 %v709_v20, 0.0 }
 0x2b9   : > { %v12916_v0 = vsel %vm7977_vm0, 4294967295, %v12915_v0  ;;  %12923 = vst [vmem:[#allocation104_spill] sm:$0xff] %v7996_v53 }
 0x2ba   : > { %v1264_v49 = vpop.f32.mrf.mxu2  ;;  %12917 = vst [vmem:[#allocation60_spill] sm:$0xff] %v12916_v0 }
 0x2bb   : > { %v1265_v13 = vadd.f32 %v1264_v49, %v7507_v35  ;;  %v1377_v14 = vpop.f32.mrf.mxu3  ;;  %12918 = vst [vmem:[#allocation19_spill] sm:$0xff] %v7982_v29  ;;  %v7993_v49 = vmax.f32 %v12921_v63, 0.0  ;;  %v12926_v63 = vld [vmem:[#allocation22_spill] sm:$0xff] }
 0x2bc   : > { %v7974_v39 = vpop.f32.mrf.mxu0 }
 0x2bd   : > { %v7988_v15 = vadd.f32 %v1377_v14, %v1265_v13  ;;  %v7990_v50 = vpop.f32.mrf.mxu1  ;;  %12922 = vst [vmem:[#allocation103_spill] sm:$0xff] %v7993_v49  ;;  %v12925_v13 = vld [vmem:[#allocation63_spill] sm:$0xff] }
 0x2be   : > { %v712_v14 = vadd.f32 %v12925_v13, %v599_v31  ;;  %12937 = vst [vmem:[#allocation63_spill] sm:$0xff] %v8038_v44 }
 0x2bf   : > { %5114 = vmatmul.msk.f32.gmra.mxu0 %vm7977_vm0, %v7982_v29  ;;  %5160 = vmatmul.msk.f32.vlgmr.msra.gmra.mxu2 %vm7421_vm2, %v7984_v12  ;;  %v1110_v29 = vadd.f32 %v12926_v63, %v997_v45  ;;  %v2030_v12 = vld [vmem:[#allocation12 + $0x5a8] sm:$0xff]  ;;  %v1578_v45 = vadd.s32 160, %v7392_v9 }
 0x2c0   : > { %5146 = vmatmul.msk.f32.gmra.mxu1 %vm7977_vm0, %v7993_v49  ;;  %5192 = vmatmul.msk.f32.vlgmr.msra.gmra.mxu3 %vm7421_vm2, %v7996_v53  ;;  %v8014_v49 = vmax.f32 %v712_v14, 0.0  ;;  %vm8019_vm0 = vcmp.lt.s32.totalorder %v1610_v38, %v7415_v61  ;;  %v12935_v53 = vld [vmem:[#allocation73_spill] sm:$0xff] }
 0x2c1   : > { %2793 = vmatpush.msra.mxu2 %v2038_v37  ;;  %2906 = vmatpush.msra.mxu3 %v2102_v41  ;;  %v12929_v34 = vsel %vm8019_vm0, 4294967295, %v12928_v34  ;;  %v12931_v41 = vld [vmem:[#allocation64_spill] sm:$0xff]  ;;  %v8026_v63 = vmax.f32 %v1110_v29, 0.0  ;;  %v8035_v38 = vmax.f32 %v12935_v53, 0.0  ;;  %v2094_v29 = vld [vmem:[#allocation12 + $0x7a8] sm:$0xff]  ;;  %v1611_v59 = vadd.s32 %v7400_v46, %v1578_v45 }
 0x2c2   : > { %v1267_v17 = vpop.f32.mrf.mxu2  ;;  %12927 = vst [vmem:[#allocation61_spill] sm:$0xff] %v8014_v49  ;;  %v602_v37 = vadd.f32 %v12931_v41, %v6887_v27  ;;  %v12939_v41 = vld [vmem:[#allocation24_spill] sm:$0xff]  ;;  %v1579_v45 = vadd.s32 168, %v7392_v9 }
 0x2c3   : > { %v1268_v31 = vadd.f32 %v1267_v17, %v7507_v35  ;;  %v1380_v13 = vpop.f32.mrf.mxu3  ;;  %2794 = vmatpush.msra.mxu2 %v2034_v32  ;;  %2907 = vmatpush.msra.mxu3 %v2098_v51  ;;  %12930 = vst [vmem:[#allocation20_spill] sm:$0xff] %v12929_v34  ;;  %v12933_v17 = vld [vmem:[#allocation23_spill] sm:$0xff] }
 0x2c4   : > { %v8016_v30 = vpop.f32.mrf.mxu0  ;;  %12932 = vst [vmem:[#allocation62_spill] sm:$0xff] %v8026_v63  ;;  %v1000_v32 = vadd.f32 %v12933_v17, %v7936_v21 }
 0x2c5   : > { %v8030_v51 = vadd.f32 %v1380_v13, %v1268_v31  ;;  %v8032_v14 = vpop.f32.mrf.mxu1  ;;  %2795 = vmatpush.msra.mxu2 %v2030_v12  ;;  %12936 = vst [vmem:[#allocation70_spill] sm:$0xff] %v8035_v38  ;;  %v1874_v31 = vld [vmem:[#allocation12 + $0xc8] sm:$0xff]  ;;  %2908 = vmatpush.msra.mxu3 %v2094_v29 }
 0x2c6   : > { %12934 = vst [vmem:[#allocation21_spill] sm:$0xff] %v8032_v14  ;;  %v1938_v13 = vld [vmem:[#allocation12 + $0x2c8] sm:$0xff]  ;;  %v1113_v17 = vadd.f32 %v12939_v41, %v1000_v32  ;;  %2576 = vmatpush.msrb.mxu0 %v1874_v31  ;;  %v12953_v41 = vld [vmem:[#allocation27_spill] sm:$0xff] }
 0x2c7   : > { %5115 = vmatmul.msk.f32.gmra.mxu0 %vm8019_vm0, %v8014_v49  ;;  %5161 = vmatmul.msk.f32.gmra.mxu2 %vm7451_vm3, %v8026_v63  ;;  %v12938_v12 = vld [vmem:[#allocation65_spill] sm:$0xff] }
 0x2c8   : > { %5147 = vmatmul.msk.f32.gmra.mxu1 %vm8019_vm0, %v8035_v38  ;;  %5193 = vmatmul.msk.f32.gmra.mxu3 %vm7451_vm3, %v8038_v44  ;;  %v715_v53 = vadd.f32 %v12938_v12, %v602_v37  ;;  %v605_v38 = vadd.f32 %v12940_v8, %v6887_v27  ;;  %vm8061_vm0 = vcmp.lt.s32.totalorder %v1611_v59, %v7415_v61  ;;  %v12942_v44 = vmov 0  ;;  %v12947_v29 = vld [vmem:[#allocation25_spill] sm:$0xff]  ;;  %v12949_v8 = vld [vmem:[#allocation76_spill] sm:$0xff] }
 0x2c9   : > { %2689 = vmatpush.msrb.mxu1 %v1938_v13  ;;  %v12943_v44 = vsel %vm8061_vm0, 4294967295, %v12942_v44  ;;  %v8068_v32 = vmax.f32 %v1113_v17, 0.0  ;;  %v8077_v12 = vmax.f32 %v12949_v8, 0.0  ;;  %v8080_v59 = vmax.f32 %v7588_v57, 0.0 }
 0x2ca   : > { %v1270_v63 = vpop.f32.mrf.mxu2  ;;  %12944 = vst [vmem:[#allocation64_spill] sm:$0xff] %v12943_v44  ;;  %v8066_v37 = vmax.f32 %v715_v53, 0.0  ;;  %v12952_v53 = vld [vmem:[#allocation113_spill] sm:$0xff]  ;;  %v718_v17 = vadd.f32 %v12953_v41, %v605_v38  ;;  %v1612_v57 = vadd.s32 %v7400_v46, %v1579_v45  ;;  %v12957_v41 = vmov 0  ;;  %v12960_v45 = vld [vmem:[#allocation18_spill] sm:$0xff] }
 0x2cb   : > { %v1271_v49 = vadd.f32 %v1270_v63, %v7507_v35  ;;  %v1383_v42 = vpop.f32.mrf.mxu3  ;;  %12946 = vst [vmem:[#allocation73_spill] sm:$0xff] %v8068_v32  ;;  %v1003_v63 = vadd.f32 %v12947_v29, %v7936_v21 }
 0x2cc   : > { %v8058_v60 = vpop.f32.mrf.mxu0  ;;  %12945 = vst [vmem:[#allocation23_spill] sm:$0xff] %v8066_v37 }
 0x2cd   : > { %12941 = vst [vmem:[#allocation22_spill] sm:$0xff] %v8058_v60  ;;  %v8072_v31 = vadd.f32 %v1383_v42, %v1271_v49  ;;  %v8074_v13 = vpop.f32.mrf.mxu1  ;;  %v2026_v42 = vld [vmem:[#allocation12 + $0x588] sm:$0xff] }
 0x2ce   : > { %12948 = vst [vmem:[#allocation65_spill] sm:$0xff] %v8074_v13  ;;  %v12954_v49 = vld [vmem:[#allocation26_spill] sm:$0xff]  ;;  %2796 = vmatpush.msra.mxu2 %v2026_v42  ;;  %v8098_v13 = vmax.f32 %v718_v17, 0.0 }
 0x2cf   : > { %12950 = vst [vmem:[#allocation24_spill] sm:$0xff] %v8077_v12  ;;  %5116 = vmatmul.msk.f32.gmra.mxu0 %vm8061_vm0, %v8066_v37  ;;  %5162 = vmatmul.msk.f32.gmra.mxu2 %vm7481_vm4, %v8068_v32  ;;  %v1116_v29 = vadd.f32 %v12954_v49, %v1003_v63  ;;  %v12962_v42 = vld [vmem:[#allocation66_spill] sm:$0xff] }
 0x2d0   : > { %12951 = vst [vmem:[#allocation17_spill] sm:$0xff] %v8080_v59  ;;  %5148 = vmatmul.msk.f32.gmra.mxu1 %vm8061_vm0, %v8077_v12  ;;  %5194 = vmatmul.msk.f32.gmra.mxu3 %vm7481_vm4, %v8080_v59  ;;  %vm8103_vm0 = vcmp.lt.s32.totalorder %v1612_v57, %v7415_v61  ;;  %v1580_v59 = vadd.s32 176, %v7392_v9  ;;  %v608_v12 = vadd.f32 %v12960_v45, %v6887_v27  ;;  %v8122_v57 = vmax.f32 %v7618_v4, 0.0  ;;  %v12967_v27 = vld [vmem:[#allocation117_spill] sm:$0xff] }
 0x2d1   : > { %12955 = vst [vmem:[#allocation25_spill] sm:$0xff] %v8098_v13  ;;  %v12958_v41 = vsel %vm8103_vm0, 4294967295, %v12957_v41  ;;  %v8110_v63 = vmax.f32 %v1116_v29, 0.0  ;;  %v1006_v49 = vadd.f32 %v12962_v42, %v7936_v21  ;;  %v2090_v29 = vld [vmem:[#allocation12 + $0x788] sm:$0xff]  ;;  %v12969_v42 = vld [vmem:[#allocation68_spill] sm:$0xff] }
 0x2d2   : > { %v1273_v8 = vpop.f32.mrf.mxu2  ;;  %12959 = vst [vmem:[#allocation27_spill] sm:$0xff] %v12958_v41  ;;  %v1870_v45 = vld [vmem:[#allocation12 + $0xa8] sm:$0xff]  ;;  %v1613_v4 = vadd.s32 %v7400_v46, %v1580_v59  ;;  %2909 = vmatpush.msra.mxu3 %v2090_v29  ;;  %v1581_v59 = vadd.s32 184, %v7392_v9 }
 0x2d3   : > { %v1274_v37 = vadd.f32 %v1273_v8, %v7507_v35  ;;  %v1386_v32 = vpop.f32.mrf.mxu3  ;;  %12961 = vst [vmem:[#allocation26_spill] sm:$0xff] %v8110_v63  ;;  %2577 = vmatpush.msrb.mxu0 %v1870_v45 }
 0x2d4   : > { %v8100_v38 = vpop.f32.mrf.mxu0 }
 0x2d5   : > { %12956 = vst [vmem:[#allocation76_spill] sm:$0xff] %v8100_v38  ;;  %v8114_v8 = vadd.f32 %v1386_v32, %v1274_v37  ;;  %v8116_v17 = vpop.f32.mrf.mxu1  ;;  %v12964_v38 = vld [vmem:[#allocation79_spill] sm:$0xff]  ;;  %v1934_v37 = vld [vmem:[#allocation12 + $0x2a8] sm:$0xff]  ;;  %v12968_v32 = vld [vmem:[#allocation28_spill] sm:$0xff] }
 0x2d6   : > { %12963 = vst [vmem:[#allocation18_spill] sm:$0xff] %v8116_v17  ;;  %v8119_v44 = vmax.f32 %v12964_v38, 0.0  ;;  %v721_v38 = vadd.f32 %v12968_v32, %v608_v12  ;;  %2690 = vmatpush.msrb.mxu1 %v1934_v37  ;;  %v12977_v37 = vld [vmem:[#allocation82_spill] sm:$0xff] }
 0x2d7   : > { %12966 = vst [vmem:[#allocation79_spill] sm:$0xff] %v8122_v57  ;;  %5117 = vmatmul.msk.f32.gmra.mxu0 %vm8103_vm0, %v8098_v13  ;;  %5163 = vmatmul.msk.f32.gmra.mxu2 %vm7519_vm5, %v8110_v63  ;;  %v1119_v13 = vadd.f32 %v12969_v42, %v1006_v49  ;;  %v12975_v49 = vld [vmem:[#allocation69_spill] sm:$0xff]  ;;  %v8159_v32 = vmax.f32 %v12977_v37, 0.0 }
 0x2d8   : > { %12965 = vst [vmem:[#allocation66_spill] sm:$0xff] %v8119_v44  ;;  %5149 = vmatmul.msk.f32.gmra.mxu1 %vm8103_vm0, %v8119_v44  ;;  %5195 = vmatmul.msk.f32.gmra.mxu3 %vm7519_vm5, %v8122_v57  ;;  %vm8143_vm0 = vcmp.lt.s32.totalorder %v1613_v4, %v7415_v61  ;;  %v12970_v44 = vmov 0  ;;  %v8148_v57 = vmax.f32 %v721_v38, 0.0  ;;  %v1009_v29 = vadd.f32 %v12975_v49, %v7936_v21 }
 0x2d9   : > { %v12971_v44 = vsel %vm8143_vm0, 4294967295, %v12970_v44  ;;  %v8150_v12 = vmax.f32 %v1119_v13, 0.0  ;;  %12978 = vst [vmem:[#allocation82_spill] sm:$0xff] %v8159_v32  ;;  %v8162_v4 = vmax.f32 %v7648_v5, 0.0  ;;  %v12980_v13 = vld [vmem:[#allocation120_spill] sm:$0xff]  ;;  %v2022_v5 = vld [vmem:[#allocation12 + $0x568] sm:$0xff] }
 0x2da   : > { %v1276_v63 = vpop.f32.mrf.mxu2  ;;  %12972 = vst [vmem:[#allocation28_spill] sm:$0xff] %v12971_v44  ;;  %2797 = vmatpush.msra.mxu2 %v2022_v5 }
 0x2db   : > { %v1277_v17 = vadd.f32 %v1276_v63, %v7507_v35  ;;  %v1389_v60 = vpop.f32.mrf.mxu3  ;;  %12973 = vst [vmem:[#allocation68_spill] sm:$0xff] %v8148_v57 }
 0x2dc   : > { %v8140_v14 = vpop.f32.mrf.mxu0  ;;  %12974 = vst [vmem:[#allocation171_spill] sm:$0xff] %v8150_v12 }
 0x2dd   : > { %v8154_v45 = vadd.f32 %v1389_v60, %v1277_v17  ;;  %v8156_v63 = vpop.f32.mrf.mxu1  ;;  %12979 = vst [vmem:[#allocation172_spill] sm:$0xff] %v8162_v4  ;;  %v1614_v60 = vadd.s32 %v7400_v46, %v1581_v59  ;;  %v12981_v17 = vld [vmem:[#allocation71_spill] sm:$0xff] }
 0x2de   : > { %12976 = vst [vmem:[#allocation69_spill] sm:$0xff] %v8156_v63  ;;  %v1122_v38 = vadd.f32 %v12981_v17, %v1009_v29  ;;  %v12989_v29 = vld [vmem:[#allocation72_spill] sm:$0xff] }
 0x2df   : > { %5118 = vmatmul.msk.f32.gmra.mxu0 %vm8143_vm0, %v8148_v57  ;;  %5164 = vmatmul.msk.f32.gmra.mxu2 %vm7549_vm6, %v8150_v12  ;;  %vm8182_vm5 = vcmp.lt.s32.totalorder %v1614_v60, %v7415_v61  ;;  %v12983_v12 = vmov 0  ;;  %v1012_v5 = vadd.f32 %v12989_v29, %v7936_v21  ;;  %v8202_v60 = vmax.f32 %v7678_v16, 0.0 }
 0x2e0   : > { %5150 = vmatmul.msk.f32.gmra.mxu1 %vm8143_vm0, %v8159_v32  ;;  %5196 = vmatmul.msk.f32.gmra.mxu3 %vm7549_vm6, %v8162_v4  ;;  %v12984_v12 = vsel %vm8182_vm5, 4294967295, %v12983_v12  ;;  %v1582_v32 = vadd.s32 192, %v7392_v9  ;;  %v12986_v4 = vld [vmem:[#allocation32_spill] sm:$0xff]  ;;  %v8190_v59 = vmax.f32 %v1122_v38, 0.0  ;;  %v1866_v38 = vld [vmem:[#allocation12 + $0x88] sm:$0xff] }
 0x2e1   : > { %12985 = vst [vmem:[#allocation173_spill] sm:$0xff] %v12984_v12  ;;  %v8188_v63 = vmax.f32 %v12986_v4, 0.0  ;;  %v2086_v4 = vld [vmem:[#allocation12 + $0x768] sm:$0xff]  ;;  %2578 = vmatpush.msrb.mxu0 %v1866_v38  ;;  %v12999_v12 = vld [vmem:[#allocation35_spill] sm:$0xff] }
 0x2e2   : > { %v1279_v42 = vpop.f32.mrf.mxu2  ;;  %12988 = vst [vmem:[#allocation174_spill] sm:$0xff] %v8190_v59  ;;  %v1615_v16 = vadd.s32 %v7400_v46, %v1582_v32  ;;  %2910 = vmatpush.msra.mxu3 %v2086_v4  ;;  %v8228_v32 = vmax.f32 %v12999_v12, 0.0  ;;  %v13002_v4 = vld [vmem:[#allocation75_spill] sm:$0xff] }
 0x2e3   : > { %v1280_v49 = vadd.f32 %v1279_v42, %v7507_v35  ;;  %v1392_v37 = vpop.f32.mrf.mxu3  ;;  %12987 = vst [vmem:[#allocation32_spill] sm:$0xff] %v8188_v63  ;;  %v1015_v38 = vadd.f32 %v13002_v4, %v7936_v21 }
 0x2e4   : > { %v8179_v57 = vpop.f32.mrf.mxu0  ;;  %12993 = vst [vmem:[#allocation175_spill] sm:$0xff] %v8202_v60  ;;  %vm8222_vm0 = vcmp.lt.s32.totalorder %v1615_v16, %v7415_v61  ;;  %v8242_v16 = vmax.f32 %v7708_v55, 0.0  ;;  %v2018_v55 = vld [vmem:[#allocation12 + $0x548] sm:$0xff] }
 0x2e5   : > { %12982 = vst [vmem:[#allocation71_spill] sm:$0xff] %v8179_v57  ;;  %v8194_v17 = vadd.f32 %v1392_v37, %v1280_v49  ;;  %v8196_v42 = vpop.f32.mrf.mxu1  ;;  %v12991_v57 = vld [vmem:[#allocation85_spill] sm:$0xff]  ;;  %2798 = vmatpush.msra.mxu2 %v2018_v55 }
 0x2e6   : > { %12990 = vst [vmem:[#allocation72_spill] sm:$0xff] %v8196_v42  ;;  %v8199_v44 = vmax.f32 %v12991_v57, 0.0  ;;  %v1930_v49 = vld [vmem:[#allocation12 + $0x288] sm:$0xff] }
 0x2e7   : > { %5119 = vmatmul.msk.f32.gmra.mxu0 %vm8182_vm5, %v8188_v63  ;;  %5165 = vmatmul.msk.f32.gmra.mxu2 %vm7579_vm7, %v8190_v59  ;;  %v12994_v57 = vld [vmem:[#allocation74_spill] sm:$0xff]  ;;  %13000 = vst [vmem:[#allocation35_spill] sm:$0xff] %v8228_v32 }
 0x2e8   : > { %12992 = vst [vmem:[#allocation85_spill] sm:$0xff] %v8199_v44  ;;  %5151 = vmatmul.msk.f32.gmra.mxu1 %vm8182_vm5, %v8199_v44  ;;  %5197 = vmatmul.msk.f32.gmra.mxu3 %vm7579_vm7, %v8202_v60  ;;  %v1125_v37 = vadd.f32 %v12994_v57, %v1012_v5  ;;  %v12996_v44 = vmov 0  ;;  %v1583_v60 = vadd.s32 200, %v7392_v9 }
 0x2e9   : > { %2691 = vmatpush.msrb.mxu1 %v1930_v49  ;;  %v12997_v44 = vsel %vm8222_vm0, 4294967295, %v12996_v44  ;;  %13006 = vst [vmem:[#allocation178_spill] sm:$0xff] %v8242_v16 }
 0x2ea   : > { %v1282_v29 = vpop.f32.mrf.mxu2  ;;  %12998 = vst [vmem:[#allocation176_spill] sm:$0xff] %v12997_v44  ;;  %v8230_v5 = vmax.f32 %v1125_v37, 0.0  ;;  %v1616_v12 = vadd.s32 %v7400_v46, %v1583_v60 }
 0x2eb   : > { %v1283_v59 = vadd.f32 %v1282_v29, %v7507_v35  ;;  %v1395_v63 = vpop.f32.mrf.mxu3  ;;  %v13004_v29 = vld [vmem:[#allocation88_spill] sm:$0xff] }
 0x2ec   : > { %v8219_v42 = vpop.f32.mrf.mxu0  ;;  %13001 = vst [vmem:[#allocation177_spill] sm:$0xff] %v8230_v5  ;;  %vm8262_vm5 = vcmp.lt.s32.totalorder %v1616_v12, %v7415_v61  ;;  %v8282_v12 = vmax.f32 %v7738_v62, 0.0 }
 0x2ed   : > { %12995 = vst [vmem:[#allocation74_spill] sm:$0xff] %v8219_v42  ;;  %v8234_v49 = vadd.f32 %v1395_v63, %v1283_v59  ;;  %v8236_v57 = vpop.f32.mrf.mxu1  ;;  %v8239_v42 = vmax.f32 %v13004_v29, 0.0  ;;  %v13007_v63 = vld [vmem:[#allocation77_spill] sm:$0xff] }
 0x2ee   : > { %13003 = vst [vmem:[#allocation75_spill] sm:$0xff] %v8236_v57  ;;  %v1128_v59 = vadd.f32 %v13007_v63, %v1015_v38  ;;  %v13015_v38 = vld [vmem:[#allocation78_spill] sm:$0xff] }
 0x2ef   : > { %13005 = vst [vmem:[#allocation88_spill] sm:$0xff] %v8239_v42  ;;  %5120 = vmatmul.msk.f32.gmra.mxu0 %vm8222_vm0, %v8228_v32  ;;  %5166 = vmatmul.msk.f32.gmra.mxu2 %vm7609_vm8, %v8230_v5  ;;  %v13009_v5 = vmov 0  ;;  %v1018_v55 = vadd.f32 %v13015_v38, %v7936_v21 }
 0x2f0   : > { %5152 = vmatmul.msk.f32.gmra.mxu1 %vm8222_vm0, %v8239_v42  ;;  %5198 = vmatmul.msk.f32.gmra.mxu3 %vm7609_vm8, %v8242_v16  ;;  %v13010_v5 = vsel %vm8262_vm5, 4294967295, %v13009_v5  ;;  %v1584_v42 = vadd.s32 208, %v7392_v9  ;;  %v13012_v16 = vld [vmem:[#allocation38_spill] sm:$0xff]  ;;  %v8270_v60 = vmax.f32 %v1128_v59, 0.0  ;;  %13019 = vst [vmem:[#allocation181_spill] sm:$0xff] %v8282_v12 }
 0x2f1   : > { %13011 = vst [vmem:[#allocation179_spill] sm:$0xff] %v13010_v5  ;;  %v8268_v57 = vmax.f32 %v13012_v16, 0.0  ;;  %v2082_v16 = vld [vmem:[#allocation12 + $0x748] sm:$0xff] }
 0x2f2   : > { %v1285_v37 = vpop.f32.mrf.mxu2  ;;  %13014 = vst [vmem:[#allocation180_spill] sm:$0xff] %v8270_v60  ;;  %v1862_v59 = vld [vmem:[#allocation12 + $0x68] sm:$0xff]  ;;  %v1617_v62 = vadd.s32 %v7400_v46, %v1584_v42  ;;  %2911 = vmatpush.msra.mxu3 %v2082_v16 }
 0x2f3   : > { %v1286_v4 = vadd.f32 %v1285_v37, %v7507_v35  ;;  %v1398_v29 = vpop.f32.mrf.mxu3  ;;  %13013 = vst [vmem:[#allocation38_spill] sm:$0xff] %v8268_v57  ;;  %2579 = vmatpush.msrb.mxu0 %v1862_v59  ;;  %v13025_v5 = vld [vmem:[#allocation41_spill] sm:$0xff] }
 0x2f4   : > { %v8259_v32 = vpop.f32.mrf.mxu0  ;;  %vm8302_vm0 = vcmp.lt.s32.totalorder %v1617_v62, %v7415_v61  ;;  %v8308_v42 = vmax.f32 %v13025_v5, 0.0  ;;  %v13028_v16 = vld [vmem:[#allocation81_spill] sm:$0xff]  ;;  %v8322_v62 = vmax.f32 %v7768_v33, 0.0 }
 0x2f5   : > { %13008 = vst [vmem:[#allocation77_spill] sm:$0xff] %v8259_v32  ;;  %v8274_v63 = vadd.f32 %v1398_v29, %v1286_v4  ;;  %v8276_v37 = vpop.f32.mrf.mxu1  ;;  %v13017_v32 = vld [vmem:[#allocation91_spill] sm:$0xff]  ;;  %v1926_v4 = vld [vmem:[#allocation12 + $0x268] sm:$0xff]  ;;  %v1021_v59 = vadd.f32 %v13028_v16, %v7936_v21 }
 0x2f6   : > { %13016 = vst [vmem:[#allocation78_spill] sm:$0xff] %v8276_v37  ;;  %v8279_v44 = vmax.f32 %v13017_v32, 0.0  ;;  %v13020_v32 = vld [vmem:[#allocation80_spill] sm:$0xff]  ;;  %2692 = vmatpush.msrb.mxu1 %v1926_v4  ;;  %v2014_v33 = vld [vmem:[#allocation12 + $0x528] sm:$0xff] }
 0x2f7   : > { %5121 = vmatmul.msk.f32.gmra.mxu0 %vm8262_vm5, %v8268_v57  ;;  %5167 = vmatmul.msk.f32.gmra.mxu2 %vm7639_vm9, %v8270_v60  ;;  %v1131_v29 = vadd.f32 %v13020_v32, %v1018_v55  ;;  %13026 = vst [vmem:[#allocation41_spill] sm:$0xff] %v8308_v42 }
 0x2f8   : > { %13018 = vst [vmem:[#allocation91_spill] sm:$0xff] %v8279_v44  ;;  %5153 = vmatmul.msk.f32.gmra.mxu1 %vm8262_vm5, %v8279_v44  ;;  %5199 = vmatmul.msk.f32.gmra.mxu3 %vm7639_vm9, %v8282_v12  ;;  %v13022_v44 = vmov 0  ;;  %v1585_v12 = vadd.s32 216, %v7392_v9 }
 0x2f9   : > { %v13023_v44 = vsel %vm8302_vm0, 4294967295, %v13022_v44  ;;  %v8310_v55 = vmax.f32 %v1131_v29, 0.0  ;;  %13033 = vst [vmem:[#allocation185_spill] sm:$0xff] %v8322_v62  ;;  %2799 = vmatpush.msra.mxu2 %v2014_v33 }
 0x2fa   : > { %v1288_v38 = vpop.f32.mrf.mxu2  ;;  %13024 = vst [vmem:[#allocation182_spill] sm:$0xff] %v13023_v44  ;;  %v1618_v5 = vadd.s32 %v7400_v46, %v1585_v12 }
 0x2fb   : > { %v1289_v60 = vadd.f32 %v1288_v38, %v7507_v35  ;;  %v1401_v57 = vpop.f32.mrf.mxu3  ;;  %13027 = vst [vmem:[#allocation183_spill] sm:$0xff] %v8310_v55  ;;  %v13031_v38 = vld [vmem:[#allocation94_spill] sm:$0xff] }
 0x2fc   : > { %v8299_v37 = vpop.f32.mrf.mxu0  ;;  %vm8342_vm5 = vcmp.lt.s32.totalorder %v1618_v5, %v7415_v61  ;;  %v8362_v5 = vmax.f32 %v7798_v47, 0.0 }
 0x2fd   : > { %13021 = vst [vmem:[#allocation80_spill] sm:$0xff] %v8299_v37  ;;  %v8314_v4 = vadd.f32 %v1401_v57, %v1289_v60  ;;  %v8316_v32 = vpop.f32.mrf.mxu1  ;;  %v8319_v37 = vmax.f32 %v13031_v38, 0.0  ;;  %v13034_v57 = vld [vmem:[#allocation83_spill] sm:$0xff] }
 0x2fe   : > { %13030 = vst [vmem:[#allocation184_spill] sm:$0xff] %v8316_v32  ;;  %v1134_v60 = vadd.f32 %v13034_v57, %v1021_v59  ;;  %v13042_v59 = vld [vmem:[#allocation84_spill] sm:$0xff] }
 0x2ff   : > { %13029 = vst [vmem:[#allocation81_spill] sm:$0xff] %v8314_v4  ;;  %5122 = vmatmul.msk.f32.gmra.mxu0 %vm8302_vm0, %v8308_v42  ;;  %5168 = vmatmul.msk.f32.gmra.mxu2 %vm7669_vm10, %v8310_v55  ;;  %v13036_v55 = vmov 0  ;;  %v1024_v33 = vadd.f32 %v13042_v59, %v7936_v21  ;;  %v1850_v4 = vld [vmem:[#allocation12 + $0x8] sm:$0xff] }
 0x300   : > { %13032 = vst [vmem:[#allocation94_spill] sm:$0xff] %v8319_v37  ;;  %5154 = vmatmul.msk.f32.gmra.mxu1 %vm8302_vm0, %v8319_v37  ;;  %5200 = vmatmul.msk.f32.gmra.mxu3 %vm7669_vm10, %v8322_v62  ;;  %v13037_v55 = vsel %vm8342_vm5, 4294967295, %v13036_v55  ;;  %v1586_v37 = vadd.s32 224, %v7392_v9  ;;  %v13039_v62 = vld [vmem:[#allocation44_spill] sm:$0xff]  ;;  %v8350_v12 = vmax.f32 %v1134_v60, 0.0  ;;  %v1858_v60 = vld [vmem:[#allocation12 + $0x48] sm:$0xff] }
 0x301   : > { %13038 = vst [vmem:[#allocation186_spill] sm:$0xff] %v13037_v55  ;;  %v8348_v32 = vmax.f32 %v13039_v62, 0.0  ;;  %v2078_v62 = vld [vmem:[#allocation12 + $0x728] sm:$0xff]  ;;  %2580 = vmatpush.msrb.mxu0 %v1858_v60  ;;  %v13056_v60 = vld [vmem:[#allocation87_spill] sm:$0xff] }
 0x302   : > { %v1291_v29 = vpop.f32.mrf.mxu2  ;;  %13041 = vst [vmem:[#allocation187_spill] sm:$0xff] %v8350_v12  ;;  %v1619_v47 = vadd.s32 %v7400_v46, %v1586_v37  ;;  %2912 = vmatpush.msra.mxu3 %v2078_v62  ;;  %v1854_v55 = vld [vmem:[#allocation12 + $0x28] sm:$0xff] }
 0x303   : > { %v1292_v16 = vadd.f32 %v1291_v29, %v7507_v35  ;;  %v1404_v38 = vpop.f32.mrf.mxu3  ;;  %13040 = vst [vmem:[#allocation44_spill] sm:$0xff] %v8348_v32  ;;  %v1918_v37 = vld [vmem:[#allocation12 + $0x228] sm:$0xff]  ;;  %2581 = vmatpush.msrb.mxu0 %v1854_v55 }
 0x304   : > { %v8339_v42 = vpop.f32.mrf.mxu0  ;;  %13047 = vst [vmem:[#allocation189_spill] sm:$0xff] %v8362_v5  ;;  %vm8382_vm0 = vcmp.lt.s32.totalorder %v1619_v47, %v7415_v61  ;;  %v13057_v47 = vld [vmem:[#allocation29_spill] sm:$0xff]  ;;  %v13226_v1 = vld [vmem:[#allocation80_spill] sm:$0xff] }
 0x305   : > { %13035 = vst [vmem:[#allocation83_spill] sm:$0xff] %v8339_v42  ;;  %v8354_v57 = vadd.f32 %v1404_v38, %v1292_v16  ;;  %v8356_v29 = vpop.f32.mrf.mxu1  ;;  %v13045_v42 = vld [vmem:[#allocation97_spill] sm:$0xff]  ;;  %2582 = vmatpush.msrb.mxu0 %v1850_v4  ;;  %v13067_v4 = vld [vmem:[#allocation90_spill] sm:$0xff] }
 0x306   : > { %13044 = vst [vmem:[#allocation188_spill] sm:$0xff] %v8356_v29  ;;  %v8359_v44 = vmax.f32 %v13045_v42, 0.0  ;;  %v1922_v16 = vld [vmem:[#allocation12 + $0x248] sm:$0xff] }
 0x307   : > { %13043 = vst [vmem:[#allocation84_spill] sm:$0xff] %v8354_v57  ;;  %5123 = vmatmul.msk.f32.gmra.mxu0 %vm8342_vm5, %v8348_v32  ;;  %5169 = vmatmul.msk.f32.gmra.mxu2 %vm7699_vm11, %v8350_v12  ;;  %v13048_v42 = vld [vmem:[#allocation86_spill] sm:$0xff]  ;;  %v13053_v57 = vld [vmem:[#allocation47_spill] sm:$0xff] }
 0x308   : > { %13046 = vst [vmem:[#allocation97_spill] sm:$0xff] %v8359_v44  ;;  %5155 = vmatmul.msk.f32.gmra.mxu1 %vm8342_vm5, %v8359_v44  ;;  %5201 = vmatmul.msk.f32.gmra.mxu3 %vm7699_vm11, %v8362_v5  ;;  %v1137_v38 = vadd.f32 %v13048_v42, %v1024_v33  ;;  %v13050_v44 = vmov 0  ;;  %v1587_v5 = vadd.s32 232, %v7392_v9  ;;  %v8388_v33 = vmax.f32 %v13053_v57, 0.0  ;;  %v1914_v57 = vld [vmem:[#allocation12 + $0x208] sm:$0xff] }
 0x309   : > { %2693 = vmatpush.msrb.mxu1 %v1922_v16  ;;  %v13051_v44 = vsel %vm8382_vm0, 4294967295, %v13050_v44  ;;  %v1027_v16 = vadd.f32 %v13056_v60, %v7936_v21  ;;  %13059 = vst [vmem:[#allocation29_spill] sm:$0xff] %v8402_v58  ;;  %v2010_v55 = vld [vmem:[#allocation12 + $0x508] sm:$0xff] }
 0x30a   : > { %v1294_v59 = vpop.f32.mrf.mxu2  ;;  %13052 = vst [vmem:[#allocation190_spill] sm:$0xff] %v13051_v44  ;;  %v8390_v62 = vmax.f32 %v1137_v38, 0.0  ;;  %v1620_v40 = vadd.s32 %v7400_v46, %v1587_v5  ;;  %2800 = vmatpush.msra.mxu2 %v2010_v55  ;;  %v13064_v5 = vld [vmem:[#allocation49_spill] sm:$0xff] }
 0x30b   : > { %v1295_v12 = vadd.f32 %v1294_v59, %v7507_v35  ;;  %v1407_v32 = vpop.f32.mrf.mxu3  ;;  %13054 = vst [vmem:[#allocation47_spill] sm:$0xff] %v8388_v33  ;;  %2694 = vmatpush.msrb.mxu1 %v1918_v37 }
 0x30c   : > { %v8379_v29 = vpop.f32.mrf.mxu0  ;;  %13055 = vst [vmem:[#allocation191_spill] sm:$0xff] %v8390_v62 }
 0x30d   : > { %13049 = vst [vmem:[#allocation86_spill] sm:$0xff] %v8379_v29  ;;  %v8394_v42 = vadd.f32 %v1407_v32, %v1295_v12  ;;  %v8396_v59 = vpop.f32.mrf.mxu1  ;;  %v8399_v29 = vmax.f32 %v13057_v47, 0.0  ;;  %v13060_v32 = vld [vmem:[#allocation89_spill] sm:$0xff]  ;;  %2695 = vmatpush.msrb.mxu1 %v1914_v57  ;;  %v1030_v57 = vadd.f32 %v13067_v4, %v7936_v21 }
 0x30e   : > { %v1140_v12 = vadd.f32 %v13060_v32, %v1027_v16 }
 0x30f   : > { %13058 = vst [vmem:[#allocation87_spill] sm:$0xff] %v8399_v29  ;;  %5124 = vmatmul.msk.f32.gmra.mxu0 %vm8382_vm0, %v8388_v33  ;;  %5170 = vmatmul.msk.f32.gmra.mxu2 %vm7729_vm12, %v8390_v62  ;;  %v8428_v62 = vmax.f32 %v13064_v5, 0.0 }
 0x310   : > { %5156 = vmatmul.msk.f32.gmra.mxu1 %vm8382_vm0, %v8399_v29  ;;  %5202 = vmatmul.msk.f32.gmra.mxu3 %vm7729_vm12, %v8402_v58  ;;  %vm8422_vm0 = vcmp.lt.s32.totalorder %v1620_v40, %v7415_v61  ;;  %v13061_v29 = vmov 0  ;;  %v1588_v58 = vadd.s32 240, %v7392_v9  ;;  %v8430_v16 = vmax.f32 %v1140_v12, 0.0  ;;  %v2074_v12 = vld [vmem:[#allocation12 + $0x708] sm:$0xff] }
 0x311   : > { %v13062_v29 = vsel %vm8422_vm0, 4294967295, %v13061_v29  ;;  %13065 = vst [vmem:[#allocation49_spill] sm:$0xff] %v8428_v62  ;;  %v8442_v40 = vmax.f32 %v7858_v18, 0.0  ;;  %2913 = vmatpush.msra.mxu3 %v2074_v12 }
 0x312   : > { %v1297_v38 = vpop.f32.mrf.mxu2  ;;  %13063 = vst [vmem:[#allocation89_spill] sm:$0xff] %v13062_v29  ;;  %v1621_v18 = vadd.s32 %v7400_v46, %v1588_v58 }
 0x313   : > { %v1298_v37 = vadd.f32 %v1297_v38, %v7507_v35  ;;  %v1410_v60 = vpop.f32.mrf.mxu3  ;;  %13066 = vst [vmem:[#allocation192_spill] sm:$0xff] %v8430_v16  ;;  %v13069_v38 = vld [vmem:[#allocation31_spill] sm:$0xff] }
 0x314   : > { %v8419_v47 = vpop.f32.mrf.mxu0  ;;  %v8439_v33 = vmax.f32 %v13069_v38, 0.0  ;;  %13071 = vst [vmem:[#allocation193_spill] sm:$0xff] %v8442_v40  ;;  %vm8462_vm5 = vcmp.lt.s32.totalorder %v1621_v18, %v7415_v61  ;;  %v8482_v18 = vmax.f32 %v7888_v2, 0.0  ;;  %v2006_v2 = vld [vmem:[#allocation12 + $0x4e8] sm:$0xff] }
 0x315   : > { %v8434_v55 = vadd.f32 %v1410_v60, %v1298_v37  ;;  %v8436_v32 = vpop.f32.mrf.mxu1  ;;  %v13072_v37 = vld [vmem:[#allocation92_spill] sm:$0xff]  ;;  %2801 = vmatpush.msra.mxu2 %v2006_v2  ;;  %v13251_v23 = vld [vmem:[#allocation86_spill] sm:$0xff] }
 0x316   : > { %13068 = vst [vmem:[#allocation90_spill] sm:$0xff] %v8436_v32  ;;  %v1143_v60 = vadd.f32 %v13072_v37, %v1030_v57  ;;  %v13077_v32 = vld [vmem:[#allocation51_spill] sm:$0xff]  ;;  %v13080_v57 = vld [vmem:[#allocation93_spill] sm:$0xff] }
 0x317   : > { %13070 = vst [vmem:[#allocation31_spill] sm:$0xff] %v8439_v33  ;;  %5125 = vmatmul.msk.f32.gmra.mxu0 %vm8422_vm0, %v8428_v62  ;;  %5171 = vmatmul.msk.f32.gmra.mxu2 %vm7759_vm13, %v8430_v16  ;;  %v13074_v16 = vmov 0  ;;  %v1033_v12 = vadd.f32 %v13080_v57, %v7936_v21 }
 0x318   : > { %5157 = vmatmul.msk.f32.gmra.mxu1 %vm8422_vm0, %v8439_v33  ;;  %5203 = vmatmul.msk.f32.gmra.mxu3 %vm7759_vm13, %v8442_v40  ;;  %v13075_v16 = vsel %vm8462_vm5, 4294967295, %v13074_v16  ;;  %v1589_v33 = vadd.s32 248, %v7392_v9  ;;  %v8468_v40 = vmax.f32 %v13077_v32, 0.0  ;;  %v8470_v58 = vmax.f32 %v1143_v60, 0.0 }
 0x319   : > { %13076 = vst [vmem:[#allocation194_spill] sm:$0xff] %v13075_v16 }
 0x31a   : > { %v1300_v5 = vpop.f32.mrf.mxu2  ;;  %13078 = vst [vmem:[#allocation51_spill] sm:$0xff] %v8468_v40  ;;  %v1622_v9 = vadd.s32 %v7400_v46, %v1589_v33  ;;  %v13091_v46 = vld [vmem:[#allocation96_spill] sm:$0xff] }
 0x31b   : > { %v1301_v4 = vadd.f32 %v1300_v5, %v7507_v35  ;;  %v1413_v38 = vpop.f32.mrf.mxu3  ;;  %13079 = vst [vmem:[#allocation195_spill] sm:$0xff] %v8470_v58  ;;  %v1036_v33 = vadd.f32 %v13091_v46, %v7936_v21 }
 0x31c   : > { %v8459_v62 = vpop.f32.mrf.mxu0  ;;  %vm8502_vm0 = vcmp.lt.s32.totalorder %v1622_v9, %v7415_v61  ;;  %v8521_v61 = vmax.f32 %v7918_v22, 0.0  ;;  %v13096_v9 = vld [vmem:[#allocation98_spill] sm:$0xff] }
 0x31d   : > { %13073 = vst [vmem:[#allocation92_spill] sm:$0xff] %v8459_v62  ;;  %v8474_v37 = vadd.f32 %v1413_v38, %v1301_v4  ;;  %v8476_v5 = vpop.f32.mrf.mxu1  ;;  %v13081_v62 = vld [vmem:[#allocation34_spill] sm:$0xff]  ;;  %v1149_v22 = vadd.f32 %v13096_v9, %v1036_v33 }
 0x31e   : > { %v8479_v29 = vmax.f32 %v13081_v62, 0.0  ;;  %13083 = vst [vmem:[#allocation34_spill] sm:$0xff] %v8482_v18  ;;  %v13084_v62 = vld [vmem:[#allocation95_spill] sm:$0xff]  ;;  %v13103_v33 = vld [vmem:[#allocation106_spill] sm:$0xff] }
 0x31f   : > { %5126 = vmatmul.msk.f32.gmra.mxu0 %vm8462_vm5, %v8468_v40  ;;  %5172 = vmatmul.msk.f32.gmra.mxu2 %vm7789_vm14, %v8470_v58  ;;  %v1146_v32 = vadd.f32 %v13084_v62, %v1033_v12  ;;  %v13085_v58 = vmov 0  ;;  %v13093_v62 = vld [vmem:[#allocation37_spill] sm:$0xff]  ;;  %13095 = vst [vmem:[#allocation197_spill] sm:$0xff] %v8521_v61  ;;  %v13105_v9 = vld [vmem:[#allocation102_spill] sm:$0xff] }
 0x320   : > { %13082 = vst [vmem:[#allocation93_spill] sm:$0xff] %v8479_v29  ;;  %5158 = vmatmul.msk.f32.gmra.mxu1 %vm8462_vm5, %v8479_v29  ;;  %5204 = vmatmul.msk.f32.gmra.mxu3 %vm7789_vm14, %v8482_v18  ;;  %v13086_v58 = vsel %vm8502_vm0, 4294967295, %v13085_v58  ;;  %v13088_v29 = vld [vmem:[#allocation52_spill] sm:$0xff] }
 0x321   : > { %13087 = vst [vmem:[#allocation95_spill] sm:$0xff] %v13086_v58  ;;  %v8507_v40 = vmax.f32 %v13088_v29, 0.0  ;;  %v8509_v18 = vmax.f32 %v1146_v32, 0.0  ;;  %v2070_v29 = vld [vmem:[#allocation12 + $0x6e8] sm:$0xff] }
 0x322   : > { %v1303_v60 = vpop.f32.mrf.mxu2  ;;  %2914 = vmatpush.msra.mxu3 %v2070_v29  ;;  %v2002_v29 = vld [vmem:[#allocation12 + $0x4c8] sm:$0xff] }
 0x323   : > { %v1304_v4 = vadd.f32 %v1303_v60, %v7507_v35  ;;  %v1416_v38 = vpop.f32.mrf.mxu3  ;;  %13089 = vst [vmem:[#allocation52_spill] sm:$0xff] %v8507_v40  ;;  %v8518_v60 = vmax.f32 %v13093_v62, 0.0  ;;  %v8539_v62 = vmax.f32 %v1149_v22, 0.0  ;;  %2802 = vmatpush.msra.mxu2 %v2002_v29  ;;  %v8578_v29 = vmax.f32 %v7988_v15, 0.0  ;;  %v13114_v15 = vld [vmem:[#allocation107_spill] sm:$0xff] }
 0x324   : > { %v8499_v57 = vpop.f32.mrf.mxu0  ;;  %13090 = vst [vmem:[#allocation196_spill] sm:$0xff] %v8509_v18 }
 0x325   : > { %v8513_v12 = vadd.f32 %v1416_v38, %v1304_v4  ;;  %v8515_v2 = vpop.f32.mrf.mxu1  ;;  %13094 = vst [vmem:[#allocation37_spill] sm:$0xff] %v8518_v60 }
 0x326   : > { %13092 = vst [vmem:[#allocation96_spill] sm:$0xff] %v8515_v2 }
 0x327   : > { %5127 = vmatmul.msk.f32.gmra.mxu0 %vm8502_vm0, %v8507_v40  ;;  %5173 = vmatmul.msk.f32.gmra.mxu2 %vm7819_vm15, %v8509_v18  ;;  %13098 = vst [vmem:[#allocation198_spill] sm:$0xff] %v8539_v62  ;;  %v13099_v18 = vld [vmem:[#allocation101_spill] sm:$0xff] }
 0x328   : > { %5159 = vmatmul.msk.f32.gmra.mxu1 %vm8502_vm0, %v8518_v60  ;;  %5205 = vmatmul.msk.f32.gmra.mxu3 %vm7819_vm15, %v8521_v61  ;;  %v1039_v40 = vadd.f32 %v13099_v18, %v7936_v21  ;;  %v8548_v61 = vmax.f32 %v7953_v10, 0.0  ;;  %vm13102_vm0 = vnez %v12881_v26  ;;  %v13104_v18 = vld [vmem:[#allocation108_spill] sm:$0xff]  ;;  %13110 = vst [vmem:[#allocation201_spill] sm:$0xff] %v8578_v29 }
 0x32a   : > { %v1306_v32 = vpop.f32.mrf.mxu2  ;;  %13101 = vst [vmem:[#allocation199_spill] sm:$0xff] %v8548_v61  ;;  %v1152_v10 = vadd.f32 %v13105_v9, %v1039_v40  ;;  %v2105_v40 = vld [vmem:[%s12093_s5] sm:$0xf]  ;;  %v13112_v9 = vld [vmem:[#allocation110_spill] sm:$0xff] }
 0x32b   : > { %v1307_v4 = vadd.f32 %v1306_v32, %v7507_v35  ;;  %v1419_v38 = vpop.f32.mrf.mxu3 }
 0x32c   : > { %v8537_v46 = vpop.f32.mrf.mxu0 }
 0x32d   : > { %13097 = vst [vmem:[#allocation98_spill] sm:$0xff] %v8537_v46  ;;  %v8543_v2 = vadd.f32 %v1419_v38, %v1307_v4  ;;  %v8545_v60 = vpop.f32.mrf.mxu1 }
 0x32e   : > { %13100 = vst [vmem:[#allocation101_spill] sm:$0xff] %v8545_v60 }
 0x32f   : > { %5174 = vmatmul.msk.f32.gmra.mxu2 %vm13102_vm0, %v8539_v62  ;;  %5224 = vmatmul.msk.f32.vlgmr.msrb.gmra.mxu0 %vm7421_vm2, %v13103_v33  ;;  %v8566_v62 = vmax.f32 %v1152_v10, 0.0  ;;  %v13108_v33 = vld [vmem:[#allocation30_spill] sm:$0xff] }
 0x330   : > { %5206 = vmatmul.msk.f32.gmra.mxu3 %vm13102_vm0, %v8548_v61  ;;  %5256 = vmatmul.msk.f32.vlgmr.msrb.gmra.mxu1 %vm7421_vm2, %v13104_v18  ;;  %v1042_v60 = vadd.f32 %v13108_v33, %v7936_v21  ;;  %vm13111_vm2 = vnez %v12889_v24  ;;  %v2066_v33 = vld [vmem:[#allocation12 + $0x6c8] sm:$0xff]  ;;  %v1911_v10 = vld [vmem:[#allocation12 + $0x1f0] sm:$0xff]  ;;  %v8593_v18 = vperm.slane %v2105_v40, 0 }
 0x331   : > { %13107 = vst [vmem:[#allocation200_spill] sm:$0xff] %v8566_v62  ;;  %2915 = vmatpush.msra.mxu3 %v2066_v33  ;;  %3019 = vmatpush.msra.mxu0 %v1911_v10  ;;  %v8609_v33 = vmax.f32 %v8030_v51, 0.0 }
 0x332   : > { %v1309_v22 = vpop.f32.mrf.mxu2 }
 0x333   : > { %v1310_v32 = vadd.f32 %v1309_v22, %v7507_v35  ;;  %v1422_v4 = vpop.f32.mrf.mxu3  ;;  %v1975_v22 = vld [vmem:[#allocation12 + $0x3f0] sm:$0xff]  ;;  %13118 = vst [vmem:[#allocation202_spill] sm:$0xff] %v8609_v33 }
 0x334   : > { %v8564_v38 = vpop.f32.mrf.mxu0  ;;  %3132 = vmatpush.msra.mxu1 %v1975_v22 }
 0x335   : > { %13106 = vst [vmem:[#allocation102_spill] sm:$0xff] %v8564_v38  ;;  %v8570_v61 = vadd.f32 %v1422_v4, %v1310_v32  ;;  %v8572_v46 = vpop.f32.mrf.mxu1  ;;  %v13113_v32 = vld [vmem:[#allocation112_spill] sm:$0xff]  ;;  %v1155_v4 = vadd.f32 %v13114_v15, %v1042_v60 }
 0x336   : > { %13109 = vst [vmem:[#allocation30_spill] sm:$0xff] %v8572_v46 }
 0x337   : > { %5175 = vmatmul.msk.f32.gmra.mxu2 %vm13111_vm2, %v8566_v62  ;;  %5225 = vmatmul.msk.f32.gmra.mxu0 %vm7451_vm3, %v13112_v9  ;;  %v8598_v20 = vmax.f32 %v1155_v4, 0.0 }
 0x338   : > { %5207 = vmatmul.msk.f32.gmra.mxu3 %vm13111_vm2, %v8578_v29  ;;  %5257 = vmatmul.msk.f32.gmra.mxu1 %vm7451_vm3, %v13113_v32  ;;  %v13116_v29 = vld [vmem:[#allocation33_spill] sm:$0xff]  ;;  %v2133_v32 = vadd.f32 %v7906_v48, %v8593_v18  ;;  %vm13119_vm3 = vnez %v12895_v52  ;;  %v13121_v48 = vld [vmem:[#allocation116_spill] sm:$0xff] }
 0x339   : > { %13115 = vst [vmem:[#allocation107_spill] sm:$0xff] %v8598_v20  ;;  %v1045_v58 = vadd.f32 %v13116_v29, %v7936_v21 }
 0x33a   : > { %v1312_v62 = vpop.f32.mrf.mxu2  ;;  %v2246_v29 = vadd.f32 %v7920_v56, %v2133_v32  ;;  %v8638_v56 = vmax.f32 %v8072_v31, 0.0  ;;  %v2062_v32 = vld [vmem:[#allocation12 + $0x6a8] sm:$0xff]  ;;  %v13130_v31 = vld [vmem:[#allocation115_spill] sm:$0xff] }
 0x33b   : > { %v1313_v9 = vadd.f32 %v1312_v62, %v7507_v35  ;;  %v1425_v46 = vpop.f32.mrf.mxu3  ;;  %v13120_v35 = vld [vmem:[#allocation114_spill] sm:$0xff]  ;;  %v13122_v62 = vld [vmem:[#allocation111_spill] sm:$0xff]  ;;  %2916 = vmatpush.msra.mxu3 %v2062_v32  ;;  %v13138_v32 = vld [vmem:[#allocation40_spill] sm:$0xff] }
 0x33c   : > { %v8596_v38 = vpop.f32.mrf.mxu0  ;;  %v1158_v51 = vadd.f32 %v13122_v62, %v1045_v58  ;;  %13126 = vst [vmem:[#allocation203_spill] sm:$0xff] %v8638_v56  ;;  %v13127_v58 = vld [vmem:[#allocation118_spill] sm:$0xff] }
 0x33d   : > { %v8604_v60 = vadd.f32 %v1425_v46, %v1313_v9  ;;  %v8606_v40 = vpop.f32.mrf.mxu1  ;;  %v1998_v46 = vld [vmem:[#allocation12 + $0x4a8] sm:$0xff] }
 0x33e   : > { %13117 = vst [vmem:[#allocation33_spill] sm:$0xff] %v8606_v40  ;;  %2803 = vmatpush.msra.mxu2 %v1998_v46  ;;  %v8627_v4 = vmax.f32 %v1158_v51, 0.0  ;;  %v1971_v46 = vld [vmem:[#allocation12 + $0x3d0] sm:$0xff] }
 0x33f   : > { %5176 = vmatmul.msk.f32.gmra.mxu2 %vm13119_vm3, %v8598_v20  ;;  %5226 = vmatmul.msk.f32.gmra.mxu0 %vm7481_vm4, %v13120_v35  ;;  %v13124_v35 = vld [vmem:[#allocation36_spill] sm:$0xff]  ;;  %v2136_v20 = vadd.f32 %v7939_v43, %v8593_v18  ;;  %v13129_v43 = vld [vmem:[#allocation119_spill] sm:$0xff] }
 0x340   : > { %5208 = vmatmul.msk.f32.gmra.mxu3 %vm13119_vm3, %v8609_v33  ;;  %5258 = vmatmul.msk.f32.gmra.mxu1 %vm7481_vm4, %v13121_v48  ;;  %13123 = vst [vmem:[#allocation111_spill] sm:$0xff] %v8627_v4  ;;  %v1048_v33 = vadd.f32 %v13124_v35, %v7936_v21  ;;  %vm13128_vm4 = vnez %v12967_v27  ;;  %v1907_v35 = vld [vmem:[#allocation12 + $0x1d0] sm:$0xff] }
 0x341   : > { %v2249_v51 = vadd.f32 %v7955_v3, %v2136_v20  ;;  %3020 = vmatpush.msra.mxu0 %v1907_v35  ;;  %3133 = vmatpush.msra.mxu1 %v1971_v46  ;;  %v8667_v3 = vmax.f32 %v8114_v8, 0.0  ;;  %v13136_v20 = vld [vmem:[#allocation121_spill] sm:$0xff] }
 0x342   : > { %v2358_v9 = vpop.f32.mrf.mxu2  ;;  %v1161_v62 = vadd.f32 %v13130_v31, %v1048_v33 }
 0x343   : > { %v2359_v10 = vadd.f32 %v2358_v9, %v2246_v29  ;;  %v2471_v22 = vpop.f32.mrf.mxu3  ;;  %13134 = vst [vmem:[#allocation204_spill] sm:$0xff] %v8667_v3 }
 0x344   : > { %v8625_v15 = vpop.f32.mrf.mxu0 }
 0x345   : > { %v8633_v48 = vadd.f32 %v2471_v22, %v2359_v10  ;;  %v8635_v40 = vpop.f32.mrf.mxu1 }
 0x347   : > { %13125 = vst [vmem:[#allocation36_spill] sm:$0xff] %v8633_v48  ;;  %5177 = vmatmul.msk.f32.gmra.mxu2 %vm7942_vm1, %v8627_v4  ;;  %5227 = vmatmul.msk.f32.gmra.mxu0 %vm13128_vm4, %v13127_v58  ;;  %v8656_v48 = vmax.f32 %v1161_v62, 0.0 }
 0x348   : > { %5209 = vmatmul.msk.f32.gmra.mxu3 %vm7942_vm1, %v8638_v56  ;;  %5259 = vmatmul.msk.f32.gmra.mxu1 %vm13128_vm4, %v13129_v43  ;;  %v13132_v56 = vld [vmem:[#allocation39_spill] sm:$0xff]  ;;  %v2139_v43 = vadd.f32 %v7974_v39, %v8593_v18  ;;  %vm13135_vm4 = vnez %v12916_v0  ;;  %v13137_v39 = vld [vmem:[#allocation122_spill] sm:$0xff]  ;;  %v13296_v0 = vld [vmem:[#allocation61_spill] sm:$0xff] }
 0x349   : > { %13131 = vst [vmem:[#allocation115_spill] sm:$0xff] %v8656_v48  ;;  %v1051_v58 = vadd.f32 %v13132_v56, %v7936_v21  ;;  %v1994_v56 = vld [vmem:[#allocation12 + $0x488] sm:$0xff] }
 0x34a   : > { %v2361_v29 = vpop.f32.mrf.mxu2  ;;  %v2252_v35 = vadd.f32 %v7990_v50, %v2139_v43  ;;  %2804 = vmatpush.msra.mxu2 %v1994_v56  ;;  %v8696_v50 = vmax.f32 %v8154_v45, 0.0  ;;  %v2058_v43 = vld [vmem:[#allocation12 + $0x688] sm:$0xff]  ;;  %v1903_v56 = vld [vmem:[#allocation12 + $0x1b0] sm:$0xff] }
 0x34b   : > { %v2362_v9 = vadd.f32 %v2361_v29, %v2249_v51  ;;  %v2474_v10 = vpop.f32.mrf.mxu3  ;;  %v1164_v8 = vadd.f32 %v13138_v32, %v1051_v58  ;;  %v13144_v58 = vld [vmem:[#allocation124_spill] sm:$0xff]  ;;  %v1967_v32 = vld [vmem:[#allocation12 + $0x3b0] sm:$0xff]  ;;  %2917 = vmatpush.msra.mxu3 %v2058_v43  ;;  %3021 = vmatpush.msra.mxu0 %v1903_v56 }
 0x34c   : > { %v8654_v22 = vpop.f32.mrf.mxu0  ;;  %13142 = vst [vmem:[#allocation205_spill] sm:$0xff] %v8696_v50  ;;  %v13146_v45 = vld [vmem:[#allocation43_spill] sm:$0xff]  ;;  %3134 = vmatpush.msra.mxu1 %v1967_v32  ;;  %v13154_v43 = vld [vmem:[#allocation64_spill] sm:$0xff]  ;;  %v13158_v32 = vld [vmem:[#allocation46_spill] sm:$0xff] }
 0x34d   : > { %v8662_v4 = vadd.f32 %v2474_v10, %v2362_v9  ;;  %v8664_v33 = vpop.f32.mrf.mxu1  ;;  %v8685_v29 = vmax.f32 %v1164_v8, 0.0  ;;  %v13140_v9 = vld [vmem:[#allocation42_spill] sm:$0xff]  ;;  %v13156_v56 = vld [vmem:[#allocation127_spill] sm:$0xff] }
 0x34e   : > { %v1054_v10 = vadd.f32 %v13140_v9, %v7936_v21 }
 0x34f   : > { %13133 = vst [vmem:[#allocation39_spill] sm:$0xff] %v8662_v4  ;;  %5178 = vmatmul.msk.f32.gmra.mxu2 %vm13135_vm4, %v8656_v48  ;;  %5228 = vmatmul.msk.f32.gmra.mxu0 %vm7549_vm6, %v13136_v20  ;;  %v2142_v4 = vadd.f32 %v8016_v30, %v8593_v18  ;;  %v13145_v30 = vld [vmem:[#allocation125_spill] sm:$0xff]  ;;  %v13150_v20 = vld [vmem:[#allocation22_spill] sm:$0xff] }
 0x350   : > { %5210 = vmatmul.msk.f32.gmra.mxu3 %vm13135_vm4, %v8667_v3  ;;  %5260 = vmatmul.msk.f32.gmra.mxu1 %vm7549_vm6, %v13137_v39  ;;  %13139 = vst [vmem:[#allocation40_spill] sm:$0xff] %v8685_v29  ;;  %vm13143_vm6 = vnez %v12929_v34  ;;  %v1167_v8 = vadd.f32 %v13146_v45, %v1054_v10  ;;  %v13159_v45 = vld [vmem:[#allocation65_spill] sm:$0xff] }
 0x352   : > { %v2364_v46 = vpop.f32.mrf.mxu2 }
 0x353   : > { %v2365_v31 = vadd.f32 %v2364_v46, %v2252_v35  ;;  %v2477_v62 = vpop.f32.mrf.mxu3  ;;  %v13147_v35 = vld [vmem:[#allocation21_spill] sm:$0xff] }
 0x354   : > { %v8683_v51 = vpop.f32.mrf.mxu0  ;;  %v2255_v46 = vadd.f32 %v13147_v35, %v2142_v4  ;;  %v8725_v4 = vmax.f32 %v8194_v17, 0.0 }
 0x355   : > { %v8691_v39 = vadd.f32 %v2477_v62, %v2365_v31  ;;  %v8693_v3 = vpop.f32.mrf.mxu1 }
 0x356   : > { %13153 = vst [vmem:[#allocation22_spill] sm:$0xff] %v8725_v4 }
 0x357   : > { %13141 = vst [vmem:[#allocation42_spill] sm:$0xff] %v8691_v39  ;;  %5179 = vmatmul.msk.f32.gmra.mxu2 %vm13143_vm6, %v8685_v29  ;;  %5229 = vmatmul.msk.f32.gmra.mxu0 %vm7579_vm7, %v13144_v58  ;;  %v8714_v58 = vmax.f32 %v1167_v8, 0.0 }
 0x358   : > { %5211 = vmatmul.msk.f32.gmra.mxu3 %vm13143_vm6, %v8696_v50  ;;  %5261 = vmatmul.msk.f32.gmra.mxu1 %vm7579_vm7, %v13145_v30  ;;  %v13149_v50 = vld [vmem:[#allocation45_spill] sm:$0xff]  ;;  %v2145_v30 = vadd.f32 %v13150_v20, %v8593_v18  ;;  %vm13155_vm7 = vnez %v13154_v43 }
 0x359   : > { %13148 = vst [vmem:[#allocation43_spill] sm:$0xff] %v8714_v58  ;;  %v1057_v29 = vadd.f32 %v13149_v50, %v7936_v21  ;;  %v13157_v20 = vld [vmem:[#allocation129_spill] sm:$0xff] }
 0x35a   : > { %v2367_v31 = vpop.f32.mrf.mxu2  ;;  %v1990_v50 = vld [vmem:[#allocation12 + $0x468] sm:$0xff]  ;;  %v2258_v8 = vadd.f32 %v13159_v45, %v2145_v30  ;;  %v13167_v30 = vld [vmem:[#allocation131_spill] sm:$0xff] }
 0x35b   : > { %v2368_v62 = vadd.f32 %v2367_v31, %v2255_v46  ;;  %v2480_v9 = vpop.f32.mrf.mxu3  ;;  %v1170_v17 = vadd.f32 %v13158_v32, %v1057_v29  ;;  %2805 = vmatpush.msra.mxu2 %v1990_v50  ;;  %v8754_v29 = vmax.f32 %v8234_v49, 0.0  ;;  %v2054_v50 = vld [vmem:[#allocation12 + $0x668] sm:$0xff]  ;;  %v1963_v32 = vld [vmem:[#allocation12 + $0x390] sm:$0xff]  ;;  %v13169_v49 = vld [vmem:[#allocation128_spill] sm:$0xff] }
 0x35c   : > { %v8712_v39 = vpop.f32.mrf.mxu0  ;;  %v13170_v45 = vld [vmem:[#allocation18_spill] sm:$0xff]  ;;  %2918 = vmatpush.msra.mxu3 %v2054_v50  ;;  %3135 = vmatpush.msra.mxu1 %v1963_v32  ;;  %v13177_v50 = vld [vmem:[#allocation28_spill] sm:$0xff] }
 0x35d   : > { %v8720_v48 = vadd.f32 %v2480_v9, %v2368_v62  ;;  %v8722_v10 = vpop.f32.mrf.mxu1  ;;  %v8743_v9 = vmax.f32 %v1170_v17, 0.0  ;;  %v13181_v32 = vld [vmem:[#allocation132_spill] sm:$0xff] }
 0x35e   : > { %13152 = vst [vmem:[#allocation45_spill] sm:$0xff] %v8722_v10 }
 0x35f   : > { %13151 = vst [vmem:[#allocation21_spill] sm:$0xff] %v8720_v48  ;;  %5180 = vmatmul.msk.f32.gmra.mxu2 %vm13155_vm7, %v8714_v58  ;;  %5230 = vmatmul.msk.f32.gmra.mxu0 %vm7609_vm8, %v13156_v56  ;;  %v13161_v48 = vld [vmem:[#allocation48_spill] sm:$0xff] }
 0x360   : > { %5212 = vmatmul.msk.f32.gmra.mxu3 %vm13155_vm7, %v8725_v4  ;;  %5262 = vmatmul.msk.f32.gmra.mxu1 %vm7609_vm8, %v13157_v20  ;;  %13160 = vst [vmem:[#allocation46_spill] sm:$0xff] %v8743_v9  ;;  %v1060_v4 = vadd.f32 %v13161_v48, %v7936_v21  ;;  %v13162_v56 = vld [vmem:[#allocation76_spill] sm:$0xff]  ;;  %vm13166_vm8 = vnez %v12958_v41  ;;  %v1899_v48 = vld [vmem:[#allocation12 + $0x190] sm:$0xff] }
 0x361   : > { %v2148_v58 = vadd.f32 %v13162_v56, %v8593_v18  ;;  %13165 = vst [vmem:[#allocation76_spill] sm:$0xff] %v8754_v29  ;;  %v13168_v56 = vld [vmem:[#allocation133_spill] sm:$0xff]  ;;  %3022 = vmatpush.msra.mxu0 %v1899_v48  ;;  %v13179_v48 = vld [vmem:[#allocation136_spill] sm:$0xff] }
 0x362   : > { %v2370_v35 = vpop.f32.mrf.mxu2  ;;  %v1173_v17 = vadd.f32 %v13169_v49, %v1060_v4  ;;  %v13182_v49 = vld [vmem:[#allocation69_spill] sm:$0xff] }
 0x363   : > { %v2371_v46 = vadd.f32 %v2370_v35, %v2258_v8  ;;  %v2483_v31 = vpop.f32.mrf.mxu3  ;;  %v2261_v8 = vadd.f32 %v13170_v45, %v2148_v58  ;;  %v8783_v58 = vmax.f32 %v8274_v63, 0.0 }
 0x364   : > { %v8741_v62 = vpop.f32.mrf.mxu0 }
 0x365   : > { %v8749_v20 = vadd.f32 %v2483_v31, %v2371_v46  ;;  %v8751_v10 = vpop.f32.mrf.mxu1  ;;  %13176 = vst [vmem:[#allocation207_spill] sm:$0xff] %v8783_v58 }
 0x366   : > { %13164 = vst [vmem:[#allocation48_spill] sm:$0xff] %v8751_v10 }
 0x367   : > { %13163 = vst [vmem:[#allocation65_spill] sm:$0xff] %v8749_v20  ;;  %5181 = vmatmul.msk.f32.gmra.mxu2 %vm13166_vm8, %v8743_v9  ;;  %5231 = vmatmul.msk.f32.gmra.mxu0 %vm7639_vm9, %v13167_v30  ;;  %v8772_v30 = vmax.f32 %v1173_v17, 0.0 }
 0x368   : > { %5213 = vmatmul.msk.f32.gmra.mxu3 %vm13166_vm8, %v8754_v29  ;;  %5263 = vmatmul.msk.f32.gmra.mxu1 %vm7639_vm9, %v13168_v56  ;;  %v13173_v29 = vld [vmem:[#allocation50_spill] sm:$0xff]  ;;  %v2151_v56 = vadd.f32 %v8140_v14, %v8593_v18  ;;  %vm13178_vm9 = vnez %v13177_v50 }
 0x369   : > { %13172 = vst [vmem:[#allocation18_spill] sm:$0xff] %v8772_v30  ;;  %v1063_v9 = vadd.f32 %v13173_v29, %v7936_v21  ;;  %v13180_v14 = vld [vmem:[#allocation138_spill] sm:$0xff] }
 0x36a   : > { %v2373_v35 = vpop.f32.mrf.mxu2  ;;  %v1986_v29 = vld [vmem:[#allocation12 + $0x448] sm:$0xff]  ;;  %v2264_v17 = vadd.f32 %v13182_v49, %v2151_v56 }
 0x36b   : > { %v2374_v46 = vadd.f32 %v2373_v35, %v2261_v8  ;;  %v2486_v31 = vpop.f32.mrf.mxu3  ;;  %v1176_v63 = vadd.f32 %v13181_v32, %v1063_v9  ;;  %2806 = vmatpush.msra.mxu2 %v1986_v29  ;;  %v13189_v9 = vld [vmem:[#allocation81_spill] sm:$0xff] }
 0x36c   : > { %v8770_v20 = vpop.f32.mrf.mxu0  ;;  %v8812_v56 = vmax.f32 %v13189_v9, 0.0  ;;  %v13191_v29 = vld [vmem:[#allocation173_spill] sm:$0xff] }
 0x36d   : > { %13171 = vst [vmem:[#allocation128_spill] sm:$0xff] %v8770_v20  ;;  %v8778_v10 = vadd.f32 %v2486_v31, %v2374_v46  ;;  %v8780_v4 = vpop.f32.mrf.mxu1  ;;  %v8801_v31 = vmax.f32 %v1176_v63, 0.0  ;;  %v13193_v32 = vld [vmem:[#allocation141_spill] sm:$0xff]  ;;  %v13200_v63 = vld [vmem:[#allocation74_spill] sm:$0xff] }
 0x36e   : > { %13175 = vst [vmem:[#allocation206_spill] sm:$0xff] %v8780_v4  ;;  %v2050_v49 = vld [vmem:[#allocation12 + $0x648] sm:$0xff] }
 0x36f   : > { %13174 = vst [vmem:[#allocation50_spill] sm:$0xff] %v8778_v10  ;;  %5182 = vmatmul.msk.f32.gmra.mxu2 %vm13178_vm9, %v8772_v30  ;;  %5232 = vmatmul.msk.f32.gmra.mxu0 %vm7669_vm10, %v13179_v48  ;;  %v13185_v10 = vld [vmem:[#allocation134_spill] sm:$0xff]  ;;  %v13186_v48 = vld [vmem:[#allocation71_spill] sm:$0xff] }
 0x370   : > { %5214 = vmatmul.msk.f32.gmra.mxu3 %vm13178_vm9, %v8783_v58  ;;  %5264 = vmatmul.msk.f32.gmra.mxu1 %vm7669_vm10, %v13180_v14  ;;  %13184 = vst [vmem:[#allocation132_spill] sm:$0xff] %v8801_v31  ;;  %v1066_v58 = vadd.f32 %v13185_v10, %v7936_v21  ;;  %v2154_v30 = vadd.f32 %v13186_v48, %v8593_v18  ;;  %vm13192_vm10 = vnez %v13191_v29  ;;  %v1895_v10 = vld [vmem:[#allocation12 + $0x170] sm:$0xff] }
 0x371   : > { %13190 = vst [vmem:[#allocation71_spill] sm:$0xff] %v8812_v56  ;;  %v13195_v48 = vld [vmem:[#allocation143_spill] sm:$0xff]  ;;  %2919 = vmatpush.msra.mxu3 %v2050_v49  ;;  %3023 = vmatpush.msra.mxu0 %v1895_v10  ;;  %v13207_v10 = vld [vmem:[#allocation145_spill] sm:$0xff] }
 0x372   : > { %v2376_v45 = vpop.f32.mrf.mxu2 }
 0x373   : > { %v2377_v8 = vadd.f32 %v2376_v45, %v2264_v17  ;;  %v2489_v35 = vpop.f32.mrf.mxu3  ;;  %v1959_v17 = vld [vmem:[#allocation12 + $0x370] sm:$0xff]  ;;  %v13196_v45 = vld [vmem:[#allocation137_spill] sm:$0xff] }
 0x374   : > { %v8799_v46 = vpop.f32.mrf.mxu0  ;;  %3136 = vmatpush.msra.mxu1 %v1959_v17  ;;  %v13210_v17 = vld [vmem:[#allocation75_spill] sm:$0xff] }
 0x375   : > { %13183 = vst [vmem:[#allocation28_spill] sm:$0xff] %v8799_v46  ;;  %v8807_v14 = vadd.f32 %v2489_v35, %v2377_v8  ;;  %v8809_v4 = vpop.f32.mrf.mxu1  ;;  %v1179_v8 = vadd.f32 %v13196_v45, %v1066_v58  ;;  %v13197_v35 = vld [vmem:[#allocation72_spill] sm:$0xff] }
 0x376   : > { %13188 = vst [vmem:[#allocation134_spill] sm:$0xff] %v8809_v4  ;;  %v2267_v9 = vadd.f32 %v13197_v35, %v2154_v30  ;;  %v13203_v30 = vld [vmem:[#allocation84_spill] sm:$0xff] }
 0x377   : > { %13187 = vst [vmem:[#allocation69_spill] sm:$0xff] %v8807_v14  ;;  %5183 = vmatmul.msk.f32.gmra.mxu2 %vm13192_vm10, %v8801_v31  ;;  %5233 = vmatmul.msk.f32.gmra.mxu0 %vm7699_vm11, %v13193_v32  ;;  %v8830_v46 = vmax.f32 %v1179_v8, 0.0  ;;  %v8841_v49 = vmax.f32 %v13203_v30, 0.0 }
 0x378   : > { %5215 = vmatmul.msk.f32.gmra.mxu3 %vm13192_vm10, %v8812_v56  ;;  %5265 = vmatmul.msk.f32.gmra.mxu1 %vm7699_vm11, %v13195_v48  ;;  %v13199_v56 = vld [vmem:[#allocation139_spill] sm:$0xff]  ;;  %v2157_v48 = vadd.f32 %v13200_v63, %v8593_v18 }
 0x379   : > { %13198 = vst [vmem:[#allocation81_spill] sm:$0xff] %v8830_v46  ;;  %v1069_v19 = vadd.f32 %v13199_v56, %v7936_v21  ;;  %v13208_v56 = vld [vmem:[#allocation147_spill] sm:$0xff] }
 0x37a   : > { %v2379_v14 = vpop.f32.mrf.mxu2  ;;  %13204 = vst [vmem:[#allocation72_spill] sm:$0xff] %v8841_v49  ;;  %v2270_v45 = vadd.f32 %v13210_v17, %v2157_v48  ;;  %v13218_v48 = vld [vmem:[#allocation179_spill] sm:$0xff] }
 0x37b   : > { %v2380_v32 = vadd.f32 %v2379_v14, %v2267_v9  ;;  %v2492_v31 = vpop.f32.mrf.mxu3  ;;  %v13205_v14 = vld [vmem:[#allocation176_spill] sm:$0xff] }
 0x37c   : > { %v8828_v4 = vpop.f32.mrf.mxu0  ;;  %vm13206_vm11 = vnez %v13205_v14 }
 0x37d   : > { %v8836_v20 = vadd.f32 %v2492_v31, %v2380_v32  ;;  %v8838_v58 = vpop.f32.mrf.mxu1  ;;  %v1982_v31 = vld [vmem:[#allocation12 + $0x428] sm:$0xff] }
 0x37e   : > { %13202 = vst [vmem:[#allocation137_spill] sm:$0xff] %v8838_v58  ;;  %v13209_v32 = vld [vmem:[#allocation142_spill] sm:$0xff]  ;;  %2807 = vmatpush.msra.mxu2 %v1982_v31  ;;  %v13220_v31 = vld [vmem:[#allocation149_spill] sm:$0xff] }
 0x37f   : > { %13201 = vst [vmem:[#allocation173_spill] sm:$0xff] %v8836_v20  ;;  %5184 = vmatmul.msk.f32.gmra.mxu2 %vm13206_vm11, %v8830_v46  ;;  %5234 = vmatmul.msk.f32.gmra.mxu0 %vm7729_vm12, %v13207_v10  ;;  %v1182_v63 = vadd.f32 %v13209_v32, %v1069_v19  ;;  %v13213_v10 = vld [vmem:[#allocation53_spill] sm:$0xff]  ;;  %v8870_v19 = vmax.f32 %v8394_v42, 0.0  ;;  %v13222_v42 = vld [vmem:[#allocation146_spill] sm:$0xff] }
 0x380   : > { %5216 = vmatmul.msk.f32.gmra.mxu3 %vm13206_vm11, %v8841_v49  ;;  %5266 = vmatmul.msk.f32.gmra.mxu1 %vm7729_vm12, %v13208_v56  ;;  %v1072_v49 = vadd.f32 %v13213_v10, %v7936_v21  ;;  %v13214_v46 = vld [vmem:[#allocation77_spill] sm:$0xff]  ;;  %vm13219_vm12 = vnez %v13218_v48  ;;  %v1891_v10 = vld [vmem:[#allocation12 + $0x150] sm:$0xff] }
 0x381   : > { %v8859_v20 = vmax.f32 %v1182_v63, 0.0  ;;  %v2160_v58 = vadd.f32 %v13214_v46, %v8593_v18  ;;  %13217 = vst [vmem:[#allocation75_spill] sm:$0xff] %v8870_v19  ;;  %v2046_v32 = vld [vmem:[#allocation12 + $0x628] sm:$0xff]  ;;  %v1955_v63 = vld [vmem:[#allocation12 + $0x350] sm:$0xff]  ;;  %3024 = vmatpush.msra.mxu0 %v1891_v10 }
 0x382   : > { %v2382_v8 = vpop.f32.mrf.mxu2  ;;  %v13221_v46 = vld [vmem:[#allocation151_spill] sm:$0xff]  ;;  %v1185_v17 = vadd.f32 %v13222_v42, %v1072_v49  ;;  %2920 = vmatpush.msra.mxu3 %v2046_v32  ;;  %3137 = vmatpush.msra.mxu1 %v1955_v63  ;;  %v13230_v32 = vld [vmem:[#allocation182_spill] sm:$0xff]  ;;  %v13232_v10 = vld [vmem:[#allocation153_spill] sm:$0xff] }
 0x383   : > { %v2383_v35 = vadd.f32 %v2382_v8, %v2270_v45  ;;  %v2495_v9 = vpop.f32.mrf.mxu3  ;;  %13212 = vst [vmem:[#allocation74_spill] sm:$0xff] %v8859_v20  ;;  %v13223_v45 = vld [vmem:[#allocation78_spill] sm:$0xff]  ;;  %v13235_v63 = vld [vmem:[#allocation184_spill] sm:$0xff]  ;;  %v13348_v48 = vld [vmem:[#allocation41_spill] sm:$0xff] }
 0x384   : > { %v8857_v30 = vpop.f32.mrf.mxu0  ;;  %v2273_v8 = vadd.f32 %v13223_v45, %v2160_v58  ;;  %v8899_v58 = vmax.f32 %v8434_v55, 0.0 }
 0x385   : > { %13211 = vst [vmem:[#allocation139_spill] sm:$0xff] %v8857_v30  ;;  %v8865_v56 = vadd.f32 %v2495_v9, %v2383_v35  ;;  %v8867_v28 = vpop.f32.mrf.mxu1 }
 0x386   : > { %13216 = vst [vmem:[#allocation142_spill] sm:$0xff] %v8867_v28 }
 0x387   : > { %13215 = vst [vmem:[#allocation84_spill] sm:$0xff] %v8865_v56  ;;  %5185 = vmatmul.msk.f32.gmra.mxu2 %vm13219_vm12, %v8859_v20  ;;  %5235 = vmatmul.msk.f32.gmra.mxu0 %vm7759_vm13, %v13220_v31  ;;  %v8888_v20 = vmax.f32 %v1185_v17, 0.0 }
 0x388   : > { %5217 = vmatmul.msk.f32.gmra.mxu3 %vm13219_vm12, %v8870_v19  ;;  %5267 = vmatmul.msk.f32.gmra.mxu1 %vm7759_vm13, %v13221_v46  ;;  %v13225_v19 = vld [vmem:[#allocation54_spill] sm:$0xff]  ;;  %v2163_v46 = vadd.f32 %v13226_v1, %v8593_v18  ;;  %13229 = vst [vmem:[#allocation78_spill] sm:$0xff] %v8899_v58  ;;  %vm13231_vm13 = vnez %v13230_v32  ;;  %v13233_v1 = vld [vmem:[#allocation155_spill] sm:$0xff]  ;;  %v13361_v32 = vld [vmem:[#allocation140_spill] sm:$0xff] }
 0x389   : > { %13224 = vst [vmem:[#allocation53_spill] sm:$0xff] %v8888_v20  ;;  %v1075_v28 = vadd.f32 %v13225_v19, %v7936_v21  ;;  %v13234_v19 = vld [vmem:[#allocation150_spill] sm:$0xff] }
 0x38a   : > { %v2385_v35 = vpop.f32.mrf.mxu2  ;;  %v2276_v42 = vadd.f32 %v13235_v63, %v2163_v46  ;;  %v13243_v46 = vld [vmem:[#allocation186_spill] sm:$0xff] }
 0x38b   : > { %v2386_v9 = vadd.f32 %v2385_v35, %v2273_v8  ;;  %v2498_v56 = vpop.f32.mrf.mxu3  ;;  %v1188_v55 = vadd.f32 %v13234_v19, %v1075_v28  ;;  %v8928_v28 = vmax.f32 %v8474_v37, 0.0  ;;  %v2042_v19 = vld [vmem:[#allocation12 + $0x608] sm:$0xff] }
 0x38c   : > { %v8886_v31 = vpop.f32.mrf.mxu0  ;;  %v13247_v37 = vld [vmem:[#allocation154_spill] sm:$0xff]  ;;  %2921 = vmatpush.msra.mxu3 %v2042_v19  ;;  %v13255_v19 = vld [vmem:[#allocation161_spill] sm:$0xff] }
 0x38d   : > { %v8894_v30 = vadd.f32 %v2498_v56, %v2386_v9  ;;  %v8896_v49 = vpop.f32.mrf.mxu1  ;;  %v1978_v56 = vld [vmem:[#allocation12 + $0x408] sm:$0xff]  ;;  %v8917_v9 = vmax.f32 %v1188_v55, 0.0  ;;  %v1951_v55 = vld [vmem:[#allocation12 + $0x330] sm:$0xff] }
 0x38e   : > { %13228 = vst [vmem:[#allocation146_spill] sm:$0xff] %v8896_v49  ;;  %2808 = vmatpush.msra.mxu2 %v1978_v56  ;;  %v13245_v56 = vld [vmem:[#allocation157_spill] sm:$0xff]  ;;  %3138 = vmatpush.msra.mxu1 %v1951_v55 }
 0x38f   : > { %13227 = vst [vmem:[#allocation77_spill] sm:$0xff] %v8894_v30  ;;  %5186 = vmatmul.msk.f32.gmra.mxu2 %vm13231_vm13, %v8888_v20  ;;  %5236 = vmatmul.msk.f32.gmra.mxu0 %vm7789_vm14, %v13232_v10  ;;  %v13238_v30 = vld [vmem:[#allocation55_spill] sm:$0xff] }
 0x390   : > { %5218 = vmatmul.msk.f32.gmra.mxu3 %vm13231_vm13, %v8899_v58  ;;  %5268 = vmatmul.msk.f32.gmra.mxu1 %vm7789_vm14, %v13233_v1  ;;  %13237 = vst [vmem:[#allocation80_spill] sm:$0xff] %v8917_v9  ;;  %v1078_v58 = vadd.f32 %v13238_v30, %v7936_v21  ;;  %v13239_v10 = vld [vmem:[#allocation83_spill] sm:$0xff]  ;;  %vm13244_vm14 = vnez %v13243_v46  ;;  %v2211_v46 = vadd.f32 %v8828_v4, %v8593_v18  ;;  %v13373_v4 = vld [vmem:[#allocation29_spill] sm:$0xff] }
 0x391   : > { %v2166_v20 = vadd.f32 %v13239_v10, %v8593_v18  ;;  %13242 = vst [vmem:[#allocation55_spill] sm:$0xff] %v8928_v28  ;;  %v1887_v30 = vld [vmem:[#allocation12 + $0x130] sm:$0xff] }
 0x392   : > { %v2388_v17 = vpop.f32.mrf.mxu2  ;;  %v13246_v10 = vld [vmem:[#allocation159_spill] sm:$0xff]  ;;  %v1191_v63 = vadd.f32 %v13247_v37, %v1078_v58  ;;  %3025 = vmatpush.msra.mxu0 %v1887_v30 }
 0x393   : > { %v2389_v45 = vadd.f32 %v2388_v17, %v2276_v42  ;;  %v2501_v8 = vpop.f32.mrf.mxu3  ;;  %v13248_v42 = vld [vmem:[#allocation188_spill] sm:$0xff] }
 0x394   : > { %v8915_v35 = vpop.f32.mrf.mxu0  ;;  %v2279_v17 = vadd.f32 %v13248_v42, %v2166_v20  ;;  %v8957_v20 = vmax.f32 %v8513_v12, 0.0 }
 0x395   : > { %13236 = vst [vmem:[#allocation54_spill] sm:$0xff] %v8915_v35  ;;  %v8923_v1 = vadd.f32 %v2501_v8, %v2389_v45  ;;  %v8925_v49 = vpop.f32.mrf.mxu1 }
 0x396   : > { %13241 = vst [vmem:[#allocation184_spill] sm:$0xff] %v8925_v49 }
 0x397   : > { %13240 = vst [vmem:[#allocation150_spill] sm:$0xff] %v8923_v1  ;;  %5187 = vmatmul.msk.f32.gmra.mxu2 %vm13244_vm14, %v8917_v9  ;;  %5237 = vmatmul.msk.f32.gmra.mxu0 %vm7819_vm15, %v13245_v56  ;;  %v8946_v9 = vmax.f32 %v1191_v63, 0.0 }
 0x398   : > { %5219 = vmatmul.msk.f32.gmra.mxu3 %vm13244_vm14, %v8928_v28  ;;  %5269 = vmatmul.msk.f32.gmra.mxu1 %vm7819_vm15, %v13246_v10  ;;  %v13250_v28 = vld [vmem:[#allocation56_spill] sm:$0xff]  ;;  %v2169_v10 = vadd.f32 %v13251_v23, %v8593_v18  ;;  %13253 = vst [vmem:[#allocation188_spill] sm:$0xff] %v8957_v20  ;;  %vm13254_vm15 = vnez %v13051_v44  ;;  %v13256_v23 = vld [vmem:[#allocation163_spill] sm:$0xff]  ;;  %v13377_v44 = vld [vmem:[#allocation49_spill] sm:$0xff] }
 0x399   : > { %13249 = vst [vmem:[#allocation83_spill] sm:$0xff] %v8946_v9  ;;  %v1081_v49 = vadd.f32 %v13250_v28, %v7936_v21 }
 0x39a   : > { %v2391_v45 = vpop.f32.mrf.mxu2  ;;  %v2282_v12 = vadd.f32 %v8396_v59, %v2169_v10  ;;  %v13262_v59 = vld [vmem:[#allocation89_spill] sm:$0xff] }
 0x39b   : > { %v2392_v8 = vadd.f32 %v2391_v45, %v2279_v17  ;;  %v2504_v1 = vpop.f32.mrf.mxu3  ;;  %v13259_v17 = vld [vmem:[#allocation57_spill] sm:$0xff] }
 0x39c   : > { %v8944_v56 = vpop.f32.mrf.mxu0  ;;  %v1084_v45 = vadd.f32 %v13259_v17, %v7936_v21  ;;  %v13264_v10 = vld [vmem:[#allocation165_spill] sm:$0xff] }
 0x39d   : > { %v8952_v35 = vadd.f32 %v2504_v1, %v2392_v8  ;;  %v8954_v58 = vpop.f32.mrf.mxu1  ;;  %v13257_v1 = vld [vmem:[#allocation158_spill] sm:$0xff]  ;;  %v2172_v8 = vadd.f32 %v8419_v47, %v8593_v18  ;;  %v13265_v47 = vld [vmem:[#allocation167_spill] sm:$0xff] }
 0x39e   : > { %v1194_v28 = vadd.f32 %v13257_v1, %v1081_v49  ;;  %v8986_v49 = vmax.f32 %v8543_v2, 0.0  ;;  %v1883_v1 = vld [vmem:[#allocation12 + $0x110] sm:$0xff] }
 0x39f   : > { %13252 = vst [vmem:[#allocation154_spill] sm:$0xff] %v8952_v35  ;;  %5188 = vmatmul.msk.f32.gmra.mxu2 %vm13254_vm15, %v8946_v9  ;;  %5238 = vmatmul.msk.f32.gmra.mxu0 %vm13102_vm0, %v13255_v19  ;;  %v13266_v2 = vld [vmem:[#allocation162_spill] sm:$0xff]  ;;  %v13270_v19 = vld [vmem:[#allocation92_spill] sm:$0xff] }
 0x3a0   : > { %5220 = vmatmul.msk.f32.gmra.mxu3 %vm13254_vm15, %v8957_v20  ;;  %5270 = vmatmul.msk.f32.gmra.mxu1 %vm13102_vm0, %v13256_v23  ;;  %v8975_v42 = vmax.f32 %v1194_v28, 0.0  ;;  %13261 = vst [vmem:[#allocation158_spill] sm:$0xff] %v8986_v49  ;;  %vm13263_vm0 = vnez %v13262_v59  ;;  %v1947_v28 = vld [vmem:[#allocation12 + $0x310] sm:$0xff]  ;;  %v2175_v9 = vadd.f32 %v13270_v19, %v8593_v18 }
 0x3a1   : > { %3026 = vmatpush.msra.mxu0 %v1883_v1  ;;  %3139 = vmatpush.msra.mxu1 %v1947_v28  ;;  %v13269_v20 = vld [vmem:[#allocation58_spill] sm:$0xff]  ;;  %v13273_v1 = vld [vmem:[#allocation169_spill] sm:$0xff] }
 0x3a2   : > { %v2394_v30 = vpop.f32.mrf.mxu2  ;;  %13258 = vst [vmem:[#allocation56_spill] sm:$0xff] %v8975_v42 }
 0x3a3   : > { %v2395_v55 = vadd.f32 %v2394_v30, %v2282_v12  ;;  %v2507_v37 = vpop.f32.mrf.mxu3  ;;  %v1197_v12 = vadd.f32 %v13266_v2, %v1084_v45  ;;  %v13267_v30 = vld [vmem:[#allocation90_spill] sm:$0xff] }
 0x3a4   : > { %v8973_v63 = vpop.f32.mrf.mxu0 }
 0x3a5   : > { %v8981_v35 = vadd.f32 %v2507_v37, %v2395_v55  ;;  %v8983_v23 = vpop.f32.mrf.mxu1  ;;  %v2285_v55 = vadd.f32 %v13267_v30, %v2172_v8  ;;  %v9015_v8 = vmax.f32 %v8570_v61, 0.0  ;;  %v2288_v61 = vadd.f32 %v8476_v5, %v2175_v9  ;;  %v13281_v5 = vld [vmem:[#allocation100_spill] sm:$0xff]  ;;  %v1879_v9 = vld [vmem:[#allocation12 + $0xf0] sm:$0xff] }
 0x3a6   : > { %3027 = vmatpush.msra.mxu0 %v1879_v9  ;;  %v13289_v9 = vld [vmem:[#allocation105_spill] sm:$0xff] }
 0x3a7   : > { %13260 = vst [vmem:[#allocation86_spill] sm:$0xff] %v8981_v35  ;;  %5189 = vmatmul.msk.f32.gmra.mxu2 %vm13263_vm0, %v8975_v42  ;;  %5239 = vmatmul.msk.f32.gmra.mxu0 %vm13111_vm2, %v13264_v10  ;;  %v9004_v42 = vmax.f32 %v1197_v12, 0.0 }
 0x3a8   : > { %5221 = vmatmul.msk.f32.gmra.mxu3 %vm13263_vm0, %v8986_v49  ;;  %5271 = vmatmul.msk.f32.gmra.mxu1 %vm13111_vm2, %v13265_v47  ;;  %v1087_v49 = vadd.f32 %v13269_v20, %v7936_v21  ;;  %13272 = vst [vmem:[#allocation162_spill] sm:$0xff] %v9015_v8  ;;  %v13274_v21 = vld [vmem:[#allocation170_spill] sm:$0xff] }
 0x3a9   : > { %13268 = vst [vmem:[#allocation57_spill] sm:$0xff] %v9004_v42 }
 0x3aa   : > { %v2397_v37 = vpop.f32.mrf.mxu2 }
 0x3ab   : > { %v2398_v17 = vadd.f32 %v2397_v37, %v2285_v55  ;;  %v2510_v35 = vpop.f32.mrf.mxu3  ;;  %v2178_v55 = vadd.f32 %v8499_v57, %v8593_v18  ;;  %v13282_v57 = vld [vmem:[#allocation59_spill] sm:$0xff] }
 0x3ac   : > { %v9002_v10 = vpop.f32.mrf.mxu0 }
 0x3ad   : > { %v9010_v47 = vadd.f32 %v2510_v35, %v2398_v17  ;;  %v9012_v45 = vpop.f32.mrf.mxu1  ;;  %v13275_v35 = vld [vmem:[#allocation166_spill] sm:$0xff] }
 0x3ae   : > { %v1200_v20 = vadd.f32 %v13275_v35, %v1087_v49  ;;  %v13279_v49 = vld [vmem:[#allocation95_spill] sm:$0xff] }
 0x3af   : > { %13271 = vst [vmem:[#allocation89_spill] sm:$0xff] %v9010_v47  ;;  %5190 = vmatmul.msk.f32.gmra.mxu2 %vm8462_vm5, %v9004_v42  ;;  %5240 = vmatmul.msk.f32.gmra.mxu0 %vm13119_vm3, %v13273_v1  ;;  %v9042_v47 = vmax.f32 %v8604_v60, 0.0  ;;  %v1943_v35 = vld [vmem:[#allocation12 + $0x2f0] sm:$0xff]  ;;  %v13283_v60 = vld [vmem:[#allocation96_spill] sm:$0xff] }
 0x3b0   : > { %5222 = vmatmul.msk.f32.gmra.mxu3 %vm8462_vm5, %v9015_v8  ;;  %5272 = vmatmul.msk.f32.gmra.mxu1 %vm13119_vm3, %v13274_v21  ;;  %v9033_v30 = vmax.f32 %v1200_v20, 0.0  ;;  %vm13280_vm3 = vnez %v13279_v49  ;;  %v2291_v20 = vadd.f32 %v13283_v60, %v2178_v55  ;;  %v2103_v8 = vld [vmem:[#allocation12 + $0x7f0] sm:$0xff]  ;;  %v13292_v60 = vld [vmem:[#allocation104_spill] sm:$0xff] }
 0x3b1   : > { %13278 = vst [vmem:[#allocation92_spill] sm:$0xff] %v9042_v47  ;;  %3140 = vmatpush.msra.mxu1 %v1943_v35  ;;  %v13287_v1 = vld [vmem:[#allocation19_spill] sm:$0xff] }
 0x3b2   : > { %v2400_v19 = vpop.f32.mrf.mxu2  ;;  %13276 = vst [vmem:[#allocation90_spill] sm:$0xff] %v9033_v30  ;;  %v13288_v55 = vld [vmem:[#allocation67_spill] sm:$0xff] }
 0x3b3   : > { %v2401_v28 = vadd.f32 %v2400_v19, %v2288_v61  ;;  %v2513_v2 = vpop.f32.mrf.mxu3  ;;  %v13291_v35 = vld [vmem:[#allocation103_spill] sm:$0xff] }
 0x3b4   : > { %v9031_v12 = vpop.f32.mrf.mxu0 }
 0x3b5   : > { %v9037_v37 = vadd.f32 %v2513_v2, %v2401_v28  ;;  %v9039_v17 = vpop.f32.mrf.mxu1 }
 0x3b7   : > { %13277 = vst [vmem:[#allocation58_spill] sm:$0xff] %v9037_v37  ;;  %5191 = vmatmul.msk.f32.gmra.mxu2 %vm13280_vm3, %v9033_v30  ;;  %5241 = vmatmul.msk.f32.gmra.mxu0 %vm7942_vm1, %v13281_v5  ;;  %v13284_v37 = vld [vmem:[#allocation98_spill] sm:$0xff] }
 0x3b8   : > { %5223 = vmatmul.msk.f32.gmra.mxu3 %vm13280_vm3, %v9042_v47  ;;  %5273 = vmatmul.msk.f32.gmra.mxu1 %vm7942_vm1, %v13282_v57  ;;  %v2181_v5 = vadd.f32 %v13284_v37, %v8593_v18  ;;  %v2039_v47 = vld [vmem:[#allocation12 + $0x5f0] sm:$0xff]  ;;  %vm13290_vm1 = vnez %v13289_v9 }
 0x3b9   : > { %v2035_v37 = vld [vmem:[#allocation12 + $0x5d0] sm:$0xff] }
 0x3ba   : > { %v2403_v61 = vpop.f32.mrf.mxu2 }
 0x3bb   : > { %v2404_v19 = vadd.f32 %v2403_v61, %v2291_v20  ;;  %v2516_v28 = vpop.f32.mrf.mxu3  ;;  %v2099_v20 = vld [vmem:[#allocation12 + $0x7d0] sm:$0xff]  ;;  %v13293_v61 = vld [vmem:[#allocation101_spill] sm:$0xff] }
 0x3bc   : > { %v9057_v2 = vpop.f32.mrf.mxu0 }
 0x3bd   : > { %v9061_v30 = vadd.f32 %v2516_v28, %v2404_v19  ;;  %v9063_v21 = vpop.f32.mrf.mxu1  ;;  %v2294_v19 = vadd.f32 %v13293_v61, %v2181_v5  ;;  %v1875_v5 = vld [vmem:[#allocation12 + $0xd0] sm:$0xff] }
 0x3be   : > { %13286 = vst [vmem:[#allocation95_spill] sm:$0xff] %v9063_v21  ;;  %3028 = vmatpush.msra.mxu0 %v1875_v5  ;;  %v13307_v5 = vld [vmem:[#allocation17_spill] sm:$0xff] }
 0x3bf   : > { %13285 = vst [vmem:[#allocation166_spill] sm:$0xff] %v9061_v30  ;;  %5242 = vmatmul.msk.f32.gmra.mxu0 %vm13135_vm4, %v13287_v1  ;;  %5288 = vmatmul.msk.f32.vlgmr.msra.gmra.mxu2 %vm13290_vm1, %v13288_v55  ;;  %v2031_v30 = vld [vmem:[#allocation12 + $0x5b0] sm:$0xff] }
 0x3c0   : > { %5274 = vmatmul.msk.f32.gmra.mxu1 %vm13135_vm4, %v13291_v35  ;;  %5320 = vmatmul.msk.f32.vlgmr.msra.gmra.mxu3 %vm13290_vm1, %v13292_v60  ;;  %v13294_v35 = vld [vmem:[#allocation102_spill] sm:$0xff]  ;;  %vm13298_vm4 = vnez %v12772_v54 }
 0x3c1   : > { %3245 = vmatpush.msra.mxu2 %v2039_v47  ;;  %3358 = vmatpush.msra.mxu3 %v2103_v8  ;;  %v2184_v42 = vadd.f32 %v13294_v35, %v8593_v18  ;;  %v13297_v47 = vld [vmem:[#allocation62_spill] sm:$0xff] }
 0x3c2   : > { %v2406_v28 = vpop.f32.mrf.mxu2  ;;  %v2095_v8 = vld [vmem:[#allocation12 + $0x7b0] sm:$0xff] }
 0x3c3   : > { %v2407_v1 = vadd.f32 %v2406_v28, %v2294_v19  ;;  %v2519_v57 = vpop.f32.mrf.mxu3  ;;  %3246 = vmatpush.msra.mxu2 %v2035_v37  ;;  %3359 = vmatpush.msra.mxu3 %v2099_v20  ;;  %v1939_v37 = vld [vmem:[#allocation12 + $0x2d0] sm:$0xff] }
 0x3c4   : > { %v9078_v55 = vpop.f32.mrf.mxu0  ;;  %v13299_v20 = vld [vmem:[#allocation70_spill] sm:$0xff]  ;;  %3141 = vmatpush.msra.mxu1 %v1939_v37  ;;  %v13308_v37 = vld [vmem:[#allocation33_spill] sm:$0xff] }
 0x3c5   : > { %v9082_v21 = vadd.f32 %v2519_v57, %v2407_v1  ;;  %v9084_v60 = vpop.f32.mrf.mxu1  ;;  %3247 = vmatpush.msra.mxu2 %v2031_v30  ;;  %v13300_v1 = vld [vmem:[#allocation63_spill] sm:$0xff]  ;;  %v13301_v30 = vld [vmem:[#allocation30_spill] sm:$0xff]  ;;  %3360 = vmatpush.msra.mxu3 %v2095_v8  ;;  %v13306_v8 = vld [vmem:[#allocation24_spill] sm:$0xff] }
 0x3c6   : > { %v2297_v57 = vadd.f32 %v13301_v30, %v2184_v42  ;;  %v13304_v42 = vld [vmem:[#allocation73_spill] sm:$0xff] }
 0x3c7   : > { %13295 = vst [vmem:[#allocation96_spill] sm:$0xff] %v9082_v21  ;;  %5243 = vmatmul.msk.f32.gmra.mxu0 %vm13143_vm6, %v13296_v0  ;;  %5289 = vmatmul.msk.f32.gmra.mxu2 %vm13298_vm4, %v13297_v47  ;;  %v2187_v21 = vadd.f32 %v8596_v38, %v8593_v18  ;;  %v13303_v0 = vld [vmem:[#allocation23_spill] sm:$0xff] }
 0x3c8   : > { %5275 = vmatmul.msk.f32.gmra.mxu1 %vm13143_vm6, %v13299_v20  ;;  %5321 = vmatmul.msk.f32.gmra.mxu3 %vm13298_vm4, %v13300_v1  ;;  %vm13305_vm6 = vnez %v12952_v53  ;;  %v2027_v38 = vld [vmem:[#allocation12 + $0x590] sm:$0xff] }
 0x3c9   : > { %v2300_v30 = vadd.f32 %v13308_v37, %v2187_v21  ;;  %3248 = vmatpush.msra.mxu2 %v2027_v38  ;;  %v2091_v21 = vld [vmem:[#allocation12 + $0x790] sm:$0xff] }
 0x3ca   : > { %v2409_v35 = vpop.f32.mrf.mxu2  ;;  %v1871_v38 = vld [vmem:[#allocation12 + $0xb0] sm:$0xff]  ;;  %3361 = vmatpush.msra.mxu3 %v2091_v21  ;;  %v13321_v21 = vld [vmem:[#allocation172_spill] sm:$0xff] }
 0x3cb   : > { %v2410_v61 = vadd.f32 %v2409_v35, %v2297_v57  ;;  %v2522_v19 = vpop.f32.mrf.mxu3  ;;  %v1935_v37 = vld [vmem:[#allocation12 + $0x2b0] sm:$0xff]  ;;  %3029 = vmatpush.msra.mxu0 %v1871_v38 }
 0x3cc   : > { %v9099_v28 = vpop.f32.mrf.mxu0  ;;  %3142 = vmatpush.msra.mxu1 %v1935_v37 }
 0x3cd   : > { %v9103_v47 = vadd.f32 %v2522_v19, %v2410_v61  ;;  %v9105_v20 = vpop.f32.mrf.mxu1 }
 0x3cf   : > { %13302 = vst [vmem:[#allocation98_spill] sm:$0xff] %v9103_v47  ;;  %5244 = vmatmul.msk.f32.gmra.mxu0 %vm13155_vm7, %v13303_v0  ;;  %5290 = vmatmul.msk.f32.gmra.mxu2 %vm13305_vm6, %v13304_v42  ;;  %v2190_v47 = vadd.f32 %v8625_v15, %v8593_v18  ;;  %v13315_v15 = vld [vmem:[#allocation79_spill] sm:$0xff] }
 0x3d0   : > { %5276 = vmatmul.msk.f32.gmra.mxu1 %vm13155_vm7, %v13306_v8  ;;  %5322 = vmatmul.msk.f32.gmra.mxu3 %vm13305_vm6, %v13307_v5  ;;  %v13311_v8 = vld [vmem:[#allocation25_spill] sm:$0xff]  ;;  %v13312_v5 = vld [vmem:[#allocation26_spill] sm:$0xff]  ;;  %vm13313_vm7 = vnez %v12967_v27  ;;  %v13431_v27 = vld [vmem:[#allocation60_spill] sm:$0xff] }
 0x3d2   : > { %v2412_v57 = vpop.f32.mrf.mxu2 }
 0x3d3   : > { %v2413_v35 = vadd.f32 %v2412_v57, %v2300_v30  ;;  %v2525_v61 = vpop.f32.mrf.mxu3  ;;  %v13314_v30 = vld [vmem:[#allocation66_spill] sm:$0xff]  ;;  %v2303_v57 = vadd.f32 %v8635_v40, %v2190_v47  ;;  %v13318_v40 = vld [vmem:[#allocation171_spill] sm:$0xff] }
 0x3d4   : > { %v9120_v19 = vpop.f32.mrf.mxu0  ;;  %v13320_v47 = vld [vmem:[#allocation82_spill] sm:$0xff] }
 0x3d5   : > { %v9124_v42 = vadd.f32 %v2525_v61, %v2413_v35  ;;  %v9126_v0 = vpop.f32.mrf.mxu1 }
 0x3d6   : > { %13310 = vst [vmem:[#allocation102_spill] sm:$0xff] %v9126_v0  ;;  %v13317_v0 = vld [vmem:[#allocation68_spill] sm:$0xff] }
 0x3d7   : > { %13309 = vst [vmem:[#allocation101_spill] sm:$0xff] %v9124_v42  ;;  %5245 = vmatmul.msk.f32.gmra.mxu0 %vm13166_vm8, %v13311_v8  ;;  %5291 = vmatmul.msk.f32.gmra.mxu2 %vm13313_vm7, %v13312_v5  ;;  %v2193_v8 = vadd.f32 %v8654_v22, %v8593_v18  ;;  %v2023_v22 = vld [vmem:[#allocation12 + $0x570] sm:$0xff] }
 0x3d8   : > { %5277 = vmatmul.msk.f32.gmra.mxu1 %vm13166_vm8, %v13314_v30  ;;  %5323 = vmatmul.msk.f32.gmra.mxu3 %vm13313_vm7, %v13315_v15  ;;  %vm13319_vm8 = vnez %v12980_v13  ;;  %v13329_v15 = vld [vmem:[#allocation35_spill] sm:$0xff] }
 0x3d9   : > { %3249 = vmatpush.msra.mxu2 %v2023_v22  ;;  %v1931_v22 = vld [vmem:[#allocation12 + $0x290] sm:$0xff] }
 0x3da   : > { %v2415_v35 = vpop.f32.mrf.mxu2  ;;  %3143 = vmatpush.msra.mxu1 %v1931_v22 }
 0x3db   : > { %v2416_v61 = vadd.f32 %v2415_v35, %v2303_v57  ;;  %v2528_v42 = vpop.f32.mrf.mxu3 }
 0x3dc   : > { %v9141_v5 = vpop.f32.mrf.mxu0 }
 0x3dd   : > { %v9145_v1 = vadd.f32 %v2528_v42, %v2416_v61  ;;  %v9147_v30 = vpop.f32.mrf.mxu1  ;;  %v2306_v42 = vadd.f32 %v8664_v33, %v2193_v8  ;;  %v2196_v61 = vadd.f32 %v8683_v51, %v8593_v18  ;;  %v2087_v33 = vld [vmem:[#allocation12 + $0x770] sm:$0xff] }
 0x3de   : > { %v1867_v8 = vld [vmem:[#allocation12 + $0x90] sm:$0xff]  ;;  %3362 = vmatpush.msra.mxu3 %v2087_v33 }
 0x3df   : > { %13316 = vst [vmem:[#allocation30_spill] sm:$0xff] %v9145_v1  ;;  %5246 = vmatmul.msk.f32.gmra.mxu0 %vm13178_vm9, %v13317_v0  ;;  %5292 = vmatmul.msk.f32.gmra.mxu2 %vm13319_vm8, %v13318_v40  ;;  %v13327_v51 = vld [vmem:[#allocation175_spill] sm:$0xff]  ;;  %v13333_v33 = vld [vmem:[#allocation178_spill] sm:$0xff] }
 0x3e0   : > { %5278 = vmatmul.msk.f32.gmra.mxu1 %vm13178_vm9, %v13320_v47  ;;  %5324 = vmatmul.msk.f32.gmra.mxu3 %vm13319_vm8, %v13321_v21  ;;  %v13323_v47 = vld [vmem:[#allocation32_spill] sm:$0xff]  ;;  %v13324_v21 = vld [vmem:[#allocation174_spill] sm:$0xff]  ;;  %vm13325_vm9 = vnez %v12810_v36 }
 0x3e1   : > { %3030 = vmatpush.msra.mxu0 %v1867_v8 }
 0x3e2   : > { %v2418_v38 = vpop.f32.mrf.mxu2 }
 0x3e3   : > { %v2419_v37 = vadd.f32 %v2418_v38, %v2306_v42  ;;  %v2531_v57 = vpop.f32.mrf.mxu3  ;;  %v13326_v42 = vld [vmem:[#allocation85_spill] sm:$0xff]  ;;  %v2309_v38 = vadd.f32 %v8693_v3, %v2196_v61  ;;  %v13332_v61 = vld [vmem:[#allocation88_spill] sm:$0xff] }
 0x3e4   : > { %v9162_v35 = vpop.f32.mrf.mxu0  ;;  %v13330_v3 = vld [vmem:[#allocation177_spill] sm:$0xff] }
 0x3e5   : > { %v9166_v1 = vadd.f32 %v2531_v57, %v2419_v37  ;;  %v9168_v40 = vpop.f32.mrf.mxu1 }
 0x3e7   : > { %13322 = vst [vmem:[#allocation33_spill] sm:$0xff] %v9166_v1  ;;  %5247 = vmatmul.msk.f32.gmra.mxu0 %vm13192_vm10, %v13323_v47  ;;  %5293 = vmatmul.msk.f32.gmra.mxu2 %vm13325_vm9, %v13324_v21  ;;  %v2199_v47 = vadd.f32 %v8712_v39, %v8593_v18  ;;  %v2019_v39 = vld [vmem:[#allocation12 + $0x550] sm:$0xff] }
 0x3e8   : > { %5279 = vmatmul.msk.f32.gmra.mxu1 %vm13192_vm10, %v13326_v42  ;;  %5325 = vmatmul.msk.f32.gmra.mxu3 %vm13325_vm9, %v13327_v51  ;;  %vm13331_vm10 = vnez %v12819_v6  ;;  %v13345_v51 = vld [vmem:[#allocation128_spill] sm:$0xff] }
 0x3e9   : > { %3250 = vmatpush.msra.mxu2 %v2019_v39  ;;  %v1863_v39 = vld [vmem:[#allocation12 + $0x70] sm:$0xff] }
 0x3ea   : > { %v2421_v37 = vpop.f32.mrf.mxu2  ;;  %3031 = vmatpush.msra.mxu0 %v1863_v39  ;;  %v13352_v39 = vld [vmem:[#allocation94_spill] sm:$0xff] }
 0x3eb   : > { %v2422_v57 = vadd.f32 %v2421_v37, %v2309_v38  ;;  %v2534_v1 = vpop.f32.mrf.mxu3 }
 0x3ec   : > { %v9183_v21 = vpop.f32.mrf.mxu0 }
 0x3ed   : > { %v9187_v0 = vadd.f32 %v2534_v1, %v2422_v57  ;;  %v9189_v42 = vpop.f32.mrf.mxu1  ;;  %v13334_v1 = vld [vmem:[#allocation45_spill] sm:$0xff] }
 0x3ee   : > { %v2312_v8 = vadd.f32 %v13334_v1, %v2199_v47  ;;  %v2083_v47 = vld [vmem:[#allocation12 + $0x750] sm:$0xff] }
 0x3ef   : > { %13328 = vst [vmem:[#allocation208_spill] sm:$0xff] %v9187_v0  ;;  %5248 = vmatmul.msk.f32.gmra.mxu0 %vm13206_vm11, %v13329_v15  ;;  %5294 = vmatmul.msk.f32.gmra.mxu2 %vm13331_vm10, %v13330_v3  ;;  %v2202_v0 = vadd.f32 %v8741_v62, %v8593_v18  ;;  %v1927_v1 = vld [vmem:[#allocation12 + $0x270] sm:$0xff]  ;;  %v13342_v62 = vld [vmem:[#allocation181_spill] sm:$0xff] }
 0x3f0   : > { %5280 = vmatmul.msk.f32.gmra.mxu1 %vm13206_vm11, %v13332_v61  ;;  %5326 = vmatmul.msk.f32.gmra.mxu3 %vm13331_vm10, %v13333_v33  ;;  %v13338_v61 = vld [vmem:[#allocation38_spill] sm:$0xff]  ;;  %v13339_v33 = vld [vmem:[#allocation180_spill] sm:$0xff]  ;;  %vm13340_vm11 = vnez %v12827_v25 }
 0x3f1   : > { %3363 = vmatpush.msra.mxu3 %v2083_v47  ;;  %3144 = vmatpush.msra.mxu1 %v1927_v1  ;;  %v13350_v47 = vld [vmem:[#allocation135_spill] sm:$0xff]  ;;  %v13353_v1 = vld [vmem:[#allocation185_spill] sm:$0xff] }
 0x3f2   : > { %v2424_v22 = vpop.f32.mrf.mxu2 }
 0x3f3   : > { %v2425_v38 = vadd.f32 %v2424_v22, %v2312_v8  ;;  %v2537_v37 = vpop.f32.mrf.mxu3  ;;  %v13341_v8 = vld [vmem:[#allocation91_spill] sm:$0xff]  ;;  %v13343_v22 = vld [vmem:[#allocation48_spill] sm:$0xff] }
 0x3f4   : > { %v9204_v57 = vpop.f32.mrf.mxu0 }
 0x3f5   : > { %13335 = vst [vmem:[#allocation45_spill] sm:$0xff] %v9204_v57  ;;  %v9208_v3 = vadd.f32 %v2537_v37, %v2425_v38  ;;  %v9210_v15 = vpop.f32.mrf.mxu1  ;;  %v2315_v38 = vadd.f32 %v13343_v22, %v2202_v0  ;;  %v13349_v0 = vld [vmem:[#allocation183_spill] sm:$0xff] }
 0x3f6   : > { %13337 = vst [vmem:[#allocation210_spill] sm:$0xff] %v9210_v15  ;;  %v2205_v15 = vadd.f32 %v13345_v51, %v8593_v18  ;;  %v2015_v51 = vld [vmem:[#allocation12 + $0x530] sm:$0xff] }
 0x3f7   : > { %13336 = vst [vmem:[#allocation209_spill] sm:$0xff] %v9208_v3  ;;  %5249 = vmatmul.msk.f32.gmra.mxu0 %vm13219_vm12, %v13338_v61  ;;  %5295 = vmatmul.msk.f32.gmra.mxu2 %vm13340_vm11, %v13339_v33 }
 0x3f8   : > { %5281 = vmatmul.msk.f32.gmra.mxu1 %vm13219_vm12, %v13341_v8  ;;  %5327 = vmatmul.msk.f32.gmra.mxu3 %vm13340_vm11, %v13342_v62  ;;  %vm13351_vm12 = vnez %v13350_v47 }
 0x3f9   : > { %3251 = vmatpush.msra.mxu2 %v2015_v51  ;;  %v1859_v51 = vld [vmem:[#allocation12 + $0x50] sm:$0xff] }
 0x3fa   : > { %v2427_v37 = vpop.f32.mrf.mxu2  ;;  %3032 = vmatpush.msra.mxu0 %v1859_v51  ;;  %v13368_v51 = vld [vmem:[#allocation47_spill] sm:$0xff] }
 0x3fb   : > { %v2428_v3 = vadd.f32 %v2427_v37, %v2315_v38  ;;  %v2540_v61 = vpop.f32.mrf.mxu3 }
 0x3fc   : > { %v9225_v33 = vpop.f32.mrf.mxu0 }
 0x3fd   : > { %13344 = vst [vmem:[#allocation48_spill] sm:$0xff] %v9225_v33  ;;  %v9229_v57 = vadd.f32 %v2540_v61, %v2428_v3  ;;  %v9231_v8 = vpop.f32.mrf.mxu1  ;;  %v13354_v3 = vld [vmem:[#allocation206_spill] sm:$0xff] }
 0x3fe   : > { %13347 = vst [vmem:[#allocation211_spill] sm:$0xff] %v9231_v8  ;;  %v2318_v61 = vadd.f32 %v13354_v3, %v2205_v15  ;;  %v2079_v15 = vld [vmem:[#allocation12 + $0x730] sm:$0xff] }
 0x3ff   : > { %13346 = vst [vmem:[#allocation128_spill] sm:$0xff] %v9229_v57  ;;  %5250 = vmatmul.msk.f32.gmra.mxu0 %vm13231_vm13, %v13348_v48  ;;  %5296 = vmatmul.msk.f32.gmra.mxu2 %vm13351_vm12, %v13349_v0  ;;  %v13356_v48 = vld [vmem:[#allocation28_spill] sm:$0xff]  ;;  %v1923_v3 = vld [vmem:[#allocation12 + $0x250] sm:$0xff] }
 0x400   : > { %5282 = vmatmul.msk.f32.gmra.mxu1 %vm13231_vm13, %v13352_v39  ;;  %5328 = vmatmul.msk.f32.gmra.mxu3 %vm13351_vm12, %v13353_v1  ;;  %v2208_v0 = vadd.f32 %v13356_v48, %v8593_v18  ;;  %v13359_v39 = vld [vmem:[#allocation44_spill] sm:$0xff]  ;;  %v13360_v1 = vld [vmem:[#allocation187_spill] sm:$0xff]  ;;  %vm13362_vm13 = vnez %v13361_v32  ;;  %v13364_v48 = vld [vmem:[#allocation189_spill] sm:$0xff] }
 0x401   : > { %3364 = vmatpush.msra.mxu3 %v2079_v15  ;;  %3145 = vmatpush.msra.mxu1 %v1923_v3  ;;  %v1915_v15 = vld [vmem:[#allocation12 + $0x210] sm:$0xff] }
 0x402   : > { %v2430_v22 = vpop.f32.mrf.mxu2  ;;  %v13369_v3 = vld [vmem:[#allocation191_spill] sm:$0xff] }
 0x403   : > { %v2431_v38 = vadd.f32 %v2430_v22, %v2318_v61  ;;  %v2543_v37 = vpop.f32.mrf.mxu3  ;;  %v13363_v61 = vld [vmem:[#allocation97_spill] sm:$0xff]  ;;  %v13365_v22 = vld [vmem:[#allocation134_spill] sm:$0xff] }
 0x404   : > { %v9246_v57 = vpop.f32.mrf.mxu0 }
 0x405   : > { %13355 = vst [vmem:[#allocation206_spill] sm:$0xff] %v9246_v57  ;;  %v9250_v62 = vadd.f32 %v2543_v37, %v2431_v38  ;;  %v9252_v8 = vpop.f32.mrf.mxu1  ;;  %v2321_v38 = vadd.f32 %v13365_v22, %v2208_v0  ;;  %v1919_v57 = vld [vmem:[#allocation12 + $0x230] sm:$0xff]  ;;  %v13370_v22 = vld [vmem:[#allocation144_spill] sm:$0xff] }
 0x406   : > { %13358 = vst [vmem:[#allocation212_spill] sm:$0xff] %v9252_v8  ;;  %v1855_v8 = vld [vmem:[#allocation12 + $0x30] sm:$0xff]  ;;  %3146 = vmatpush.msra.mxu1 %v1919_v57  ;;  %v13374_v57 = vld [vmem:[#allocation137_spill] sm:$0xff] }
 0x407   : > { %13357 = vst [vmem:[#allocation28_spill] sm:$0xff] %v9250_v62  ;;  %5251 = vmatmul.msk.f32.gmra.mxu0 %vm13244_vm14, %v13359_v39  ;;  %5297 = vmatmul.msk.f32.gmra.mxu2 %vm13362_vm13, %v13360_v1  ;;  %v1851_v0 = vld [vmem:[#allocation12 + $0x10] sm:$0xff] }
 0x408   : > { %5283 = vmatmul.msk.f32.gmra.mxu1 %vm13244_vm14, %v13363_v61  ;;  %5329 = vmatmul.msk.f32.gmra.mxu3 %vm13362_vm13, %v13364_v48  ;;  %vm13371_vm14 = vnez %v13370_v22  ;;  %v13491_v22 = vld [vmem:[#allocation53_spill] sm:$0xff] }
 0x409   : > { %3033 = vmatpush.msra.mxu0 %v1855_v8  ;;  %v2011_v8 = vld [vmem:[#allocation12 + $0x510] sm:$0xff]  ;;  %3147 = vmatpush.msra.mxu1 %v1915_v15 }
 0x40a   : > { %v2433_v37 = vpop.f32.mrf.mxu2  ;;  %3252 = vmatpush.msra.mxu2 %v2011_v8  ;;  %v2075_v15 = vld [vmem:[#allocation12 + $0x710] sm:$0xff] }
 0x40b   : > { %v2434_v62 = vadd.f32 %v2433_v37, %v2321_v38  ;;  %v2546_v39 = vpop.f32.mrf.mxu3  ;;  %v13372_v38 = vld [vmem:[#allocation87_spill] sm:$0xff]  ;;  %3034 = vmatpush.msra.mxu0 %v1851_v0  ;;  %v13379_v0 = vld [vmem:[#allocation148_spill] sm:$0xff]  ;;  %3365 = vmatpush.msra.mxu3 %v2075_v15  ;;  %v13391_v15 = vld [vmem:[#allocation34_spill] sm:$0xff] }
 0x40c   : > { %v9267_v1 = vpop.f32.mrf.mxu0  ;;  %v13381_v8 = vld [vmem:[#allocation31_spill] sm:$0xff] }
 0x40d   : > { %v9271_v61 = vadd.f32 %v2546_v39, %v2434_v62  ;;  %v9273_v33 = vpop.f32.mrf.mxu1  ;;  %v2324_v62 = vadd.f32 %v13374_v57, %v2211_v46  ;;  %v13378_v46 = vld [vmem:[#allocation192_spill] sm:$0xff]  ;;  %v13382_v57 = vld [vmem:[#allocation193_spill] sm:$0xff] }
 0x40e   : > { %13367 = vst [vmem:[#allocation213_spill] sm:$0xff] %v9273_v33 }
 0x40f   : > { %13366 = vst [vmem:[#allocation134_spill] sm:$0xff] %v9271_v61  ;;  %5252 = vmatmul.msk.f32.gmra.mxu0 %vm13254_vm15, %v13368_v51  ;;  %5298 = vmatmul.msk.f32.gmra.mxu2 %vm13371_vm14, %v13369_v3  ;;  %v13375_v3 = vld [vmem:[#allocation139_spill] sm:$0xff] }
 0x410   : > { %5284 = vmatmul.msk.f32.gmra.mxu1 %vm13254_vm15, %v13372_v38  ;;  %5330 = vmatmul.msk.f32.gmra.mxu3 %vm13371_vm14, %v13373_v4  ;;  %v2214_v48 = vadd.f32 %v13375_v3, %v8593_v18  ;;  %vm13380_vm15 = vnez %v13379_v0  ;;  %v13492_v0 = vld [vmem:[#allocation182_spill] sm:$0xff] }
 0x412   : > { %v2436_v39 = vpop.f32.mrf.mxu2 }
 0x413   : > { %v2437_v37 = vadd.f32 %v2436_v39, %v2324_v62  ;;  %v2549_v61 = vpop.f32.mrf.mxu3 }
 0x414   : > { %v9288_v51 = vpop.f32.mrf.mxu0 }
 0x415   : > { %v9292_v33 = vadd.f32 %v2549_v61, %v2437_v37  ;;  %v9294_v38 = vpop.f32.mrf.mxu1  ;;  %v13383_v61 = vld [vmem:[#allocation142_spill] sm:$0xff] }
 0x416   : > { %v2327_v3 = vadd.f32 %v13383_v61, %v2214_v48  ;;  %v13390_v48 = vld [vmem:[#allocation93_spill] sm:$0xff]  ;;  %v13392_v61 = vld [vmem:[#allocation146_spill] sm:$0xff] }
 0x417   : > { %13376 = vst [vmem:[#allocation137_spill] sm:$0xff] %v9292_v33  ;;  %5253 = vmatmul.msk.f32.gmra.mxu0 %vm13263_vm0, %v13377_v44  ;;  %5299 = vmatmul.msk.f32.gmra.mxu2 %vm13380_vm15, %v13378_v46  ;;  %v2217_v46 = vadd.f32 %v8886_v31, %v8593_v18  ;;  %v2007_v31 = vld [vmem:[#allocation12 + $0x4f0] sm:$0xff] }
 0x418   : > { %5285 = vmatmul.msk.f32.gmra.mxu1 %vm13263_vm0, %v13381_v8  ;;  %5331 = vmatmul.msk.f32.gmra.mxu3 %vm13380_vm15, %v13382_v57  ;;  %v13387_v8 = vld [vmem:[#allocation51_spill] sm:$0xff]  ;;  %vm13389_vm0 = vnez %v12865_v11 }
 0x419   : > { %v13388_v57 = vld [vmem:[#allocation195_spill] sm:$0xff]  ;;  %3253 = vmatpush.msra.mxu2 %v2007_v31  ;;  %v13400_v31 = vld [vmem:[#allocation37_spill] sm:$0xff] }
 0x41a   : > { %v2439_v62 = vpop.f32.mrf.mxu2  ;;  %v13510_v11 = vld [vmem:[#allocation83_spill] sm:$0xff] }
 0x41b   : > { %v2440_v39 = vadd.f32 %v2439_v62, %v2327_v3  ;;  %v2552_v37 = vpop.f32.mrf.mxu3  ;;  %v2330_v3 = vadd.f32 %v13392_v61, %v2217_v46  ;;  %v2071_v46 = vld [vmem:[#allocation12 + $0x6f0] sm:$0xff]  ;;  %v13401_v61 = vld [vmem:[#allocation197_spill] sm:$0xff] }
 0x41c   : > { %v9309_v33 = vpop.f32.mrf.mxu0  ;;  %3366 = vmatpush.msra.mxu3 %v2071_v46  ;;  %v13408_v46 = vld [vmem:[#allocation108_spill] sm:$0xff] }
 0x41d   : > { %13384 = vst [vmem:[#allocation139_spill] sm:$0xff] %v9309_v33  ;;  %v9313_v44 = vadd.f32 %v2552_v37, %v2440_v39  ;;  %v9315_v4 = vpop.f32.mrf.mxu1  ;;  %v13398_v33 = vld [vmem:[#allocation156_spill] sm:$0xff] }
 0x41e   : > { %13386 = vst [vmem:[#allocation214_spill] sm:$0xff] %v9315_v4 }
 0x41f   : > { %13385 = vst [vmem:[#allocation142_spill] sm:$0xff] %v9313_v44  ;;  %5254 = vmatmul.msk.f32.gmra.mxu0 %vm8462_vm5, %v13387_v8  ;;  %5300 = vmatmul.msk.f32.gmra.mxu2 %vm13389_vm0, %v13388_v57  ;;  %v13393_v8 = vld [vmem:[#allocation54_spill] sm:$0xff] }
 0x420   : > { %5286 = vmatmul.msk.f32.gmra.mxu1 %vm8462_vm5, %v13390_v48  ;;  %5332 = vmatmul.msk.f32.gmra.mxu3 %vm13389_vm0, %v13391_v15  ;;  %v2220_v57 = vadd.f32 %v13393_v8, %v8593_v18  ;;  %v13396_v48 = vld [vmem:[#allocation52_spill] sm:$0xff]  ;;  %vm13399_vm5 = vnez %v13398_v33  ;;  %v13511_v33 = vld [vmem:[#allocation190_spill] sm:$0xff] }
 0x421   : > { %v13397_v15 = vld [vmem:[#allocation196_spill] sm:$0xff] }
 0x422   : > { %v2442_v62 = vpop.f32.mrf.mxu2  ;;  %v13402_v8 = vld [vmem:[#allocation184_spill] sm:$0xff] }
 0x423   : > { %v2443_v39 = vadd.f32 %v2442_v62, %v2330_v3  ;;  %v2555_v37 = vpop.f32.mrf.mxu3  ;;  %v2333_v3 = vadd.f32 %v13402_v8, %v2220_v57  ;;  %v13407_v57 = vld [vmem:[#allocation199_spill] sm:$0xff] }
 0x424   : > { %v9330_v44 = vpop.f32.mrf.mxu0 }
 0x425   : > { %v9334_v4 = vadd.f32 %v2555_v37, %v2443_v39  ;;  %v9336_v16 = vpop.f32.mrf.mxu1 }
 0x426   : > { %13395 = vst [vmem:[#allocation54_spill] sm:$0xff] %v9336_v16 }
 0x427   : > { %13394 = vst [vmem:[#allocation146_spill] sm:$0xff] %v9334_v4  ;;  %5255 = vmatmul.msk.f32.gmra.mxu0 %vm13280_vm3, %v13396_v48  ;;  %5301 = vmatmul.msk.f32.gmra.mxu2 %vm13399_vm5, %v13397_v15  ;;  %v2223_v15 = vadd.f32 %v8944_v56, %v8593_v18  ;;  %v2003_v56 = vld [vmem:[#allocation12 + $0x4d0] sm:$0xff] }
 0x428   : > { %5287 = vmatmul.msk.f32.gmra.mxu1 %vm13280_vm3, %v13400_v31  ;;  %5333 = vmatmul.msk.f32.gmra.mxu3 %vm13399_vm5, %v13401_v61  ;;  %v13404_v31 = vld [vmem:[#allocation198_spill] sm:$0xff]  ;;  %vm13405_vm3 = vnez %v12881_v26 }
 0x429   : > { %v13406_v61 = vld [vmem:[#allocation106_spill] sm:$0xff]  ;;  %v2336_v8 = vadd.f32 %v8954_v58, %v2223_v15  ;;  %3254 = vmatpush.msra.mxu2 %v2003_v56  ;;  %v1912_v15 = vld [vmem:[#allocation12 + $0x1f8] sm:$0xff] }
 0x42a   : > { %v2445_v62 = vpop.f32.mrf.mxu2  ;;  %v2067_v58 = vld [vmem:[#allocation12 + $0x6d0] sm:$0xff]  ;;  %v1976_v56 = vld [vmem:[#allocation12 + $0x3f8] sm:$0xff]  ;;  %3471 = vmatpush.msrb.mxu0 %v1912_v15 }
 0x42b   : > { %v2446_v39 = vadd.f32 %v2445_v62, %v2333_v3  ;;  %v2558_v37 = vpop.f32.mrf.mxu3  ;;  %3367 = vmatpush.msra.mxu3 %v2067_v58  ;;  %3584 = vmatpush.msrb.mxu1 %v1976_v56  ;;  %v13419_v58 = vld [vmem:[#allocation202_spill] sm:$0xff]  ;;  %v13420_v15 = vld [vmem:[#allocation116_spill] sm:$0xff] }
 0x42c   : > { %v9351_v4 = vpop.f32.mrf.mxu0 }
 0x42d   : > { %v9355_v48 = vadd.f32 %v2558_v37, %v2446_v39  ;;  %v9357_v16 = vpop.f32.mrf.mxu1 }
 0x42f   : > { %13403 = vst [vmem:[#allocation184_spill] sm:$0xff] %v9355_v48  ;;  %5302 = vmatmul.msk.f32.gmra.mxu2 %vm13405_vm3, %v13404_v31  ;;  %5352 = vmatmul.msk.f32.vlgmr.msra.gmra.mxu0 %vm13290_vm1, %v13406_v61  ;;  %v2226_v48 = vadd.f32 %v8973_v63, %v8593_v18  ;;  %v13413_v18 = vld [vmem:[#allocation112_spill] sm:$0xff] }
 0x430   : > { %5334 = vmatmul.msk.f32.gmra.mxu3 %vm13405_vm3, %v13407_v57  ;;  %5384 = vmatmul.msk.f32.vlgmr.msra.gmra.mxu1 %vm13290_vm1, %v13408_v46  ;;  %v13410_v57 = vld [vmem:[#allocation200_spill] sm:$0xff]  ;;  %v13411_v46 = vld [vmem:[#allocation110_spill] sm:$0xff]  ;;  %vm13425_vm1 = vnez %v12903_v7  ;;  %v13545_v7 = vld [vmem:[#allocation19_spill] sm:$0xff] }
 0x431   : > { %v2339_v63 = vadd.f32 %v8983_v23, %v2226_v48 }
 0x432   : > { %v2448_v3 = vpop.f32.mrf.mxu2 }
 0x433   : > { %v2449_v62 = vadd.f32 %v2448_v3, %v2336_v8  ;;  %v2561_v39 = vpop.f32.mrf.mxu3  ;;  %v13412_v8 = vld [vmem:[#allocation201_spill] sm:$0xff]  ;;  %v9396_v3 = vld [vmem:[%s12093_s5] sm:$0xf] }
 0x434   : > { %v9372_v37 = vpop.f32.mrf.mxu0  ;;  %13414 = vst [vmem:[#allocation216_spill] sm:$0xff] %v9396_v3 }
 0x435   : > { %v9376_v61 = vadd.f32 %v2561_v39, %v2449_v62  ;;  %v9378_v31 = vpop.f32.mrf.mxu1  ;;  %v9399_v62 = vperm.slane %v9396_v3, 1  ;;  %v13418_v3 = vld [vmem:[#allocation114_spill] sm:$0xff] }
 0x437   : > { %13409 = vst [vmem:[#allocation215_spill] sm:$0xff] %v9376_v61  ;;  %5303 = vmatmul.msk.f32.gmra.mxu2 %vm13111_vm2, %v13410_v57  ;;  %5353 = vmatmul.msk.f32.gmra.mxu0 %vm13298_vm4, %v13411_v46  ;;  %v13416_v57 = vld [vmem:[#allocation107_spill] sm:$0xff] }
 0x438   : > { %5335 = vmatmul.msk.f32.gmra.mxu3 %vm13111_vm2, %v13412_v8  ;;  %5385 = vmatmul.msk.f32.gmra.mxu1 %vm13298_vm4, %v13413_v18  ;;  %v2585_v18 = vadd.f32 %v9002_v10, %v9399_v62  ;;  %vm13417_vm4 = vnez %v12895_v52  ;;  %v1999_v10 = vld [vmem:[#allocation12 + $0x4b0] sm:$0xff] }
 0x439   : > { %3255 = vmatpush.msra.mxu2 %v1999_v10  ;;  %v1972_v10 = vld [vmem:[#allocation12 + $0x3d8] sm:$0xff] }
 0x43a   : > { %v2451_v39 = vpop.f32.mrf.mxu2  ;;  %3585 = vmatpush.msrb.mxu1 %v1972_v10 }
 0x43b   : > { %v2452_v61 = vadd.f32 %v2451_v39, %v2339_v63  ;;  %v2564_v8 = vpop.f32.mrf.mxu3 }
 0x43c   : > { %v9401_v46 = vpop.f32.mrf.mxu0 }
 0x43d   : > { %v9405_v23 = vadd.f32 %v2564_v8, %v2452_v61  ;;  %v9407_v48 = vpop.f32.mrf.mxu1  ;;  %v2698_v61 = vadd.f32 %v9012_v45, %v2585_v18  ;;  %v2063_v45 = vld [vmem:[#allocation12 + $0x6b0] sm:$0xff]  ;;  %v1908_v18 = vld [vmem:[#allocation12 + $0x1d8] sm:$0xff] }
 0x43e   : > { %3368 = vmatpush.msra.mxu3 %v2063_v45  ;;  %3472 = vmatpush.msrb.mxu0 %v1908_v18  ;;  %v13435_v45 = vld [vmem:[#allocation122_spill] sm:$0xff] }
 0x43f   : > { %13415 = vst [vmem:[#allocation217_spill] sm:$0xff] %v9405_v23  ;;  %5304 = vmatmul.msk.f32.gmra.mxu2 %vm13417_vm4, %v13416_v57  ;;  %5354 = vmatmul.msk.f32.gmra.mxu0 %vm13305_vm6, %v13418_v3  ;;  %v2588_v23 = vadd.f32 %v9031_v12, %v9399_v62  ;;  %v13428_v12 = vld [vmem:[#allocation119_spill] sm:$0xff] }
 0x440   : > { %5336 = vmatmul.msk.f32.gmra.mxu3 %vm13417_vm4, %v13419_v58  ;;  %5386 = vmatmul.msk.f32.gmra.mxu1 %vm13305_vm6, %v13420_v15  ;;  %v13424_v58 = vld [vmem:[#allocation111_spill] sm:$0xff]  ;;  %v13426_v15 = vld [vmem:[#allocation118_spill] sm:$0xff]  ;;  %vm13440_vm6 = vnez %v12929_v34 }
 0x442   : > { %v2810_v56 = vpop.f32.mrf.mxu2 }
 0x443   : > { %v2811_v8 = vadd.f32 %v2810_v56, %v2698_v61  ;;  %v2923_v63 = vpop.f32.mrf.mxu3  ;;  %v13427_v61 = vld [vmem:[#allocation203_spill] sm:$0xff]  ;;  %v2701_v56 = vadd.f32 %v9039_v17, %v2588_v23  ;;  %v13433_v17 = vld [vmem:[#allocation121_spill] sm:$0xff]  ;;  %v13434_v23 = vld [vmem:[#allocation204_spill] sm:$0xff] }
 0x444   : > { %v9422_v39 = vpop.f32.mrf.mxu0 }
 0x445   : > { %13421 = vst [vmem:[#allocation218_spill] sm:$0xff] %v9422_v39  ;;  %v9426_v3 = vadd.f32 %v2923_v63, %v2811_v8  ;;  %v9428_v57 = vpop.f32.mrf.mxu1  ;;  %v13430_v39 = vld [vmem:[#allocation115_spill] sm:$0xff] }
 0x446   : > { %13423 = vst [vmem:[#allocation220_spill] sm:$0xff] %v9428_v57 }
 0x447   : > { %13422 = vst [vmem:[#allocation219_spill] sm:$0xff] %v9426_v3  ;;  %5305 = vmatmul.msk.f32.gmra.mxu2 %vm13425_vm1, %v13424_v58  ;;  %5355 = vmatmul.msk.f32.gmra.mxu0 %vm13313_vm7, %v13426_v15  ;;  %v2591_v58 = vadd.f32 %v9057_v2, %v9399_v62  ;;  %v1995_v2 = vld [vmem:[#allocation12 + $0x490] sm:$0xff] }
 0x448   : > { %5337 = vmatmul.msk.f32.gmra.mxu3 %vm13425_vm1, %v13427_v61  ;;  %5387 = vmatmul.msk.f32.gmra.mxu1 %vm13313_vm7, %v13428_v12  ;;  %vm13432_vm7 = vnez %v13431_v27 }
 0x449   : > { %3256 = vmatpush.msra.mxu2 %v1995_v2  ;;  %v1904_v2 = vld [vmem:[#allocation12 + $0x1b8] sm:$0xff] }
 0x44a   : > { %v2813_v8 = vpop.f32.mrf.mxu2  ;;  %3473 = vmatpush.msrb.mxu0 %v1904_v2 }
 0x44b   : > { %v2814_v63 = vadd.f32 %v2813_v8, %v2701_v56  ;;  %v2926_v3 = vpop.f32.mrf.mxu3 }
 0x44c   : > { %v9443_v15 = vpop.f32.mrf.mxu0 }
 0x44d   : > { %v9447_v57 = vadd.f32 %v2926_v3, %v2814_v63  ;;  %v9449_v61 = vpop.f32.mrf.mxu1  ;;  %v13436_v3 = vld [vmem:[#allocation95_spill] sm:$0xff] }
 0x44e   : > { %v2704_v18 = vadd.f32 %v13436_v3, %v2591_v58  ;;  %v2059_v58 = vld [vmem:[#allocation12 + $0x690] sm:$0xff]  ;;  %v1968_v3 = vld [vmem:[#allocation12 + $0x3b8] sm:$0xff] }
 0x44f   : > { %13429 = vst [vmem:[#allocation221_spill] sm:$0xff] %v9447_v57  ;;  %5306 = vmatmul.msk.f32.gmra.mxu2 %vm13432_vm7, %v13430_v39  ;;  %5356 = vmatmul.msk.f32.gmra.mxu0 %vm13319_vm8, %v13433_v17  ;;  %v2594_v57 = vadd.f32 %v9078_v55, %v9399_v62  ;;  %v13443_v55 = vld [vmem:[#allocation125_spill] sm:$0xff] }
 0x450   : > { %5338 = vmatmul.msk.f32.gmra.mxu3 %vm13432_vm7, %v13434_v23  ;;  %5388 = vmatmul.msk.f32.gmra.mxu1 %vm13319_vm8, %v13435_v45  ;;  %v13439_v23 = vld [vmem:[#allocation40_spill] sm:$0xff]  ;;  %vm13453_vm8 = vnez %v12958_v41 }
 0x451   : > { %v13441_v45 = vld [vmem:[#allocation124_spill] sm:$0xff]  ;;  %3369 = vmatpush.msra.mxu3 %v2059_v58  ;;  %3586 = vmatpush.msrb.mxu1 %v1968_v3  ;;  %v13449_v58 = vld [vmem:[#allocation129_spill] sm:$0xff] }
 0x452   : > { %v2816_v10 = vpop.f32.mrf.mxu2  ;;  %v13573_v41 = vld [vmem:[#allocation68_spill] sm:$0xff] }
 0x453   : > { %v2817_v56 = vadd.f32 %v2816_v10, %v2704_v18  ;;  %v2929_v8 = vpop.f32.mrf.mxu3  ;;  %v13442_v18 = vld [vmem:[#allocation205_spill] sm:$0xff]  ;;  %v2707_v10 = vadd.f32 %v9084_v60, %v2594_v57  ;;  %v13447_v60 = vld [vmem:[#allocation127_spill] sm:$0xff]  ;;  %v13448_v57 = vld [vmem:[#allocation22_spill] sm:$0xff] }
 0x454   : > { %v9464_v63 = vpop.f32.mrf.mxu0 }
 0x455   : > { %v9468_v17 = vadd.f32 %v2929_v8, %v2817_v56  ;;  %v9470_v39 = vpop.f32.mrf.mxu1 }
 0x456   : > { %13438 = vst [vmem:[#allocation222_spill] sm:$0xff] %v9470_v39  ;;  %v13445_v39 = vld [vmem:[#allocation43_spill] sm:$0xff] }
 0x457   : > { %13437 = vst [vmem:[#allocation95_spill] sm:$0xff] %v9468_v17  ;;  %5307 = vmatmul.msk.f32.gmra.mxu2 %vm13440_vm6, %v13439_v23  ;;  %5357 = vmatmul.msk.f32.gmra.mxu0 %vm13325_vm9, %v13441_v45  ;;  %v2597_v23 = vadd.f32 %v9099_v28, %v9399_v62  ;;  %v1991_v28 = vld [vmem:[#allocation12 + $0x470] sm:$0xff] }
 0x458   : > { %5339 = vmatmul.msk.f32.gmra.mxu3 %vm13440_vm6, %v13442_v18  ;;  %5389 = vmatmul.msk.f32.gmra.mxu1 %vm13325_vm9, %v13443_v55  ;;  %vm13446_vm9 = vnez %v13154_v43 }
 0x459   : > { %3257 = vmatpush.msra.mxu2 %v1991_v28  ;;  %v1964_v28 = vld [vmem:[#allocation12 + $0x398] sm:$0xff] }
 0x45a   : > { %v2819_v56 = vpop.f32.mrf.mxu2  ;;  %3587 = vmatpush.msrb.mxu1 %v1964_v28 }
 0x45b   : > { %v2820_v8 = vadd.f32 %v2819_v56, %v2707_v10  ;;  %v2932_v17 = vpop.f32.mrf.mxu3 }
 0x45c   : > { %v9485_v45 = vpop.f32.mrf.mxu0 }
 0x45d   : > { %v9489_v12 = vadd.f32 %v2932_v17, %v2820_v8  ;;  %v9491_v18 = vpop.f32.mrf.mxu1  ;;  %v2710_v17 = vadd.f32 %v9105_v20, %v2597_v23  ;;  %v2600_v8 = vadd.f32 %v9120_v19, %v9399_v62  ;;  %v2055_v20 = vld [vmem:[#allocation12 + $0x670] sm:$0xff]  ;;  %v1900_v23 = vld [vmem:[#allocation12 + $0x198] sm:$0xff]  ;;  %v13456_v19 = vld [vmem:[#allocation133_spill] sm:$0xff] }
 0x45e   : > { %3370 = vmatpush.msra.mxu3 %v2055_v20  ;;  %3474 = vmatpush.msrb.mxu0 %v1900_v23  ;;  %v13462_v20 = vld [vmem:[#allocation207_spill] sm:$0xff]  ;;  %v13463_v23 = vld [vmem:[#allocation138_spill] sm:$0xff] }
 0x45f   : > { %13444 = vst [vmem:[#allocation223_spill] sm:$0xff] %v9489_v12  ;;  %5308 = vmatmul.msk.f32.gmra.mxu2 %vm13446_vm9, %v13445_v39  ;;  %5358 = vmatmul.msk.f32.gmra.mxu0 %vm13331_vm10, %v13447_v60  ;;  %v2603_v39 = vadd.f32 %v9141_v5, %v9399_v62  ;;  %v1987_v5 = vld [vmem:[#allocation12 + $0x450] sm:$0xff] }
 0x460   : > { %5340 = vmatmul.msk.f32.gmra.mxu3 %vm13446_vm9, %v13448_v57  ;;  %5390 = vmatmul.msk.f32.gmra.mxu1 %vm13331_vm10, %v13449_v58  ;;  %v13452_v57 = vld [vmem:[#allocation46_spill] sm:$0xff]  ;;  %v13454_v58 = vld [vmem:[#allocation131_spill] sm:$0xff]  ;;  %vm13466_vm10 = vnez %v13191_v29 }
 0x461   : > { %3258 = vmatpush.msra.mxu2 %v1987_v5  ;;  %v1960_v5 = vld [vmem:[#allocation12 + $0x378] sm:$0xff] }
 0x462   : > { %v2822_v2 = vpop.f32.mrf.mxu2  ;;  %3588 = vmatpush.msrb.mxu1 %v1960_v5 }
 0x463   : > { %v2823_v3 = vadd.f32 %v2822_v2, %v2710_v17  ;;  %v2935_v10 = vpop.f32.mrf.mxu3  ;;  %v13455_v17 = vld [vmem:[#allocation76_spill] sm:$0xff]  ;;  %v13457_v2 = vld [vmem:[#allocation102_spill] sm:$0xff] }
 0x464   : > { %v9506_v56 = vpop.f32.mrf.mxu0 }
 0x465   : > { %v9510_v12 = vadd.f32 %v2935_v10, %v2823_v3  ;;  %v9512_v60 = vpop.f32.mrf.mxu1  ;;  %v2713_v3 = vadd.f32 %v13457_v2, %v2600_v8  ;;  %v13461_v8 = vld [vmem:[#allocation136_spill] sm:$0xff] }
 0x466   : > { %13451 = vst [vmem:[#allocation225_spill] sm:$0xff] %v9512_v60  ;;  %v13459_v60 = vld [vmem:[#allocation18_spill] sm:$0xff] }
 0x467   : > { %13450 = vst [vmem:[#allocation224_spill] sm:$0xff] %v9510_v12  ;;  %5309 = vmatmul.msk.f32.gmra.mxu2 %vm13453_vm8, %v13452_v57  ;;  %5359 = vmatmul.msk.f32.gmra.mxu0 %vm13340_vm11, %v13454_v58 }
 0x468   : > { %5341 = vmatmul.msk.f32.gmra.mxu3 %vm13453_vm8, %v13455_v17  ;;  %5391 = vmatmul.msk.f32.gmra.mxu1 %vm13340_vm11, %v13456_v19  ;;  %vm13460_vm11 = vnez %v13177_v50  ;;  %v13472_v19 = vld [vmem:[#allocation81_spill] sm:$0xff] }
 0x46a   : > { %v2825_v10 = vpop.f32.mrf.mxu2 }
 0x46b   : > { %v2826_v12 = vadd.f32 %v2825_v10, %v2713_v3  ;;  %v2938_v57 = vpop.f32.mrf.mxu3  ;;  %v2606_v10 = vadd.f32 %v9162_v35, %v9399_v62  ;;  %v13469_v35 = vld [vmem:[#allocation143_spill] sm:$0xff] }
 0x46c   : > { %v9527_v58 = vpop.f32.mrf.mxu0 }
 0x46d   : > { %v9531_v55 = vadd.f32 %v2938_v57, %v2826_v12  ;;  %v9533_v17 = vpop.f32.mrf.mxu1  ;;  %v2716_v12 = vadd.f32 %v9147_v30, %v2603_v39  ;;  %v2051_v30 = vld [vmem:[#allocation12 + $0x650] sm:$0xff]  ;;  %v1896_v39 = vld [vmem:[#allocation12 + $0x178] sm:$0xff] }
 0x46e   : > { %3371 = vmatpush.msra.mxu3 %v2051_v30  ;;  %3475 = vmatpush.msrb.mxu0 %v1896_v39  ;;  %v13476_v30 = vld [vmem:[#allocation147_spill] sm:$0xff] }
 0x46f   : > { %13458 = vst [vmem:[#allocation102_spill] sm:$0xff] %v9531_v55  ;;  %5310 = vmatmul.msk.f32.gmra.mxu2 %vm13460_vm11, %v13459_v60  ;;  %5360 = vmatmul.msk.f32.gmra.mxu0 %vm13351_vm12, %v13461_v8 }
 0x470   : > { %5342 = vmatmul.msk.f32.gmra.mxu3 %vm13460_vm11, %v13462_v20  ;;  %5392 = vmatmul.msk.f32.gmra.mxu1 %vm13351_vm12, %v13463_v23  ;;  %v13465_v20 = vld [vmem:[#allocation132_spill] sm:$0xff]  ;;  %v13467_v23 = vld [vmem:[#allocation141_spill] sm:$0xff] }
 0x472   : > { %v2828_v57 = vpop.f32.mrf.mxu2 }
 0x473   : > { %v2829_v28 = vadd.f32 %v2828_v57, %v2716_v12  ;;  %v2941_v2 = vpop.f32.mrf.mxu3  ;;  %v13468_v12 = vld [vmem:[#allocation71_spill] sm:$0xff]  ;;  %v2719_v57 = vadd.f32 %v9168_v40, %v2606_v10  ;;  %v13474_v40 = vld [vmem:[#allocation145_spill] sm:$0xff]  ;;  %v13475_v10 = vld [vmem:[#allocation72_spill] sm:$0xff] }
 0x474   : > { %v9548_v3 = vpop.f32.mrf.mxu0 }
 0x475   : > { %v9552_v55 = vadd.f32 %v2941_v2, %v2829_v28  ;;  %v9554_v8 = vpop.f32.mrf.mxu1 }
 0x477   : > { %13464 = vst [vmem:[#allocation226_spill] sm:$0xff] %v9552_v55  ;;  %5311 = vmatmul.msk.f32.gmra.mxu2 %vm13466_vm10, %v13465_v20  ;;  %5361 = vmatmul.msk.f32.gmra.mxu0 %vm13362_vm13, %v13467_v23  ;;  %v2609_v20 = vadd.f32 %v9183_v21, %v9399_v62  ;;  %v1983_v21 = vld [vmem:[#allocation12 + $0x430] sm:$0xff] }
 0x478   : > { %5343 = vmatmul.msk.f32.gmra.mxu3 %vm13466_vm10, %v13468_v12  ;;  %5393 = vmatmul.msk.f32.gmra.mxu1 %vm13362_vm13, %v13469_v35  ;;  %vm13473_vm13 = vnez %v13205_v14  ;;  %v13482_v35 = vld [vmem:[#allocation179_spill] sm:$0xff] }
 0x479   : > { %3259 = vmatpush.msra.mxu2 %v1983_v21  ;;  %vm13483_vm12 = vnez %v13482_v35  ;;  %v1956_v21 = vld [vmem:[#allocation12 + $0x358] sm:$0xff] }
 0x47a   : > { %v2831_v28 = vpop.f32.mrf.mxu2  ;;  %3589 = vmatpush.msrb.mxu1 %v1956_v21 }
 0x47b   : > { %v2832_v2 = vadd.f32 %v2831_v28, %v2719_v57  ;;  %v2944_v55 = vpop.f32.mrf.mxu3 }
 0x47c   : > { %v9569_v23 = vpop.f32.mrf.mxu0 }
 0x47d   : > { %v9573_v60 = vadd.f32 %v2944_v55, %v2832_v2  ;;  %v9575_v12 = vpop.f32.mrf.mxu1  ;;  %v2722_v55 = vadd.f32 %v9189_v42, %v2609_v20  ;;  %v13478_v2 = vld [vmem:[#allocation45_spill] sm:$0xff]  ;;  %v2047_v42 = vld [vmem:[#allocation12 + $0x630] sm:$0xff]  ;;  %v1892_v20 = vld [vmem:[#allocation12 + $0x158] sm:$0xff] }
 0x47e   : > { %13471 = vst [vmem:[#allocation228_spill] sm:$0xff] %v9575_v12  ;;  %3372 = vmatpush.msra.mxu3 %v2047_v42  ;;  %3476 = vmatpush.msrb.mxu0 %v1892_v20  ;;  %v13495_v42 = vld [vmem:[#allocation78_spill] sm:$0xff]  ;;  %v13496_v20 = vld [vmem:[#allocation155_spill] sm:$0xff] }
 0x47f   : > { %13470 = vst [vmem:[#allocation227_spill] sm:$0xff] %v9573_v60  ;;  %5312 = vmatmul.msk.f32.gmra.mxu2 %vm13473_vm13, %v13472_v19  ;;  %5362 = vmatmul.msk.f32.gmra.mxu0 %vm13371_vm14, %v13474_v40  ;;  %v2612_v60 = vadd.f32 %v13478_v2, %v9399_v62 }
 0x480   : > { %5344 = vmatmul.msk.f32.gmra.mxu3 %vm13473_vm13, %v13475_v10  ;;  %5394 = vmatmul.msk.f32.gmra.mxu1 %vm13371_vm14, %v13476_v30  ;;  %v13481_v10 = vld [vmem:[#allocation74_spill] sm:$0xff]  ;;  %v13484_v30 = vld [vmem:[#allocation149_spill] sm:$0xff] }
 0x482   : > { %v2834_v39 = vpop.f32.mrf.mxu2 }
 0x483   : > { %v2835_v5 = vadd.f32 %v2834_v39, %v2722_v55  ;;  %v2947_v57 = vpop.f32.mrf.mxu3  ;;  %v13485_v55 = vld [vmem:[#allocation75_spill] sm:$0xff] }
 0x484   : > { %v9590_v28 = vpop.f32.mrf.mxu0  ;;  %v13486_v39 = vld [vmem:[#allocation151_spill] sm:$0xff] }
 0x485   : > { %13477 = vst [vmem:[#allocation229_spill] sm:$0xff] %v9590_v28  ;;  %v9594_v40 = vadd.f32 %v2947_v57, %v2835_v5  ;;  %v9596_v19 = vpop.f32.mrf.mxu1  ;;  %v13487_v5 = vld [vmem:[#allocation210_spill] sm:$0xff] }
 0x486   : > { %13480 = vst [vmem:[#allocation230_spill] sm:$0xff] %v9596_v19  ;;  %v2725_v57 = vadd.f32 %v13487_v5, %v2612_v60  ;;  %v13488_v19 = vld [vmem:[#allocation48_spill] sm:$0xff]  ;;  %v13494_v60 = vld [vmem:[#allocation153_spill] sm:$0xff] }
 0x487   : > { %13479 = vst [vmem:[#allocation45_spill] sm:$0xff] %v9594_v40  ;;  %5313 = vmatmul.msk.f32.gmra.mxu2 %vm13483_vm12, %v13481_v10  ;;  %5363 = vmatmul.msk.f32.gmra.mxu0 %vm13380_vm15, %v13484_v30  ;;  %v2615_v28 = vadd.f32 %v13488_v19, %v9399_v62  ;;  %v1979_v19 = vld [vmem:[#allocation12 + $0x410] sm:$0xff] }
 0x488   : > { %5345 = vmatmul.msk.f32.gmra.mxu3 %vm13483_vm12, %v13485_v55  ;;  %5395 = vmatmul.msk.f32.gmra.mxu1 %vm13380_vm15, %v13486_v39  ;;  %vm13493_vm15 = vnez %v13492_v0 }
 0x489   : > { %3260 = vmatpush.msra.mxu2 %v1979_v19  ;;  %v1888_v19 = vld [vmem:[#allocation12 + $0x138] sm:$0xff] }
 0x48a   : > { %v2837_v2 = vpop.f32.mrf.mxu2  ;;  %3477 = vmatpush.msrb.mxu0 %v1888_v19  ;;  %v13515_v19 = vld [vmem:[#allocation163_spill] sm:$0xff] }
 0x48b   : > { %v2838_v40 = vadd.f32 %v2837_v2, %v2725_v57  ;;  %v2950_v10 = vpop.f32.mrf.mxu3 }
 0x48c   : > { %v9611_v30 = vpop.f32.mrf.mxu0 }
 0x48d   : > { %v9615_v12 = vadd.f32 %v2950_v10, %v2838_v40  ;;  %v9617_v55 = vpop.f32.mrf.mxu1  ;;  %v13497_v40 = vld [vmem:[#allocation211_spill] sm:$0xff] }
 0x48e   : > { %13490 = vst [vmem:[#allocation48_spill] sm:$0xff] %v9617_v55  ;;  %v2728_v10 = vadd.f32 %v13497_v40, %v2615_v28  ;;  %v13503_v55 = vld [vmem:[#allocation186_spill] sm:$0xff]  ;;  %v1952_v40 = vld [vmem:[#allocation12 + $0x338] sm:$0xff] }
 0x48f   : > { %13489 = vst [vmem:[#allocation210_spill] sm:$0xff] %v9615_v12  ;;  %5314 = vmatmul.msk.f32.gmra.mxu2 %vm13493_vm15, %v13491_v22  ;;  %5364 = vmatmul.msk.f32.gmra.mxu0 %vm13389_vm0, %v13494_v60  ;;  %v13499_v12 = vld [vmem:[#allocation206_spill] sm:$0xff]  ;;  %vm13504_vm14 = vnez %v13503_v55 }
 0x490   : > { %5346 = vmatmul.msk.f32.gmra.mxu3 %vm13493_vm15, %v13495_v42  ;;  %5396 = vmatmul.msk.f32.gmra.mxu1 %vm13389_vm0, %v13496_v20  ;;  %v2618_v60 = vadd.f32 %v13499_v12, %v9399_v62  ;;  %v13502_v42 = vld [vmem:[#allocation80_spill] sm:$0xff]  ;;  %v13505_v20 = vld [vmem:[#allocation157_spill] sm:$0xff]  ;;  %v2043_v28 = vld [vmem:[#allocation12 + $0x610] sm:$0xff]  ;;  %vm13521_vm0 = vnez %v13262_v59 }
 0x491   : > { %v13507_v12 = vld [vmem:[#allocation159_spill] sm:$0xff]  ;;  %3373 = vmatpush.msra.mxu3 %v2043_v28  ;;  %3590 = vmatpush.msrb.mxu1 %v1952_v40  ;;  %v13514_v28 = vld [vmem:[#allocation188_spill] sm:$0xff] }
 0x492   : > { %v2840_v21 = vpop.f32.mrf.mxu2 }
 0x493   : > { %v2841_v5 = vadd.f32 %v2840_v21, %v2728_v10  ;;  %v2953_v57 = vpop.f32.mrf.mxu3  ;;  %v13506_v10 = vld [vmem:[#allocation55_spill] sm:$0xff]  ;;  %v13508_v21 = vld [vmem:[#allocation212_spill] sm:$0xff] }
 0x494   : > { %v9632_v2 = vpop.f32.mrf.mxu0 }
 0x495   : > { %13498 = vst [vmem:[#allocation182_spill] sm:$0xff] %v9632_v2  ;;  %v9636_v22 = vadd.f32 %v2953_v57, %v2841_v5  ;;  %v9638_v39 = vpop.f32.mrf.mxu1  ;;  %v2731_v5 = vadd.f32 %v13508_v21, %v2618_v60  ;;  %v13513_v60 = vld [vmem:[#allocation161_spill] sm:$0xff] }
 0x496   : > { %13501 = vst [vmem:[#allocation206_spill] sm:$0xff] %v9638_v39  ;;  %v2621_v39 = vadd.f32 %v9267_v1, %v9399_v62  ;;  %v13516_v1 = vld [vmem:[#allocation213_spill] sm:$0xff] }
 0x497   : > { %13500 = vst [vmem:[#allocation211_spill] sm:$0xff] %v9636_v22  ;;  %5315 = vmatmul.msk.f32.gmra.mxu2 %vm13504_vm14, %v13502_v42  ;;  %5365 = vmatmul.msk.f32.gmra.mxu0 %vm13399_vm5, %v13505_v20 }
 0x498   : > { %5347 = vmatmul.msk.f32.gmra.mxu3 %vm13504_vm14, %v13506_v10  ;;  %5397 = vmatmul.msk.f32.gmra.mxu1 %vm13399_vm5, %v13507_v12  ;;  %vm13512_vm5 = vnez %v13511_v33  ;;  %v13625_v33 = vld [vmem:[#allocation49_spill] sm:$0xff] }
 0x49a   : > { %v2843_v57 = vpop.f32.mrf.mxu2 }
 0x49b   : > { %v2844_v22 = vadd.f32 %v2843_v57, %v2731_v5  ;;  %v2956_v42 = vpop.f32.mrf.mxu3  ;;  %v2624_v57 = vadd.f32 %v9288_v51, %v9399_v62 }
 0x49c   : > { %v9653_v20 = vpop.f32.mrf.mxu0 }
 0x49d   : > { %v9657_v2 = vadd.f32 %v2956_v42, %v2844_v22  ;;  %v9659_v10 = vpop.f32.mrf.mxu1  ;;  %v2734_v22 = vadd.f32 %v13516_v1, %v2621_v39  ;;  %v1884_v39 = vld [vmem:[#allocation12 + $0x118] sm:$0xff]  ;;  %v2737_v51 = vadd.f32 %v9294_v38, %v2624_v57  ;;  %v13532_v38 = vld [vmem:[#allocation162_spill] sm:$0xff] }
 0x49e   : > { %v1948_v1 = vld [vmem:[#allocation12 + $0x318] sm:$0xff]  ;;  %3478 = vmatpush.msrb.mxu0 %v1884_v39  ;;  %v13533_v57 = vld [vmem:[#allocation170_spill] sm:$0xff] }
 0x49f   : > { %13509 = vst [vmem:[#allocation186_spill] sm:$0xff] %v9657_v2  ;;  %5316 = vmatmul.msk.f32.gmra.mxu2 %vm13512_vm5, %v13510_v11  ;;  %5366 = vmatmul.msk.f32.gmra.mxu0 %vm13405_vm3, %v13513_v60  ;;  %v13520_v11 = vld [vmem:[#allocation56_spill] sm:$0xff] }
 0x4a0   : > { %5348 = vmatmul.msk.f32.gmra.mxu3 %vm13512_vm5, %v13514_v28  ;;  %5398 = vmatmul.msk.f32.gmra.mxu1 %vm13405_vm3, %v13515_v19  ;;  %v13522_v28 = vld [vmem:[#allocation165_spill] sm:$0xff] }
 0x4a1   : > { %3591 = vmatpush.msrb.mxu1 %v1948_v1 }
 0x4a2   : > { %v2846_v42 = vpop.f32.mrf.mxu2 }
 0x4a3   : > { %v2847_v40 = vadd.f32 %v2846_v42, %v2734_v22  ;;  %v2959_v21 = vpop.f32.mrf.mxu3  ;;  %v13523_v22 = vld [vmem:[#allocation158_spill] sm:$0xff]  ;;  %v13524_v42 = vld [vmem:[#allocation167_spill] sm:$0xff] }
 0x4a4   : > { %v9674_v5 = vpop.f32.mrf.mxu0 }
 0x4a5   : > { %13517 = vst [vmem:[#allocation212_spill] sm:$0xff] %v9674_v5  ;;  %v9678_v2 = vadd.f32 %v2959_v21, %v2847_v40  ;;  %v9680_v60 = vpop.f32.mrf.mxu1  ;;  %v13529_v5 = vld [vmem:[#allocation194_spill] sm:$0xff] }
 0x4a6   : > { %13519 = vst [vmem:[#allocation231_spill] sm:$0xff] %v9680_v60  ;;  %vm13530_vm3 = vnez %v13529_v5 }
 0x4a7   : > { %13518 = vst [vmem:[#allocation213_spill] sm:$0xff] %v9678_v2  ;;  %5317 = vmatmul.msk.f32.gmra.mxu2 %vm13521_vm0, %v13520_v11  ;;  %5367 = vmatmul.msk.f32.gmra.mxu0 %vm13111_vm2, %v13522_v28  ;;  %v13525_v28 = vld [vmem:[#allocation139_spill] sm:$0xff] }
 0x4a8   : > { %5349 = vmatmul.msk.f32.gmra.mxu3 %vm13521_vm0, %v13523_v22  ;;  %5399 = vmatmul.msk.f32.gmra.mxu1 %vm13111_vm2, %v13524_v42  ;;  %v2627_v19 = vadd.f32 %v13525_v28, %v9399_v62  ;;  %v13528_v22 = vld [vmem:[#allocation57_spill] sm:$0xff]  ;;  %vm13539_vm2 = vnez %v13279_v49 }
 0x4a9   : > { %v13531_v42 = vld [vmem:[#allocation169_spill] sm:$0xff] }
 0x4aa   : > { %v2849_v40 = vpop.f32.mrf.mxu2 }
 0x4ab   : > { %v2850_v21 = vadd.f32 %v2849_v40, %v2737_v51  ;;  %v2962_v2 = vpop.f32.mrf.mxu3 }
 0x4ac   : > { %v9695_v11 = vpop.f32.mrf.mxu0 }
 0x4ad   : > { %v9699_v12 = vadd.f32 %v2962_v2, %v2850_v21  ;;  %v9701_v60 = vpop.f32.mrf.mxu1  ;;  %v13534_v2 = vld [vmem:[#allocation214_spill] sm:$0xff]  ;;  %v2630_v21 = vadd.f32 %v9330_v44, %v9399_v62 }
 0x4ae   : > { %13527 = vst [vmem:[#allocation232_spill] sm:$0xff] %v9701_v60  ;;  %v2740_v28 = vadd.f32 %v13534_v2, %v2627_v19  ;;  %v1880_v19 = vld [vmem:[#allocation12 + $0xf8] sm:$0xff]  ;;  %v13543_v44 = vld [vmem:[#allocation54_spill] sm:$0xff] }
 0x4af   : > { %13526 = vst [vmem:[#allocation139_spill] sm:$0xff] %v9699_v12  ;;  %5318 = vmatmul.msk.f32.gmra.mxu2 %vm13530_vm3, %v13528_v22  ;;  %5368 = vmatmul.msk.f32.gmra.mxu0 %vm13417_vm4, %v13531_v42  ;;  %v13538_v22 = vld [vmem:[#allocation90_spill] sm:$0xff]  ;;  %v1944_v2 = vld [vmem:[#allocation12 + $0x2f8] sm:$0xff] }
 0x4b0   : > { %5350 = vmatmul.msk.f32.gmra.mxu3 %vm13530_vm3, %v13532_v38  ;;  %5400 = vmatmul.msk.f32.gmra.mxu1 %vm13417_vm4, %v13533_v57  ;;  %v13540_v38 = vld [vmem:[#allocation100_spill] sm:$0xff] }
 0x4b1   : > { %3479 = vmatpush.msrb.mxu0 %v1880_v19  ;;  %3592 = vmatpush.msrb.mxu1 %v1944_v2  ;;  %v2104_v60 = vld [vmem:[#allocation12 + $0x7f8] sm:$0xff] }
 0x4b2   : > { %v2852_v39 = vpop.f32.mrf.mxu2  ;;  %v13548_v19 = vld [vmem:[#allocation103_spill] sm:$0xff]  ;;  %v13549_v2 = vld [vmem:[#allocation104_spill] sm:$0xff] }
 0x4b3   : > { %v2853_v1 = vadd.f32 %v2852_v39, %v2740_v28  ;;  %v2965_v51 = vpop.f32.mrf.mxu3  ;;  %v13541_v28 = vld [vmem:[#allocation92_spill] sm:$0xff]  ;;  %v13542_v39 = vld [vmem:[#allocation59_spill] sm:$0xff] }
 0x4b4   : > { %v9716_v40 = vpop.f32.mrf.mxu0 }
 0x4b5   : > { %13535 = vst [vmem:[#allocation214_spill] sm:$0xff] %v9716_v40  ;;  %v9720_v12 = vadd.f32 %v2965_v51, %v2853_v1  ;;  %v9722_v42 = vpop.f32.mrf.mxu1  ;;  %v2743_v1 = vadd.f32 %v13543_v44, %v2630_v21  ;;  %v13546_v21 = vld [vmem:[#allocation67_spill] sm:$0xff] }
 0x4b6   : > { %13537 = vst [vmem:[#allocation234_spill] sm:$0xff] %v9722_v42 }
 0x4b7   : > { %13536 = vst [vmem:[#allocation233_spill] sm:$0xff] %v9720_v12  ;;  %5319 = vmatmul.msk.f32.gmra.mxu2 %vm13539_vm2, %v13538_v22  ;;  %5369 = vmatmul.msk.f32.gmra.mxu0 %vm13425_vm1, %v13540_v38  ;;  %v2633_v38 = vadd.f32 %v9351_v4, %v9399_v62  ;;  %v2036_v4 = vld [vmem:[#allocation12 + $0x5d8] sm:$0xff] }
 0x4b8   : > { %5351 = vmatmul.msk.f32.gmra.mxu3 %vm13539_vm2, %v13541_v28  ;;  %5401 = vmatmul.msk.f32.gmra.mxu1 %vm13425_vm1, %v13542_v39  ;;  %v2040_v28 = vld [vmem:[#allocation12 + $0x5f8] sm:$0xff]  ;;  %vm13547_vm1 = vnez %v13289_v9  ;;  %v13551_v39 = vld [vmem:[#allocation61_spill] sm:$0xff] }
 0x4ba   : > { %v2855_v51 = vpop.f32.mrf.mxu2 }
 0x4bb   : > { %v2856_v12 = vadd.f32 %v2855_v51, %v2743_v1  ;;  %v2968_v22 = vpop.f32.mrf.mxu3  ;;  %v2032_v1 = vld [vmem:[#allocation12 + $0x5b8] sm:$0xff] }
 0x4bc   : > { %v9737_v57 = vpop.f32.mrf.mxu0 }
 0x4bd   : > { %v9741_v42 = vadd.f32 %v2968_v22, %v2856_v12  ;;  %v9743_v40 = vpop.f32.mrf.mxu1  ;;  %v2100_v12 = vld [vmem:[#allocation12 + $0x7d8] sm:$0xff]  ;;  %v2746_v22 = vadd.f32 %v9357_v16, %v2633_v38  ;;  %v13552_v16 = vld [vmem:[#allocation62_spill] sm:$0xff] }
 0x4be   : > { %v1876_v38 = vld [vmem:[#allocation12 + $0xd8] sm:$0xff] }
 0x4bf   : > { %13544 = vst [vmem:[#allocation54_spill] sm:$0xff] %v9741_v42  ;;  %5370 = vmatmul.msk.f32.gmra.mxu0 %vm13432_vm7, %v13545_v7  ;;  %5416 = vmatmul.msk.f32.vlgmr.msra.gmra.mxu2 %vm13547_vm1, %v13546_v21 }
 0x4c0   : > { %5402 = vmatmul.msk.f32.gmra.mxu1 %vm13432_vm7, %v13548_v19  ;;  %5448 = vmatmul.msk.f32.vlgmr.msra.gmra.mxu3 %vm13547_vm1, %v13549_v2  ;;  %v2636_v19 = vadd.f32 %v9372_v37, %v9399_v62  ;;  %vm13553_vm7 = vnez %v12772_v54  ;;  %v13555_v37 = vld [vmem:[#allocation63_spill] sm:$0xff] }
 0x4c1   : > { %3697 = vmatpush.msra.mxu2 %v2040_v28  ;;  %3810 = vmatpush.msra.mxu3 %v2104_v60  ;;  %v2096_v60 = vld [vmem:[#allocation12 + $0x7b8] sm:$0xff] }
 0x4c2   : > { %v2858_v44 = vpop.f32.mrf.mxu2  ;;  %v1940_v28 = vld [vmem:[#allocation12 + $0x2d8] sm:$0xff]  ;;  %3480 = vmatpush.msrb.mxu0 %v1876_v38 }
 0x4c3   : > { %v2859_v51 = vadd.f32 %v2858_v44, %v2746_v22  ;;  %v2971_v42 = vpop.f32.mrf.mxu3  ;;  %3698 = vmatpush.msra.mxu2 %v2036_v4  ;;  %3811 = vmatpush.msra.mxu3 %v2100_v12  ;;  %v13554_v4 = vld [vmem:[#allocation70_spill] sm:$0xff]  ;;  %v2068_v54 = vld [vmem:[#allocation12 + $0x6d8] sm:$0xff] }
 0x4c4   : > { %v9758_v21 = vpop.f32.mrf.mxu0  ;;  %3593 = vmatpush.msrb.mxu1 %v1940_v28 }
 0x4c5   : > { %v9762_v7 = vadd.f32 %v2971_v42, %v2859_v51  ;;  %v9764_v2 = vpop.f32.mrf.mxu1  ;;  %3699 = vmatpush.msra.mxu2 %v2032_v1  ;;  %v2749_v42 = vadd.f32 %v9378_v31, %v2636_v19  ;;  %3812 = vmatpush.msra.mxu3 %v2096_v60  ;;  %v2639_v51 = vadd.f32 %v9401_v46, %v9399_v62  ;;  %v13558_v31 = vld [vmem:[#allocation73_spill] sm:$0xff]  ;;  %v13560_v19 = vld [vmem:[#allocation24_spill] sm:$0xff] }
 0x4c6   : > { %v13561_v60 = vld [vmem:[#allocation17_spill] sm:$0xff]  ;;  %v2028_v46 = vld [vmem:[#allocation12 + $0x598] sm:$0xff] }
 0x4c7   : > { %13550 = vst [vmem:[#allocation235_spill] sm:$0xff] %v9762_v7  ;;  %5371 = vmatmul.msk.f32.gmra.mxu0 %vm13440_vm6, %v13551_v39  ;;  %5417 = vmatmul.msk.f32.gmra.mxu2 %vm13553_vm7, %v13552_v16  ;;  %v2752_v38 = vadd.f32 %v9407_v48, %v2639_v51  ;;  %v2092_v48 = vld [vmem:[#allocation12 + $0x798] sm:$0xff]  ;;  %v2645_v39 = vadd.f32 %v9443_v15, %v9399_v62 }
 0x4c8   : > { %5403 = vmatmul.msk.f32.gmra.mxu1 %vm13440_vm6, %v13554_v4  ;;  %5449 = vmatmul.msk.f32.gmra.mxu3 %vm13553_vm7, %v13555_v37  ;;  %v13557_v4 = vld [vmem:[#allocation23_spill] sm:$0xff]  ;;  %vm13559_vm6 = vnez %v12952_v53  ;;  %v13567_v37 = vld [vmem:[#allocation117_spill] sm:$0xff] }
 0x4c9   : > { %3700 = vmatpush.msra.mxu2 %v2028_v46  ;;  %v1872_v51 = vld [vmem:[#allocation12 + $0xb8] sm:$0xff]  ;;  %3813 = vmatpush.msra.mxu3 %v2092_v48  ;;  %v13576_v48 = vld [vmem:[#allocation82_spill] sm:$0xff] }
 0x4ca   : > { %v2861_v12 = vpop.f32.mrf.mxu2  ;;  %v1936_v46 = vld [vmem:[#allocation12 + $0x2b8] sm:$0xff]  ;;  %3481 = vmatpush.msrb.mxu0 %v1872_v51 }
 0x4cb   : > { %v2862_v22 = vadd.f32 %v2861_v12, %v2749_v42  ;;  %v2974_v44 = vpop.f32.mrf.mxu3  ;;  %3594 = vmatpush.msrb.mxu1 %v1936_v46  ;;  %v13577_v51 = vld [vmem:[#allocation172_spill] sm:$0xff]  ;;  %v13680_v53 = vld [vmem:[#allocation111_spill] sm:$0xff] }
 0x4cc   : > { %v9779_v1 = vpop.f32.mrf.mxu0  ;;  %v2024_v15 = vld [vmem:[#allocation12 + $0x578] sm:$0xff] }
 0x4cd   : > { %v9783_v7 = vadd.f32 %v2974_v44, %v2862_v22  ;;  %v9785_v16 = vpop.f32.mrf.mxu1  ;;  %v13562_v44 = vld [vmem:[#allocation218_spill] sm:$0xff]  ;;  %3701 = vmatpush.msra.mxu2 %v2024_v15  ;;  %v1932_v15 = vld [vmem:[#allocation12 + $0x298] sm:$0xff] }
 0x4ce   : > { %3595 = vmatpush.msrb.mxu1 %v1932_v15 }
 0x4cf   : > { %13556 = vst [vmem:[#allocation236_spill] sm:$0xff] %v9783_v7  ;;  %5372 = vmatmul.msk.f32.gmra.mxu0 %vm13446_vm9, %v13557_v4  ;;  %5418 = vmatmul.msk.f32.gmra.mxu2 %vm13559_vm6, %v13558_v31  ;;  %v2642_v7 = vadd.f32 %v13562_v44, %v9399_v62 }
 0x4d0   : > { %5404 = vmatmul.msk.f32.gmra.mxu1 %vm13446_vm9, %v13560_v19  ;;  %5450 = vmatmul.msk.f32.gmra.mxu3 %vm13559_vm6, %v13561_v60  ;;  %v13565_v19 = vld [vmem:[#allocation25_spill] sm:$0xff]  ;;  %v13566_v60 = vld [vmem:[#allocation26_spill] sm:$0xff]  ;;  %vm13568_vm9 = vnez %v13567_v37  ;;  %v2064_v37 = vld [vmem:[#allocation12 + $0x6b8] sm:$0xff] }
 0x4d2   : > { %v2864_v28 = vpop.f32.mrf.mxu2 }
 0x4d3   : > { %v2865_v42 = vadd.f32 %v2864_v28, %v2752_v38  ;;  %v2977_v12 = vpop.f32.mrf.mxu3  ;;  %v13569_v38 = vld [vmem:[#allocation66_spill] sm:$0xff]  ;;  %v13570_v28 = vld [vmem:[#allocation79_spill] sm:$0xff] }
 0x4d4   : > { %v9800_v22 = vpop.f32.mrf.mxu0 }
 0x4d5   : > { %v9804_v31 = vadd.f32 %v2977_v12, %v2865_v42  ;;  %v9806_v4 = vpop.f32.mrf.mxu1  ;;  %v13571_v42 = vld [vmem:[#allocation220_spill] sm:$0xff] }
 0x4d6   : > { %13564 = vst [vmem:[#allocation237_spill] sm:$0xff] %v9806_v4  ;;  %v2755_v12 = vadd.f32 %v13571_v42, %v2642_v7  ;;  %v13574_v7 = vld [vmem:[#allocation171_spill] sm:$0xff] }
 0x4d7   : > { %13563 = vst [vmem:[#allocation218_spill] sm:$0xff] %v9804_v31  ;;  %5373 = vmatmul.msk.f32.gmra.mxu0 %vm13453_vm8, %v13565_v19  ;;  %5419 = vmatmul.msk.f32.gmra.mxu2 %vm13568_vm9, %v13566_v60 }
 0x4d8   : > { %5405 = vmatmul.msk.f32.gmra.mxu1 %vm13453_vm8, %v13569_v38  ;;  %5451 = vmatmul.msk.f32.gmra.mxu3 %vm13568_vm9, %v13570_v28  ;;  %vm13575_vm8 = vnez %v12980_v13 }
 0x4da   : > { %v2867_v44 = vpop.f32.mrf.mxu2 }
 0x4db   : > { %v2868_v31 = vadd.f32 %v2867_v44, %v2755_v12  ;;  %v2980_v19 = vpop.f32.mrf.mxu3  ;;  %v2648_v44 = vadd.f32 %v9464_v63, %v9399_v62  ;;  %v13584_v63 = vld [vmem:[#allocation175_spill] sm:$0xff] }
 0x4dc   : > { %v9821_v60 = vpop.f32.mrf.mxu0 }
 0x4dd   : > { %v9825_v4 = vadd.f32 %v2980_v19, %v2868_v31  ;;  %v9827_v38 = vpop.f32.mrf.mxu1  ;;  %v2758_v31 = vadd.f32 %v9449_v61, %v2645_v39  ;;  %v2088_v61 = vld [vmem:[#allocation12 + $0x778] sm:$0xff] }
 0x4de   : > { %v1868_v39 = vld [vmem:[#allocation12 + $0x98] sm:$0xff]  ;;  %3814 = vmatpush.msra.mxu3 %v2088_v61 }
 0x4df   : > { %13572 = vst [vmem:[#allocation220_spill] sm:$0xff] %v9825_v4  ;;  %5374 = vmatmul.msk.f32.gmra.mxu0 %vm13460_vm11, %v13573_v41  ;;  %5420 = vmatmul.msk.f32.gmra.mxu2 %vm13575_vm8, %v13574_v7  ;;  %v2651_v41 = vadd.f32 %v9485_v45, %v9399_v62  ;;  %v13590_v61 = vld [vmem:[#allocation88_spill] sm:$0xff] }
 0x4e0   : > { %5406 = vmatmul.msk.f32.gmra.mxu1 %vm13460_vm11, %v13576_v48  ;;  %5452 = vmatmul.msk.f32.gmra.mxu3 %vm13575_vm8, %v13577_v51  ;;  %v13580_v48 = vld [vmem:[#allocation32_spill] sm:$0xff]  ;;  %v13581_v51 = vld [vmem:[#allocation174_spill] sm:$0xff]  ;;  %vm13582_vm11 = vnez %v12810_v36 }
 0x4e1   : > { %3482 = vmatpush.msrb.mxu0 %v1868_v39  ;;  %v13591_v39 = vld [vmem:[#allocation178_spill] sm:$0xff]  ;;  %v2020_v45 = vld [vmem:[#allocation12 + $0x558] sm:$0xff] }
 0x4e2   : > { %v2870_v19 = vpop.f32.mrf.mxu2  ;;  %3702 = vmatpush.msra.mxu2 %v2020_v45  ;;  %v1928_v45 = vld [vmem:[#allocation12 + $0x278] sm:$0xff] }
 0x4e3   : > { %v2871_v46 = vadd.f32 %v2870_v19, %v2758_v31  ;;  %v2983_v42 = vpop.f32.mrf.mxu3  ;;  %v13583_v31 = vld [vmem:[#allocation85_spill] sm:$0xff]  ;;  %v13585_v19 = vld [vmem:[#allocation222_spill] sm:$0xff]  ;;  %3596 = vmatpush.msrb.mxu1 %v1928_v45 }
 0x4e4   : > { %v9842_v12 = vpop.f32.mrf.mxu0 }
 0x4e5   : > { %v9846_v4 = vadd.f32 %v2983_v42, %v2871_v46  ;;  %v9848_v7 = vpop.f32.mrf.mxu1  ;;  %v2761_v46 = vadd.f32 %v13585_v19, %v2648_v44  ;;  %v13588_v44 = vld [vmem:[#allocation177_spill] sm:$0xff] }
 0x4e6   : > { %13579 = vst [vmem:[#allocation239_spill] sm:$0xff] %v9848_v7  ;;  %v13587_v7 = vld [vmem:[#allocation35_spill] sm:$0xff] }
 0x4e7   : > { %13578 = vst [vmem:[#allocation238_spill] sm:$0xff] %v9846_v4  ;;  %5375 = vmatmul.msk.f32.gmra.mxu0 %vm13466_vm10, %v13580_v48  ;;  %5421 = vmatmul.msk.f32.gmra.mxu2 %vm13582_vm11, %v13581_v51 }
 0x4e8   : > { %5407 = vmatmul.msk.f32.gmra.mxu1 %vm13466_vm10, %v13583_v31  ;;  %5453 = vmatmul.msk.f32.gmra.mxu3 %vm13582_vm11, %v13584_v63  ;;  %vm13589_vm10 = vnez %v12819_v6 }
 0x4ea   : > { %v2873_v42 = vpop.f32.mrf.mxu2 }
 0x4eb   : > { %v2874_v4 = vadd.f32 %v2873_v42, %v2761_v46  ;;  %v2986_v28 = vpop.f32.mrf.mxu3  ;;  %v2654_v42 = vadd.f32 %v9506_v56, %v9399_v62  ;;  %v13598_v56 = vld [vmem:[#allocation181_spill] sm:$0xff] }
 0x4ec   : > { %v9863_v51 = vpop.f32.mrf.mxu0 }
 0x4ed   : > { %v9867_v48 = vadd.f32 %v2986_v28, %v2874_v4  ;;  %v9869_v31 = vpop.f32.mrf.mxu1  ;;  %v2764_v4 = vadd.f32 %v9491_v18, %v2651_v41  ;;  %v2084_v41 = vld [vmem:[#allocation12 + $0x758] sm:$0xff] }
 0x4ee   : > { %v1864_v18 = vld [vmem:[#allocation12 + $0x78] sm:$0xff]  ;;  %3815 = vmatpush.msra.mxu3 %v2084_v41  ;;  %v13604_v41 = vld [vmem:[#allocation94_spill] sm:$0xff] }
 0x4ef   : > { %13586 = vst [vmem:[#allocation222_spill] sm:$0xff] %v9867_v48  ;;  %5376 = vmatmul.msk.f32.gmra.mxu0 %vm13473_vm13, %v13587_v7  ;;  %5422 = vmatmul.msk.f32.gmra.mxu2 %vm13589_vm10, %v13588_v44  ;;  %v2657_v7 = vadd.f32 %v9527_v58, %v9399_v62  ;;  %v2016_v58 = vld [vmem:[#allocation12 + $0x538] sm:$0xff] }
 0x4f0   : > { %5408 = vmatmul.msk.f32.gmra.mxu1 %vm13473_vm13, %v13590_v61  ;;  %5454 = vmatmul.msk.f32.gmra.mxu3 %vm13589_vm10, %v13591_v39  ;;  %v13594_v61 = vld [vmem:[#allocation38_spill] sm:$0xff]  ;;  %v13595_v39 = vld [vmem:[#allocation180_spill] sm:$0xff]  ;;  %vm13596_vm13 = vnez %v12827_v25 }
 0x4f1   : > { %3483 = vmatpush.msrb.mxu0 %v1864_v18  ;;  %v13605_v18 = vld [vmem:[#allocation185_spill] sm:$0xff]  ;;  %3703 = vmatpush.msra.mxu2 %v2016_v58  ;;  %v1924_v58 = vld [vmem:[#allocation12 + $0x258] sm:$0xff] }
 0x4f2   : > { %v2876_v28 = vpop.f32.mrf.mxu2  ;;  %3597 = vmatpush.msrb.mxu1 %v1924_v58  ;;  %v13617_v58 = vld [vmem:[#allocation144_spill] sm:$0xff] }
 0x4f3   : > { %v2877_v15 = vadd.f32 %v2876_v28, %v2764_v4  ;;  %v2989_v19 = vpop.f32.mrf.mxu3  ;;  %v13597_v4 = vld [vmem:[#allocation91_spill] sm:$0xff]  ;;  %v13599_v28 = vld [vmem:[#allocation225_spill] sm:$0xff] }
 0x4f4   : > { %v9884_v46 = vpop.f32.mrf.mxu0 }
 0x4f5   : > { %v9888_v48 = vadd.f32 %v2989_v19, %v2877_v15  ;;  %v9890_v44 = vpop.f32.mrf.mxu1  ;;  %v2767_v15 = vadd.f32 %v13599_v28, %v2654_v42  ;;  %v13602_v42 = vld [vmem:[#allocation183_spill] sm:$0xff] }
 0x4f6   : > { %13593 = vst [vmem:[#allocation241_spill] sm:$0xff] %v9890_v44  ;;  %v13601_v44 = vld [vmem:[#allocation41_spill] sm:$0xff] }
 0x4f7   : > { %13592 = vst [vmem:[#allocation240_spill] sm:$0xff] %v9888_v48  ;;  %5377 = vmatmul.msk.f32.gmra.mxu0 %vm13483_vm12, %v13594_v61  ;;  %5423 = vmatmul.msk.f32.gmra.mxu2 %vm13596_vm13, %v13595_v39 }
 0x4f8   : > { %5409 = vmatmul.msk.f32.gmra.mxu1 %vm13483_vm12, %v13597_v4  ;;  %5455 = vmatmul.msk.f32.gmra.mxu3 %vm13596_vm13, %v13598_v56  ;;  %vm13603_vm12 = vnez %v13350_v47  ;;  %v1856_v56 = vld [vmem:[#allocation12 + $0x38] sm:$0xff] }
 0x4fa   : > { %v2879_v19 = vpop.f32.mrf.mxu2 }
 0x4fb   : > { %v2880_v48 = vadd.f32 %v2879_v19, %v2767_v15  ;;  %v2992_v63 = vpop.f32.mrf.mxu3  ;;  %v2660_v19 = vadd.f32 %v9548_v3, %v9399_v62  ;;  %v13612_v3 = vld [vmem:[#allocation189_spill] sm:$0xff] }
 0x4fc   : > { %v9905_v39 = vpop.f32.mrf.mxu0 }
 0x4fd   : > { %v9909_v61 = vadd.f32 %v2992_v63, %v2880_v48  ;;  %v9911_v4 = vpop.f32.mrf.mxu1  ;;  %v2770_v48 = vadd.f32 %v9533_v17, %v2657_v7  ;;  %v2080_v17 = vld [vmem:[#allocation12 + $0x738] sm:$0xff] }
 0x4fe   : > { %v1860_v7 = vld [vmem:[#allocation12 + $0x58] sm:$0xff]  ;;  %3816 = vmatpush.msra.mxu3 %v2080_v17 }
 0x4ff   : > { %13600 = vst [vmem:[#allocation225_spill] sm:$0xff] %v9909_v61  ;;  %5378 = vmatmul.msk.f32.gmra.mxu0 %vm13493_vm15, %v13601_v44  ;;  %5424 = vmatmul.msk.f32.gmra.mxu2 %vm13603_vm12, %v13602_v42  ;;  %v1920_v44 = vld [vmem:[#allocation12 + $0x238] sm:$0xff] }
 0x500   : > { %5410 = vmatmul.msk.f32.gmra.mxu1 %vm13493_vm15, %v13604_v41  ;;  %5456 = vmatmul.msk.f32.gmra.mxu3 %vm13603_vm12, %v13605_v18  ;;  %v13608_v41 = vld [vmem:[#allocation44_spill] sm:$0xff]  ;;  %v13609_v18 = vld [vmem:[#allocation187_spill] sm:$0xff]  ;;  %vm13610_vm15 = vnez %v13361_v32 }
 0x501   : > { %3484 = vmatpush.msrb.mxu0 %v1860_v7  ;;  %3598 = vmatpush.msrb.mxu1 %v1920_v44  ;;  %v13615_v17 = vld [vmem:[#allocation47_spill] sm:$0xff]  ;;  %v13621_v44 = vld [vmem:[#allocation228_spill] sm:$0xff] }
 0x502   : > { %v2882_v63 = vpop.f32.mrf.mxu2  ;;  %v13616_v7 = vld [vmem:[#allocation191_spill] sm:$0xff] }
 0x503   : > { %v2883_v45 = vadd.f32 %v2882_v63, %v2770_v48  ;;  %v2995_v28 = vpop.f32.mrf.mxu3  ;;  %v13611_v48 = vld [vmem:[#allocation97_spill] sm:$0xff]  ;;  %v2773_v63 = vadd.f32 %v9554_v8, %v2660_v19  ;;  %3485 = vmatpush.msrb.mxu0 %v1856_v56  ;;  %v1852_v8 = vld [vmem:[#allocation12 + $0x18] sm:$0xff] }
 0x504   : > { %v9926_v15 = vpop.f32.mrf.mxu0  ;;  %v1916_v19 = vld [vmem:[#allocation12 + $0x218] sm:$0xff] }
 0x505   : > { %v9930_v61 = vadd.f32 %v2995_v28, %v2883_v45  ;;  %v9932_v42 = vpop.f32.mrf.mxu1  ;;  %3486 = vmatpush.msrb.mxu0 %v1852_v8  ;;  %3599 = vmatpush.msrb.mxu1 %v1916_v19  ;;  %v13627_v8 = vld [vmem:[#allocation148_spill] sm:$0xff] }
 0x506   : > { %13607 = vst [vmem:[#allocation243_spill] sm:$0xff] %v9932_v42  ;;  %v2076_v19 = vld [vmem:[#allocation12 + $0x718] sm:$0xff] }
 0x507   : > { %13606 = vst [vmem:[#allocation242_spill] sm:$0xff] %v9930_v61  ;;  %5379 = vmatmul.msk.f32.gmra.mxu0 %vm13504_vm14, %v13608_v41  ;;  %5425 = vmatmul.msk.f32.gmra.mxu2 %vm13610_vm15, %v13609_v18  ;;  %v2663_v41 = vadd.f32 %v9569_v23, %v9399_v62  ;;  %v13620_v23 = vld [vmem:[#allocation29_spill] sm:$0xff] }
 0x508   : > { %5411 = vmatmul.msk.f32.gmra.mxu1 %vm13504_vm14, %v13611_v48  ;;  %5457 = vmatmul.msk.f32.gmra.mxu3 %vm13610_vm15, %v13612_v3  ;;  %vm13618_vm14 = vnez %v13617_v58 }
 0x509   : > { %v2776_v56 = vadd.f32 %v13621_v44, %v2663_v41  ;;  %v13626_v41 = vld [vmem:[#allocation192_spill] sm:$0xff]  ;;  %v13630_v44 = vld [vmem:[#allocation193_spill] sm:$0xff]  ;;  %3817 = vmatpush.msra.mxu3 %v2076_v19  ;;  %v13640_v19 = vld [vmem:[#allocation34_spill] sm:$0xff] }
 0x50a   : > { %v2885_v45 = vpop.f32.mrf.mxu2 }
 0x50b   : > { %v2886_v28 = vadd.f32 %v2885_v45, %v2773_v63  ;;  %v2998_v61 = vpop.f32.mrf.mxu3  ;;  %v13619_v63 = vld [vmem:[#allocation87_spill] sm:$0xff] }
 0x50c   : > { %v9947_v18 = vpop.f32.mrf.mxu0 }
 0x50d   : > { %v9951_v48 = vadd.f32 %v2998_v61, %v2886_v28  ;;  %v9953_v42 = vpop.f32.mrf.mxu1  ;;  %v2012_v61 = vld [vmem:[#allocation12 + $0x518] sm:$0xff] }
 0x50e   : > { %13614 = vst [vmem:[#allocation245_spill] sm:$0xff] %v9953_v42  ;;  %3704 = vmatpush.msra.mxu2 %v2012_v61  ;;  %v13629_v61 = vld [vmem:[#allocation31_spill] sm:$0xff] }
 0x50f   : > { %13613 = vst [vmem:[#allocation244_spill] sm:$0xff] %v9951_v48  ;;  %5380 = vmatmul.msk.f32.gmra.mxu0 %vm13512_vm5, %v13615_v17  ;;  %5426 = vmatmul.msk.f32.gmra.mxu2 %vm13618_vm14, %v13616_v7  ;;  %v13622_v7 = vld [vmem:[#allocation229_spill] sm:$0xff] }
 0x510   : > { %5412 = vmatmul.msk.f32.gmra.mxu1 %vm13512_vm5, %v13619_v63  ;;  %5458 = vmatmul.msk.f32.gmra.mxu3 %vm13618_vm14, %v13620_v23  ;;  %v2666_v17 = vadd.f32 %v13622_v7, %v9399_v62  ;;  %vm13628_vm5 = vnez %v13627_v8 }
 0x512   : > { %v2888_v45 = vpop.f32.mrf.mxu2 }
 0x513   : > { %v2889_v28 = vadd.f32 %v2888_v45, %v2776_v56  ;;  %v3001_v48 = vpop.f32.mrf.mxu3 }
 0x514   : > { %v9968_v3 = vpop.f32.mrf.mxu0 }
 0x515   : > { %v9972_v42 = vadd.f32 %v3001_v48, %v2889_v28  ;;  %v9974_v63 = vpop.f32.mrf.mxu1  ;;  %v13631_v48 = vld [vmem:[#allocation230_spill] sm:$0xff] }
 0x516   : > { %13624 = vst [vmem:[#allocation229_spill] sm:$0xff] %v9974_v63  ;;  %v2779_v7 = vadd.f32 %v13631_v48, %v2666_v17  ;;  %v13637_v63 = vld [vmem:[#allocation152_spill] sm:$0xff]  ;;  %v13639_v17 = vld [vmem:[#allocation93_spill] sm:$0xff] }
 0x517   : > { %13623 = vst [vmem:[#allocation228_spill] sm:$0xff] %v9972_v42  ;;  %5381 = vmatmul.msk.f32.gmra.mxu0 %vm13521_vm0, %v13625_v33  ;;  %5427 = vmatmul.msk.f32.gmra.mxu2 %vm13628_vm5, %v13626_v41  ;;  %v2669_v41 = vadd.f32 %v9611_v30, %v9399_v62  ;;  %v2008_v30 = vld [vmem:[#allocation12 + $0x4f8] sm:$0xff] }
 0x518   : > { %5413 = vmatmul.msk.f32.gmra.mxu1 %vm13521_vm0, %v13629_v61  ;;  %5459 = vmatmul.msk.f32.gmra.mxu3 %vm13628_vm5, %v13630_v44  ;;  %v13635_v61 = vld [vmem:[#allocation51_spill] sm:$0xff]  ;;  %vm13638_vm0 = vnez %v13637_v63  ;;  %v13641_v48 = vld [vmem:[#allocation48_spill] sm:$0xff] }
 0x519   : > { %v13636_v44 = vld [vmem:[#allocation195_spill] sm:$0xff]  ;;  %3705 = vmatpush.msra.mxu2 %v2008_v30  ;;  %v13650_v30 = vld [vmem:[#allocation197_spill] sm:$0xff] }
 0x51a   : > { %v2891_v56 = vpop.f32.mrf.mxu2 }
 0x51b   : > { %v2892_v45 = vadd.f32 %v2891_v56, %v2779_v7  ;;  %v3004_v28 = vpop.f32.mrf.mxu3  ;;  %v2782_v7 = vadd.f32 %v13641_v48, %v2669_v41  ;;  %v13649_v41 = vld [vmem:[#allocation37_spill] sm:$0xff] }
 0x51c   : > { %v9989_v42 = vpop.f32.mrf.mxu0 }
 0x51d   : > { %13632 = vst [vmem:[#allocation230_spill] sm:$0xff] %v9989_v42  ;;  %v9993_v23 = vadd.f32 %v3004_v28, %v2892_v45  ;;  %v9995_v33 = vpop.f32.mrf.mxu1  ;;  %v13647_v42 = vld [vmem:[#allocation156_spill] sm:$0xff] }
 0x51e   : > { %13634 = vst [vmem:[#allocation247_spill] sm:$0xff] %v9995_v33 }
 0x51f   : > { %13633 = vst [vmem:[#allocation246_spill] sm:$0xff] %v9993_v23  ;;  %5382 = vmatmul.msk.f32.gmra.mxu0 %vm13530_vm3, %v13635_v61  ;;  %5428 = vmatmul.msk.f32.gmra.mxu2 %vm13638_vm0, %v13636_v44  ;;  %v13642_v61 = vld [vmem:[#allocation182_spill] sm:$0xff] }
 0x520   : > { %5414 = vmatmul.msk.f32.gmra.mxu1 %vm13530_vm3, %v13639_v17  ;;  %5460 = vmatmul.msk.f32.gmra.mxu3 %vm13638_vm0, %v13640_v19  ;;  %v2672_v44 = vadd.f32 %v13642_v61, %v9399_v62  ;;  %v13645_v17 = vld [vmem:[#allocation52_spill] sm:$0xff]  ;;  %vm13648_vm3 = vnez %v13647_v42  ;;  %v13651_v61 = vld [vmem:[#allocation206_spill] sm:$0xff] }
 0x521   : > { %v13646_v19 = vld [vmem:[#allocation196_spill] sm:$0xff] }
 0x522   : > { %v2894_v56 = vpop.f32.mrf.mxu2  ;;  %v2785_v48 = vadd.f32 %v13651_v61, %v2672_v44  ;;  %v13658_v44 = vld [vmem:[#allocation199_spill] sm:$0xff]  ;;  %v13659_v61 = vld [vmem:[#allocation108_spill] sm:$0xff] }
 0x523   : > { %v2895_v45 = vadd.f32 %v2894_v56, %v2782_v7  ;;  %v3007_v28 = vpop.f32.mrf.mxu3 }
 0x524   : > { %v10010_v23 = vpop.f32.mrf.mxu0 }
 0x525   : > { %v10014_v33 = vadd.f32 %v3007_v28, %v2895_v45  ;;  %v10016_v5 = vpop.f32.mrf.mxu1 }
 0x526   : > { %13644 = vst [vmem:[#allocation182_spill] sm:$0xff] %v10016_v5  ;;  %v13655_v5 = vld [vmem:[#allocation198_spill] sm:$0xff] }
 0x527   : > { %13643 = vst [vmem:[#allocation48_spill] sm:$0xff] %v10014_v33  ;;  %5383 = vmatmul.msk.f32.gmra.mxu0 %vm13539_vm2, %v13645_v17  ;;  %5429 = vmatmul.msk.f32.gmra.mxu2 %vm13648_vm3, %v13646_v19  ;;  %v2675_v33 = vadd.f32 %v9653_v20, %v9399_v62  ;;  %v2072_v20 = vld [vmem:[#allocation12 + $0x6f8] sm:$0xff] }
 0x528   : > { %5415 = vmatmul.msk.f32.gmra.mxu1 %vm13539_vm2, %v13649_v41  ;;  %5461 = vmatmul.msk.f32.gmra.mxu3 %vm13648_vm3, %v13650_v30  ;;  %vm13656_vm2 = vnez %v12881_v26  ;;  %v13657_v41 = vld [vmem:[#allocation106_spill] sm:$0xff] }
 0x529   : > { %3818 = vmatpush.msra.mxu3 %v2072_v20  ;;  %v13669_v20 = vld [vmem:[#allocation216_spill] sm:$0xff] }
 0x52a   : > { %v2897_v7 = vpop.f32.mrf.mxu2 }
 0x52b   : > { %v2898_v56 = vadd.f32 %v2897_v7, %v2785_v48  ;;  %v3010_v45 = vpop.f32.mrf.mxu3  ;;  %v2788_v48 = vadd.f32 %v9659_v10, %v2675_v33  ;;  %v13666_v33 = vld [vmem:[#allocation201_spill] sm:$0xff]  ;;  %v13667_v10 = vld [vmem:[#allocation112_spill] sm:$0xff]  ;;  %3819 = vmatpush.msra.mxu3 %v2068_v54  ;;  %v13683_v54 = vld [vmem:[#allocation118_spill] sm:$0xff] }
 0x52c   : > { %v10031_v28 = vpop.f32.mrf.mxu0 }
 0x52d   : > { %13652 = vst [vmem:[#allocation206_spill] sm:$0xff] %v10031_v28  ;;  %v10035_v17 = vadd.f32 %v3010_v45, %v2898_v56  ;;  %v10037_v19 = vpop.f32.mrf.mxu1  ;;  %v13663_v28 = vld [vmem:[#allocation200_spill] sm:$0xff]  ;;  %3820 = vmatpush.msra.mxu3 %v2064_v37  ;;  %v13702_v37 = vld [vmem:[#allocation205_spill] sm:$0xff] }
 0x52e   : > { %13654 = vst [vmem:[#allocation249_spill] sm:$0xff] %v10037_v19 }
 0x52f   : > { %13653 = vst [vmem:[#allocation248_spill] sm:$0xff] %v10035_v17  ;;  %5430 = vmatmul.msk.f32.gmra.mxu2 %vm13656_vm2, %v13655_v5  ;;  %5480 = vmatmul.msk.f32.vlgmr.msrb.gmra.mxu0 %vm13547_vm1, %v13657_v41  ;;  %v13660_v5 = vld [vmem:[#allocation212_spill] sm:$0xff] }
 0x530   : > { %5462 = vmatmul.msk.f32.gmra.mxu3 %vm13656_vm2, %v13658_v44  ;;  %5512 = vmatmul.msk.f32.vlgmr.msrb.gmra.mxu1 %vm13547_vm1, %v13659_v61  ;;  %v2678_v30 = vadd.f32 %v13660_v5, %v9399_v62  ;;  %v2004_v44 = vld [vmem:[#allocation12 + $0x4d8] sm:$0xff]  ;;  %vm13664_vm1 = vnez %v12889_v24  ;;  %v13665_v61 = vld [vmem:[#allocation110_spill] sm:$0xff] }
 0x531   : > { %v13668_v62 = vld [vmem:[#allocation231_spill] sm:$0xff]  ;;  %3706 = vmatpush.msra.mxu2 %v2004_v44  ;;  %v13674_v44 = vld [vmem:[#allocation114_spill] sm:$0xff] }
 0x532   : > { %v2900_v7 = vpop.f32.mrf.mxu2  ;;  %v2791_v5 = vadd.f32 %v13668_v62, %v2678_v30  ;;  %v4194_v30 = vld [vmem:[%s12094_s6 + $0x78] sm:$0xff] }
 0x533   : > { %v2901_v56 = vadd.f32 %v2900_v7, %v2788_v48  ;;  %v3013_v45 = vpop.f32.mrf.mxu3  ;;  %v10074_v48 = vperm.slane %v13669_v20, 2  ;;  %v13673_v62 = vld [vmem:[#allocation107_spill] sm:$0xff]  ;;  %v13676_v20 = vld [vmem:[#allocation116_spill] sm:$0xff]  ;;  %4211 = vmatpush.msra.mxu0 %v4194_v30 }
 0x534   : > { %v10052_v17 = vpop.f32.mrf.mxu0  ;;  %v13685_v30 = vld [vmem:[#allocation119_spill] sm:$0xff] }
 0x535   : > { %v10056_v41 = vadd.f32 %v3013_v45, %v2901_v56  ;;  %v10058_v19 = vpop.f32.mrf.mxu1 }
 0x536   : > { %13662 = vst [vmem:[#allocation250_spill] sm:$0xff] %v10058_v19 }
 0x537   : > { %13661 = vst [vmem:[#allocation212_spill] sm:$0xff] %v10056_v41  ;;  %5431 = vmatmul.msk.f32.gmra.mxu2 %vm13664_vm1, %v13663_v28  ;;  %5481 = vmatmul.msk.f32.gmra.mxu0 %vm13553_vm7, %v13665_v61  ;;  %v3037_v28 = vadd.f32 %v9695_v11, %v10074_v48  ;;  %v4210_v11 = vld [vmem:[%s12094_s6 + $0xf8] sm:$0xff] }
 0x538   : > { %5463 = vmatmul.msk.f32.gmra.mxu3 %vm13664_vm1, %v13666_v33  ;;  %5513 = vmatmul.msk.f32.gmra.mxu1 %vm13553_vm7, %v13667_v10 }
 0x539   : > { %4324 = vmatpush.msra.mxu1 %v4210_v11 }
 0x53a   : > { %v2903_v7 = vpop.f32.mrf.mxu2 }
 0x53b   : > { %v2904_v56 = vadd.f32 %v2903_v7, %v2791_v5  ;;  %v3016_v45 = vpop.f32.mrf.mxu3  ;;  %v13675_v5 = vld [vmem:[#allocation202_spill] sm:$0xff]  ;;  %v13677_v7 = vld [vmem:[#allocation232_spill] sm:$0xff] }
 0x53c   : > { %v10076_v41 = vpop.f32.mrf.mxu0 }
 0x53d   : > { %13670 = vst [vmem:[#allocation231_spill] sm:$0xff] %v10076_v41  ;;  %v10080_v61 = vadd.f32 %v3016_v45, %v2904_v56  ;;  %v10082_v33 = vpop.f32.mrf.mxu1  ;;  %v3150_v56 = vadd.f32 %v13677_v7, %v3037_v28  ;;  %v13684_v28 = vld [vmem:[#allocation203_spill] sm:$0xff] }
 0x53e   : > { %13672 = vst [vmem:[#allocation251_spill] sm:$0xff] %v10082_v33 }
 0x53f   : > { %13671 = vst [vmem:[#allocation216_spill] sm:$0xff] %v10080_v61  ;;  %5432 = vmatmul.msk.f32.gmra.mxu2 %vm13417_vm4, %v13673_v62  ;;  %5482 = vmatmul.msk.f32.gmra.mxu0 %vm13559_vm6, %v13674_v44  ;;  %v13678_v44 = vld [vmem:[#allocation214_spill] sm:$0xff] }
 0x540   : > { %5464 = vmatmul.msk.f32.gmra.mxu3 %vm13417_vm4, %v13675_v5  ;;  %5514 = vmatmul.msk.f32.gmra.mxu1 %vm13559_vm6, %v13676_v20  ;;  %v3040_v33 = vadd.f32 %v13678_v44, %v10074_v48  ;;  %v2000_v5 = vld [vmem:[#allocation12 + $0x4b8] sm:$0xff] }
 0x541   : > { %v13681_v20 = vld [vmem:[#allocation99_spill] sm:$0xff]  ;;  %3707 = vmatpush.msra.mxu2 %v2000_v5 }
 0x542   : > { %v3262_v45 = vpop.f32.mrf.mxu2  ;;  %vm13682_vm6 = vnez %v13681_v20  ;;  %v13690_v5 = vld [vmem:[#allocation115_spill] sm:$0xff] }
 0x543   : > { %v3263_v10 = vadd.f32 %v3262_v45, %v3150_v56  ;;  %v3375_v61 = vpop.f32.mrf.mxu3 }
 0x544   : > { %v10103_v62 = vpop.f32.mrf.mxu0 }
 0x545   : > { %v3376_v41 = vadd.f32 %v3375_v61, %v3263_v10  ;;  %v10107_v19 = vpop.f32.mrf.mxu1  ;;  %v13686_v61 = vld [vmem:[#allocation36_spill] sm:$0xff]  ;;  %v13687_v10 = vld [vmem:[#allocation234_spill] sm:$0xff] }
 0x546   : > { %13679 = vst [vmem:[#allocation232_spill] sm:$0xff] %v10107_v19 }
 0x547   : > { %5912 = vtanh.f32 %v3376_v41  ;;  %5433 = vmatmul.msk.f32.gmra.mxu2 %vm13682_vm6, %v13680_v53  ;;  %5483 = vmatmul.msk.f32.gmra.mxu0 %vm13568_vm9, %v13683_v54  ;;  %v3153_v41 = vadd.f32 %v13687_v10, %v3040_v33  ;;  %v3043_v53 = vadd.f32 %v9737_v57, %v10074_v48  ;;  %v13692_v10 = vld [vmem:[#allocation121_spill] sm:$0xff] }
 0x548   : > { %5465 = vmatmul.msk.f32.gmra.mxu3 %vm13682_vm6, %v13684_v28  ;;  %5515 = vmatmul.msk.f32.gmra.mxu1 %vm13568_vm9, %v13685_v30  ;;  %5914 = vtanh.f32 %v13686_v61  ;;  %v4193_v61 = vld [vmem:[%s12094_s6 + $0x70] sm:$0xff]  ;;  %vm13691_vm9 = vnez %v13431_v27  ;;  %v14011_v27 = vld [vmem:[#allocation95_spill] sm:$0xff] }
 0x549   : > { %v4209_v57 = vld [vmem:[%s12094_s6 + $0xf0] sm:$0xff]  ;;  %4212 = vmatpush.msra.mxu0 %v4193_v61 }
 0x54a   : > { %v3265_v44 = vpop.f32.mrf.mxu2  ;;  %4325 = vmatpush.msra.mxu1 %v4209_v57  ;;  %v13705_v61 = vld [vmem:[#allocation42_spill] sm:$0xff] }
 0x54b   : > { %v3266_v11 = vadd.f32 %v3265_v44, %v3153_v41  ;;  %v3378_v7 = vpop.f32.mrf.mxu3  ;;  %v13694_v44 = vld [vmem:[#allocation204_spill] sm:$0xff] }
 0x54c   : > { %v10123_v56 = vpop.f32.mrf.mxu0 }
 0x54d   : > { %13688 = vst [vmem:[#allocation214_spill] sm:$0xff] %v10123_v56  ;;  %v5913_v45 = vpop.eup %5912  ;;  %v3379_v54 = vadd.f32 %v3378_v7, %v3266_v11  ;;  %v10127_v28 = vpop.f32.mrf.mxu1  ;;  %v13695_v11 = vld [vmem:[#allocation122_spill] sm:$0xff]  ;;  %v3156_v7 = vadd.f32 %v9743_v40, %v3043_v53  ;;  %v1996_v56 = vld [vmem:[#allocation12 + $0x498] sm:$0xff] }
 0x54e   : > { %13689 = vst [vmem:[#allocation36_spill] sm:$0xff] %v10127_v28  ;;  %v4051_v19 = vadd.f32 1.0, %v5913_v45  ;;  %v5915_v33 = vpop.eup %5914  ;;  %v13699_v53 = vld [vmem:[#allocation40_spill] sm:$0xff]  ;;  %3708 = vmatpush.msra.mxu2 %v1996_v56  ;;  %v13708_v56 = vld [vmem:[#allocation43_spill] sm:$0xff] }
 0x54f   : > { %5916 = vtanh.f32 %v3379_v54  ;;  %5434 = vmatmul.msk.f32.gmra.mxu2 %vm13691_vm9, %v13690_v5  ;;  %5484 = vmatmul.msk.f32.gmra.mxu0 %vm13575_vm8, %v13692_v10  ;;  %v13696_v54 = vld [vmem:[#allocation39_spill] sm:$0xff]  ;;  %v13701_v40 = vld [vmem:[#allocation124_spill] sm:$0xff] }
 0x550   : > { %v10141_v41 = vmul.f32 %v5915_v33, %v4051_v19  ;;  %5466 = vmatmul.msk.f32.gmra.mxu3 %vm13691_vm9, %v13694_v44  ;;  %5516 = vmatmul.msk.f32.gmra.mxu1 %vm13575_vm8, %v13695_v11  ;;  %5918 = vtanh.f32 %v13696_v54  ;;  %v3046_v44 = vadd.f32 %v9758_v21, %v10074_v48  ;;  %vm13700_vm8 = vnez %v12929_v34  ;;  %v13703_v21 = vld [vmem:[#allocation125_spill] sm:$0xff] }
 0x552   : > { %13693 = vst [vmem:[#allocation234_spill] sm:$0xff] %v10141_v41  ;;  %v3268_v45 = vpop.f32.mrf.mxu2 }
 0x553   : > { %v3269_v30 = vadd.f32 %v3268_v45, %v3156_v7  ;;  %v3381_v5 = vpop.f32.mrf.mxu3 }
 0x554   : > { %v10151_v19 = vpop.f32.mrf.mxu0 }
 0x555   : > { %13697 = vst [vmem:[#allocation121_spill] sm:$0xff] %v10151_v19  ;;  %v5917_v33 = vpop.eup %5916  ;;  %v3382_v41 = vadd.f32 %v3381_v5, %v3269_v30  ;;  %v10155_v28 = vpop.f32.mrf.mxu1  ;;  %v3159_v5 = vadd.f32 %v9764_v2, %v3046_v44  ;;  %v13710_v44 = vld [vmem:[#allocation127_spill] sm:$0xff] }
 0x556   : > { %13698 = vst [vmem:[#allocation39_spill] sm:$0xff] %v10155_v28  ;;  %v4053_v11 = vadd.f32 1.0, %v5917_v33  ;;  %v5919_v54 = vpop.eup %5918 }
 0x557   : > { %5920 = vtanh.f32 %v3382_v41  ;;  %5435 = vmatmul.msk.f32.gmra.mxu2 %vm13700_vm8, %v13699_v53  ;;  %5485 = vmatmul.msk.f32.gmra.mxu0 %vm13582_vm11, %v13701_v40 }
 0x558   : > { %5467 = vmatmul.msk.f32.gmra.mxu3 %vm13700_vm8, %v13702_v37  ;;  %5517 = vmatmul.msk.f32.gmra.mxu1 %vm13582_vm11, %v13703_v21  ;;  %v10169_v30 = vmul.f32 %v5919_v54, %v4053_v11  ;;  %5922 = vtanh.f32 %v13705_v61  ;;  %v3049_v37 = vadd.f32 %v9779_v1, %v10074_v48  ;;  %v2060_v11 = vld [vmem:[#allocation12 + $0x698] sm:$0xff]  ;;  %v4192_v54 = vld [vmem:[%s12094_s6 + $0x68] sm:$0xff]  ;;  %vm13709_vm11 = vnez %v13154_v43  ;;  %v13711_v61 = vld [vmem:[#allocation22_spill] sm:$0xff] }
 0x559   : > { %v4208_v1 = vld [vmem:[%s12094_s6 + $0xe8] sm:$0xff]  ;;  %3821 = vmatpush.msra.mxu3 %v2060_v11  ;;  %4213 = vmatpush.msra.mxu0 %v4192_v54  ;;  %v13720_v11 = vld [vmem:[#allocation131_spill] sm:$0xff] }
 0x55a   : > { %13704 = vst [vmem:[#allocation124_spill] sm:$0xff] %v10169_v30  ;;  %v3271_v57 = vpop.f32.mrf.mxu2  ;;  %4326 = vmatpush.msra.mxu1 %v4208_v1  ;;  %v13721_v54 = vld [vmem:[#allocation76_spill] sm:$0xff] }
 0x55b   : > { %v3272_v41 = vadd.f32 %v3271_v57, %v3159_v5  ;;  %v3384_v7 = vpop.f32.mrf.mxu3  ;;  %v13712_v5 = vld [vmem:[#allocation129_spill] sm:$0xff] }
 0x55c   : > { %v10173_v45 = vpop.f32.mrf.mxu0  ;;  %v13714_v57 = vld [vmem:[#allocation21_spill] sm:$0xff] }
 0x55d   : > { %13706 = vst [vmem:[#allocation42_spill] sm:$0xff] %v10173_v45  ;;  %v5921_v33 = vpop.eup %5920  ;;  %v3385_v53 = vadd.f32 %v3384_v7, %v3272_v41  ;;  %v10177_v28 = vpop.f32.mrf.mxu1  ;;  %v3162_v41 = vadd.f32 %v9785_v16, %v3049_v37  ;;  %v13717_v16 = vld [vmem:[#allocation46_spill] sm:$0xff]  ;;  %v13718_v37 = vld [vmem:[#allocation27_spill] sm:$0xff] }
 0x55e   : > { %13707 = vst [vmem:[#allocation252_spill] sm:$0xff] %v10177_v28  ;;  %v4055_v21 = vadd.f32 1.0, %v5921_v33  ;;  %v5923_v2 = vpop.eup %5922 }
 0x55f   : > { %5924 = vtanh.f32 %v3385_v53  ;;  %5436 = vmatmul.msk.f32.gmra.mxu2 %vm13709_vm11, %v13708_v56  ;;  %5486 = vmatmul.msk.f32.gmra.mxu0 %vm13589_vm10, %v13710_v44 }
 0x560   : > { %5468 = vmatmul.msk.f32.gmra.mxu3 %vm13709_vm11, %v13711_v61  ;;  %5518 = vmatmul.msk.f32.gmra.mxu1 %vm13589_vm10, %v13712_v5  ;;  %v10197_v53 = vmul.f32 %v5923_v2, %v4055_v21  ;;  %5926 = vtanh.f32 %v13714_v57  ;;  %v3052_v61 = vadd.f32 %v9800_v22, %v10074_v48  ;;  %v1992_v2 = vld [vmem:[#allocation12 + $0x478] sm:$0xff]  ;;  %vm13719_vm10 = vnez %v13718_v37  ;;  %v13722_v22 = vld [vmem:[#allocation133_spill] sm:$0xff] }
 0x561   : > { %3709 = vmatpush.msra.mxu2 %v1992_v2  ;;  %v13728_v2 = vld [vmem:[#allocation18_spill] sm:$0xff]  ;;  %vm13767_vm11 = vnez %v13492_v0 }
 0x562   : > { %13713 = vst [vmem:[#allocation127_spill] sm:$0xff] %v10197_v53  ;;  %v3274_v7 = vpop.f32.mrf.mxu2 }
 0x563   : > { %v3275_v33 = vadd.f32 %v3274_v7, %v3162_v41  ;;  %v3387_v56 = vpop.f32.mrf.mxu3 }
 0x564   : > { %v10201_v30 = vpop.f32.mrf.mxu0 }
 0x565   : > { %13715 = vst [vmem:[#allocation21_spill] sm:$0xff] %v10201_v30  ;;  %v5925_v28 = vpop.eup %5924  ;;  %v3388_v45 = vadd.f32 %v3387_v56, %v3275_v33  ;;  %v10205_v5 = vpop.f32.mrf.mxu1  ;;  %v13724_v56 = vld [vmem:[#allocation65_spill] sm:$0xff] }
 0x566   : > { %13716 = vst [vmem:[#allocation253_spill] sm:$0xff] %v10205_v5  ;;  %v4057_v21 = vadd.f32 1.0, %v5925_v28  ;;  %v5927_v57 = vpop.eup %5926 }
 0x567   : > { %5928 = vtanh.f32 %v3388_v45  ;;  %5437 = vmatmul.msk.f32.gmra.mxu2 %vm13719_vm10, %v13717_v16  ;;  %5487 = vmatmul.msk.f32.gmra.mxu0 %vm13596_vm13, %v13720_v11  ;;  %v13725_v45 = vld [vmem:[#allocation237_spill] sm:$0xff] }
 0x568   : > { %5469 = vmatmul.msk.f32.gmra.mxu3 %vm13719_vm10, %v13721_v54  ;;  %5519 = vmatmul.msk.f32.gmra.mxu1 %vm13596_vm13, %v13722_v22  ;;  %v10219_v28 = vmul.f32 %v5927_v57, %v4057_v21  ;;  %5930 = vtanh.f32 %v13724_v56  ;;  %v3165_v1 = vadd.f32 %v13725_v45, %v3052_v61  ;;  %v3055_v54 = vadd.f32 %v9821_v60, %v10074_v48  ;;  %v2056_v21 = vld [vmem:[#allocation12 + $0x678] sm:$0xff]  ;;  %v13732_v45 = vld [vmem:[#allocation138_spill] sm:$0xff] }
 0x569   : > { %v4191_v57 = vld [vmem:[%s12094_s6 + $0x60] sm:$0xff]  ;;  %vm13729_vm10 = vnez %v13177_v50  ;;  %3822 = vmatpush.msra.mxu3 %v2056_v21  ;;  %vm13757_vm13 = vnez %v13482_v35 }
 0x56a   : > { %13723 = vst [vmem:[#allocation131_spill] sm:$0xff] %v10219_v28  ;;  %v3277_v41 = vpop.f32.mrf.mxu2  ;;  %v13730_v56 = vld [vmem:[#allocation136_spill] sm:$0xff]  ;;  %4214 = vmatpush.msra.mxu0 %v4191_v57  ;;  %v13740_v21 = vld [vmem:[#allocation71_spill] sm:$0xff]  ;;  %v13743_v57 = vld [vmem:[#allocation69_spill] sm:$0xff] }
 0x56b   : > { %v3278_v7 = vadd.f32 %v3277_v41, %v3165_v1  ;;  %v3390_v33 = vpop.f32.mrf.mxu3  ;;  %v4207_v60 = vld [vmem:[%s12094_s6 + $0xe0] sm:$0xff]  ;;  %v13734_v1 = vld [vmem:[#allocation50_spill] sm:$0xff]  ;;  %v3168_v41 = vadd.f32 %v9827_v38, %v3055_v54  ;;  %v13739_v54 = vld [vmem:[#allocation141_spill] sm:$0xff] }
 0x56c   : > { %v10223_v16 = vpop.f32.mrf.mxu0  ;;  %4327 = vmatpush.msra.mxu1 %v4207_v60  ;;  %v13737_v38 = vld [vmem:[#allocation132_spill] sm:$0xff] }
 0x56d   : > { %13726 = vst [vmem:[#allocation65_spill] sm:$0xff] %v10223_v16  ;;  %v5929_v53 = vpop.eup %5928  ;;  %v3391_v5 = vadd.f32 %v3390_v33, %v3278_v7  ;;  %v10227_v30 = vpop.f32.mrf.mxu1 }
 0x56e   : > { %13727 = vst [vmem:[#allocation237_spill] sm:$0xff] %v10227_v30  ;;  %v4059_v22 = vadd.f32 1.0, %v5929_v53  ;;  %v5931_v61 = vpop.eup %5930  ;;  %v13731_v53 = vld [vmem:[#allocation207_spill] sm:$0xff] }
 0x56f   : > { %5932 = vtanh.f32 %v3391_v5  ;;  %5438 = vmatmul.msk.f32.gmra.mxu2 %vm13729_vm10, %v13728_v2  ;;  %5488 = vmatmul.msk.f32.gmra.mxu0 %vm13603_vm12, %v13730_v56 }
 0x570   : > { %5470 = vmatmul.msk.f32.gmra.mxu3 %vm13729_vm10, %v13731_v53  ;;  %5520 = vmatmul.msk.f32.gmra.mxu1 %vm13603_vm12, %v13732_v45  ;;  %v10247_v5 = vmul.f32 %v5931_v61, %v4059_v22  ;;  %5934 = vtanh.f32 %v13734_v1  ;;  %v3058_v53 = vadd.f32 %v9842_v12, %v10074_v48  ;;  %v1988_v61 = vld [vmem:[#allocation12 + $0x458] sm:$0xff]  ;;  %vm13738_vm10 = vnez %v13191_v29 }
 0x571   : > { %v13741_v12 = vld [vmem:[#allocation143_spill] sm:$0xff]  ;;  %3710 = vmatpush.msra.mxu2 %v1988_v61  ;;  %v13747_v61 = vld [vmem:[#allocation81_spill] sm:$0xff] }
 0x572   : > { %13733 = vst [vmem:[#allocation136_spill] sm:$0xff] %v10247_v5  ;;  %v3280_v7 = vpop.f32.mrf.mxu2 }
 0x573   : > { %v3281_v33 = vadd.f32 %v3280_v7, %v3168_v41  ;;  %v3393_v2 = vpop.f32.mrf.mxu3 }
 0x574   : > { %v10251_v28 = vpop.f32.mrf.mxu0 }
 0x575   : > { %13735 = vst [vmem:[#allocation50_spill] sm:$0xff] %v10251_v28  ;;  %v5933_v30 = vpop.eup %5932  ;;  %v3394_v16 = vadd.f32 %v3393_v2, %v3281_v33  ;;  %v10255_v45 = vpop.f32.mrf.mxu1 }
 0x576   : > { %13736 = vst [vmem:[#allocation254_spill] sm:$0xff] %v10255_v45  ;;  %v4061_v22 = vadd.f32 1.0, %v5933_v30  ;;  %v5935_v1 = vpop.eup %5934 }
 0x577   : > { %5936 = vtanh.f32 %v3394_v16  ;;  %5439 = vmatmul.msk.f32.gmra.mxu2 %vm13738_vm10, %v13737_v38  ;;  %5489 = vmatmul.msk.f32.gmra.mxu0 %vm13610_vm15, %v13739_v54  ;;  %v13744_v16 = vld [vmem:[#allocation239_spill] sm:$0xff] }
 0x578   : > { %5471 = vmatmul.msk.f32.gmra.mxu3 %vm13738_vm10, %v13740_v21  ;;  %5521 = vmatmul.msk.f32.gmra.mxu1 %vm13610_vm15, %v13741_v12  ;;  %v10269_v30 = vmul.f32 %v5935_v1, %v4061_v22  ;;  %5938 = vtanh.f32 %v13743_v57  ;;  %v3171_v2 = vadd.f32 %v13744_v16, %v3058_v53  ;;  %v3061_v21 = vadd.f32 %v9863_v51, %v10074_v48  ;;  %v2052_v22 = vld [vmem:[#allocation12 + $0x658] sm:$0xff]  ;;  %v13749_v57 = vld [vmem:[#allocation145_spill] sm:$0xff] }
 0x579   : > { %v4190_v1 = vld [vmem:[%s12094_s6 + $0x58] sm:$0xff]  ;;  %vm13748_vm10 = vnez %v13205_v14  ;;  %3823 = vmatpush.msra.mxu3 %v2052_v22 }
 0x57a   : > { %13742 = vst [vmem:[#allocation141_spill] sm:$0xff] %v10269_v30  ;;  %v3283_v60 = vpop.f32.mrf.mxu2  ;;  %v4206_v51 = vld [vmem:[%s12094_s6 + $0xd8] sm:$0xff]  ;;  %4215 = vmatpush.msra.mxu0 %v4190_v1  ;;  %v13762_v1 = vld [vmem:[#allocation84_spill] sm:$0xff] }
 0x57b   : > { %v3284_v41 = vadd.f32 %v3283_v60, %v3171_v2  ;;  %v3396_v7 = vpop.f32.mrf.mxu3  ;;  %v13751_v16 = vld [vmem:[#allocation147_spill] sm:$0xff]  ;;  %v13753_v2 = vld [vmem:[#allocation173_spill] sm:$0xff]  ;;  %v3174_v60 = vadd.f32 %v9869_v31, %v3061_v21  ;;  %4328 = vmatpush.msra.mxu1 %v4206_v51  ;;  %v13756_v31 = vld [vmem:[#allocation74_spill] sm:$0xff] }
 0x57c   : > { %v10273_v33 = vpop.f32.mrf.mxu0  ;;  %v13758_v21 = vld [vmem:[#allocation149_spill] sm:$0xff]  ;;  %v13759_v22 = vld [vmem:[#allocation75_spill] sm:$0xff] }
 0x57d   : > { %13745 = vst [vmem:[#allocation69_spill] sm:$0xff] %v10273_v33  ;;  %v5937_v38 = vpop.eup %5936  ;;  %v3397_v5 = vadd.f32 %v3396_v7, %v3284_v41  ;;  %v10277_v45 = vpop.f32.mrf.mxu1 }
 0x57e   : > { %13746 = vst [vmem:[#allocation239_spill] sm:$0xff] %v10277_v45  ;;  %v4063_v12 = vadd.f32 1.0, %v5937_v38  ;;  %v5939_v53 = vpop.eup %5938  ;;  %v13750_v38 = vld [vmem:[#allocation72_spill] sm:$0xff] }
 0x57f   : > { %5940 = vtanh.f32 %v3397_v5  ;;  %5440 = vmatmul.msk.f32.gmra.mxu2 %vm13748_vm10, %v13747_v61  ;;  %5490 = vmatmul.msk.f32.gmra.mxu0 %vm13618_vm14, %v13749_v57 }
 0x580   : > { %5472 = vmatmul.msk.f32.gmra.mxu3 %vm13748_vm10, %v13750_v38  ;;  %5522 = vmatmul.msk.f32.gmra.mxu1 %vm13618_vm14, %v13751_v16  ;;  %v10297_v5 = vmul.f32 %v5939_v53, %v4063_v12  ;;  %5942 = vtanh.f32 %v13753_v2  ;;  %v3064_v38 = vadd.f32 %v9884_v46, %v10074_v48  ;;  %v1984_v53 = vld [vmem:[#allocation12 + $0x438] sm:$0xff]  ;;  %vm13776_vm10 = vnez %v13503_v55 }
 0x581   : > { %v13760_v46 = vld [vmem:[#allocation151_spill] sm:$0xff]  ;;  %3711 = vmatpush.msra.mxu2 %v1984_v53  ;;  %v13766_v53 = vld [vmem:[#allocation53_spill] sm:$0xff] }
 0x582   : > { %13752 = vst [vmem:[#allocation145_spill] sm:$0xff] %v10297_v5  ;;  %v3286_v41 = vpop.f32.mrf.mxu2 }
 0x583   : > { %v3287_v7 = vadd.f32 %v3286_v41, %v3174_v60  ;;  %v3399_v61 = vpop.f32.mrf.mxu3 }
 0x584   : > { %v10301_v30 = vpop.f32.mrf.mxu0 }
 0x585   : > { %13754 = vst [vmem:[#allocation173_spill] sm:$0xff] %v10301_v30  ;;  %v5941_v45 = vpop.eup %5940  ;;  %v3400_v33 = vadd.f32 %v3399_v61, %v3287_v7  ;;  %v10305_v16 = vpop.f32.mrf.mxu1 }
 0x586   : > { %13755 = vst [vmem:[#allocation255_spill] sm:$0xff] %v10305_v16  ;;  %v4065_v12 = vadd.f32 1.0, %v5941_v45  ;;  %v5943_v2 = vpop.eup %5942 }
 0x587   : > { %5944 = vtanh.f32 %v3400_v33  ;;  %5441 = vmatmul.msk.f32.gmra.mxu2 %vm13757_vm13, %v13756_v31  ;;  %5491 = vmatmul.msk.f32.gmra.mxu0 %vm13628_vm5, %v13758_v21  ;;  %v13763_v33 = vld [vmem:[#allocation241_spill] sm:$0xff] }
 0x588   : > { %5473 = vmatmul.msk.f32.gmra.mxu3 %vm13757_vm13, %v13759_v22  ;;  %5523 = vmatmul.msk.f32.gmra.mxu1 %vm13628_vm5, %v13760_v46  ;;  %v10319_v45 = vmul.f32 %v5943_v2, %v4065_v12  ;;  %5946 = vtanh.f32 %v13762_v1  ;;  %v3177_v61 = vadd.f32 %v13763_v33, %v3064_v38  ;;  %v3067_v22 = vadd.f32 %v9905_v39, %v10074_v48  ;;  %v2048_v12 = vld [vmem:[#allocation12 + $0x638] sm:$0xff]  ;;  %v4189_v2 = vld [vmem:[%s12094_s6 + $0x50] sm:$0xff] }
 0x589   : > { %v13768_v1 = vld [vmem:[#allocation153_spill] sm:$0xff]  ;;  %v13770_v33 = vld [vmem:[#allocation155_spill] sm:$0xff]  ;;  %3824 = vmatpush.msra.mxu3 %v2048_v12  ;;  %4216 = vmatpush.msra.mxu0 %v4189_v2  ;;  %v13781_v2 = vld [vmem:[#allocation150_spill] sm:$0xff]  ;;  %vm13797_vm13 = vnez %v13262_v59 }
 0x58a   : > { %13761 = vst [vmem:[#allocation149_spill] sm:$0xff] %v10319_v45  ;;  %v3289_v51 = vpop.f32.mrf.mxu2  ;;  %v4205_v39 = vld [vmem:[%s12094_s6 + $0xd0] sm:$0xff]  ;;  %v13778_v12 = vld [vmem:[#allocation55_spill] sm:$0xff] }
 0x58b   : > { %v3290_v60 = vadd.f32 %v3289_v51, %v3177_v61  ;;  %v3402_v41 = vpop.f32.mrf.mxu3  ;;  %v13772_v61 = vld [vmem:[#allocation77_spill] sm:$0xff]  ;;  %v3180_v51 = vadd.f32 %v9911_v4, %v3067_v22  ;;  %4329 = vmatpush.msra.mxu1 %v4205_v39  ;;  %v13775_v4 = vld [vmem:[#allocation80_spill] sm:$0xff] }
 0x58c   : > { %v10323_v7 = vpop.f32.mrf.mxu0  ;;  %v13777_v22 = vld [vmem:[#allocation157_spill] sm:$0xff] }
 0x58d   : > { %13764 = vst [vmem:[#allocation84_spill] sm:$0xff] %v10323_v7  ;;  %v5945_v31 = vpop.eup %5944  ;;  %v3403_v5 = vadd.f32 %v3402_v41, %v3290_v60  ;;  %v10327_v16 = vpop.f32.mrf.mxu1 }
 0x58e   : > { %13765 = vst [vmem:[#allocation241_spill] sm:$0xff] %v10327_v16  ;;  %v4067_v46 = vadd.f32 1.0, %v5945_v31  ;;  %v5947_v38 = vpop.eup %5946  ;;  %v13769_v31 = vld [vmem:[#allocation78_spill] sm:$0xff] }
 0x58f   : > { %5948 = vtanh.f32 %v3403_v5  ;;  %5442 = vmatmul.msk.f32.gmra.mxu2 %vm13767_vm11, %v13766_v53  ;;  %5492 = vmatmul.msk.f32.gmra.mxu0 %vm13638_vm0, %v13768_v1 }
 0x590   : > { %5474 = vmatmul.msk.f32.gmra.mxu3 %vm13767_vm11, %v13769_v31  ;;  %5524 = vmatmul.msk.f32.gmra.mxu1 %vm13638_vm0, %v13770_v33  ;;  %v10347_v5 = vmul.f32 %v5947_v38, %v4067_v46  ;;  %5950 = vtanh.f32 %v13772_v61  ;;  %v3070_v31 = vadd.f32 %v9926_v15, %v10074_v48  ;;  %v1980_v38 = vld [vmem:[#allocation12 + $0x418] sm:$0xff] }
 0x591   : > { %v13779_v15 = vld [vmem:[#allocation159_spill] sm:$0xff]  ;;  %3712 = vmatpush.msra.mxu2 %v1980_v38  ;;  %v4204_v38 = vld [vmem:[%s12094_s6 + $0xc8] sm:$0xff] }
 0x592   : > { %13771 = vst [vmem:[#allocation153_spill] sm:$0xff] %v10347_v5  ;;  %v3292_v60 = vpop.f32.mrf.mxu2  ;;  %4330 = vmatpush.msra.mxu1 %v4204_v38  ;;  %v13800_v38 = vld [vmem:[#allocation167_spill] sm:$0xff] }
 0x593   : > { %v3293_v41 = vadd.f32 %v3292_v60, %v3180_v51  ;;  %v3405_v53 = vpop.f32.mrf.mxu3 }
 0x594   : > { %v10351_v45 = vpop.f32.mrf.mxu0 }
 0x595   : > { %13773 = vst [vmem:[#allocation77_spill] sm:$0xff] %v10351_v45  ;;  %v5949_v16 = vpop.eup %5948  ;;  %v3406_v7 = vadd.f32 %v3405_v53, %v3293_v41  ;;  %v10355_v33 = vpop.f32.mrf.mxu1 }
 0x596   : > { %13774 = vst [vmem:[#allocation256_spill] sm:$0xff] %v10355_v33  ;;  %v4069_v46 = vadd.f32 1.0, %v5949_v16  ;;  %v5951_v61 = vpop.eup %5950 }
 0x597   : > { %5952 = vtanh.f32 %v3406_v7  ;;  %5443 = vmatmul.msk.f32.gmra.mxu2 %vm13776_vm10, %v13775_v4  ;;  %5493 = vmatmul.msk.f32.gmra.mxu0 %vm13648_vm3, %v13777_v22  ;;  %v13782_v7 = vld [vmem:[#allocation243_spill] sm:$0xff] }
 0x598   : > { %5475 = vmatmul.msk.f32.gmra.mxu3 %vm13776_vm10, %v13778_v12  ;;  %5525 = vmatmul.msk.f32.gmra.mxu1 %vm13648_vm3, %v13779_v15  ;;  %v10369_v16 = vmul.f32 %v5951_v61, %v4069_v46  ;;  %5954 = vtanh.f32 %v13781_v2  ;;  %v3183_v53 = vadd.f32 %v13782_v7, %v3070_v31  ;;  %v3073_v12 = vadd.f32 %v9947_v18, %v10074_v48  ;;  %v2044_v15 = vld [vmem:[#allocation12 + $0x618] sm:$0xff]  ;;  %v4188_v31 = vld [vmem:[%s12094_s6 + $0x48] sm:$0xff]  ;;  %v13786_v7 = vld [vmem:[#allocation190_spill] sm:$0xff] }
 0x599   : > { %3825 = vmatpush.msra.mxu3 %v2044_v15  ;;  %v13785_v2 = vld [vmem:[#allocation83_spill] sm:$0xff]  ;;  %vm13787_vm12 = vnez %v13786_v7  ;;  %v13788_v18 = vld [vmem:[#allocation161_spill] sm:$0xff]  ;;  %4217 = vmatpush.msra.mxu0 %v4188_v31  ;;  %v13799_v31 = vld [vmem:[#allocation158_spill] sm:$0xff] }
 0x59a   : > { %13780 = vst [vmem:[#allocation157_spill] sm:$0xff] %v10369_v16  ;;  %v3295_v39 = vpop.f32.mrf.mxu2  ;;  %v13790_v15 = vld [vmem:[#allocation163_spill] sm:$0xff] }
 0x59b   : > { %v3296_v51 = vadd.f32 %v3295_v39, %v3183_v53  ;;  %v3408_v60 = vpop.f32.mrf.mxu3  ;;  %v13792_v39 = vld [vmem:[#allocation154_spill] sm:$0xff] }
 0x59c   : > { %v10373_v41 = vpop.f32.mrf.mxu0 }
 0x59d   : > { %13783 = vst [vmem:[#allocation150_spill] sm:$0xff] %v10373_v41  ;;  %v5953_v4 = vpop.eup %5952  ;;  %v3409_v5 = vadd.f32 %v3408_v60, %v3296_v51  ;;  %v10377_v33 = vpop.f32.mrf.mxu1 }
 0x59e   : > { %13784 = vst [vmem:[#allocation243_spill] sm:$0xff] %v10377_v33  ;;  %v4071_v46 = vadd.f32 1.0, %v5953_v4  ;;  %v5955_v61 = vpop.eup %5954  ;;  %v13789_v4 = vld [vmem:[#allocation188_spill] sm:$0xff] }
 0x59f   : > { %5956 = vtanh.f32 %v3409_v5  ;;  %5444 = vmatmul.msk.f32.gmra.mxu2 %vm13787_vm12, %v13785_v2  ;;  %5494 = vmatmul.msk.f32.gmra.mxu0 %vm13656_vm2, %v13788_v18  ;;  %v13793_v5 = vld [vmem:[#allocation245_spill] sm:$0xff] }
 0x5a0   : > { %5476 = vmatmul.msk.f32.gmra.mxu3 %vm13787_vm12, %v13789_v4  ;;  %5526 = vmatmul.msk.f32.gmra.mxu1 %vm13656_vm2, %v13790_v15  ;;  %v10397_v53 = vmul.f32 %v5955_v61, %v4071_v46  ;;  %5958 = vtanh.f32 %v13792_v39  ;;  %v3186_v51 = vadd.f32 %v13793_v5, %v3073_v12  ;;  %v3076_v4 = vadd.f32 %v9968_v3, %v10074_v48  ;;  %v13796_v39 = vld [vmem:[#allocation56_spill] sm:$0xff]  ;;  %v13798_v12 = vld [vmem:[#allocation165_spill] sm:$0xff] }
 0x5a2   : > { %13791 = vst [vmem:[#allocation161_spill] sm:$0xff] %v10397_v53  ;;  %v3298_v60 = vpop.f32.mrf.mxu2 }
 0x5a3   : > { %v3299_v2 = vadd.f32 %v3298_v60, %v3186_v51  ;;  %v3411_v16 = vpop.f32.mrf.mxu3 }
 0x5a4   : > { %v10401_v33 = vpop.f32.mrf.mxu0 }
 0x5a5   : > { %13794 = vst [vmem:[#allocation154_spill] sm:$0xff] %v10401_v33  ;;  %v5957_v41 = vpop.eup %5956  ;;  %v3412_v45 = vadd.f32 %v3411_v16, %v3299_v2  ;;  %v10405_v30 = vpop.f32.mrf.mxu1  ;;  %v13802_v16 = vld [vmem:[#allocation86_spill] sm:$0xff] }
 0x5a6   : > { %13795 = vst [vmem:[#allocation245_spill] sm:$0xff] %v10405_v30  ;;  %v4073_v46 = vadd.f32 1.0, %v5957_v41  ;;  %v5959_v61 = vpop.eup %5958 }
 0x5a7   : > { %5960 = vtanh.f32 %v3412_v45  ;;  %5445 = vmatmul.msk.f32.gmra.mxu2 %vm13797_vm13, %v13796_v39  ;;  %5495 = vmatmul.msk.f32.gmra.mxu0 %vm13664_vm1, %v13798_v12  ;;  %v13803_v45 = vld [vmem:[#allocation229_spill] sm:$0xff]  ;;  %v13805_v39 = vld [vmem:[#allocation230_spill] sm:$0xff] }
 0x5a8   : > { %5477 = vmatmul.msk.f32.gmra.mxu3 %vm13797_vm13, %v13799_v31  ;;  %5527 = vmatmul.msk.f32.gmra.mxu1 %vm13664_vm1, %v13800_v38  ;;  %v10419_v3 = vmul.f32 %v5959_v61, %v4073_v46  ;;  %5962 = vtanh.f32 %v13802_v16  ;;  %v3189_v41 = vadd.f32 %v13803_v45, %v3076_v4  ;;  %v3079_v53 = vadd.f32 %v13805_v39, %v10074_v48  ;;  %v4187_v46 = vld [vmem:[%s12094_s6 + $0x40] sm:$0xff]  ;;  %v13807_v16 = vld [vmem:[#allocation57_spill] sm:$0xff]  ;;  %v13808_v45 = vld [vmem:[#allocation194_spill] sm:$0xff] }
 0x5a9   : > { %v4203_v4 = vld [vmem:[%s12094_s6 + $0xc0] sm:$0xff]  ;;  %vm13809_vm15 = vnez %v13808_v45  ;;  %v13811_v39 = vld [vmem:[#allocation162_spill] sm:$0xff]  ;;  %4218 = vmatpush.msra.mxu0 %v4187_v46 }
 0x5aa   : > { %13801 = vst [vmem:[#allocation165_spill] sm:$0xff] %v10419_v3  ;;  %v3301_v2 = vpop.f32.mrf.mxu2  ;;  %4331 = vmatpush.msra.mxu1 %v4203_v4  ;;  %v13822_v46 = vld [vmem:[#allocation59_spill] sm:$0xff] }
 0x5ab   : > { %v3302_v5 = vadd.f32 %v3301_v2, %v3189_v41  ;;  %v3414_v51 = vpop.f32.mrf.mxu3  ;;  %v13810_v41 = vld [vmem:[#allocation169_spill] sm:$0xff] }
 0x5ac   : > { %v10423_v60 = vpop.f32.mrf.mxu0 }
 0x5ad   : > { %13804 = vst [vmem:[#allocation86_spill] sm:$0xff] %v10423_v60  ;;  %v5961_v15 = vpop.eup %5960  ;;  %v3415_v31 = vadd.f32 %v3414_v51, %v3302_v5  ;;  %v10427_v30 = vpop.f32.mrf.mxu1  ;;  %v13814_v5 = vld [vmem:[#allocation89_spill] sm:$0xff] }
 0x5ae   : > { %13806 = vst [vmem:[#allocation229_spill] sm:$0xff] %v10427_v30  ;;  %v4075_v33 = vadd.f32 1.0, %v5961_v15  ;;  %v5963_v61 = vpop.eup %5962  ;;  %v13812_v15 = vld [vmem:[#allocation170_spill] sm:$0xff] }
 0x5af   : > { %5964 = vtanh.f32 %v3415_v31  ;;  %5446 = vmatmul.msk.f32.gmra.mxu2 %vm13809_vm15, %v13807_v16  ;;  %5496 = vmatmul.msk.f32.gmra.mxu0 %vm13417_vm4, %v13810_v41  ;;  %v13815_v31 = vld [vmem:[#allocation247_spill] sm:$0xff] }
 0x5b0   : > { %5478 = vmatmul.msk.f32.gmra.mxu3 %vm13809_vm15, %v13811_v39  ;;  %5528 = vmatmul.msk.f32.gmra.mxu1 %vm13417_vm4, %v13812_v15  ;;  %v10447_v2 = vmul.f32 %v5963_v61, %v4075_v33  ;;  %5966 = vtanh.f32 %v13814_v5  ;;  %v3192_v51 = vadd.f32 %v13815_v31, %v3079_v53  ;;  %v3082_v39 = vadd.f32 %v10010_v23, %v10074_v48  ;;  %v13818_v5 = vld [vmem:[#allocation90_spill] sm:$0xff]  ;;  %v13820_v53 = vld [vmem:[#allocation100_spill] sm:$0xff] }
 0x5b1   : > { %vm13819_vm4 = vnez %v13279_v49 }
 0x5b2   : > { %13813 = vst [vmem:[#allocation230_spill] sm:$0xff] %v10447_v2  ;;  %v3304_v38 = vpop.f32.mrf.mxu2 }
 0x5b3   : > { %v3305_v16 = vadd.f32 %v3304_v38, %v3192_v51  ;;  %v3417_v3 = vpop.f32.mrf.mxu3  ;;  %v13821_v38 = vld [vmem:[#allocation92_spill] sm:$0xff] }
 0x5b4   : > { %v10451_v30 = vpop.f32.mrf.mxu0 }
 0x5b5   : > { %13816 = vst [vmem:[#allocation194_spill] sm:$0xff] %v10451_v30  ;;  %v5965_v60 = vpop.eup %5964  ;;  %v3418_v28 = vadd.f32 %v3417_v3, %v3305_v16  ;;  %v10455_v19 = vpop.f32.mrf.mxu1  ;;  %v13824_v3 = vld [vmem:[#allocation58_spill] sm:$0xff] }
 0x5b6   : > { %13817 = vst [vmem:[#allocation169_spill] sm:$0xff] %v10455_v19  ;;  %v4077_v33 = vadd.f32 1.0, %v5965_v60  ;;  %v5967_v61 = vpop.eup %5966 }
 0x5b7   : > { %5968 = vtanh.f32 %v3418_v28  ;;  %5447 = vmatmul.msk.f32.gmra.mxu2 %vm13819_vm4, %v13818_v5  ;;  %5497 = vmatmul.msk.f32.gmra.mxu0 %vm13682_vm6, %v13820_v53  ;;  %v13825_v28 = vld [vmem:[#allocation182_spill] sm:$0xff] }
 0x5b8   : > { %5479 = vmatmul.msk.f32.gmra.mxu3 %vm13819_vm4, %v13821_v38  ;;  %5529 = vmatmul.msk.f32.gmra.mxu1 %vm13682_vm6, %v13822_v46  ;;  %v10469_v23 = vmul.f32 %v5967_v61, %v4077_v33  ;;  %5970 = vtanh.f32 %v13824_v3  ;;  %v3195_v60 = vadd.f32 %v13825_v28, %v3082_v39  ;;  %v13826_v5 = vld [vmem:[#allocation206_spill] sm:$0xff]  ;;  %v13827_v33 = vld [vmem:[#allocation19_spill] sm:$0xff]  ;;  %vm13829_vm6 = vnez %v13289_v9 }
 0x5b9   : > { %v3085_v2 = vadd.f32 %v13826_v5, %v10074_v48  ;;  %v13828_v39 = vld [vmem:[#allocation67_spill] sm:$0xff]  ;;  %v13833_v28 = vld [vmem:[#allocation166_spill] sm:$0xff] }
 0x5ba   : > { %13823 = vst [vmem:[#allocation89_spill] sm:$0xff] %v10469_v23  ;;  %v3307_v4 = vpop.f32.mrf.mxu2  ;;  %v4186_v61 = vld [vmem:[%s12094_s6 + $0x38] sm:$0xff] }
 0x5bb   : > { %v3308_v16 = vadd.f32 %v3307_v4, %v3195_v60  ;;  %v3420_v31 = vpop.f32.mrf.mxu3  ;;  %v4202_v5 = vld [vmem:[%s12094_s6 + $0xb8] sm:$0xff]  ;;  %v13834_v60 = vld [vmem:[#allocation249_spill] sm:$0xff]  ;;  %4219 = vmatpush.msra.mxu0 %v4186_v61 }
 0x5bc   : > { %v10473_v51 = vpop.f32.mrf.mxu0  ;;  %v13830_v3 = vld [vmem:[#allocation103_spill] sm:$0xff]  ;;  %v3198_v4 = vadd.f32 %v13834_v60, %v3085_v2  ;;  %4332 = vmatpush.msra.mxu1 %v4202_v5  ;;  %v3088_v60 = vadd.f32 %v10052_v17, %v10074_v48  ;;  %v13838_v61 = vld [vmem:[#allocation49_spill] sm:$0xff] }
 0x5bd   : > { %v5969_v15 = vpop.eup %5968  ;;  %v3421_v38 = vadd.f32 %v3420_v31, %v3308_v16  ;;  %v10477_v19 = vpop.f32.mrf.mxu1  ;;  %v13835_v16 = vld [vmem:[#allocation52_spill] sm:$0xff]  ;;  %v13841_v17 = vld [vmem:[#allocation61_spill] sm:$0xff] }
 0x5be   : > { %v4079_v30 = vadd.f32 1.0, %v5969_v15  ;;  %v5971_v46 = vpop.eup %5970  ;;  %v13831_v15 = vld [vmem:[#allocation104_spill] sm:$0xff] }
 0x5bf   : > { %5972 = vtanh.f32 %v3421_v38  ;;  %5498 = vmatmul.msk.f32.gmra.mxu0 %vm13691_vm9, %v13827_v33  ;;  %5544 = vmatmul.msk.f32.vlgmr.msra.gmra.mxu2 %vm13829_vm6, %v13828_v39  ;;  %v13846_v39 = vld [vmem:[#allocation62_spill] sm:$0xff] }
 0x5c0   : > { %5530 = vmatmul.msk.f32.gmra.mxu1 %vm13691_vm9, %v13830_v3  ;;  %5576 = vmatmul.msk.f32.vlgmr.msra.gmra.mxu3 %vm13829_vm6, %v13831_v15  ;;  %v10497_v38 = vmul.f32 %v5971_v46, %v4079_v30  ;;  %5974 = vtanh.f32 %v13833_v28  ;;  %v13836_v30 = vld [vmem:[#allocation51_spill] sm:$0xff] }
 0x5c1   : > { %5608 = vmatpush.msk.msra.mxu2 %vm13664_vm1, %v13798_v12  ;;  %5624 = vmatpush.msk.msra.mxu3 %vm13819_vm4, %v13835_v16  ;;  %v13848_v3 = vld [vmem:[#allocation63_spill] sm:$0xff]  ;;  %vm13854_vm1 = vnez %v13361_v32  ;;  %vm13859_vm4 = vnez %v13205_v14 }
 0x5c2   : > { %13832 = vst [vmem:[#allocation247_spill] sm:$0xff] %v10497_v38  ;;  %v3310_v31 = vpop.f32.mrf.mxu2  ;;  %v13849_v38 = vld [vmem:[#allocation44_spill] sm:$0xff] }
 0x5c3   : > { %5609 = vmatpush.msk.msra.mxu2 %vm13656_vm2, %v13788_v18  ;;  %5625 = vmatpush.msk.msra.mxu3 %vm13809_vm15, %v13836_v30  ;;  %v3311_v2 = vadd.f32 %v3310_v31, %v3198_v4  ;;  %v3423_v46 = vpop.f32.mrf.mxu3  ;;  %v13840_v31 = vld [vmem:[#allocation47_spill] sm:$0xff]  ;;  %vm13856_vm2 = vnez %v13482_v35 }
 0x5c4   : > { %v10513_v28 = vpop.f32.mrf.mxu0 }
 0x5c5   : > { %13837 = vst [vmem:[#allocation100_spill] sm:$0xff] %v10513_v28  ;;  %v5973_v12 = vpop.eup %5972  ;;  %v3424_v15 = vadd.f32 %v3423_v46, %v3311_v2  ;;  %5610 = vmatpush.msk.msra.mxu2 %vm13648_vm3, %v13777_v22  ;;  %5626 = vmatpush.msk.msra.mxu3 %vm13797_vm13, %v13838_v61  ;;  %v10523_v18 = vpop.f32.mrf.mxu1  ;;  %v13842_v22 = vld [vmem:[#allocation70_spill] sm:$0xff]  ;;  %v13844_v46 = vld [vmem:[#allocation96_spill] sm:$0xff]  ;;  %vm13857_vm3 = vnez %v13350_v47  ;;  %vm13872_vm13 = vnez %v13191_v29 }
 0x5c6   : > { %13839 = vst [vmem:[#allocation58_spill] sm:$0xff] %v10523_v18  ;;  %v4081_v5 = vadd.f32 1.0, %v5973_v12  ;;  %v5975_v4 = vpop.eup %5974 }
 0x5c7   : > { %5976 = vtanh.f32 %v3424_v15  ;;  %5611 = vmatpush.msk.msra.mxu2 %vm13638_vm0, %v13768_v1  ;;  %5627 = vmatpush.msk.msra.mxu3 %vm13787_vm12, %v13840_v31  ;;  %v13845_v15 = vld [vmem:[#allocation250_spill] sm:$0xff]  ;;  %vm13864_vm0 = vnez %v13154_v43  ;;  %vm13876_vm12 = vnez %v13177_v50 }
 0x5c8   : > { %5499 = vmatmul.msk.f32.gmra.mxu0 %vm13700_vm8, %v13841_v17  ;;  %5531 = vmatmul.msk.f32.gmra.mxu1 %vm13700_vm8, %v13842_v22  ;;  %v10537_v2 = vmul.f32 %v5975_v4, %v4081_v5  ;;  %5978 = vtanh.f32 %v13844_v46  ;;  %v3201_v12 = vadd.f32 %v13845_v15, %v3088_v60  ;;  %v13850_v60 = vld [vmem:[#allocation41_spill] sm:$0xff] }
 0x5c9   : > { %5545 = vmatmul.msk.f32.gmra.mxu2 %vm13553_vm7, %v13846_v39  ;;  %5577 = vmatmul.msk.f32.gmra.mxu3 %vm13553_vm7, %v13848_v3 }
 0x5ca   : > { %13843 = vst [vmem:[#allocation182_spill] sm:$0xff] %v10537_v2  ;;  %5612 = vmatpush.msk.msra.mxu2 %vm13628_vm5, %v13758_v21  ;;  %5628 = vmatpush.msk.msra.mxu3 %vm13776_vm10, %v13849_v38  ;;  %v3313_v5 = vpop.f32.mrf.mxu2  ;;  %v13852_v21 = vld [vmem:[#allocation231_spill] sm:$0xff]  ;;  %vm13870_vm5 = vnez %v12827_v25  ;;  %vm13879_vm10 = vnez %v13718_v37 }
 0x5cb   : > { %v3314_v4 = vadd.f32 %v3313_v5, %v3201_v12  ;;  %v3426_v46 = vpop.f32.mrf.mxu3  ;;  %v3091_v39 = vadd.f32 %v13852_v21, %v10074_v48  ;;  %v13855_v12 = vld [vmem:[#allocation38_spill] sm:$0xff]  ;;  %v13862_v21 = vld [vmem:[#allocation251_spill] sm:$0xff] }
 0x5cc   : > { %5613 = vmatpush.msk.msra.mxu2 %vm13618_vm14, %v13749_v57  ;;  %5629 = vmatpush.msk.msra.mxu3 %vm13767_vm11, %v13850_v60  ;;  %v10559_v15 = vpop.f32.mrf.mxu0  ;;  %v4185_v57 = vld [vmem:[%s12094_s6 + $0x30] sm:$0xff]  ;;  %vm13874_vm14 = vnez %v12819_v6 }
 0x5cd   : > { %13851 = vst [vmem:[#allocation206_spill] sm:$0xff] %v10559_v15  ;;  %v5977_v3 = vpop.eup %5976  ;;  %v3427_v22 = vadd.f32 %v3426_v46, %v3314_v4  ;;  %v10563_v2 = vpop.f32.mrf.mxu1  ;;  %v4201_v5 = vld [vmem:[%s12094_s6 + $0xb0] sm:$0xff]  ;;  %4220 = vmatpush.msra.mxu0 %v4185_v57  ;;  %v13863_v15 = vld [vmem:[#allocation23_spill] sm:$0xff] }
 0x5ce   : > { %13853 = vst [vmem:[#allocation19_spill] sm:$0xff] %v10563_v2  ;;  %v4083_v23 = vadd.f32 1.0, %v5977_v3  ;;  %5614 = vmatpush.msk.msra.mxu2 %vm13854_vm1, %v13739_v54  ;;  %5630 = vmatpush.msk.msra.mxu3 %vm13856_vm2, %v13855_v12  ;;  %v5979_v4 = vpop.eup %5978  ;;  %v13858_v54 = vld [vmem:[#allocation35_spill] sm:$0xff]  ;;  %v13861_v46 = vld [vmem:[#allocation98_spill] sm:$0xff]  ;;  %v3204_v2 = vadd.f32 %v13862_v21, %v3091_v39  ;;  %v13866_v57 = vld [vmem:[#allocation73_spill] sm:$0xff]  ;;  %vm13877_vm1 = vnez %v12810_v36 }
 0x5cf   : > { %5980 = vtanh.f32 %v3427_v22  ;;  %4333 = vmatpush.msra.mxu1 %v4201_v5  ;;  %v13865_v22 = vld [vmem:[#allocation24_spill] sm:$0xff]  ;;  %v13869_v5 = vld [vmem:[#allocation17_spill] sm:$0xff] }
 0x5d0   : > { %5615 = vmatpush.msk.msra.mxu2 %vm13857_vm3, %v13730_v56  ;;  %5631 = vmatpush.msk.msra.mxu3 %vm13859_vm4, %v13858_v54  ;;  %v10583_v3 = vmul.f32 %v5979_v4, %v4083_v23  ;;  %5982 = vtanh.f32 %v13861_v46  ;;  %v13867_v56 = vld [vmem:[#allocation113_spill] sm:$0xff]  ;;  %v13871_v39 = vld [vmem:[#allocation32_spill] sm:$0xff]  ;;  %vm13882_vm3 = vnez %v12980_v13 }
 0x5d1   : > { %5500 = vmatmul.msk.f32.gmra.mxu0 %vm13864_vm0, %v13863_v15  ;;  %5532 = vmatmul.msk.f32.gmra.mxu1 %vm13864_vm0, %v13865_v22  ;;  %vm13868_vm15 = vnez %v13867_v56 }
 0x5d2   : > { %13860 = vst [vmem:[#allocation166_spill] sm:$0xff] %v10583_v3  ;;  %5546 = vmatmul.msk.f32.gmra.mxu2 %vm13868_vm15, %v13866_v57  ;;  %5578 = vmatmul.msk.f32.gmra.mxu3 %vm13868_vm15, %v13869_v5  ;;  %v3316_v23 = vpop.f32.mrf.mxu2  ;;  %v3094_v57 = vadd.f32 %v10103_v62, %v10074_v48  ;;  %v13875_v5 = vld [vmem:[#allocation68_spill] sm:$0xff] }
 0x5d3   : > { %5616 = vmatpush.msk.msra.mxu2 %vm13870_vm5, %v13720_v11  ;;  %5632 = vmatpush.msk.msra.mxu3 %vm13872_vm13, %v13871_v39  ;;  %v3317_v4 = vadd.f32 %v3316_v23, %v3204_v2  ;;  %v3429_v46 = vpop.f32.mrf.mxu3  ;;  %v13878_v23 = vld [vmem:[#allocation25_spill] sm:$0xff] }
 0x5d4   : > { %v10605_v21 = vpop.f32.mrf.mxu0 }
 0x5d5   : > { %13873 = vst [vmem:[#allocation249_spill] sm:$0xff] %v10605_v21  ;;  %v5981_v22 = vpop.eup %5980  ;;  %5617 = vmatpush.msk.msra.mxu2 %vm13874_vm14, %v13710_v44  ;;  %5633 = vmatpush.msk.msra.mxu3 %vm13876_vm12, %v13875_v5  ;;  %v3430_v11 = vadd.f32 %v3429_v46, %v3317_v4  ;;  %v10615_v3 = vpop.f32.mrf.mxu1  ;;  %v13880_v44 = vld [vmem:[#allocation101_spill] sm:$0xff]  ;;  %v13881_v21 = vld [vmem:[#allocation232_spill] sm:$0xff] }
 0x5d6   : > { %v4085_v18 = vadd.f32 1.0, %v5981_v22  ;;  %v5983_v2 = vpop.eup %5982  ;;  %v3207_v28 = vadd.f32 %v13881_v21, %v3094_v57  ;;  %v13884_v22 = vld [vmem:[#allocation26_spill] sm:$0xff]  ;;  %v13885_v4 = vld [vmem:[#allocation117_spill] sm:$0xff]  ;;  %v13887_v57 = vld [vmem:[#allocation79_spill] sm:$0xff] }
 0x5d7   : > { %5984 = vtanh.f32 %v3430_v11  ;;  %5618 = vmatpush.msk.msra.mxu2 %vm13877_vm1, %v13701_v40  ;;  %5634 = vmatpush.msk.msra.mxu3 %vm13879_vm10, %v13878_v23  ;;  %v13883_v40 = vld [vmem:[#allocation66_spill] sm:$0xff]  ;;  %vm13886_vm11 = vnez %v13885_v4 }
 0x5d8   : > { %v10623_v62 = vmul.f32 %v5983_v2, %v4085_v18  ;;  %5986 = vtanh.f32 %v13880_v44  ;;  %v13889_v2 = vld [vmem:[#allocation214_spill] sm:$0xff] }
 0x5d9   : > { %5619 = vmatpush.msk.msra.mxu2 %vm13882_vm3, %v13692_v10  ;;  %5635 = vmatpush.msk.msra.mxu3 %vm13864_vm0, %v13863_v15  ;;  %v13888_v15 = vld [vmem:[#allocation118_spill] sm:$0xff] }
 0x5da   : > { %5501 = vmatmul.msk.f32.gmra.mxu0 %vm13879_vm10, %v13878_v23  ;;  %5533 = vmatmul.msk.f32.gmra.mxu1 %vm13879_vm10, %v13883_v40  ;;  %v3319_v18 = vpop.f32.mrf.mxu2  ;;  %v3097_v23 = vadd.f32 %v13889_v2, %v10074_v48  ;;  %v13901_v40 = vld [vmem:[#allocation33_spill] sm:$0xff] }
 0x5db   : > { %5547 = vmatmul.msk.f32.gmra.mxu2 %vm13886_vm11, %v13884_v22  ;;  %5579 = vmatmul.msk.f32.gmra.mxu3 %vm13886_vm11, %v13887_v57  ;;  %v3320_v10 = vadd.f32 %v3319_v18, %v3207_v28  ;;  %v3432_v46 = vpop.f32.mrf.mxu3  ;;  %v13890_v28 = vld [vmem:[#allocation114_spill] sm:$0xff]  ;;  %v4200_v18 = vld [vmem:[%s12094_s6 + $0xa8] sm:$0xff] }
 0x5dc   : > { %5620 = vmatpush.msk.msra.mxu2 %vm13886_vm11, %v13888_v15  ;;  %5636 = vmatpush.msk.msra.mxu3 %vm13700_vm8, %v13841_v17  ;;  %v10651_v21 = vpop.f32.mrf.mxu0  ;;  %v4184_v17 = vld [vmem:[%s12094_s6 + $0x28] sm:$0xff]  ;;  %vm13892_vm11 = vnez %v13681_v20  ;;  %v13893_v15 = vld [vmem:[#allocation30_spill] sm:$0xff] }
 0x5dd   : > { %v5985_v11 = vpop.eup %5984  ;;  %v3433_v44 = vadd.f32 %v3432_v46, %v3320_v10  ;;  %v10655_v22 = vpop.f32.mrf.mxu1  ;;  %4221 = vmatpush.msra.mxu0 %v4184_v17  ;;  %4334 = vmatpush.msra.mxu1 %v4200_v18  ;;  %v13891_v46 = vld [vmem:[#allocation110_spill] sm:$0xff]  ;;  %v13899_v18 = vld [vmem:[#allocation172_spill] sm:$0xff] }
 0x5de   : > { %v4087_v57 = vadd.f32 1.0, %v5985_v11  ;;  %5621 = vmatpush.msk.msra.mxu2 %vm13868_vm15, %v13890_v28  ;;  %5637 = vmatpush.msk.msra.mxu3 %vm13691_vm9, %v13827_v33  ;;  %v5987_v10 = vpop.eup %5986  ;;  %v13894_v11 = vld [vmem:[#allocation36_spill] sm:$0xff]  ;;  %v13895_v28 = vld [vmem:[#allocation106_spill] sm:$0xff]  ;;  %vm13896_vm15 = vnez %v12895_v52 }
 0x5df   : > { %5988 = vtanh.f32 %v3433_v44  ;;  %v3210_v2 = vadd.f32 %v13894_v11, %v3097_v23  ;;  %v13898_v23 = vld [vmem:[#allocation171_spill] sm:$0xff] }
 0x5e0   : > { %5622 = vmatpush.msk.msra.mxu2 %vm13553_vm7, %v13891_v46  ;;  %5638 = vmatpush.msk.msra.mxu3 %vm13892_vm11, %v13820_v53  ;;  %v10675_v33 = vmul.f32 %v5987_v10, %v4087_v57  ;;  %5990 = vtanh.f32 %v13893_v15  ;;  %v13897_v53 = vld [vmem:[#allocation82_spill] sm:$0xff]  ;;  %v13900_v46 = vld [vmem:[#allocation121_spill] sm:$0xff]  ;;  %vm13945_vm7 = vnez %v13617_v58 }
 0x5e2   : > { %5623 = vmatpush.msk.msra.mxu2 %vm13829_vm6, %v13895_v28  ;;  %5639 = vmatpush.msk.msra.mxu3 %vm13896_vm15, %v13810_v41  ;;  %v3322_v44 = vpop.f32.mrf.mxu2  ;;  %vm13963_vm6 = vnez %v13637_v63 }
 0x5e3   : > { %5502 = vmatmul.msk.f32.gmra.mxu0 %vm13876_vm12, %v13875_v5  ;;  %5534 = vmatmul.msk.f32.gmra.mxu1 %vm13876_vm12, %v13897_v53  ;;  %v3323_v57 = vadd.f32 %v3322_v44, %v3210_v2  ;;  %v3435_v17 = vpop.f32.mrf.mxu3  ;;  %v3100_v5 = vadd.f32 %v13900_v46, %v10074_v48  ;;  %v13905_v46 = vld [vmem:[#allocation175_spill] sm:$0xff] }
 0x5e4   : > { %5548 = vmatmul.msk.f32.gmra.mxu2 %vm13882_vm3, %v13898_v23  ;;  %5580 = vmatmul.msk.f32.gmra.mxu3 %vm13882_vm3, %v13899_v18  ;;  %v10697_v41 = vpop.f32.mrf.mxu0  ;;  %v13902_v23 = vld [vmem:[#allocation39_spill] sm:$0xff]  ;;  %v13903_v18 = vld [vmem:[#allocation85_spill] sm:$0xff]  ;;  %vm13954_vm3 = vnez %v13627_v8 }
 0x5e5   : > { %v5989_v10 = vpop.eup %5988  ;;  %v3436_v15 = vadd.f32 %v3435_v17, %v3323_v57  ;;  %v10701_v11 = vpop.f32.mrf.mxu1  ;;  %v3213_v53 = vadd.f32 %v13902_v23, %v3100_v5  ;;  %v13906_v5 = vld [vmem:[#allocation42_spill] sm:$0xff] }
 0x5e6   : > { %v4089_v28 = vadd.f32 1.0, %v5989_v10  ;;  %v5991_v2 = vpop.eup %5990  ;;  %v13904_v10 = vld [vmem:[#allocation174_spill] sm:$0xff] }
 0x5e7   : > { %5992 = vtanh.f32 %v3436_v15 }
 0x5e8   : > { %v10703_v44 = vmul.f32 %v5991_v2, %v4089_v28  ;;  %5994 = vtanh.f32 %v13901_v40 }
 0x5ea   : > { %v3325_v4 = vpop.f32.mrf.mxu2 }
 0x5eb   : > { %5503 = vmatmul.msk.f32.gmra.mxu0 %vm13872_vm13, %v13871_v39  ;;  %5535 = vmatmul.msk.f32.gmra.mxu1 %vm13872_vm13, %v13903_v18  ;;  %v3326_v57 = vadd.f32 %v3325_v4, %v3213_v53  ;;  %v3438_v17 = vpop.f32.mrf.mxu3  ;;  %v3103_v39 = vadd.f32 %v13906_v5, %v10074_v48  ;;  %v4183_v4 = vld [vmem:[%s12094_s6 + $0x20] sm:$0xff] }
 0x5ec   : > { %5549 = vmatmul.msk.f32.gmra.mxu2 %vm13877_vm1, %v13904_v10  ;;  %5581 = vmatmul.msk.f32.gmra.mxu3 %vm13877_vm1, %v13905_v46  ;;  %v10719_v40 = vpop.f32.mrf.mxu0  ;;  %v4199_v53 = vld [vmem:[%s12094_s6 + $0xa0] sm:$0xff]  ;;  %vm13936_vm1 = vnez %v13361_v32 }
 0x5ed   : > { %v5993_v23 = vpop.eup %5992  ;;  %v3439_v15 = vadd.f32 %v3438_v17, %v3326_v57  ;;  %v10723_v28 = vpop.f32.mrf.mxu1  ;;  %4222 = vmatpush.msra.mxu0 %v4183_v4  ;;  %4335 = vmatpush.msra.mxu1 %v4199_v53  ;;  %v13908_v18 = vld [vmem:[#allocation208_spill] sm:$0xff] }
 0x5ee   : > { %v4091_v2 = vadd.f32 1.0, %v5993_v23  ;;  %v5995_v10 = vpop.eup %5994  ;;  %v13909_v57 = vld [vmem:[#allocation252_spill] sm:$0xff] }
 0x5ef   : > { %5996 = vtanh.f32 %v3439_v15  ;;  %v3216_v17 = vadd.f32 %v13909_v57, %v3103_v39  ;;  %v13910_v23 = vld [vmem:[#allocation88_spill] sm:$0xff]  ;;  %v13911_v15 = vld [vmem:[#allocation177_spill] sm:$0xff] }
 0x5f0   : > { %v10731_v46 = vmul.f32 %v5995_v10, %v4091_v2  ;;  %5998 = vtanh.f32 %v13908_v18  ;;  %v13912_v10 = vld [vmem:[#allocation178_spill] sm:$0xff]  ;;  %v13913_v2 = vld [vmem:[#allocation21_spill] sm:$0xff]  ;;  %v4179_v32 = vld [vmem:[%s12094_s6] sm:$0xff] }
 0x5f2   : > { %13907 = vst [vmem:[#allocation52_spill] sm:$0xff] %v10731_v46  ;;  %v3328_v5 = vpop.f32.mrf.mxu2  ;;  %v13995_v46 = vld [vmem:[#allocation127_spill] sm:$0xff] }
 0x5f3   : > { %5504 = vmatmul.msk.f32.gmra.mxu0 %vm13859_vm4, %v13858_v54  ;;  %5536 = vmatmul.msk.f32.gmra.mxu1 %vm13859_vm4, %v13910_v23  ;;  %v3329_v56 = vadd.f32 %v3328_v5, %v3216_v17  ;;  %v3441_v36 = vpop.f32.mrf.mxu3  ;;  %v3106_v54 = vadd.f32 %v13913_v2, %v10074_v48  ;;  %v13915_v23 = vld [vmem:[#allocation209_spill] sm:$0xff] }
 0x5f4   : > { %5550 = vmatmul.msk.f32.gmra.mxu2 %vm13874_vm14, %v13911_v15  ;;  %5582 = vmatmul.msk.f32.gmra.mxu3 %vm13874_vm14, %v13912_v10  ;;  %v10747_v18 = vpop.f32.mrf.mxu0  ;;  %v13916_v15 = vld [vmem:[#allocation253_spill] sm:$0xff]  ;;  %v13917_v10 = vld [vmem:[#allocation91_spill] sm:$0xff]  ;;  %vm13927_vm14 = vnez %v13350_v47 }
 0x5f5   : > { %v5997_v39 = vpop.eup %5996  ;;  %v3442_v4 = vadd.f32 %v3441_v36, %v3329_v56  ;;  %v10751_v53 = vpop.f32.mrf.mxu1  ;;  %v3219_v1 = vadd.f32 %v13916_v15, %v3106_v54  ;;  %v13919_v2 = vld [vmem:[#allocation181_spill] sm:$0xff] }
 0x5f6   : > { %v4093_v57 = vadd.f32 1.0, %v5997_v39  ;;  %v5999_v17 = vpop.eup %5998  ;;  %v13918_v39 = vld [vmem:[#allocation180_spill] sm:$0xff]  ;;  %v13920_v54 = vld [vmem:[#allocation65_spill] sm:$0xff] }
 0x5f7   : > { %6000 = vtanh.f32 %v3442_v4 }
 0x5f8   : > { %v10753_v5 = vmul.f32 %v5999_v17, %v4093_v57  ;;  %6002 = vtanh.f32 %v13915_v23 }
 0x5fa   : > { %13914 = vst [vmem:[#allocation51_spill] sm:$0xff] %v10753_v5  ;;  %v3331_v6 = vpop.f32.mrf.mxu2  ;;  %v13986_v5 = vld [vmem:[#allocation124_spill] sm:$0xff] }
 0x5fb   : > { %5505 = vmatmul.msk.f32.gmra.mxu0 %vm13856_vm2, %v13855_v12  ;;  %5537 = vmatmul.msk.f32.gmra.mxu1 %vm13856_vm2, %v13917_v10  ;;  %v3332_v36 = vadd.f32 %v3331_v6, %v3219_v1  ;;  %v3444_v56 = vpop.f32.mrf.mxu3  ;;  %v3109_v12 = vadd.f32 %v13920_v54, %v10074_v48  ;;  %v4182_v6 = vld [vmem:[%s12094_s6 + $0x18] sm:$0xff]  ;;  %v13922_v10 = vld [vmem:[#allocation128_spill] sm:$0xff] }
 0x5fc   : > { %5551 = vmatmul.msk.f32.gmra.mxu2 %vm13870_vm5, %v13918_v39  ;;  %5583 = vmatmul.msk.f32.gmra.mxu3 %vm13870_vm5, %v13919_v2  ;;  %v10769_v23 = vpop.f32.mrf.mxu0  ;;  %v4198_v1 = vld [vmem:[%s12094_s6 + $0x98] sm:$0xff]  ;;  %vm13924_vm5 = vnez %v13492_v0 }
 0x5fd   : > { %v6001_v15 = vpop.eup %6000  ;;  %v3445_v4 = vadd.f32 %v3444_v56, %v3332_v36  ;;  %v10773_v57 = vpop.f32.mrf.mxu1  ;;  %4223 = vmatpush.msra.mxu0 %v4182_v6  ;;  %4336 = vmatpush.msra.mxu1 %v4198_v1  ;;  %v13923_v36 = vld [vmem:[#allocation237_spill] sm:$0xff] }
 0x5fe   : > { %v4095_v17 = vadd.f32 1.0, %v6001_v15  ;;  %v6003_v39 = vpop.eup %6002  ;;  %v3222_v56 = vadd.f32 %v13923_v36, %v3109_v12  ;;  %v13925_v15 = vld [vmem:[#allocation94_spill] sm:$0xff] }
 0x5ff   : > { %6004 = vtanh.f32 %v3445_v4  ;;  %v13926_v4 = vld [vmem:[#allocation183_spill] sm:$0xff] }
 0x600   : > { %v10781_v2 = vmul.f32 %v6003_v39, %v4095_v17  ;;  %6006 = vtanh.f32 %v13922_v10  ;;  %v13928_v39 = vld [vmem:[#allocation185_spill] sm:$0xff]  ;;  %v13929_v17 = vld [vmem:[#allocation50_spill] sm:$0xff] }
 0x602   : > { %13921 = vst [vmem:[#allocation49_spill] sm:$0xff] %v10781_v2  ;;  %v3334_v54 = vpop.f32.mrf.mxu2  ;;  %v13952_v2 = vld [vmem:[#allocation31_spill] sm:$0xff] }
 0x603   : > { %5506 = vmatmul.msk.f32.gmra.mxu0 %vm13924_vm5, %v13850_v60  ;;  %5538 = vmatmul.msk.f32.gmra.mxu1 %vm13924_vm5, %v13925_v15  ;;  %v3335_v25 = vadd.f32 %v3334_v54, %v3222_v56  ;;  %v3447_v13 = vpop.f32.mrf.mxu3  ;;  %v3112_v60 = vadd.f32 %v13929_v17, %v10074_v48  ;;  %v13931_v15 = vld [vmem:[#allocation28_spill] sm:$0xff]  ;;  %v13937_v17 = vld [vmem:[#allocation189_spill] sm:$0xff] }
 0x604   : > { %5552 = vmatmul.msk.f32.gmra.mxu2 %vm13927_vm14, %v13926_v4  ;;  %5584 = vmatmul.msk.f32.gmra.mxu3 %vm13927_vm14, %v13928_v39  ;;  %v10797_v10 = vpop.f32.mrf.mxu0  ;;  %v13932_v4 = vld [vmem:[#allocation254_spill] sm:$0xff]  ;;  %vm13933_vm14 = vnez %v13503_v55  ;;  %v13934_v39 = vld [vmem:[#allocation97_spill] sm:$0xff] }
 0x605   : > { %v6005_v12 = vpop.eup %6004  ;;  %v3448_v6 = vadd.f32 %v3447_v13, %v3335_v25  ;;  %v10801_v1 = vpop.f32.mrf.mxu1  ;;  %v3225_v9 = vadd.f32 %v13932_v4, %v3112_v60  ;;  %v13938_v60 = vld [vmem:[#allocation69_spill] sm:$0xff] }
 0x606   : > { %v4097_v36 = vadd.f32 1.0, %v6005_v12  ;;  %v6007_v56 = vpop.eup %6006  ;;  %v13935_v12 = vld [vmem:[#allocation187_spill] sm:$0xff] }
 0x607   : > { %6008 = vtanh.f32 %v3448_v6 }
 0x608   : > { %v10803_v54 = vmul.f32 %v6007_v56, %v4097_v36  ;;  %6010 = vtanh.f32 %v13931_v15 }
 0x60a   : > { %13930 = vst [vmem:[#allocation47_spill] sm:$0xff] %v10803_v54  ;;  %v3337_v47 = vpop.f32.mrf.mxu2  ;;  %v13950_v54 = vld [vmem:[#allocation255_spill] sm:$0xff] }
 0x60b   : > { %5507 = vmatmul.msk.f32.gmra.mxu0 %vm13933_vm14, %v13849_v38  ;;  %5539 = vmatmul.msk.f32.gmra.mxu1 %vm13933_vm14, %v13934_v39  ;;  %v3338_v25 = vadd.f32 %v3337_v47, %v3225_v9  ;;  %v3450_v13 = vpop.f32.mrf.mxu3  ;;  %v3115_v38 = vadd.f32 %v13938_v60, %v10074_v48  ;;  %v4181_v9 = vld [vmem:[%s12094_s6 + $0x10] sm:$0xff]  ;;  %v4180_v60 = vld [vmem:[%s12094_s6 + $0x8] sm:$0xff] }
 0x60c   : > { %5553 = vmatmul.msk.f32.gmra.mxu2 %vm13936_vm1, %v13935_v12  ;;  %5585 = vmatmul.msk.f32.gmra.mxu3 %vm13936_vm1, %v13937_v17  ;;  %v10819_v15 = vpop.f32.mrf.mxu0  ;;  %v4197_v47 = vld [vmem:[%s12094_s6 + $0x90] sm:$0xff]  ;;  %vm13942_vm1 = vnez %v13786_v7 }
 0x60d   : > { %v6009_v4 = vpop.eup %6008  ;;  %v3451_v6 = vadd.f32 %v3450_v13, %v3338_v25  ;;  %v10823_v36 = vpop.f32.mrf.mxu1  ;;  %4224 = vmatpush.msra.mxu0 %v4181_v9  ;;  %4337 = vmatpush.msra.mxu1 %v4197_v47  ;;  %v13940_v13 = vld [vmem:[#allocation134_spill] sm:$0xff]  ;;  %v13944_v9 = vld [vmem:[#allocation191_spill] sm:$0xff] }
 0x60e   : > { %v4099_v56 = vadd.f32 1.0, %v6009_v4  ;;  %v6011_v12 = vpop.eup %6010  ;;  %v13941_v4 = vld [vmem:[#allocation239_spill] sm:$0xff] }
 0x60f   : > { %6012 = vtanh.f32 %v3451_v6  ;;  %v3228_v17 = vadd.f32 %v13941_v4, %v3115_v38  ;;  %4225 = vmatpush.msra.mxu0 %v4180_v60  ;;  %v13943_v6 = vld [vmem:[#allocation87_spill] sm:$0xff]  ;;  %v13946_v38 = vld [vmem:[#allocation29_spill] sm:$0xff] }
 0x610   : > { %v10834_v25 = vmul.f32 %v6011_v12, %v4099_v56  ;;  %6014 = vtanh.f32 %v13940_v13  ;;  %v13947_v13 = vld [vmem:[#allocation173_spill] sm:$0xff] }
 0x611   : > { %4226 = vmatpush.msra.mxu0 %v4179_v32 }
 0x612   : > { %13939 = vst [vmem:[#allocation61_spill] sm:$0xff] %v10834_v25  ;;  %v3340_v39 = vpop.f32.mrf.mxu2 }
 0x613   : > { %5508 = vmatmul.msk.f32.gmra.mxu0 %vm13942_vm1, %v13840_v31  ;;  %5540 = vmatmul.msk.f32.gmra.mxu1 %vm13942_vm1, %v13943_v6  ;;  %v3341_v12 = vadd.f32 %v3340_v39, %v3228_v17  ;;  %v3453_v56 = vpop.f32.mrf.mxu3  ;;  %v3118_v31 = vadd.f32 %v13947_v13, %v10074_v48  ;;  %v13956_v13 = vld [vmem:[#allocation84_spill] sm:$0xff] }
 0x614   : > { %5554 = vmatmul.msk.f32.gmra.mxu2 %vm13945_vm7, %v13944_v9  ;;  %5586 = vmatmul.msk.f32.gmra.mxu3 %vm13945_vm7, %v13946_v38  ;;  %v10853_v47 = vpop.f32.mrf.mxu0  ;;  %v13949_v9 = vld [vmem:[#allocation137_spill] sm:$0xff]  ;;  %vm13951_vm7 = vnez %v13262_v59  ;;  %v14345_v59 = vld [vmem:[#allocation78_spill] sm:$0xff] }
 0x615   : > { %v6013_v60 = vpop.eup %6012  ;;  %v3454_v4 = vadd.f32 %v3453_v56, %v3341_v12  ;;  %v10857_v25 = vpop.f32.mrf.mxu1  ;;  %v3231_v58 = vadd.f32 %v13950_v54, %v3118_v31  ;;  %v13953_v56 = vld [vmem:[#allocation192_spill] sm:$0xff] }
 0x616   : > { %v4101_v39 = vadd.f32 1.0, %v6013_v60  ;;  %v6015_v17 = vpop.eup %6014  ;;  %v13955_v60 = vld [vmem:[#allocation193_spill] sm:$0xff] }
 0x617   : > { %6016 = vtanh.f32 %v3454_v4 }
 0x618   : > { %v10859_v6 = vmul.f32 %v6015_v17, %v4101_v39  ;;  %6018 = vtanh.f32 %v13949_v9 }
 0x61a   : > { %13948 = vst [vmem:[#allocation96_spill] sm:$0xff] %v10859_v6  ;;  %v3343_v38 = vpop.f32.mrf.mxu2  ;;  %v13978_v6 = vld [vmem:[#allocation234_spill] sm:$0xff] }
 0x61b   : > { %5509 = vmatmul.msk.f32.gmra.mxu0 %vm13951_vm7, %v13838_v61  ;;  %5541 = vmatmul.msk.f32.gmra.mxu1 %vm13951_vm7, %v13952_v2  ;;  %v3344_v12 = vadd.f32 %v3343_v38, %v3231_v58  ;;  %v3456_v32 = vpop.f32.mrf.mxu3  ;;  %v3121_v61 = vadd.f32 %v13956_v13, %v10074_v48  ;;  %v4196_v58 = vld [vmem:[%s12094_s6 + $0x88] sm:$0xff]  ;;  %v13962_v13 = vld [vmem:[#allocation195_spill] sm:$0xff] }
 0x61c   : > { %5555 = vmatmul.msk.f32.gmra.mxu2 %vm13954_vm3, %v13953_v56  ;;  %5587 = vmatmul.msk.f32.gmra.mxu3 %vm13954_vm3, %v13955_v60  ;;  %v10875_v54 = vpop.f32.mrf.mxu0  ;;  %v13958_v60 = vld [vmem:[#allocation142_spill] sm:$0xff]  ;;  %v13959_v56 = vld [vmem:[#allocation241_spill] sm:$0xff]  ;;  %vm13960_vm3 = vnez %v13808_v45 }
 0x61d   : > { %v6017_v9 = vpop.eup %6016  ;;  %v3457_v31 = vadd.f32 %v3456_v32, %v3344_v12  ;;  %v10879_v39 = vpop.f32.mrf.mxu1  ;;  %4338 = vmatpush.msra.mxu1 %v4196_v58  ;;  %v3234_v2 = vadd.f32 %v13959_v56, %v3121_v61  ;;  %v13961_v12 = vld [vmem:[#allocation93_spill] sm:$0xff] }
 0x61e   : > { %v4103_v4 = vadd.f32 1.0, %v6017_v9  ;;  %v6019_v38 = vpop.eup %6018  ;;  %v13965_v61 = vld [vmem:[#allocation77_spill] sm:$0xff] }
 0x61f   : > { %6020 = vtanh.f32 %v3457_v31  ;;  %v13964_v31 = vld [vmem:[#allocation34_spill] sm:$0xff] }
 0x620   : > { %v10884_v17 = vmul.f32 %v6019_v38, %v4103_v4  ;;  %6022 = vtanh.f32 %v13958_v60 }
 0x622   : > { %13957 = vst [vmem:[#allocation250_spill] sm:$0xff] %v10884_v17  ;;  %v3346_v8 = vpop.f32.mrf.mxu2 }
 0x623   : > { %5510 = vmatmul.msk.f32.gmra.mxu0 %vm13960_vm3, %v13836_v30  ;;  %5542 = vmatmul.msk.f32.gmra.mxu1 %vm13960_vm3, %v13961_v12  ;;  %v3347_v32 = vadd.f32 %v3346_v8, %v3234_v2  ;;  %v3459_v9 = vpop.f32.mrf.mxu3  ;;  %v3124_v30 = vadd.f32 %v13965_v61, %v10074_v48  ;;  %v13967_v12 = vld [vmem:[#allocation146_spill] sm:$0xff]  ;;  %vm13972_vm3 = vnez %v13647_v42  ;;  %v13973_v61 = vld [vmem:[#allocation197_spill] sm:$0xff] }
 0x624   : > { %5556 = vmatmul.msk.f32.gmra.mxu2 %vm13963_vm6, %v13962_v13  ;;  %5588 = vmatmul.msk.f32.gmra.mxu3 %vm13963_vm6, %v13964_v31  ;;  %v10900_v56 = vpop.f32.mrf.mxu0  ;;  %v13968_v13 = vld [vmem:[#allocation256_spill] sm:$0xff]  ;;  %vm13969_vm6 = vnez %v13279_v49  ;;  %v13970_v31 = vld [vmem:[#allocation37_spill] sm:$0xff] }
 0x625   : > { %v6021_v60 = vpop.eup %6020  ;;  %v3460_v4 = vadd.f32 %v3459_v9, %v3347_v32  ;;  %v10904_v8 = vpop.f32.mrf.mxu1  ;;  %v3237_v17 = vadd.f32 %v13968_v13, %v3124_v30  ;;  %v13974_v30 = vld [vmem:[#allocation150_spill] sm:$0xff] }
 0x626   : > { %v4105_v58 = vadd.f32 1.0, %v6021_v60  ;;  %v6023_v38 = vpop.eup %6022  ;;  %v13971_v60 = vld [vmem:[#allocation196_spill] sm:$0xff] }
 0x627   : > { %6024 = vtanh.f32 %v3460_v4 }
 0x628   : > { %v10906_v2 = vmul.f32 %v6023_v38, %v4105_v58  ;;  %6026 = vtanh.f32 %v13967_v12 }
 0x62a   : > { %13966 = vst [vmem:[#allocation44_spill] sm:$0xff] %v10906_v2  ;;  %v3349_v63 = vpop.f32.mrf.mxu2 }
 0x62b   : > { %5511 = vmatmul.msk.f32.gmra.mxu0 %vm13969_vm6, %v13835_v16  ;;  %5543 = vmatmul.msk.f32.gmra.mxu1 %vm13969_vm6, %v13970_v31  ;;  %v3350_v32 = vadd.f32 %v3349_v63, %v3237_v17  ;;  %v3462_v9 = vpop.f32.mrf.mxu3  ;;  %v3127_v16 = vadd.f32 %v13974_v30, %v10074_v48  ;;  %v4195_v63 = vld [vmem:[%s12094_s6 + $0x80] sm:$0xff] }
 0x62c   : > { %5557 = vmatmul.msk.f32.gmra.mxu2 %vm13972_vm3, %v13971_v60  ;;  %5589 = vmatmul.msk.f32.gmra.mxu3 %vm13972_vm3, %v13973_v61  ;;  %v10922_v12 = vpop.f32.mrf.mxu0  ;;  %v13976_v60 = vld [vmem:[#allocation184_spill] sm:$0xff]  ;;  %v13977_v31 = vld [vmem:[#allocation243_spill] sm:$0xff]  ;;  %vm13980_vm3 = vnez %v12881_v26 }
 0x62d   : > { %v6025_v13 = vpop.eup %6024  ;;  %v3463_v4 = vadd.f32 %v3462_v9, %v3350_v32  ;;  %v3240_v61 = vadd.f32 %v13977_v31, %v3127_v16  ;;  %4339 = vmatpush.msra.mxu1 %v4195_v63  ;;  %v10933_v42 = vpop.f32.mrf.mxu1  ;;  %v13981_v30 = vld [vmem:[#allocation199_spill] sm:$0xff]  ;;  %v13982_v31 = vld [vmem:[#allocation154_spill] sm:$0xff] }
 0x62e   : > { %v4107_v58 = vadd.f32 1.0, %v6025_v13  ;;  %v6027_v38 = vpop.eup %6026  ;;  %v13979_v13 = vld [vmem:[#allocation198_spill] sm:$0xff]  ;;  %v3130_v16 = vadd.f32 %v13982_v31, %v10074_v48  ;;  %v13989_v31 = vld [vmem:[#allocation201_spill] sm:$0xff] }
 0x62f   : > { %6028 = vtanh.f32 %v3463_v4 }
 0x630   : > { %v10929_v17 = vmul.f32 %v6027_v38, %v4107_v58  ;;  %6030 = vtanh.f32 %v13976_v60 }
 0x632   : > { %13975 = vst [vmem:[#allocation41_spill] sm:$0xff] %v10929_v17  ;;  %v3352_v2 = vpop.f32.mrf.mxu2 }
 0x633   : > { %4227 = vmatmul.f32.vlgmr.msra.gmra.mxu0 %v13978_v6  ;;  %v3353_v32 = vadd.f32 %v3352_v2, %v3240_v61  ;;  %v3465_v9 = vpop.f32.mrf.mxu3  ;;  %v13984_v2 = vld [vmem:[#allocation215_spill] sm:$0xff]  ;;  %v13985_v61 = vld [vmem:[#allocation245_spill] sm:$0xff] }
 0x634   : > { %5558 = vmatmul.msk.f32.gmra.mxu2 %vm13980_vm3, %v13979_v13  ;;  %5590 = vmatmul.msk.f32.gmra.mxu3 %vm13980_vm3, %v13981_v30  ;;  %v10942_v4 = vpop.f32.mrf.mxu0  ;;  %v3243_v13 = vadd.f32 %v13985_v61, %v3130_v16  ;;  %v6300_v30 = vld [vmem:[%s12093_s5] sm:$0xf]  ;;  %vm13988_vm3 = vnez %v12889_v24  ;;  %v13994_v61 = vld [vmem:[#allocation229_spill] sm:$0xff] }
 0x635   : > { %v6029_v60 = vpop.eup %6028  ;;  %v3466_v58 = vadd.f32 %v3465_v9, %v3353_v32  ;;  %v10953_v26 = vperm.slane %v6300_v30, 3  ;;  %v10956_v9 = vpop.f32.mrf.mxu1  ;;  %v13991_v30 = vld [vmem:[#allocation86_spill] sm:$0xff] }
 0x636   : > { %v4109_v38 = vadd.f32 1.0, %v6029_v60  ;;  %v6031_v63 = vpop.eup %6030  ;;  %v13987_v60 = vld [vmem:[#allocation200_spill] sm:$0xff] }
 0x637   : > { %6032 = vtanh.f32 %v3466_v58 }
 0x638   : > { %v10946_v6 = vmul.f32 %v6031_v63, %v4109_v38  ;;  %6034 = vtanh.f32 %v13984_v2  ;;  %v3489_v38 = vadd.f32 %v13991_v30, %v10953_v26  ;;  %v13993_v2 = vld [vmem:[#allocation217_spill] sm:$0xff]  ;;  %v13997_v30 = vld [vmem:[#allocation202_spill] sm:$0xff] }
 0x63a   : > { %13983 = vst [vmem:[#allocation231_spill] sm:$0xff] %v10946_v6  ;;  %v3355_v17 = vpop.f32.mrf.mxu2 }
 0x63b   : > { %4230 = vmatmul.f32.gmra.mxu0 %v13986_v5  ;;  %v3356_v48 = vadd.f32 %v3355_v17, %v3243_v13  ;;  %v3468_v32 = vpop.f32.mrf.mxu3 }
 0x63c   : > { %5559 = vmatmul.msk.f32.gmra.mxu2 %vm13988_vm3, %v13987_v60  ;;  %5591 = vmatmul.msk.f32.gmra.mxu3 %vm13988_vm3, %v13989_v31  ;;  %v10964_v16 = vpop.f32.mrf.mxu0  ;;  %v3602_v60 = vadd.f32 %v13994_v61, %v3489_v38 }
 0x63d   : > { %13990 = vst [vmem:[#allocation38_spill] sm:$0xff] %v10964_v16  ;;  %v6033_v58 = vpop.eup %6032  ;;  %v3469_v63 = vadd.f32 %v3468_v32, %v3356_v48  ;;  %v13996_v16 = vld [vmem:[#allocation107_spill] sm:$0xff] }
 0x63e   : > { %v4111_v5 = vadd.f32 1.0, %v6033_v58  ;;  %v6035_v17 = vpop.eup %6034 }
 0x63f   : > { %6036 = vtanh.f32 %v3469_v63 }
 0x640   : > { %v10968_v13 = vmul.f32 %v6035_v17, %v4111_v5  ;;  %6038 = vtanh.f32 %v13993_v2  ;;  %v10981_v5 = vpop.f32.mrf.mxu1  ;;  %v14000_v17 = vld [vmem:[#allocation219_spill] sm:$0xff]  ;;  %v14001_v2 = vld [vmem:[#allocation169_spill] sm:$0xff] }
 0x642   : > { %13992 = vst [vmem:[#allocation35_spill] sm:$0xff] %v10968_v13  ;;  %v3714_v6 = vpop.f32.mrf.mxu2 }
 0x643   : > { %4233 = vmatmul.f32.gmra.mxu0 %v13995_v46  ;;  %v3715_v31 = vadd.f32 %v3714_v6, %v3602_v60  ;;  %v3827_v24 = vpop.f32.mrf.mxu3  ;;  %v13998_v46 = vld [vmem:[#allocation194_spill] sm:$0xff] }
 0x644   : > { %5560 = vmatmul.msk.f32.gmra.mxu2 %vm13896_vm15, %v13996_v16  ;;  %5592 = vmatmul.msk.f32.gmra.mxu3 %vm13896_vm15, %v13997_v30  ;;  %v3492_v6 = vadd.f32 %v13998_v46, %v10953_v26  ;;  %v14002_v16 = vld [vmem:[#allocation131_spill] sm:$0xff] }
 0x645   : > { %v6037_v48 = vpop.eup %6036  ;;  %v3828_v32 = vadd.f32 %v3827_v24, %v3715_v31  ;;  %v10979_v58 = vpop.f32.mrf.mxu0  ;;  %v14003_v30 = vld [vmem:[#allocation111_spill] sm:$0xff] }
 0x646   : > { %v4113_v63 = vadd.f32 1.0, %v6037_v48  ;;  %v6039_v38 = vpop.eup %6038  ;;  %v3605_v61 = vadd.f32 %v14001_v2, %v3492_v6  ;;  %v14004_v24 = vld [vmem:[#allocation203_spill] sm:$0xff] }
 0x647   : > { %6040 = vtanh.f32 %v3828_v32 }
 0x648   : > { %v10985_v60 = vmul.f32 %v6039_v38, %v4113_v63  ;;  %6042 = vtanh.f32 %v14000_v17  ;;  %v11000_v2 = vpop.f32.mrf.mxu1 }
 0x64a   : > { %13999 = vst [vmem:[#allocation98_spill] sm:$0xff] %v10985_v60  ;;  %v14016_v60 = vld [vmem:[#allocation206_spill] sm:$0xff] }
 0x64b   : > { %4236 = vmatmul.f32.gmra.mxu0 %v14002_v16  ;;  %v3495_v16 = vadd.f32 %v10473_v51, %v10953_v26  ;;  %v3501_v13 = vadd.f32 %v14016_v60, %v10953_v26 }
 0x64c   : > { %5561 = vmatmul.msk.f32.gmra.mxu2 %vm13892_vm11, %v14003_v30  ;;  %5593 = vmatmul.msk.f32.gmra.mxu3 %vm13892_vm11, %v14004_v24  ;;  %v3717_v31 = vpop.f32.mrf.mxu2  ;;  %v3830_v48 = vpop.f32.mrf.mxu3  ;;  %v14005_v30 = vld [vmem:[#allocation221_spill] sm:$0xff]  ;;  %v14006_v24 = vld [vmem:[#allocation136_spill] sm:$0xff] }
 0x64d   : > { %v6041_v46 = vpop.eup %6040  ;;  %v3718_v32 = vadd.f32 %v3717_v31, %v3605_v61  ;;  %v3608_v20 = vadd.f32 %v10477_v19, %v3495_v16  ;;  %v14007_v61 = vld [vmem:[#allocation115_spill] sm:$0xff]  ;;  %v14008_v31 = vld [vmem:[#allocation204_spill] sm:$0xff] }
 0x64e   : > { %v4052_v63 = vadd.f32 1.0, %v6041_v46  ;;  %v10996_v38 = vpop.f32.mrf.mxu0  ;;  %v6043_v17 = vpop.eup %6042 }
 0x64f   : > { %v3831_v52 = vadd.f32 %v3830_v48, %v3718_v32 }
 0x650   : > { %v4116_v6 = vmul.f32 %v6043_v17, %v4052_v63  ;;  %v11015_v16 = vpop.f32.mrf.mxu1 }
 0x651   : > { %6044 = vtanh.f32 %v3831_v52 }
 0x652   : > { %4340 = vmatmul.f32.vlgmr.msra.gmra.mxu1 %v4116_v6  ;;  %6046 = vtanh.f32 %v14005_v30 }
 0x653   : > { %4239 = vmatmul.f32.gmra.mxu0 %v14006_v24  ;;  %v14009_v24 = vld [vmem:[#allocation100_spill] sm:$0xff] }
 0x654   : > { %5562 = vmatmul.msk.f32.gmra.mxu2 %vm13691_vm9, %v14007_v61  ;;  %5594 = vmatmul.msk.f32.gmra.mxu3 %vm13691_vm9, %v14008_v31  ;;  %v3498_v19 = vadd.f32 %v14009_v24, %v10953_v26  ;;  %v14010_v61 = vld [vmem:[#allocation141_spill] sm:$0xff]  ;;  %v14012_v31 = vld [vmem:[#allocation40_spill] sm:$0xff] }
 0x655   : > { %v3720_v51 = vpop.f32.mrf.mxu2  ;;  %v3833_v48 = vpop.f32.mrf.mxu3 }
 0x656   : > { %v3721_v46 = vadd.f32 %v3720_v51, %v3608_v20  ;;  %v14013_v20 = vld [vmem:[#allocation205_spill] sm:$0xff]  ;;  %v14014_v51 = vld [vmem:[#allocation58_spill] sm:$0xff] }
 0x657   : > { %v6045_v32 = vpop.eup %6044  ;;  %v11011_v52 = vpop.f32.mrf.mxu0 }
 0x658   : > { %v4054_v63 = vadd.f32 1.0, %v6045_v32  ;;  %v3834_v30 = vadd.f32 %v3833_v48, %v3721_v46  ;;  %v6047_v17 = vpop.eup %6046  ;;  %v3611_v48 = vadd.f32 %v14014_v51, %v3498_v19  ;;  %v14019_v19 = vld [vmem:[#allocation43_spill] sm:$0xff] }
 0x659   : > { %v14021_v51 = vld [vmem:[#allocation223_spill] sm:$0xff] }
 0x65a   : > { %6048 = vtanh.f32 %v3834_v30  ;;  %v4118_v6 = vmul.f32 %v6047_v17, %v4054_v63 }
 0x65b   : > { %4242 = vmatmul.f32.gmra.mxu0 %v14010_v61  ;;  %6050 = vtanh.f32 %v14011_v27 }
 0x65c   : > { %5563 = vmatmul.msk.f32.gmra.mxu2 %vm13700_vm8, %v14012_v31  ;;  %5595 = vmatmul.msk.f32.gmra.mxu3 %vm13700_vm8, %v14013_v20  ;;  %v14017_v31 = vld [vmem:[#allocation145_spill] sm:$0xff]  ;;  %v11031_v20 = vpop.f32.mrf.mxu1 }
 0x65d   : > { %4343 = vmatmul.f32.gmra.mxu1 %v4118_v6  ;;  %14018 = vst [vmem:[#allocation23_spill] sm:$0xff] %v11031_v20  ;;  %v14020_v6 = vld [vmem:[#allocation22_spill] sm:$0xff]  ;;  %v14024_v20 = vld [vmem:[#allocation149_spill] sm:$0xff] }
 0x65e   : > { %v3723_v46 = vpop.f32.mrf.mxu2  ;;  %v3836_v32 = vpop.f32.mrf.mxu3 }
 0x65f   : > { %v3724_v24 = vadd.f32 %v3723_v46, %v3611_v48  ;;  %v14022_v48 = vld [vmem:[#allocation19_spill] sm:$0xff] }
 0x660   : > { %v6049_v30 = vpop.eup %6048  ;;  %v11026_v63 = vpop.f32.mrf.mxu0  ;;  %v3614_v46 = vadd.f32 %v14022_v48, %v3501_v13 }
 0x661   : > { %14015 = vst [vmem:[#allocation251_spill] sm:$0xff] %v11026_v63  ;;  %v4056_v61 = vadd.f32 1.0, %v6049_v30  ;;  %v3837_v17 = vadd.f32 %v3836_v32, %v3724_v24  ;;  %v6051_v27 = vpop.eup %6050 }
 0x663   : > { %6052 = vtanh.f32 %v3837_v17  ;;  %4245 = vmatmul.f32.gmra.mxu0 %v14017_v31  ;;  %v4120_v34 = vmul.f32 %v6051_v27, %v4056_v61  ;;  %v14023_v61 = vld [vmem:[#allocation249_spill] sm:$0xff] }
 0x664   : > { %5564 = vmatmul.msk.f32.gmra.mxu2 %vm13864_vm0, %v14019_v19  ;;  %5596 = vmatmul.msk.f32.gmra.mxu3 %vm13864_vm0, %v14020_v6  ;;  %6054 = vtanh.f32 %v14021_v51  ;;  %v3504_v17 = vadd.f32 %v14023_v61, %v10953_v26  ;;  %v14025_v6 = vld [vmem:[#allocation46_spill] sm:$0xff]  ;;  %v14027_v51 = vld [vmem:[#allocation224_spill] sm:$0xff] }
 0x665   : > { %4346 = vmatmul.f32.gmra.mxu1 %v4120_v34  ;;  %v14026_v34 = vld [vmem:[#allocation76_spill] sm:$0xff] }
 0x666   : > { %v3617_v48 = vadd.f32 %v10615_v3, %v3504_v17  ;;  %v14030_v3 = vld [vmem:[#allocation207_spill] sm:$0xff] }
 0x667   : > { %v3726_v60 = vpop.f32.mrf.mxu2  ;;  %v3839_v32 = vpop.f32.mrf.mxu3 }
 0x668   : > { %v3727_v24 = vadd.f32 %v3726_v60, %v3614_v46  ;;  %v11041_v31 = vpop.f32.mrf.mxu0  ;;  %v11054_v46 = vpop.f32.mrf.mxu1 }
 0x669   : > { %v6053_v30 = vpop.eup %6052 }
 0x66a   : > { %v4058_v27 = vadd.f32 1.0, %v6053_v30  ;;  %v3840_v19 = vadd.f32 %v3839_v32, %v3727_v24  ;;  %v6055_v63 = vpop.eup %6054  ;;  %v3507_v30 = vadd.f32 %v10651_v21, %v10953_v26 }
 0x66b   : > { %4248 = vmatmul.f32.gmra.mxu0 %v14024_v20 }
 0x66c   : > { %6056 = vtanh.f32 %v3840_v19  ;;  %5565 = vmatmul.msk.f32.gmra.mxu2 %vm13879_vm10, %v14025_v6  ;;  %5597 = vmatmul.msk.f32.gmra.mxu3 %vm13879_vm10, %v14026_v34  ;;  %v4122_v13 = vmul.f32 %v6055_v63, %v4058_v27  ;;  %v14028_v34 = vld [vmem:[#allocation153_spill] sm:$0xff]  ;;  %v14029_v27 = vld [vmem:[#allocation18_spill] sm:$0xff] }
 0x66d   : > { %6058 = vtanh.f32 %v14027_v51  ;;  %v3620_v51 = vadd.f32 %v10655_v22, %v3507_v30  ;;  %v14034_v22 = vld [vmem:[#allocation71_spill] sm:$0xff] }
 0x66e   : > { %4349 = vmatmul.f32.gmra.mxu1 %v4122_v13  ;;  %v14031_v13 = vld [vmem:[#allocation102_spill] sm:$0xff] }
 0x66f   : > { %v3729_v60 = vpop.f32.mrf.mxu2  ;;  %v3842_v32 = vpop.f32.mrf.mxu3 }
 0x670   : > { %v3730_v20 = vadd.f32 %v3729_v60, %v3617_v48  ;;  %v11056_v19 = vpop.f32.mrf.mxu0  ;;  %v11069_v60 = vpop.f32.mrf.mxu1 }
 0x672   : > { %v6057_v24 = vpop.eup %6056  ;;  %v3843_v61 = vadd.f32 %v3842_v32, %v3730_v20 }
 0x673   : > { %v4060_v6 = vadd.f32 1.0, %v6057_v24  ;;  %4251 = vmatmul.f32.gmra.mxu0 %v14028_v34  ;;  %v6059_v63 = vpop.eup %6058  ;;  %v3510_v24 = vadd.f32 %v10697_v41, %v10953_v26 }
 0x674   : > { %6060 = vtanh.f32 %v3843_v61  ;;  %5566 = vmatmul.msk.f32.gmra.mxu2 %vm13876_vm12, %v14029_v27  ;;  %5598 = vmatmul.msk.f32.gmra.mxu3 %vm13876_vm12, %v14030_v3  ;;  %v14032_v3 = vld [vmem:[#allocation157_spill] sm:$0xff] }
 0x675   : > { %v4124_v17 = vmul.f32 %v6059_v63, %v4060_v6  ;;  %6062 = vtanh.f32 %v14031_v13  ;;  %v14033_v63 = vld [vmem:[#allocation132_spill] sm:$0xff]  ;;  %v3623_v13 = vadd.f32 %v10701_v11, %v3510_v24 }
 0x676   : > { %v14038_v11 = vld [vmem:[#allocation72_spill] sm:$0xff] }
 0x677   : > { %v3732_v21 = vpop.f32.mrf.mxu2  ;;  %v3845_v48 = vpop.f32.mrf.mxu3  ;;  %4352 = vmatmul.f32.gmra.mxu1 %v4124_v17  ;;  %v14035_v17 = vld [vmem:[#allocation226_spill] sm:$0xff] }
 0x678   : > { %v3733_v34 = vadd.f32 %v3732_v21, %v3620_v51  ;;  %v11071_v32 = vpop.f32.mrf.mxu0 }
 0x67a   : > { %v6061_v20 = vpop.eup %6060  ;;  %v3846_v61 = vadd.f32 %v3845_v48, %v3733_v34  ;;  %v3513_v34 = vadd.f32 %v10719_v40, %v10953_v26 }
 0x67b   : > { %v4062_v27 = vadd.f32 1.0, %v6061_v20  ;;  %4254 = vmatmul.f32.gmra.mxu0 %v14032_v3  ;;  %v6063_v6 = vpop.eup %6062  ;;  %v11088_v20 = vpop.f32.mrf.mxu1 }
 0x67c   : > { %6064 = vtanh.f32 %v3846_v61  ;;  %5567 = vmatmul.msk.f32.gmra.mxu2 %vm13872_vm13, %v14033_v63  ;;  %5599 = vmatmul.msk.f32.gmra.mxu3 %vm13872_vm13, %v14034_v22  ;;  %v14036_v22 = vld [vmem:[#allocation161_spill] sm:$0xff]  ;;  %v3626_v40 = vadd.f32 %v10723_v28, %v3513_v34  ;;  %v14042_v28 = vld [vmem:[#allocation75_spill] sm:$0xff] }
 0x67d   : > { %v4126_v30 = vmul.f32 %v6063_v6, %v4062_v27  ;;  %6066 = vtanh.f32 %v14035_v17  ;;  %v14037_v6 = vld [vmem:[#allocation81_spill] sm:$0xff] }
 0x67f   : > { %v3735_v41 = vpop.f32.mrf.mxu2  ;;  %v3848_v51 = vpop.f32.mrf.mxu3  ;;  %4355 = vmatmul.f32.gmra.mxu1 %v4126_v30  ;;  %v14039_v30 = vld [vmem:[#allocation227_spill] sm:$0xff] }
 0x680   : > { %v3736_v21 = vadd.f32 %v3735_v41, %v3623_v13  ;;  %v11084_v3 = vpop.f32.mrf.mxu0 }
 0x682   : > { %v6065_v48 = vpop.eup %6064  ;;  %v3849_v61 = vadd.f32 %v3848_v51, %v3736_v21  ;;  %v3516_v21 = vadd.f32 %v10747_v18, %v10953_v26 }
 0x683   : > { %v4064_v63 = vadd.f32 1.0, %v6065_v48  ;;  %4257 = vmatmul.f32.gmra.mxu0 %v14036_v22  ;;  %v6067_v27 = vpop.eup %6066 }
 0x684   : > { %6068 = vtanh.f32 %v3849_v61  ;;  %5568 = vmatmul.msk.f32.gmra.mxu2 %vm13859_vm4, %v14037_v6  ;;  %5600 = vmatmul.msk.f32.gmra.mxu3 %vm13859_vm4, %v14038_v11  ;;  %v14040_v6 = vld [vmem:[#allocation165_spill] sm:$0xff]  ;;  %v3629_v18 = vadd.f32 %v10751_v53, %v3516_v21  ;;  %v14046_v53 = vld [vmem:[#allocation78_spill] sm:$0xff] }
 0x685   : > { %v4128_v24 = vmul.f32 %v6067_v27, %v4064_v63  ;;  %6070 = vtanh.f32 %v14039_v30  ;;  %v11104_v63 = vpop.f32.mrf.mxu1  ;;  %v14041_v27 = vld [vmem:[#allocation74_spill] sm:$0xff] }
 0x687   : > { %v3738_v17 = vpop.f32.mrf.mxu2  ;;  %v3851_v13 = vpop.f32.mrf.mxu3  ;;  %4358 = vmatmul.f32.gmra.mxu1 %v4128_v24  ;;  %v14043_v24 = vld [vmem:[#allocation45_spill] sm:$0xff] }
 0x688   : > { %v3739_v41 = vadd.f32 %v3738_v17, %v3626_v40  ;;  %v11099_v22 = vpop.f32.mrf.mxu0 }
 0x68a   : > { %v6069_v51 = vpop.eup %6068  ;;  %v3852_v48 = vadd.f32 %v3851_v13, %v3739_v41  ;;  %v3519_v41 = vadd.f32 %v10769_v23, %v10953_v26 }
 0x68b   : > { %v4066_v61 = vadd.f32 1.0, %v6069_v51  ;;  %4260 = vmatmul.f32.gmra.mxu0 %v14040_v6  ;;  %v6071_v11 = vpop.eup %6070 }
 0x68c   : > { %6072 = vtanh.f32 %v3852_v48  ;;  %5569 = vmatmul.msk.f32.gmra.mxu2 %vm13856_vm2, %v14041_v27  ;;  %5601 = vmatmul.msk.f32.gmra.mxu3 %vm13856_vm2, %v14042_v28  ;;  %v14044_v27 = vld [vmem:[#allocation230_spill] sm:$0xff] }
 0x68d   : > { %v4130_v34 = vmul.f32 %v6071_v11, %v4066_v61  ;;  %6074 = vtanh.f32 %v14043_v24  ;;  %v14045_v11 = vld [vmem:[#allocation53_spill] sm:$0xff]  ;;  %v14047_v61 = vld [vmem:[#allocation210_spill] sm:$0xff]  ;;  %v11127_v23 = vpop.f32.mrf.mxu1 }
 0x68f   : > { %v3741_v30 = vpop.f32.mrf.mxu2  ;;  %v3854_v40 = vpop.f32.mrf.mxu3  ;;  %4361 = vmatmul.f32.gmra.mxu1 %v4130_v34  ;;  %v3632_v34 = vadd.f32 %v10773_v57, %v3519_v41  ;;  %v14050_v57 = vld [vmem:[#allocation55_spill] sm:$0xff] }
 0x690   : > { %v3742_v6 = vadd.f32 %v3741_v30, %v3629_v18  ;;  %v11114_v17 = vpop.f32.mrf.mxu0 }
 0x692   : > { %v6073_v13 = vpop.eup %6072  ;;  %v3855_v51 = vadd.f32 %v3854_v40, %v3742_v6  ;;  %v3522_v6 = vadd.f32 %v10797_v10, %v10953_v26 }
 0x693   : > { %v4068_v48 = vadd.f32 1.0, %v6073_v13  ;;  %4263 = vmatmul.f32.gmra.mxu0 %v14044_v27  ;;  %v6075_v28 = vpop.eup %6074 }
 0x694   : > { %6076 = vtanh.f32 %v3855_v51  ;;  %5570 = vmatmul.msk.f32.gmra.mxu2 %vm13924_vm5, %v14045_v11  ;;  %5602 = vmatmul.msk.f32.gmra.mxu3 %vm13924_vm5, %v14046_v53  ;;  %v14048_v53 = vld [vmem:[#allocation89_spill] sm:$0xff] }
 0x695   : > { %v4132_v21 = vmul.f32 %v6075_v28, %v4068_v48  ;;  %6078 = vtanh.f32 %v14047_v61  ;;  %v14049_v48 = vld [vmem:[#allocation80_spill] sm:$0xff]  ;;  %v3635_v61 = vadd.f32 %v10801_v1, %v3522_v6 }
 0x696   : > { %v14054_v1 = vld [vmem:[#allocation188_spill] sm:$0xff] }
 0x697   : > { %v3744_v24 = vpop.f32.mrf.mxu2  ;;  %v3857_v18 = vpop.f32.mrf.mxu3  ;;  %4364 = vmatmul.f32.gmra.mxu1 %v4132_v21  ;;  %v14051_v21 = vld [vmem:[#allocation211_spill] sm:$0xff] }
 0x698   : > { %v3745_v27 = vadd.f32 %v3744_v24, %v3632_v34  ;;  %v11129_v30 = vpop.f32.mrf.mxu0  ;;  %v11142_v24 = vpop.f32.mrf.mxu1 }
 0x69a   : > { %v6077_v40 = vpop.eup %6076  ;;  %v3858_v13 = vadd.f32 %v3857_v18, %v3745_v27 }
 0x69b   : > { %v4070_v51 = vadd.f32 1.0, %v6077_v40  ;;  %4266 = vmatmul.f32.gmra.mxu0 %v14048_v53  ;;  %v6079_v28 = vpop.eup %6078  ;;  %v3525_v40 = vadd.f32 %v10819_v15, %v10953_v26 }
 0x69c   : > { %6080 = vtanh.f32 %v3858_v13  ;;  %5571 = vmatmul.msk.f32.gmra.mxu2 %vm13933_vm14, %v14049_v48  ;;  %5603 = vmatmul.msk.f32.gmra.mxu3 %vm13933_vm14, %v14050_v57  ;;  %v14052_v57 = vld [vmem:[#allocation247_spill] sm:$0xff]  ;;  %vm14062_vm14 = vnez %v13808_v45 }
 0x69d   : > { %v4134_v41 = vmul.f32 %v6079_v28, %v4070_v51  ;;  %6082 = vtanh.f32 %v14051_v21  ;;  %v14053_v28 = vld [vmem:[#allocation83_spill] sm:$0xff]  ;;  %v3638_v21 = vadd.f32 %v10823_v36, %v3525_v40  ;;  %v14058_v36 = vld [vmem:[#allocation158_spill] sm:$0xff] }
 0x69f   : > { %v3747_v10 = vpop.f32.mrf.mxu2  ;;  %v3860_v34 = vpop.f32.mrf.mxu3  ;;  %4367 = vmatmul.f32.gmra.mxu1 %v4134_v41  ;;  %v14055_v41 = vld [vmem:[#allocation186_spill] sm:$0xff] }
 0x6a0   : > { %v3748_v53 = vadd.f32 %v3747_v10, %v3635_v61  ;;  %v11144_v18 = vpop.f32.mrf.mxu0 }
 0x6a2   : > { %v6081_v27 = vpop.eup %6080  ;;  %v3861_v13 = vadd.f32 %v3860_v34, %v3748_v53  ;;  %v3528_v53 = vadd.f32 %v10853_v47, %v10953_v26 }
 0x6a3   : > { %v4072_v11 = vadd.f32 1.0, %v6081_v27  ;;  %4269 = vmatmul.f32.gmra.mxu0 %v14052_v57  ;;  %v6083_v51 = vpop.eup %6082  ;;  %v11161_v27 = vpop.f32.mrf.mxu1 }
 0x6a4   : > { %6084 = vtanh.f32 %v3861_v13  ;;  %5572 = vmatmul.msk.f32.gmra.mxu2 %vm13942_vm1, %v14053_v28  ;;  %5604 = vmatmul.msk.f32.gmra.mxu3 %vm13942_vm1, %v14054_v1  ;;  %v14056_v1 = vld [vmem:[#allocation182_spill] sm:$0xff]  ;;  %v3641_v47 = vadd.f32 %v10857_v25, %v3528_v53 }
 0x6a5   : > { %v4136_v6 = vmul.f32 %v6083_v51, %v4072_v11  ;;  %6086 = vtanh.f32 %v14055_v41  ;;  %v14057_v51 = vld [vmem:[#allocation56_spill] sm:$0xff]  ;;  %v14060_v28 = vld [vmem:[#allocation166_spill] sm:$0xff] }
 0x6a6   : > { %v14063_v25 = vld [vmem:[#allocation162_spill] sm:$0xff] }
 0x6a7   : > { %v3750_v15 = vpop.f32.mrf.mxu2  ;;  %v3863_v61 = vpop.f32.mrf.mxu3  ;;  %4370 = vmatmul.f32.gmra.mxu1 %v4136_v6  ;;  %v14059_v6 = vld [vmem:[#allocation213_spill] sm:$0xff] }
 0x6a8   : > { %v3751_v10 = vadd.f32 %v3750_v15, %v3638_v21  ;;  %v11157_v57 = vpop.f32.mrf.mxu0 }
 0x6aa   : > { %v6085_v34 = vpop.eup %6084  ;;  %v3864_v13 = vadd.f32 %v3863_v61, %v3751_v10  ;;  %v3531_v10 = vadd.f32 %v10875_v54, %v10953_v26 }
 0x6ab   : > { %v4074_v48 = vadd.f32 1.0, %v6085_v34  ;;  %4272 = vmatmul.f32.gmra.mxu0 %v14056_v1  ;;  %v6087_v11 = vpop.eup %6086 }
 0x6ac   : > { %6088 = vtanh.f32 %v3864_v13  ;;  %5573 = vmatmul.msk.f32.gmra.mxu2 %vm13951_vm7, %v14057_v51  ;;  %5605 = vmatmul.msk.f32.gmra.mxu3 %vm13951_vm7, %v14058_v36  ;;  %v3644_v54 = vadd.f32 %v10879_v39, %v3531_v10  ;;  %v14066_v39 = vld [vmem:[#allocation92_spill] sm:$0xff] }
 0x6ad   : > { %v4138_v40 = vmul.f32 %v6087_v11, %v4074_v48  ;;  %6090 = vtanh.f32 %v14059_v6  ;;  %v11177_v48 = vpop.f32.mrf.mxu1  ;;  %v14061_v11 = vld [vmem:[#allocation57_spill] sm:$0xff]  ;;  %v14090_v51 = vld [vmem:[#allocation240_spill] sm:$0xff] }
 0x6af   : > { %v3753_v41 = vpop.f32.mrf.mxu2  ;;  %v3866_v21 = vpop.f32.mrf.mxu3  ;;  %4373 = vmatmul.f32.gmra.mxu1 %v4138_v40  ;;  %v14064_v40 = vld [vmem:[#allocation139_spill] sm:$0xff] }
 0x6b0   : > { %v3754_v15 = vadd.f32 %v3753_v41, %v3641_v47  ;;  %v11172_v1 = vpop.f32.mrf.mxu0 }
 0x6b2   : > { %v6089_v61 = vpop.eup %6088  ;;  %v3867_v34 = vadd.f32 %v3866_v21, %v3754_v15  ;;  %v3534_v15 = vadd.f32 %v10900_v56, %v10953_v26 }
 0x6b3   : > { %v4076_v13 = vadd.f32 1.0, %v6089_v61  ;;  %4275 = vmatmul.f32.gmra.mxu0 %v14060_v28  ;;  %v6091_v36 = vpop.eup %6090 }
 0x6b4   : > { %6092 = vtanh.f32 %v3867_v34  ;;  %5574 = vmatmul.msk.f32.gmra.mxu2 %vm14062_vm14, %v14061_v11  ;;  %5606 = vmatmul.msk.f32.gmra.mxu3 %vm14062_vm14, %v14063_v25  ;;  %vm12620_vm14 = vcmask 7168   ;;  %v14091_v11 = vld [vmem:[#allocation123_spill] sm:$0xff] }
 0x6b5   : > { %v4140_v53 = vmul.f32 %v6091_v36, %v4076_v13  ;;  %6094 = vtanh.f32 %v14064_v40  ;;  %v14065_v36 = vld [vmem:[#allocation90_spill] sm:$0xff]  ;;  %v14067_v13 = vld [vmem:[#allocation233_spill] sm:$0xff]  ;;  %v11200_v56 = vpop.f32.mrf.mxu1 }
 0x6b7   : > { %v3756_v6 = vpop.f32.mrf.mxu2  ;;  %v3869_v47 = vpop.f32.mrf.mxu3  ;;  %4376 = vmatmul.f32.gmra.mxu1 %v4140_v53  ;;  %v3647_v53 = vadd.f32 %v10904_v8, %v3534_v15  ;;  %v14068_v8 = vld [vmem:[#allocation54_spill] sm:$0xff] }
 0x6b8   : > { %v3757_v28 = vadd.f32 %v3756_v6, %v3644_v54  ;;  %v11187_v41 = vpop.f32.mrf.mxu0 }
 0x6ba   : > { %v6093_v21 = vpop.eup %6092  ;;  %v3870_v61 = vadd.f32 %v3869_v47, %v3757_v28  ;;  %v3537_v28 = vadd.f32 %v10922_v12, %v10953_v26 }
 0x6bb   : > { %v4078_v34 = vadd.f32 1.0, %v6093_v21  ;;  %4278 = vmatmul.f32.gmra.mxu0 %v10623_v62  ;;  %v6095_v25 = vpop.eup %6094 }
 0x6bc   : > { %6096 = vtanh.f32 %v3870_v61  ;;  %5575 = vmatmul.msk.f32.gmra.mxu2 %vm13969_vm6, %v14065_v36  ;;  %5607 = vmatmul.msk.f32.gmra.mxu3 %vm13969_vm6, %v14066_v39  ;;  %v3650_v15 = vadd.f32 %v10933_v42, %v3537_v28  ;;  %v14069_v42 = vld [vmem:[#allocation235_spill] sm:$0xff]  ;;  %v14098_v36 = vld [vmem:[#allocation225_spill] sm:$0xff] }
 0x6bd   : > { %v4142_v10 = vmul.f32 %v6095_v25, %v4078_v34  ;;  %6098 = vtanh.f32 %v14067_v13 }
 0x6bf   : > { %v3759_v40 = vpop.f32.mrf.mxu2  ;;  %v3872_v54 = vpop.f32.mrf.mxu3  ;;  %4379 = vmatmul.f32.gmra.mxu1 %v4142_v10 }
 0x6c0   : > { %v3760_v62 = vadd.f32 %v3759_v40, %v3647_v53  ;;  %v11202_v6 = vpop.f32.mrf.mxu0  ;;  %v11209_v53 = vpop.f32.mrf.mxu1 }
 0x6c2   : > { %v6097_v47 = vpop.eup %6096  ;;  %v3873_v21 = vadd.f32 %v3872_v54, %v3760_v62  ;;  %v3540_v54 = vadd.f32 %v10942_v4, %v10953_v26 }
 0x6c3   : > { %v4080_v61 = vadd.f32 1.0, %v6097_v47  ;;  %4281 = vmatmul.f32.gmra.mxu0 %v10675_v33  ;;  %v6099_v25 = vpop.eup %6098 }
 0x6c4   : > { %6100 = vtanh.f32 %v3873_v21  ;;  %v3653_v28 = vadd.f32 %v10956_v9, %v3540_v54  ;;  %v14072_v9 = vld [vmem:[#allocation236_spill] sm:$0xff] }
 0x6c5   : > { %v4144_v34 = vmul.f32 %v6099_v25, %v4080_v61  ;;  %6102 = vtanh.f32 %v14068_v8 }
 0x6c7   : > { %v3762_v13 = vpop.f32.mrf.mxu2  ;;  %v3875_v10 = vpop.f32.mrf.mxu3  ;;  %4382 = vmatmul.f32.gmra.mxu1 %v4144_v34 }
 0x6c8   : > { %v3763_v40 = vadd.f32 %v3762_v13, %v3650_v15  ;;  %v11211_v39 = vpop.f32.mrf.mxu0  ;;  %v14070_v13 = vld [vmem:[#allocation38_spill] sm:$0xff] }
 0x6ca   : > { %v6101_v12 = vpop.eup %6100  ;;  %v3876_v33 = vadd.f32 %v3875_v10, %v3763_v40  ;;  %v3543_v10 = vadd.f32 %v14070_v13, %v10953_v26 }
 0x6cb   : > { %v4082_v62 = vadd.f32 1.0, %v6101_v12  ;;  %4284 = vmatmul.f32.gmra.mxu0 %v10703_v44  ;;  %v6103_v47 = vpop.eup %6102  ;;  %v14071_v12 = vld [vmem:[#allocation52_spill] sm:$0xff] }
 0x6cc   : > { %6104 = vtanh.f32 %v3876_v33  ;;  %v3656_v54 = vadd.f32 %v10981_v5, %v3543_v10  ;;  %v14074_v5 = vld [vmem:[#allocation218_spill] sm:$0xff] }
 0x6cd   : > { %v4146_v21 = vmul.f32 %v6103_v47, %v4082_v62  ;;  %6106 = vtanh.f32 %v14069_v42 }
 0x6cf   : > { %v3765_v61 = vpop.f32.mrf.mxu2  ;;  %v3878_v25 = vpop.f32.mrf.mxu3  ;;  %4385 = vmatmul.f32.gmra.mxu1 %v4146_v21 }
 0x6d0   : > { %v3766_v34 = vadd.f32 %v3765_v61, %v3653_v28  ;;  %v11218_v8 = vpop.f32.mrf.mxu0  ;;  %v11220_v15 = vpop.f32.mrf.mxu1 }
 0x6d2   : > { %v6105_v4 = vpop.eup %6104  ;;  %v3879_v44 = vadd.f32 %v3878_v25, %v3766_v34  ;;  %v3546_v25 = vadd.f32 %v10979_v58, %v10953_v26 }
 0x6d3   : > { %v4084_v40 = vadd.f32 1.0, %v6105_v4  ;;  %4287 = vmatmul.f32.gmra.mxu0 %v14071_v12  ;;  %v6107_v33 = vpop.eup %6106 }
 0x6d4   : > { %6108 = vtanh.f32 %v3879_v44  ;;  %v14073_v44 = vld [vmem:[#allocation51_spill] sm:$0xff]  ;;  %v3659_v10 = vadd.f32 %v11000_v2, %v3546_v25  ;;  %v14076_v2 = vld [vmem:[#allocation220_spill] sm:$0xff] }
 0x6d5   : > { %v4148_v62 = vmul.f32 %v6107_v33, %v4084_v40  ;;  %6110 = vtanh.f32 %v14072_v9 }
 0x6d7   : > { %v3768_v47 = vpop.f32.mrf.mxu2  ;;  %v3881_v21 = vpop.f32.mrf.mxu3  ;;  %4388 = vmatmul.f32.gmra.mxu1 %v4148_v62 }
 0x6d8   : > { %v3769_v42 = vadd.f32 %v3768_v47, %v3656_v54  ;;  %v11227_v28 = vpop.f32.mrf.mxu0  ;;  %v3549_v47 = vadd.f32 %v10996_v38, %v10953_v26 }
 0x6da   : > { %v6109_v61 = vpop.eup %6108  ;;  %v3882_v34 = vadd.f32 %v3881_v21, %v3769_v42  ;;  %v11231_v4 = vpop.f32.mrf.mxu1  ;;  %v3662_v25 = vadd.f32 %v11015_v16, %v3549_v47  ;;  %v14078_v16 = vld [vmem:[#allocation238_spill] sm:$0xff]  ;;  %v14079_v47 = vld [vmem:[#allocation23_spill] sm:$0xff] }
 0x6db   : > { %v4086_v13 = vadd.f32 1.0, %v6109_v61  ;;  %4290 = vmatmul.f32.gmra.mxu0 %v14073_v44  ;;  %v6111_v40 = vpop.eup %6110 }
 0x6dc   : > { %6112 = vtanh.f32 %v3882_v34  ;;  %v14075_v34 = vld [vmem:[#allocation49_spill] sm:$0xff] }
 0x6dd   : > { %v4150_v12 = vmul.f32 %v6111_v40, %v4086_v13  ;;  %6114 = vtanh.f32 %v14074_v5 }
 0x6df   : > { %v3771_v33 = vpop.f32.mrf.mxu2  ;;  %v3884_v62 = vpop.f32.mrf.mxu3  ;;  %4391 = vmatmul.f32.gmra.mxu1 %v4150_v12 }
 0x6e0   : > { %v3772_v9 = vadd.f32 %v3771_v33, %v3659_v10  ;;  %v11236_v54 = vpop.f32.mrf.mxu0  ;;  %v3552_v33 = vadd.f32 %v11011_v52, %v10953_v26  ;;  %v4342_v52 = vadd.f32 %v11220_v15, %v11172_v1  ;;  %v14084_v1 = vld [vmem:[#allocation222_spill] sm:$0xff] }
 0x6e2   : > { %v6113_v58 = vpop.eup %6112  ;;  %v3885_v21 = vadd.f32 %v3884_v62, %v3772_v9  ;;  %v11240_v42 = vpop.f32.mrf.mxu1 }
 0x6e3   : > { %v4088_v61 = vadd.f32 1.0, %v6113_v58  ;;  %4293 = vmatmul.f32.gmra.mxu0 %v14075_v34  ;;  %v6115_v13 = vpop.eup %6114  ;;  %v14077_v58 = vld [vmem:[#allocation47_spill] sm:$0xff] }
 0x6e4   : > { %6116 = vtanh.f32 %v3885_v21 }
 0x6e5   : > { %v4152_v44 = vmul.f32 %v6115_v13, %v4088_v61  ;;  %6118 = vtanh.f32 %v14076_v2  ;;  %v3665_v13 = vadd.f32 %v14079_v47, %v3552_v33 }
 0x6e7   : > { %v3774_v40 = vpop.f32.mrf.mxu2  ;;  %v3887_v12 = vpop.f32.mrf.mxu3  ;;  %4394 = vmatmul.f32.gmra.mxu1 %v4152_v44 }
 0x6e8   : > { %v3775_v5 = vadd.f32 %v3774_v40, %v3662_v25  ;;  %v11245_v10 = vpop.f32.mrf.mxu0 }
 0x6ea   : > { %v6117_v38 = vpop.eup %6116  ;;  %v3888_v62 = vadd.f32 %v3887_v12, %v3775_v5  ;;  %v14080_v5 = vld [vmem:[#allocation251_spill] sm:$0xff] }
 0x6eb   : > { %v4090_v9 = vadd.f32 1.0, %v6117_v38  ;;  %4296 = vmatmul.f32.gmra.mxu0 %v14077_v58  ;;  %v11250_v21 = vpop.f32.mrf.mxu1  ;;  %v6119_v61 = vpop.eup %6118  ;;  %v3555_v38 = vadd.f32 %v14080_v5, %v10953_v26 }
 0x6ec   : > { %6120 = vtanh.f32 %v3888_v62 }
 0x6ed   : > { %v4154_v34 = vmul.f32 %v6119_v61, %v4090_v9  ;;  %6122 = vtanh.f32 %v14078_v16  ;;  %v14081_v9 = vld [vmem:[#allocation61_spill] sm:$0xff]  ;;  %v3668_v15 = vadd.f32 %v11054_v46, %v3555_v38  ;;  %v4345_v46 = vadd.f32 %v11231_v4, %v11187_v41 }
 0x6ee   : > { %v14082_v16 = vld [vmem:[#allocation105_spill] sm:$0xff] }
 0x6ef   : > { %v3777_v44 = vpop.f32.mrf.mxu2  ;;  %v3890_v2 = vpop.f32.mrf.mxu3  ;;  %4397 = vmatmul.f32.gmra.mxu1 %v4154_v34  ;;  %vm14083_vm6 = vnez %v14082_v16  ;;  %v14099_v16 = vld [vmem:[#allocation126_spill] sm:$0xff] }
 0x6f0   : > { %v3778_v25 = vadd.f32 %v3777_v44, %v3665_v13  ;;  %v11254_v40 = vpop.f32.mrf.mxu0  ;;  %v11263_v34 = vsel %vm14083_vm6, %v4342_v52, -inf  ;;  %v14085_v44 = vld [vmem:[#allocation120_spill] sm:$0xff]  ;;  %vm14092_vm6 = vnez %v14091_v11 }
 0x6f1   : > { %vm14086_vm5 = vnez %v14085_v44  ;;  %v11274_v5 = vsel %vm12620_vm14, %v11263_v34, -inf  ;;  %v14113_v44 = vld [vmem:[#allocation135_spill] sm:$0xff] }
 0x6f2   : > { %v6121_v12 = vpop.eup %6120  ;;  %v3891_v58 = vadd.f32 %v3890_v2, %v3778_v25 }
 0x6f3   : > { %v4092_v62 = vadd.f32 1.0, %v6121_v12  ;;  %4299 = vmatmul.f32.gmra.mxu0 %v14081_v9  ;;  %v6123_v61 = vpop.eup %6122  ;;  %v3558_v9 = vadd.f32 %v11041_v31, %v10953_v26 }
 0x6f4   : > { %6124 = vtanh.f32 %v3891_v58  ;;  %v4353_v33 = vpop.f32.mrf.mxu1 }
 0x6f5   : > { %v4354_v47 = vadd.f32 %v4353_v33, %v11218_v8  ;;  %v4156_v13 = vmul.f32 %v6123_v61, %v4092_v62  ;;  %6126 = vtanh.f32 %v14084_v1  ;;  %v3671_v38 = vadd.f32 %v11069_v60, %v3558_v9 }
 0x6f6   : > { %v4348_v60 = vadd.f32 %v11240_v42, %v11202_v6 }
 0x6f7   : > { %v11270_v2 = vsel %vm14086_vm5, %v4354_v47, -inf  ;;  %v3780_v25 = vpop.f32.mrf.mxu2  ;;  %v3893_v12 = vpop.f32.mrf.mxu3  ;;  %4400 = vmatmul.f32.gmra.mxu1 %v4156_v13  ;;  %v14087_v47 = vld [vmem:[#allocation96_spill] sm:$0xff]  ;;  %vm14093_vm5 = vcmask 7168  }
 0x6f8   : > { %v11278_v52 = vsel %vm12620_vm14, %v11270_v2, -inf  ;;  %v3781_v8 = vadd.f32 %v3780_v25, %v3668_v15  ;;  %v11280_v58 = vpop.f32.mrf.mxu0  ;;  %v14088_v15 = vld [vmem:[#allocation109_spill] sm:$0xff] }
 0x6f9   : > { %vm14089_vm14 = vnez %v14088_v15  ;;  %v14106_v15 = vld [vmem:[#allocation242_spill] sm:$0xff] }
 0x6fa   : > { %v6125_v62 = vpop.eup %6124  ;;  %v3894_v61 = vadd.f32 %v3893_v12, %v3781_v8  ;;  %v11291_v25 = vsel %vm14089_vm14, %v4345_v46, -inf  ;;  %vm14094_vm14 = vmmov %vm14093_vm5 }
 0x6fb   : > { %v4094_v33 = vadd.f32 1.0, %v6125_v62  ;;  %4302 = vmatmul.f32.gmra.mxu0 %v14087_v47  ;;  %v6127_v13 = vpop.eup %6126  ;;  %v11302_v62 = vsel %vm14093_vm5, %v11291_v25, -inf }
 0x6fc   : > { %6128 = vtanh.f32 %v3894_v61  ;;  %v4356_v1 = vpop.f32.mrf.mxu1 }
 0x6fd   : > { %v4357_v41 = vadd.f32 %v4356_v1, %v11227_v28  ;;  %v4158_v4 = vmul.f32 %v6127_v13, %v4094_v33  ;;  %6130 = vtanh.f32 %v14090_v51  ;;  %v3561_v33 = vadd.f32 %v11056_v19, %v10953_v26  ;;  %v14095_v1 = vld [vmem:[#allocation250_spill] sm:$0xff] }
 0x6ff   : > { %v11298_v31 = vsel %vm14092_vm6, %v4357_v41, -inf  ;;  %v3783_v12 = vpop.f32.mrf.mxu2  ;;  %v3896_v8 = vpop.f32.mrf.mxu3  ;;  %4403 = vmatmul.f32.gmra.mxu1 %v4158_v4  ;;  %v3674_v51 = vadd.f32 %v11088_v20, %v3561_v33  ;;  %vm14101_vm6 = vcmask 7168   ;;  %v4351_v20 = vadd.f32 %v11250_v21, %v11211_v39 }
 0x700   : > { %v11306_v46 = vsel %vm14094_vm14, %v11298_v31, -inf  ;;  %v3784_v28 = vadd.f32 %v3783_v12, %v3671_v38  ;;  %v11308_v61 = vpop.f32.mrf.mxu0  ;;  %v14096_v38 = vld [vmem:[#allocation113_spill] sm:$0xff]  ;;  %vm14100_vm14 = vnez %v14099_v16 }
 0x701   : > { %vm14097_vm5 = vnez %v14096_v38  ;;  %v14107_v38 = vld [vmem:[#allocation130_spill] sm:$0xff] }
 0x702   : > { %v6129_v9 = vpop.eup %6128  ;;  %v3897_v47 = vadd.f32 %v3896_v8, %v3784_v28  ;;  %v11319_v12 = vsel %vm14097_vm5, %v4348_v60, -inf  ;;  %vm14102_vm5 = vmmov %vm14101_vm6 }
 0x703   : > { %v4096_v13 = vadd.f32 1.0, %v6129_v9  ;;  %4305 = vmatmul.f32.gmra.mxu0 %v14095_v1  ;;  %v6131_v41 = vpop.eup %6130  ;;  %v11330_v9 = vsel %vm14101_vm6, %v11319_v12, -inf }
 0x704   : > { %6132 = vtanh.f32 %v3897_v47  ;;  %v4359_v4 = vpop.f32.mrf.mxu1 }
 0x705   : > { %v4360_v6 = vadd.f32 %v4359_v4, %v11236_v54  ;;  %v4160_v42 = vmul.f32 %v6131_v41, %v4096_v13  ;;  %6134 = vtanh.f32 %v14098_v36  ;;  %v3564_v13 = vadd.f32 %v11071_v32, %v10953_v26  ;;  %v14103_v4 = vld [vmem:[#allocation44_spill] sm:$0xff] }
 0x707   : > { %v11326_v19 = vsel %vm14100_vm14, %v4360_v6, -inf  ;;  %v3786_v8 = vpop.f32.mrf.mxu2  ;;  %v3899_v28 = vpop.f32.mrf.mxu3  ;;  %4406 = vmatmul.f32.gmra.mxu1 %v4160_v42  ;;  %v3677_v36 = vadd.f32 %v11104_v63, %v3564_v13  ;;  %vm14109_vm14 = vcmask 7168   ;;  %v3567_v13 = vadd.f32 %v11084_v3, %v10953_v26 }
 0x708   : > { %v11334_v60 = vsel %vm14102_vm5, %v11326_v19, -inf  ;;  %v3787_v54 = vadd.f32 %v3786_v8, %v3674_v51  ;;  %v11336_v47 = vpop.f32.mrf.mxu0  ;;  %v14104_v51 = vld [vmem:[#allocation117_spill] sm:$0xff]  ;;  %vm14108_vm5 = vnez %v14107_v38 }
 0x709   : > { %vm14105_vm6 = vnez %v14104_v51 }
 0x70a   : > { %v6133_v33 = vpop.eup %6132  ;;  %v3900_v1 = vadd.f32 %v3899_v28, %v3787_v54  ;;  %v11347_v8 = vsel %vm14105_vm6, %v4351_v20, -inf  ;;  %vm14110_vm6 = vmmov %vm14109_vm14 }
 0x70b   : > { %v4098_v41 = vadd.f32 1.0, %v6133_v33  ;;  %4308 = vmatmul.f32.gmra.mxu0 %v14103_v4  ;;  %v6135_v6 = vpop.eup %6134  ;;  %v11358_v33 = vsel %vm14109_vm14, %v11347_v8, -inf  ;;  %vm14114_vm14 = vnez %v14113_v44 }
 0x70c   : > { %6136 = vtanh.f32 %v3900_v1  ;;  %v4362_v42 = vpop.f32.mrf.mxu1 }
 0x70d   : > { %v4363_v39 = vadd.f32 %v4362_v42, %v11245_v10  ;;  %v4162_v21 = vmul.f32 %v6135_v6, %v4098_v41  ;;  %6138 = vtanh.f32 %v14106_v15  ;;  %v14111_v6 = vld [vmem:[#allocation41_spill] sm:$0xff] }
 0x70f   : > { %v11354_v32 = vsel %vm14108_vm5, %v4363_v39, -inf  ;;  %v3789_v28 = vpop.f32.mrf.mxu2  ;;  %v3902_v54 = vpop.f32.mrf.mxu3  ;;  %4409 = vmatmul.f32.gmra.mxu1 %v4162_v21  ;;  %vm14120_vm5 = vcmask 7168  }
 0x710   : > { %v11362_v20 = vsel %vm14110_vm6, %v11354_v32, -inf  ;;  %v3790_v10 = vadd.f32 %v3789_v28, %v3677_v36  ;;  %v11364_v1 = vpop.f32.mrf.mxu0  ;;  %v14112_v36 = vld [vmem:[#allocation244_spill] sm:$0xff]  ;;  %v3680_v28 = vadd.f32 %v11127_v23, %v3567_v13  ;;  %v3570_v23 = vadd.f32 %v11099_v22, %v10953_v26 }
 0x712   : > { %v6137_v15 = vpop.eup %6136  ;;  %v3903_v41 = vadd.f32 %v3902_v54, %v3790_v10 }
 0x713   : > { %v4100_v4 = vadd.f32 1.0, %v6137_v15  ;;  %4311 = vmatmul.f32.gmra.mxu0 %v14111_v6  ;;  %v6139_v42 = vpop.eup %6138 }
 0x714   : > { %6140 = vtanh.f32 %v3903_v41  ;;  %v4365_v39 = vpop.f32.mrf.mxu1 }
 0x715   : > { %v4366_v21 = vadd.f32 %v4365_v39, %v11254_v40  ;;  %v4164_v51 = vmul.f32 %v6139_v42, %v4100_v4  ;;  %6142 = vtanh.f32 %v14112_v36  ;;  %v14115_v40 = vmax.f32 %v11274_v5, %v11278_v52  ;;  %v14116_v42 = vld [vmem:[#allocation231_spill] sm:$0xff]  ;;  %v14117_v36 = vld [vmem:[#allocation228_spill] sm:$0xff] }
 0x716   : > { %v3683_v5 = vadd.f32 %v11142_v24, %v3570_v23  ;;  %v14118_v52 = vld [vmem:[#allocation140_spill] sm:$0xff]  ;;  %v3573_v24 = vadd.f32 %v11114_v17, %v10953_v26 }
 0x717   : > { %v11376_v63 = vsel %vm14114_vm14, %v4366_v21, -inf  ;;  %v3792_v11 = vpop.f32.mrf.mxu2  ;;  %v3905_v3 = vpop.f32.mrf.mxu3  ;;  %4412 = vmatmul.f32.gmra.mxu1 %v4164_v51  ;;  %vm14126_vm14 = vcmask 7168  }
 0x718   : > { %v4483_v54 = vsel %vm14110_vm6, %v11376_v63, -inf  ;;  %v3793_v10 = vadd.f32 %v3792_v11, %v3680_v28  ;;  %v11380_v15 = vpop.f32.mrf.mxu0  ;;  %vm14119_vm6 = vnez %v14118_v52 }
 0x719   : > { %v11385_v41 = vmax.f32 %v14115_v40, %v4483_v54  ;;  %v14121_v40 = vmax.f32 %v11302_v62, %v11306_v46  ;;  %v3686_v62 = vadd.f32 %v11161_v27, %v3573_v24  ;;  %v14124_v46 = vld [vmem:[#allocation144_spill] sm:$0xff]  ;;  %v3576_v27 = vadd.f32 %v11129_v30, %v10953_v26 }
 0x71a   : > { %v6141_v4 = vpop.eup %6140  ;;  %v3906_v13 = vadd.f32 %v3905_v3, %v3793_v10 }
 0x71b   : > { %v4102_v6 = vadd.f32 1.0, %v6141_v4  ;;  %4314 = vmatmul.f32.gmra.mxu0 %v14116_v42  ;;  %v6143_v51 = vpop.eup %6142  ;;  %v14122_v42 = vld [vmem:[#allocation35_spill] sm:$0xff] }
 0x71c   : > { %6144 = vtanh.f32 %v3906_v13  ;;  %v4368_v39 = vpop.f32.mrf.mxu1 }
 0x71d   : > { %v4369_v11 = vadd.f32 %v4368_v39, %v11280_v58  ;;  %v4166_v21 = vmul.f32 %v6143_v51, %v4102_v6  ;;  %6146 = vtanh.f32 %v14117_v36  ;;  %v14123_v36 = vld [vmem:[#allocation246_spill] sm:$0xff] }
 0x71f   : > { %v11395_v28 = vsel %vm14119_vm6, %v4369_v11, -inf  ;;  %v3795_v54 = vpop.f32.mrf.mxu2  ;;  %v3908_v22 = vpop.f32.mrf.mxu3  ;;  %4415 = vmatmul.f32.gmra.mxu1 %v4166_v21  ;;  %vm14132_vm6 = vcmask 7168  }
 0x720   : > { %v4485_v3 = vsel %vm14120_vm5, %v11395_v28, -inf  ;;  %v3796_v10 = vadd.f32 %v3795_v54, %v3683_v5  ;;  %v11406_v13 = vpop.f32.mrf.mxu0  ;;  %vm14125_vm5 = vnez %v14124_v46 }
 0x721   : > { %v11402_v58 = vmax.f32 %v14121_v40, %v4485_v3 }
 0x722   : > { %v6145_v4 = vpop.eup %6144  ;;  %v3909_v23 = vadd.f32 %v3908_v22, %v3796_v10  ;;  %v14127_v10 = vmax.f32 %v11330_v9, %v11334_v60  ;;  %v3689_v9 = vadd.f32 %v11177_v48, %v3576_v27  ;;  %v14130_v60 = vld [vmem:[#allocation148_spill] sm:$0xff]  ;;  %v3579_v48 = vadd.f32 %v11144_v18, %v10953_v26 }
 0x723   : > { %v4104_v6 = vadd.f32 1.0, %v6145_v4  ;;  %4317 = vmatmul.f32.gmra.mxu0 %v14122_v42  ;;  %v6147_v51 = vpop.eup %6146 }
 0x724   : > { %6148 = vtanh.f32 %v3909_v23  ;;  %v4371_v39 = vpop.f32.mrf.mxu1  ;;  %v14128_v23 = vld [vmem:[#allocation98_spill] sm:$0xff] }
 0x725   : > { %v4372_v11 = vadd.f32 %v4371_v39, %v11308_v61  ;;  %v4168_v21 = vmul.f32 %v6147_v51, %v4104_v6  ;;  %6150 = vtanh.f32 %v14123_v36 }
 0x727   : > { %v11414_v5 = vsel %vm14125_vm5, %v4372_v11, -inf  ;;  %v3798_v17 = vpop.f32.mrf.mxu2  ;;  %v3911_v54 = vpop.f32.mrf.mxu3  ;;  %4418 = vmatmul.f32.gmra.mxu1 %v4168_v21  ;;  %v14129_v21 = vld [vmem:[#allocation48_spill] sm:$0xff]  ;;  %vm14137_vm5 = vcmask 7168  }
 0x728   : > { %v4487_v22 = vsel %vm14126_vm14, %v11414_v5, -inf  ;;  %v3799_v3 = vadd.f32 %v3798_v17, %v3686_v62  ;;  %v11426_v42 = vpop.f32.mrf.mxu0  ;;  %vm14131_vm14 = vnez %v14130_v60 }
 0x729   : > { %v11421_v61 = vmax.f32 %v14127_v10, %v4487_v22  ;;  %v14133_v22 = vmax.f32 %v11358_v33, %v11362_v20  ;;  %v14135_v33 = vld [vmem:[#allocation152_spill] sm:$0xff] }
 0x72a   : > { %v6149_v40 = vpop.eup %6148  ;;  %v3912_v4 = vadd.f32 %v3911_v54, %v3799_v3 }
 0x72b   : > { %v4106_v24 = vadd.f32 1.0, %v6149_v40  ;;  %4320 = vmatmul.f32.gmra.mxu0 %v14128_v23  ;;  %v6151_v6 = vpop.eup %6150 }
 0x72c   : > { %6152 = vtanh.f32 %v3912_v4  ;;  %v4374_v51 = vpop.f32.mrf.mxu1 }
 0x72d   : > { %v4375_v39 = vadd.f32 %v4374_v51, %v11336_v47  ;;  %v4170_v11 = vmul.f32 %v6151_v6, %v4106_v24  ;;  %6154 = vtanh.f32 %v14129_v21  ;;  %v14134_v6 = vld [vmem:[#allocation248_spill] sm:$0xff]  ;;  %v3692_v51 = vadd.f32 %v11200_v56, %v3579_v48 }
 0x72f   : > { %v11433_v36 = vsel %vm14131_vm14, %v4375_v39, -inf  ;;  %v3801_v30 = vpop.f32.mrf.mxu2  ;;  %v3914_v62 = vpop.f32.mrf.mxu3  ;;  %4421 = vmatmul.f32.gmra.mxu1 %v4170_v11  ;;  %vm14141_vm14 = vcmask 7168  }
 0x730   : > { %v4489_v17 = vsel %vm14132_vm6, %v11433_v36, -inf  ;;  %v3802_v54 = vadd.f32 %v3801_v30, %v3689_v9  ;;  %v4276_v39 = vpop.f32.mrf.mxu0  ;;  %vm14136_vm6 = vnez %v14135_v33 }
 0x731   : > { %v11440_v47 = vmax.f32 %v14133_v22, %v4489_v17 }
 0x732   : > { %v6153_v3 = vpop.eup %6152  ;;  %v3915_v10 = vadd.f32 %v3914_v62, %v3802_v54  ;;  %v3582_v62 = vadd.f32 %v11157_v57, %v10953_v26 }
 0x733   : > { %v4108_v40 = vadd.f32 1.0, %v6153_v3  ;;  %v6155_v27 = vpop.eup %6154 }
 0x734   : > { %6156 = vtanh.f32 %v3915_v10  ;;  %v4377_v4 = vpop.f32.mrf.mxu1  ;;  %v14138_v10 = vld [vmem:[#allocation212_spill] sm:$0xff] }
 0x735   : > { %v4378_v24 = vadd.f32 %v4377_v4, %v11364_v1  ;;  %v4172_v23 = vmul.f32 %v6155_v27, %v4108_v40  ;;  %6158 = vtanh.f32 %v14134_v6  ;;  %v3695_v40 = vadd.f32 %v11209_v53, %v3582_v62  ;;  %v14139_v27 = vld [vmem:[#allocation156_spill] sm:$0xff] }
 0x736   : > { %v14143_v62 = vld [vmem:[#allocation160_spill] sm:$0xff] }
 0x737   : > { %v11449_v20 = vsel %vm14136_vm6, %v4378_v24, -inf  ;;  %v3804_v11 = vpop.f32.mrf.mxu2  ;;  %v3917_v21 = vpop.f32.mrf.mxu3  ;;  %4424 = vmatmul.f32.gmra.mxu1 %v4172_v23  ;;  %vm14144_vm6 = vnez %v14143_v62 }
 0x738   : > { %v4491_v18 = vsel %vm14137_vm5, %v11449_v20, -inf  ;;  %v3805_v9 = vadd.f32 %v3804_v11, %v3692_v51  ;;  %vm14140_vm5 = vnez %v14139_v27  ;;  %v4279_v24 = vpop.f32.mrf.mxu0 }
 0x739   : > { %v4492_v30 = vmax.f32 %v11385_v41, %v4491_v18 }
 0x73a   : > { %v6157_v1 = vpop.eup %6156  ;;  %v3918_v17 = vadd.f32 %v3917_v21, %v3805_v9 }
 0x73b   : > { %v4110_v56 = vadd.f32 1.0, %v6157_v1  ;;  %v6159_v54 = vpop.eup %6158  ;;  %v14142_v1 = vld [vmem:[#allocation216_spill] sm:$0xff] }
 0x73c   : > { %6160 = vtanh.f32 %v3918_v17  ;;  %v4380_v22 = vpop.f32.mrf.mxu1 }
 0x73d   : > { %v4381_v3 = vadd.f32 %v4380_v22, %v11380_v15  ;;  %v4174_v48 = vmul.f32 %v6159_v54, %v4110_v56  ;;  %6162 = vtanh.f32 %v14138_v10 }
 0x73f   : > { %v11461_v4 = vsel %vm14140_vm5, %v4381_v3, -inf  ;;  %v3807_v41 = vpop.f32.mrf.mxu2  ;;  %4427 = vmatmul.f32.gmra.mxu1 %v4174_v48  ;;  %v3920_v6 = vpop.f32.mrf.mxu3  ;;  %vm14146_vm5 = vmmov %vm14141_vm14 }
 0x740   : > { %v4493_v26 = vsel %vm14141_vm14, %v11461_v4, -inf  ;;  %v3808_v57 = vadd.f32 %v3807_v41, %v3695_v40  ;;  %v4282_v22 = vpop.f32.mrf.mxu0  ;;  %v14315_v41 = vld [vmem:[#allocation34_spill] sm:$0xff] }
 0x741   : > { %v4494_v23 = vmax.f32 %v11402_v58, %v4493_v26 }
 0x742   : > { %v6161_v15 = vpop.eup %6160  ;;  %v3921_v51 = vadd.f32 %v3920_v6, %v3808_v57 }
 0x743   : > { %v4112_v11 = vadd.f32 1.0, %v6161_v15  ;;  %v6163_v21 = vpop.eup %6162 }
 0x744   : > { %6164 = vtanh.f32 %v3921_v51  ;;  %v4383_v53 = vpop.f32.mrf.mxu1 }
 0x745   : > { %v4384_v18 = vadd.f32 %v4383_v53, %v11406_v13  ;;  %v4176_v9 = vmul.f32 %v6163_v21, %v4112_v11  ;;  %6166 = vtanh.f32 %v14142_v1 }
 0x747   : > { %v11470_v17 = vsel %vm14144_vm6, %v4384_v18, -inf  ;;  %4430 = vmatmul.f32.gmra.mxu1 %v4176_v9 }
 0x748   : > { %v4495_v58 = vsel %vm14141_vm14, %v11470_v17, -inf  ;;  %v4285_v6 = vpop.f32.mrf.mxu0  ;;  %vm14148_vm14 = vmmov %vm14146_vm5 }
 0x749   : > { %v4496_v56 = vmax.f32 %v11421_v61, %v4495_v58 }
 0x74a   : > { %v6165_v54 = vpop.eup %6164 }
 0x74b   : > { %v4114_v3 = vadd.f32 1.0, %v6165_v54  ;;  %v6167_v48 = vpop.eup %6166 }
 0x74c   : > { %v4386_v10 = vpop.f32.mrf.mxu1 }
 0x74d   : > { %v4387_v13 = vadd.f32 %v4386_v10, %v11426_v42  ;;  %v4178_v40 = vmul.f32 %v6167_v48, %v4114_v3 }
 0x74f   : > { %v11478_v26 = vsel %vm13988_vm3, %v4387_v13, -inf  ;;  %4433 = vmatmul.f32.gmra.mxu1 %v4178_v40 }
 0x750   : > { %v11482_v57 = vsel %vm14146_vm5, %v11478_v26, -inf  ;;  %v4288_v1 = vpop.f32.mrf.mxu0 }
 0x754   : > { %v4389_v15 = vpop.f32.mrf.mxu1 }
 0x755   : > { %v4390_v51 = vadd.f32 %v4389_v15, %v4276_v39 }
 0x757   : > { %v11488_v21 = vsel %vm13896_vm15, %v4390_v51, -inf  ;;  %vm14153_vm15 = vmmov %vm14146_vm5 }
 0x758   : > { %v4499_v42 = vsel %vm14148_vm14, %v11488_v21, -inf  ;;  %v4291_v15 = vpop.f32.mrf.mxu0  ;;  %vm14151_vm14 = vmmov %vm14146_vm5 }
 0x759   : > { %v4500_v53 = vmax.f32 %v4492_v30, %v4499_v42 }
 0x75c   : > { %v4392_v18 = vpop.f32.mrf.mxu1 }
 0x75d   : > { %v4393_v9 = vadd.f32 %v4392_v18, %v4279_v24 }
 0x75f   : > { %v11494_v54 = vsel %vm13892_vm11, %v4393_v9, -inf  ;;  %vm14154_vm11 = vmmov %vm14146_vm5 }
 0x760   : > { %v4501_v3 = vsel %vm14146_vm5, %v11494_v54, -inf  ;;  %v4294_v18 = vpop.f32.mrf.mxu0 }
 0x761   : > { %v4502_v48 = vmax.f32 %v4494_v23, %v4501_v3 }
 0x764   : > { %v4395_v39 = vpop.f32.mrf.mxu1 }
 0x765   : > { %v4396_v10 = vadd.f32 %v4395_v39, %v4282_v22 }
 0x767   : > { %v11500_v40 = vsel %vm13691_vm9, %v4396_v10, -inf  ;;  %vm14155_vm9 = vmmov %vm14146_vm5 }
 0x768   : > { %v4503_v30 = vsel %vm14151_vm14, %v11500_v40, -inf  ;;  %v4297_v11 = vpop.f32.mrf.mxu0  ;;  %vm14152_vm14 = vmmov %vm14146_vm5 }
 0x769   : > { %v11504_v24 = vmax.f32 %v4496_v56, %v4503_v30 }
 0x76c   : > { %v4398_v51 = vpop.f32.mrf.mxu1 }
 0x76d   : > { %v4399_v42 = vadd.f32 %v4398_v51, %v4285_v6 }
 0x770   : > { %v4300_v39 = vpop.f32.mrf.mxu0 }
 0x774   : > { %v4401_v9 = vpop.f32.mrf.mxu1 }
 0x775   : > { %v4402_v61 = vadd.f32 %v4401_v9, %v4288_v1 }
 0x777   : > { %v11508_v1 = vsel %vm13864_vm0, %v4402_v61, -inf  ;;  %vm14164_vm0 = vmmov %vm14146_vm5 }
 0x778   : > { %v4303_v10 = vpop.f32.mrf.mxu0 }
 0x77c   : > { %v4404_v58 = vpop.f32.mrf.mxu1 }
 0x77d   : > { %v4405_v23 = vadd.f32 %v4404_v58, %v4291_v15 }
 0x77f   : > { %v11512_v58 = vsel %vm13879_vm10, %v4405_v23, -inf  ;;  %vm12632_vm10 = vcmask 0  }
 0x780   : > { %v4306_v38 = vpop.f32.mrf.mxu0 }
 0x784   : > { %v4407_v3 = vpop.f32.mrf.mxu1 }
 0x785   : > { %v4408_v22 = vadd.f32 %v4407_v3, %v4294_v18 }
 0x788   : > { %v4309_v52 = vpop.f32.mrf.mxu0 }
 0x78c   : > { %v4410_v13 = vpop.f32.mrf.mxu1 }
 0x78d   : > { %v4411_v27 = vadd.f32 %v4410_v13, %v4297_v11 }
 0x790   : > { %v4312_v30 = vpop.f32.mrf.mxu0 }
 0x794   : > { %v4413_v16 = vpop.f32.mrf.mxu1 }
 0x795   : > { %v4414_v6 = vadd.f32 %v4413_v16, %v4300_v39  ;;  %v4507_v16 = vsel %vm14146_vm5, %v11508_v1, -inf }
 0x797   : > { %v11516_v9 = vsel %vm13859_vm4, %v4414_v6, -inf }
 0x798   : > { %v4315_v18 = vpop.f32.mrf.mxu0 }
 0x79c   : > { %v4416_v44 = vpop.f32.mrf.mxu1 }
 0x79d   : > { %v4417_v51 = vadd.f32 %v4416_v44, %v4303_v10  ;;  %v4509_v44 = vsel %vm14152_vm14, %v11512_v58, -inf  ;;  %v4508_v10 = vmax.f32 %v4500_v53, %v4507_v16  ;;  %vm14160_vm14 = vmmov %vm14146_vm5 }
 0x79f   : > { %v11520_v3 = vsel %vm13856_vm2, %v4417_v51, -inf }
 0x7a0   : > { %v4517_v23 = vsel %vm14154_vm11, %v11520_v3, -inf  ;;  %v4318_v33 = vpop.f32.mrf.mxu0  ;;  %vm14158_vm11 = vnez %v13492_v0  ;;  %v14355_v0 = vld [vmem:[#allocation71_spill] sm:$0xff] }
 0x7a4   : > { %v4419_v46 = vpop.f32.mrf.mxu1 }
 0x7a5   : > { %v4420_v16 = vadd.f32 %v4419_v46, %v4306_v38  ;;  %v14161_v46 = vmax.f32 %v11440_v47, %v11482_v57 }
 0x7a8   : > { %v4321_v13 = vpop.f32.mrf.mxu0 }
 0x7ac   : > { %v4422_v56 = vpop.f32.mrf.mxu1 }
 0x7b4   : > { %v4425_v60 = vpop.f32.mrf.mxu1 }
 0x7b5   : > { %v4426_v15 = vadd.f32 %v4425_v60, %v4312_v30  ;;  %v4515_v60 = vsel %vm14153_vm15, %v11516_v9, -inf  ;;  %v4510_v30 = vmax.f32 %v4502_v48, %v4509_v44  ;;  %v14156_v48 = vld [vmem:[#allocation20_spill] sm:$0xff]  ;;  %v4423_v44 = vadd.f32 %v4422_v56, %v4309_v52 }
 0x7b6   : > { %v4516_v43 = vmax.f32 %v4508_v10, %v4515_v60  ;;  %v11548_v60 = vsel %vm13876_vm12, %v4408_v22, -inf  ;;  %vm14159_vm15 = vnez %v13503_v55  ;;  %vm14185_vm12 = vmmov %vm14164_vm0 }
 0x7b7   : > { %v11528_v61 = vsel %vm13942_vm1, %v4426_v15, -inf  ;;  %v4518_v37 = vmax.f32 %v4510_v30, %v4517_v23  ;;  %v11552_v23 = vsel %vm13872_vm13, %v4411_v27, -inf  ;;  %v4511_v38 = vsel %vm14160_vm14, %v11548_v60, -inf  ;;  %vm14165_vm14 = vmmov %vm14164_vm0 }
 0x7b8   : > { %v4523_v51 = vsel %vm14155_vm9, %v11528_v61, -inf  ;;  %vm14157_vm9 = vmmov %vm14146_vm5  ;;  %v4513_v52 = vsel %vm14146_vm5, %v11552_v23, -inf  ;;  %v4512_v56 = vmax.f32 %v11504_v24, %v4511_v38 }
 0x7b9   : > { %v4524_v35 = vmax.f32 %v4516_v43, %v4523_v51 }
 0x7bc   : > { %v4428_v39 = vpop.f32.mrf.mxu1 }
 0x7bd   : > { %v4429_v6 = vadd.f32 %v4428_v39, %v4315_v18  ;;  %v11544_v18 = vsel %vm13700_vm8, %v4399_v42, -inf  ;;  %vm14163_vm8 = vmmov %vm14146_vm5 }
 0x7bf   : > { %v11538_v14 = vsel %vm13951_vm7, %v4429_v6, -inf }
 0x7c0   : > { %v4525_v15 = vsel %vm14146_vm5, %v11538_v14, -inf  ;;  %vm14166_vm5 = vnez %v13279_v49  ;;  %v14338_v49 = vld [vmem:[#allocation188_spill] sm:$0xff] }
 0x7c1   : > { %v4526_v7 = vmax.f32 %v4518_v37, %v4525_v15  ;;  %v4505_v37 = vsel %vm14157_vm9, %v11544_v18, -inf  ;;  %vm14162_vm9 = vnez %v13808_v45  ;;  %v14341_v45 = vld [vmem:[#allocation55_spill] sm:$0xff] }
 0x7c3   : > { %v4531_v62 = vmax.f32 %v4524_v35, %v4526_v7  ;;  %v11558_v35 = vsel %vm14158_vm11, %v4420_v16, -inf  ;;  %v11562_v7 = vsel %vm14159_vm15, %v4423_v44, -inf }
 0x7c4   : > { %v4431_v53 = vpop.f32.mrf.mxu1  ;;  %v4519_v11 = vsel %vm14163_vm8, %v11558_v35, -inf  ;;  %v4521_v42 = vsel %vm14164_vm0, %v11562_v7, -inf  ;;  %vm14167_vm8 = vmmov %vm14164_vm0 }
 0x7c5   : > { %v4432_v43 = vadd.f32 %v4431_v53, %v4318_v33  ;;  %v4506_v33 = vmax.f32 %v14161_v46, %v4505_v37  ;;  %v4520_v57 = vmax.f32 %v4512_v56, %v4519_v11  ;;  %v11588_v46 = vld [vmem:[#allocation2] sm:$0x1] }
 0x7c7   : > { %v11573_v27 = vsel %vm14162_vm9, %v4432_v43, -inf  ;;  %v4514_v39 = vmax.f32 %v4506_v33, %v4513_v52 }
 0x7c8   : > { %v4527_v47 = vsel %vm14165_vm14, %v11573_v27, -inf  ;;  %vm14168_vm14 = vmmov %vm14164_vm0 }
 0x7c9   : > { %v4522_v30 = vmax.f32 %v4514_v39, %v4521_v42  ;;  %v4528_v15 = vmax.f32 %v4520_v57, %v4527_v47 }
 0x7cc   : > { %v4434_v22 = vpop.f32.mrf.mxu1 }
 0x7cd   : > { %v4435_v10 = vadd.f32 %v4434_v22, %v4321_v13 }
 0x7cf   : > { %v11584_v6 = vsel %vm14166_vm5, %v4435_v10, -inf }
 0x7d0   : > { %v4529_v51 = vsel %vm14167_vm8, %v11584_v6, -inf  ;;  %vm14169_vm8 = vmmov %vm14164_vm0 }
 0x7d1   : > { %v4530_v53 = vmax.f32 %v4522_v30, %v4529_v51 }
 0x7d3   : > { %v4532_v16 = vmax.f32 %v4528_v15, %v4530_v53 }
 0x7d5   : > { %v4533_v44 = vmax.f32 %v4531_v62, %v4532_v16 }
 0x7d7   : > { %v4534_v43 = vrot.slane %v4533_v44, 4 }
 0x7d9   : > { %v4535_v24 = vmax.f32 %v4533_v44, %v4534_v43 }
 0x7db   : > { %v4536_v37 = vrot.slane %v4535_v24, 2 }
 0x7dd   : > { %v4537_v38 = vmax.f32 %v4535_v24, %v4536_v37 }
 0x7df   : > { %v4538_v52 = vrot.slane %v4537_v38, 1 }
 0x7e1   : > { %v4539_v33 = vmax.f32 %v4537_v38, %v4538_v52 }
 0x7e3   : > { %v11591_v11 = vmax.f32 %v11588_v46, %v4539_v33 }
 0x7e5   : > { %v11594_v13 = vperm.slane %v11591_v11, 0  ;;  %4969 = vst.msk [vmem:[#allocation2] sm:$0x1] %vm12632_vm10, %v11591_v11  ;;  %vm14184_vm10 = vmmov %vm14164_vm0 }
 0x7e7   : > { %v4547_v42 = vsub.f32 %v11263_v34, %v11594_v13  ;;  %v4548_v62 = vsub.f32 %v11291_v25, %v11594_v13  ;;  %v4549_v22 = vsub.f32 %v11319_v12, %v11594_v13  ;;  %v4550_v56 = vsub.f32 %v11347_v8, %v11594_v13 }
 0x7e8   : > { %v4551_v39 = vsub.f32 %v11270_v2, %v11594_v13  ;;  %v4552_v10 = vsub.f32 %v11298_v31, %v11594_v13  ;;  %v4553_v47 = vsub.f32 %v11326_v19, %v11594_v13  ;;  %v4554_v34 = vsub.f32 %v11354_v32, %v11594_v13 }
 0x7e9   : > { %v4555_v25 = vsub.f32 %v11376_v63, %v11594_v13  ;;  %v4556_v12 = vsub.f32 %v11395_v28, %v11594_v13  ;;  %v4557_v8 = vsub.f32 %v11414_v5, %v11594_v13  ;;  %v4558_v2 = vsub.f32 %v11433_v36, %v11594_v13 }
 0x7ea   : > { %v4559_v31 = vsub.f32 %v11449_v20, %v11594_v13  ;;  %v4560_v19 = vsub.f32 %v11461_v4, %v11594_v13  ;;  %v4561_v32 = vsub.f32 %v11470_v17, %v11594_v13  ;;  %v4562_v63 = vsub.f32 %v11478_v26, %v11594_v13 }
 0x7eb   : > { %v4563_v28 = vsub.f32 %v11488_v21, %v11594_v13  ;;  %v4564_v5 = vsub.f32 %v11494_v54, %v11594_v13  ;;  %v4565_v36 = vsub.f32 %v11500_v40, %v11594_v13  ;;  %v4573_v20 = vsub.f32 %v11558_v35, %v11594_v13 }
 0x7ec   : > { %v4579_v57 = vmul.f32 1.442695, %v4547_v42  ;;  %v4581_v4 = vmul.f32 1.442695, %v4548_v62  ;;  %v4583_v30 = vmul.f32 1.442695, %v4549_v22  ;;  %v4566_v21 = vsub.f32 %v11544_v18, %v11594_v13 }
 0x7ed   : > { %v4585_v17 = vmul.f32 1.442695, %v4550_v56  ;;  %v4587_v26 = vmul.f32 1.442695, %v4551_v39  ;;  %v4589_v51 = vmul.f32 1.442695, %v4552_v10  ;;  %v4574_v18 = vsub.f32 %v11562_v7, %v11594_v13 }
 0x7ee   : > { %6168 = vpow2.f32 %v4579_v57  ;;  %v4591_v53 = vmul.f32 1.442695, %v4553_v47  ;;  %v4593_v43 = vmul.f32 1.442695, %v4554_v34  ;;  %v4595_v52 = vmul.f32 1.442695, %v4555_v25 }
 0x7ef   : > { %6170 = vpow2.f32 %v4581_v4  ;;  %v6484_v42 = vmov 0   ;;  %v4609_v62 = vmul.f32 1.442695, %v4562_v63  ;;  %v4597_v39 = vmul.f32 1.442695, %v4556_v12 }
 0x7f0   : > { %6172 = vpow2.f32 %v4583_v30  ;;  %5911 = vset.pattern.permute.xlu0 %v6484_v42  ;;  %v4607_v47 = vmul.f32 1.442695, %v4561_v32  ;;  %v4599_v63 = vmul.f32 1.442695, %v4557_v8  ;;  %v4605_v4 = vmul.f32 1.442695, %v4560_v19 }
 0x7f1   : > { %6174 = vpow2.f32 %v4585_v17  ;;  %v4601_v12 = vmul.f32 1.442695, %v4558_v2  ;;  %v4578_v42 = vsub.f32 %v11584_v6, %v11594_v13 }
 0x7f2   : > { %6176 = vpow2.f32 %v4587_v26 }
 0x7f3   : > { %6178 = vpow2.f32 %v4589_v51  ;;  %v4603_v51 = vmul.f32 1.442695, %v4559_v31 }
 0x7f4   : > { %v11636_v15 = vpop.eup %6168  ;;  %6180 = vpow2.f32 %v4591_v53 }
 0x7f5   : > { %v11638_v16 = vpop.eup %6170  ;;  %v4645_v24 = vsel %vm14164_vm0, %v11636_v15, 0.0  ;;  %6182 = vpow2.f32 %v4593_v43 }
 0x7f6   : > { %v11640_v44 = vpop.eup %6172  ;;  %v4646_v37 = vsel %vm14168_vm14, %v11638_v16, 0.0  ;;  %6184 = vpow2.f32 %v4595_v52  ;;  %vm14170_vm14 = vmmov %vm14164_vm0 }
 0x7f7   : > { %v11646_v38 = vpop.eup %6174  ;;  %v4647_v33 = vadd.f32 %v4646_v37, %v4645_v24  ;;  %v4648_v22 = vsel %vm14169_vm8, %v11640_v44, 0.0  ;;  %6186 = vpow2.f32 %v4609_v62  ;;  %vm14171_vm8 = vmmov %vm14164_vm0 }
 0x7f8   : > { %v11650_v56 = vpop.eup %6176  ;;  %v4650_v34 = vsel %vm14164_vm0, %v11646_v38, 0.0  ;;  %6188 = vpow2.f32 %v4597_v39 }
 0x7f9   : > { %v4649_v10 = vadd.f32 %v4648_v22, %v4647_v33  ;;  %v11656_v25 = vpop.eup %6178  ;;  %v4652_v30 = vsel %vm14170_vm14, %v11650_v56, 0.0  ;;  %6190 = vpow2.f32 %v4607_v47  ;;  %vm14172_vm14 = vmmov %vm14164_vm0 }
 0x7fa   : > { %v11660_v17 = vpop.eup %6180  ;;  %v4654_v32 = vsel %vm14171_vm8, %v11656_v25, 0.0  ;;  %6192 = vpow2.f32 %v4599_v63  ;;  %vm14173_vm8 = vmmov %vm14164_vm0  ;;  %v4611_v63 = vmul.f32 1.442695, %v4563_v28 }
 0x7fb   : > { %v4651_v57 = vadd.f32 %v4650_v34, %v4649_v10  ;;  %v11664_v53 = vpop.eup %6182  ;;  %6194 = vpow2.f32 %v4605_v4  ;;  %v4656_v19 = vsel %vm14164_vm0, %v11660_v17, 0.0  ;;  %v4541_v10 = vsub.f32 %v11588_v46, %v11591_v11 }
 0x7fc   : > { %v11668_v43 = vpop.eup %6184  ;;  %6196 = vpow2.f32 %v4601_v12  ;;  %v4658_v2 = vsel %vm14172_vm14, %v11664_v53, 0.0  ;;  %v4577_v34 = vsub.f32 %v11573_v27, %v11594_v13  ;;  %v4613_v4 = vmul.f32 1.442695, %v4564_v5  ;;  %vm14174_vm14 = vmmov %vm14164_vm0 }
 0x7fd   : > { %v4653_v26 = vadd.f32 %v4652_v30, %v4651_v57  ;;  %v11670_v37 = vpop.eup %6186  ;;  %6198 = vpow2.f32 %v4603_v51  ;;  %v4660_v62 = vsel %vm14173_vm8, %v11668_v43, 0.0  ;;  %v4576_v46 = vsub.f32 %v11538_v14, %v11594_v13  ;;  %vm14175_vm8 = vmmov %vm14164_vm0 }
 0x7fe   : > { %v6189_v31 = vpop.eup %6188  ;;  %5788 = vmatpush.lsf.msrb.mxu2 %v11670_v37  ;;  %v4641_v11 = vmul.f32 1.442695, %v4578_v42  ;;  %v4575_v51 = vsub.f32 %v11528_v61, %v11594_v13  ;;  %6200 = vpow2.f32 %v4611_v63  ;;  %v4639_v54 = vmul.f32 1.442695, %v4577_v34 }
 0x7ff   : > { %v4655_v8 = vadd.f32 %v4654_v32, %v4653_v26  ;;  %v6191_v33 = vpop.eup %6190  ;;  %v4662_v57 = vsel %vm14164_vm0, %v6189_v31, 0.0  ;;  %v4542_v26 = vmul.f32 1.442695, %v4541_v10  ;;  %v4567_v32 = vsub.f32 %v11508_v1, %v11594_v13 }
 0x800   : > { %v6193_v22 = vpop.eup %6192  ;;  %5789 = vmatpush.lsf.msrb.mxu2 %v6191_v33  ;;  %6202 = vpow2.f32 %v4613_v4  ;;  %v4615_v14 = vmul.f32 1.442695, %v4565_v36  ;;  %v4635_v1 = vmul.f32 1.442695, %v4575_v51  ;;  %v4569_v36 = vsub.f32 %v11548_v60, %v11594_v13 }
 0x801   : > { %v4657_v24 = vadd.f32 %v4656_v19, %v4655_v8  ;;  %v6195_v47 = vpop.eup %6194  ;;  %v4664_v27 = vsel %vm14174_vm14, %v6193_v22, 0.0  ;;  %v4637_v19 = vmul.f32 1.442695, %v4576_v46  ;;  %6204 = vpow2.f32 %v4641_v11  ;;  %vm14176_vm14 = vmmov %vm14164_vm0 }
 0x802   : > { %v6197_v6 = vpop.eup %6196  ;;  %5790 = vmatpush.lsf.msrb.mxu2 %v6195_v47  ;;  %6206 = vpow2.f32 %v4542_v26  ;;  %v4670_v40 = vsel %vm14176_vm14, %v6195_v47, 0.0  ;;  %v4619_v7 = vmul.f32 1.442695, %v4567_v32  ;;  %v4570_v47 = vsub.f32 %v11552_v23, %v11594_v13  ;;  %vm14178_vm14 = vmmov %vm14164_vm0 }
 0x803   : > { %v4659_v52 = vadd.f32 %v4658_v2, %v4657_v24  ;;  %v6199_v12 = vpop.eup %6198  ;;  %v4666_v5 = vsel %vm14175_vm8, %v6197_v6, 0.0  ;;  %v4568_v24 = vsub.f32 %v11512_v58, %v11594_v13  ;;  %v4617_v2 = vmul.f32 1.442695, %v4566_v21  ;;  %vm14177_vm8 = vmmov %vm14164_vm0 }
 0x804   : > { %5791 = vmatpush.lsf.msrb.mxu2 %v6199_v12  ;;  %v4668_v61 = vsel %vm14164_vm0, %v6199_v12, 0.0  ;;  %6208 = vpow2.f32 %v4639_v54  ;;  %v4572_v58 = vsub.f32 %v11520_v3, %v11594_v13  ;;  %v4571_v63 = vsub.f32 %v11516_v9, %v11594_v13 }
 0x805   : > { %v4661_v39 = vadd.f32 %v4660_v62, %v4659_v52  ;;  %6210 = vpow2.f32 %v4615_v14  ;;  %v11711_v62 = vpop.eup %6200  ;;  %v4621_v60 = vmul.f32 1.442695, %v4568_v24  ;;  %v4631_v3 = vmul.f32 1.442695, %v4573_v20 }
 0x806   : > { %5792 = vmatpush.lsf.msrb.mxu2 %v6197_v6  ;;  %6212 = vpow2.f32 %v4637_v19  ;;  %v11716_v10 = vpop.eup %6202  ;;  %v4623_v23 = vmul.f32 1.442695, %v4569_v36  ;;  %v4629_v9 = vmul.f32 1.442695, %v4572_v58  ;;  %v4676_v35 = vsel %vm14178_vm14, %v11711_v62, 0.0  ;;  %vm14180_vm14 = vmmov %vm14164_vm0 }
 0x807   : > { %v4663_v30 = vadd.f32 %v4662_v57, %v4661_v39  ;;  %v4633_v39 = vmul.f32 1.442695, %v4574_v18  ;;  %6214 = vpow2.f32 %v4617_v2  ;;  %v4625_v20 = vmul.f32 1.442695, %v4570_v47 }
 0x808   : > { %5793 = vmatpush.lsf.msrb.mxu2 %v6193_v22  ;;  %v4672_v22 = vsel %vm14177_vm8, %v6191_v33, 0.0  ;;  %6216 = vpow2.f32 %v4635_v1  ;;  %v4674_v33 = vsel %vm14164_vm0, %v11670_v37, 0.0  ;;  %vm14179_vm8 = vmmov %vm14164_vm0 }
 0x809   : > { %v4665_v28 = vadd.f32 %v4664_v27, %v4663_v30  ;;  %6218 = vpow2.f32 %v4619_v7  ;;  %v4678_v30 = vsel %vm14179_vm8, %v11716_v10, 0.0  ;;  %vm14181_vm8 = vmmov %vm14164_vm0 }
 0x80a   : > { %5794 = vmatpush.lsf.msrb.mxu2 %v6189_v31  ;;  %v11721_v31 = vpop.eup %6204  ;;  %6220 = vpow2.f32 %v4633_v39 }
 0x80b   : > { %v4667_v8 = vadd.f32 %v4666_v5, %v4665_v28  ;;  %v11730_v57 = vpop.eup %6206  ;;  %5821 = vmatpush.lsf.msrb.mxu3 %v11721_v31  ;;  %6222 = vpow2.f32 %v4621_v60 }
 0x80c   : > { %5795 = vmatpush.lsf.msrb.mxu2 %v11668_v43  ;;  %v11734_v43 = vpop.eup %6208  ;;  %4720 = vperm.xlu0 %5911, %v11730_v57   ;;  %6224 = vpow2.f32 %v4631_v3 }
 0x80d   : > { %v4669_v52 = vadd.f32 %v4668_v61, %v4667_v8  ;;  %v11739_v13 = vpop.eup %6210  ;;  %5822 = vmatpush.lsf.msrb.mxu3 %v11734_v43  ;;  %6226 = vpow2.f32 %v4623_v23  ;;  %v4704_v60 = vsel %vm14164_vm0, %v11734_v43, 0.0  ;;  %v14191_v43 = vld [vmem:[#allocation167_spill] sm:$0xff] }
 0x80e   : > { %5796 = vmatpush.lsf.msrb.mxu2 %v11664_v53  ;;  %v6213_v4 = vpop.eup %6212  ;;  %v4627_v53 = vmul.f32 1.442695, %v4571_v63  ;;  %6228 = vpow2.f32 %v4629_v9  ;;  %v4680_v27 = vsel %vm14164_vm0, %v11739_v13, 0.0 }
 0x80f   : > { %v4671_v42 = vadd.f32 %v4670_v40, %v4669_v52  ;;  %v6215_v12 = vpop.eup %6214  ;;  %5823 = vmatpush.lsf.msrb.mxu3 %v6213_v4  ;;  %6230 = vpow2.f32 %v4625_v20 }
 0x810   : > { %5797 = vmatpush.lsf.msrb.mxu2 %v11660_v17  ;;  %v6217_v11 = vpop.eup %6216  ;;  %6232 = vpow2.f32 %v4627_v53  ;;  %v4682_v26 = vsel %vm14180_vm14, %v6215_v12, 0.0  ;;  %vm14182_vm14 = vmmov %vm14164_vm0  ;;  %v14195_v53 = vld [vmem:[#allocation156_spill] sm:$0xff] }
 0x811   : > { %v4673_v34 = vadd.f32 %v4672_v22, %v4671_v42  ;;  %v6219_v21 = vpop.eup %6218  ;;  %5824 = vmatpush.lsf.msrb.mxu3 %v6217_v11 }
 0x812   : > { %5798 = vmatpush.lsf.msrb.mxu2 %v11656_v25  ;;  %v6221_v28 = vpop.eup %6220  ;;  %v4684_v5 = vsel %vm14181_vm8, %v6219_v21, 0.0  ;;  %vm14183_vm8 = vmmov %vm14164_vm0 }
 0x813   : > { %v4675_v6 = vadd.f32 %v4674_v33, %v4673_v34  ;;  %v6223_v51 = vpop.eup %6222  ;;  %5825 = vmatpush.lsf.msrb.mxu3 %v6221_v28 }
 0x814   : > { %5799 = vmatpush.lsf.msrb.mxu2 %v11650_v56  ;;  %v6225_v25 = vpop.eup %6224  ;;  %v4686_v56 = vsel %vm14164_vm0, %v6223_v51, 0.0 }
 0x815   : > { %v4677_v37 = vadd.f32 %v4676_v35, %v4675_v6  ;;  %v6227_v32 = vpop.eup %6226  ;;  %5826 = vmatpush.lsf.msrb.mxu3 %v6225_v25  ;;  %v4643_v35 = vld [vmem:[#allocation3] sm:$0x1] }
 0x816   : > { %5800 = vmatpush.lsf.msrb.mxu2 %v11646_v38  ;;  %v6229_v8 = vpop.eup %6228  ;;  %v4688_v24 = vsel %vm14182_vm14, %v6227_v32, 0.0  ;;  %vm14186_vm14 = vmmov %vm14164_vm0 }
 0x817   : > { %v4679_v46 = vadd.f32 %v4678_v30, %v4677_v37  ;;  %v6231_v18 = vpop.eup %6230  ;;  %5827 = vmatpush.lsf.msrb.mxu3 %v6229_v8  ;;  %v4694_v40 = vsel %vm14164_vm0, %v6229_v8, 0.0  ;;  %v4698_v42 = vsel %vm14186_vm14, %v6221_v28, 0.0  ;;  %vm14190_vm14 = vcmask 0   ;;  %v14197_v30 = vld [vmem:[#allocation155_spill] sm:$0xff]  ;;  %v14209_v28 = vld [vmem:[#allocation138_spill] sm:$0xff] }
 0x818   : > { %5801 = vmatpush.lsf.msrb.mxu2 %v11640_v44  ;;  %v6233_v61 = vpop.eup %6232  ;;  %v4690_v2 = vsel %vm14183_vm8, %v6231_v18, 0.0  ;;  %vm14187_vm8 = vmmov %vm14164_vm0  ;;  %v14220_v8 = vld [vmem:[#allocation31_spill] sm:$0xff] }
 0x819   : > { %v4681_v17 = vadd.f32 %v4680_v27, %v4679_v46  ;;  %5828 = vmatpush.lsf.msrb.mxu3 %v6233_v61  ;;  %v4692_v44 = vsel %vm14184_vm10, %v6233_v61, 0.0  ;;  %v4700_v58 = vsel %vm14187_vm8, %v6217_v11, 0.0  ;;  %vm14188_vm10 = vmmov %vm14164_vm0  ;;  %vm14196_vm8 = vnez %v14195_v53  ;;  %v14201_v46 = vld [vmem:[#allocation148_spill] sm:$0xff]  ;;  %v14203_v11 = vld [vmem:[#allocation147_spill] sm:$0xff] }
 0x81a   : > { %5802 = vmatpush.lsf.msrb.mxu2 %v11638_v16  ;;  %v4696_v16 = vsel %vm14185_vm12, %v6225_v25, 0.0  ;;  %v4702_v22 = vsel %vm14188_vm10, %v6213_v4, 0.0  ;;  %vm14189_vm12 = vmmov %vm14164_vm0  ;;  %v14194_v4 = vld [vmem:[#allocation159_spill] sm:$0xff]  ;;  %vm14202_vm0 = vnez %v14201_v46  ;;  %v14204_v27 = vld [vmem:[#allocation144_spill] sm:$0xff] }
 0x81b   : > { %v4683_v54 = vadd.f32 %v4682_v26, %v4681_v17  ;;  %5829 = vmatpush.lsf.msrb.mxu3 %v6231_v18  ;;  %v4706_v63 = vsel %vm14189_vm12, %v11721_v31, 0.0  ;;  %v14193_v31 = vld [vmem:[#allocation160_spill] sm:$0xff]  ;;  %vm14205_vm12 = vnez %v14204_v27  ;;  %v14210_v26 = vld [vmem:[#allocation135_spill] sm:$0xff]  ;;  %v14214_v25 = vld [vmem:[#allocation130_spill] sm:$0xff] }
 0x81c   : > { %5803 = vmatpush.lsf.msrb.mxu2 %v11636_v15  ;;  %v14207_v17 = vld [vmem:[#allocation140_spill] sm:$0xff]  ;;  %v14222_v18 = vld [vmem:[#allocation123_spill] sm:$0xff]  ;;  %v14322_v53 = vld [vmem:[#allocation29_spill] sm:$0xff] }
 0x81d   : > { %v4685_v14 = vadd.f32 %v4684_v5, %v4683_v54  ;;  %5804 = vllmr.1.mxu2  ;;  %5830 = vmatpush.lsf.msrb.mxu3 %v6227_v32  ;;  %v14213_v54 = vld [vmem:[#allocation133_spill] sm:$0xff]  ;;  %v14348_v61 = vld [vmem:[#allocation75_spill] sm:$0xff] }
 0x81e   : > { %v14216_v5 = vld [vmem:[#allocation93_spill] sm:$0xff] }
 0x81f   : > { %v4687_v19 = vadd.f32 %v4686_v56, %v4685_v14  ;;  %5831 = vmatpush.lsf.msrb.mxu3 %v6223_v51  ;;  %v14212_v51 = vld [vmem:[#allocation37_spill] sm:$0xff]  ;;  %v14218_v14 = vld [vmem:[#allocation126_spill] sm:$0xff] }
 0x820   : > { %v14217_v32 = vld [vmem:[#allocation129_spill] sm:$0xff] }
 0x821   : > { %v4689_v38 = vadd.f32 %v4688_v24, %v4687_v19  ;;  %5832 = vmatpush.lsf.msrb.mxu3 %v6219_v21  ;;  %v14206_v21 = vld [vmem:[#allocation143_spill] sm:$0xff]  ;;  %v14221_v56 = vld [vmem:[#allocation125_spill] sm:$0xff]  ;;  %v14226_v24 = vld [vmem:[#allocation122_spill] sm:$0xff] }
 0x822   : > { %v14224_v19 = vld [vmem:[#allocation87_spill] sm:$0xff]  ;;  %v14331_v27 = vld [vmem:[#allocation181_spill] sm:$0xff] }
 0x823   : > { %v4691_v52 = vadd.f32 %v4690_v2, %v4689_v38  ;;  %5833 = vmatpush.lsf.msrb.mxu3 %v6215_v12  ;;  %v14198_v12 = vld [vmem:[#allocation152_spill] sm:$0xff]  ;;  %v14229_v2 = vld [vmem:[#allocation97_spill] sm:$0xff] }
 0x824   : > { %vm14199_vm10 = vnez %v14198_v12  ;;  %v14227_v38 = vld [vmem:[#allocation120_spill] sm:$0xff] }
 0x825   : > { %v4693_v1 = vadd.f32 %v4692_v44, %v4691_v52  ;;  %5834 = vmatpush.lsf.msrb.mxu3 %v11739_v13  ;;  %v14230_v52 = vld [vmem:[#allocation119_spill] sm:$0xff]  ;;  %v14231_v44 = vld [vmem:[#allocation117_spill] sm:$0xff] }
 0x827   : > { %v4695_v36 = vadd.f32 %v4694_v40, %v4693_v1  ;;  %5835 = vmatpush.lsf.msrb.mxu3 %v11716_v10  ;;  %v4644_v10 = vmul.f32 %v11730_v57, %v4643_v35  ;;  %v14200_v57 = vld [vmem:[#allocation151_spill] sm:$0xff]  ;;  %v14233_v1 = vld [vmem:[#allocation94_spill] sm:$0xff]  ;;  %v14234_v40 = vld [vmem:[#allocation116_spill] sm:$0xff] }
 0x828   : > { %v14258_v35 = vld [vmem:[#allocation64_spill] sm:$0xff] }
 0x829   : > { %v4697_v7 = vadd.f32 %v4696_v16, %v4695_v36  ;;  %5836 = vmatpush.lsf.msrb.mxu3 %v11711_v62  ;;  %v14192_v62 = vld [vmem:[#allocation163_spill] sm:$0xff]  ;;  %v14235_v36 = vld [vmem:[#allocation113_spill] sm:$0xff] }
 0x82a   : > { %5837 = vllmr.1.mxu3  ;;  %v14237_v16 = vld [vmem:[#allocation91_spill] sm:$0xff] }
 0x82b   : > { %v4699_v15 = vadd.f32 %v4698_v42, %v4697_v7  ;;  %v14239_v42 = vld [vmem:[#allocation112_spill] sm:$0xff] }
 0x82c   : > { %v14359_v7 = vld [vmem:[#allocation76_spill] sm:$0xff] }
 0x82d   : > { %v4701_v39 = vadd.f32 %v4700_v58, %v4699_v15  ;;  %v14240_v15 = vld [vmem:[#allocation109_spill] sm:$0xff]  ;;  %v14242_v58 = vld [vmem:[#allocation88_spill] sm:$0xff] }
 0x82f   : > { %v4703_v47 = vadd.f32 %v4702_v22, %v4701_v39  ;;  %v14243_v39 = vld [vmem:[#allocation176_spill] sm:$0xff] }
 0x830   : > { %v14244_v22 = vld [vmem:[#allocation108_spill] sm:$0xff] }
 0x831   : > { %v4705_v34 = vadd.f32 %v4704_v60, %v4703_v47  ;;  %v14245_v47 = vld [vmem:[#allocation105_spill] sm:$0xff] }
 0x832   : > { %v14247_v60 = vld [vmem:[#allocation85_spill] sm:$0xff] }
 0x833   : > { %v4707_v3 = vadd.f32 %v4706_v63, %v4705_v34  ;;  %v14248_v34 = vld [vmem:[#allocation200_spill] sm:$0xff]  ;;  %v14249_v63 = vld [vmem:[#allocation82_spill] sm:$0xff] }
 0x835   : > { %v4708_v33 = vrot.slane %v4707_v3, 4 }
 0x837   : > { %v4709_v23 = vadd.f32 %v4708_v33, %v4707_v3  ;;  %v14251_v3 = vld [vmem:[#allocation198_spill] sm:$0xff] }
 0x838   : > { %v14253_v33 = vld [vmem:[#allocation66_spill] sm:$0xff] }
 0x839   : > { %v4710_v6 = vrot.slane %v4709_v23, 2 }
 0x83b   : > { %v4711_v9 = vadd.f32 %v4710_v6, %v4709_v23  ;;  %v14254_v23 = vld [vmem:[#allocation27_spill] sm:$0xff]  ;;  %v14256_v6 = vld [vmem:[#allocation196_spill] sm:$0xff] }
 0x83d   : > { %v4712_v13 = vrot.slane %v4711_v9, 1 }
 0x83e   : > { %5805 = vmatmul.lmr.bf16.vlgmr.msra.gmra.1.mxu2 }
 0x83f   : > { %v4713_v20 = vadd.f32 %v4712_v13, %v4711_v9  ;;  %5640 = vmatpush.msk.msra.mxu2 %vm13988_vm3, %v14191_v43  ;;  %v14257_v9 = vld [vmem:[#allocation24_spill] sm:$0xff]  ;;  %v14260_v13 = vld [vmem:[#allocation195_spill] sm:$0xff] }
 0x840   : > { %v14266_v43 = vld [vmem:[#allocation60_spill] sm:$0xff] }
 0x841   : > { %v4714_v37 = vadd.f32 %v4713_v20, %v4644_v10  ;;  %5641 = vmatpush.msk.msra.mxu2 %vm14144_vm6, %v14192_v62  ;;  %vm14211_vm6 = vnez %v14210_v26  ;;  %v14261_v20 = vld [vmem:[#allocation70_spill] sm:$0xff]  ;;  %v14263_v10 = vld [vmem:[#allocation192_spill] sm:$0xff]  ;;  %v14268_v62 = vld [vmem:[#allocation191_spill] sm:$0xff] }
 0x843   : > { %4716 = vst.msk [vmem:[#allocation3] sm:$0x1] %vm14190_vm14, %v4714_v37  ;;  %5642 = vmatpush.msk.msra.mxu2 %vm14196_vm8, %v14194_v4  ;;  %vm14208_vm14 = vnez %v14207_v17  ;;  %v14265_v37 = vld [vmem:[#allocation103_spill] sm:$0xff] }
 0x844   : > { %v14269_v4 = vld [vmem:[#allocation59_spill] sm:$0xff] }
 0x845   : > { %5643 = vmatpush.msk.msra.mxu2 %vm14199_vm10, %v14197_v30  ;;  %v14270_v30 = vld [vmem:[#allocation99_spill] sm:$0xff] }
 0x847   : > { %5644 = vmatpush.msk.msra.mxu2 %vm14202_vm0, %v14200_v57  ;;  %vm14215_vm0 = vnez %v14214_v25  ;;  %v14272_v57 = vld [vmem:[#allocation187_spill] sm:$0xff] }
 0x849   : > { %5645 = vmatpush.msk.msra.mxu2 %vm14205_vm12, %v14203_v11  ;;  %v14274_v11 = vld [vmem:[#allocation170_spill] sm:$0xff] }
 0x84b   : > { %5646 = vmatpush.msk.msra.mxu2 %vm14208_vm14, %v14206_v21  ;;  %5838 = vmatmul.lmr.bf16.vlgmr.msra.gmra.1.mxu3  ;;  %vm14219_vm14 = vnez %v14218_v14  ;;  %v14275_v21 = vld [vmem:[#allocation168_spill] sm:$0xff] }
 0x84c   : > { %5656 = vmatpush.msk.msra.mxu3 %vm14166_vm5, %v14212_v51  ;;  %v14279_v51 = vld [vmem:[#allocation90_spill] sm:$0xff] }
 0x84d   : > { %5647 = vmatpush.msk.msra.mxu2 %vm14211_vm6, %v14209_v28  ;;  %vm14223_vm6 = vnez %v14222_v18  ;;  %v14277_v28 = vld [vmem:[#allocation183_spill] sm:$0xff] }
 0x84e   : > { %5657 = vmatpush.msk.msra.mxu3 %vm14162_vm9, %v14216_v5  ;;  %v14282_v5 = vld [vmem:[#allocation57_spill] sm:$0xff] }
 0x84f   : > { %5648 = vmatpush.msk.msra.mxu2 %vm14215_vm0, %v14213_v54  ;;  %vm14228_vm0 = vnez %v14227_v38  ;;  %v14280_v54 = vld [vmem:[#allocation180_spill] sm:$0xff] }
 0x850   : > { %5658 = vmatpush.msk.msra.mxu3 %vm13951_vm7, %v14220_v8  ;;  %v14285_v8 = vld [vmem:[#allocation56_spill] sm:$0xff] }
 0x851   : > { %5649 = vmatpush.msk.msra.mxu2 %vm14219_vm14, %v14217_v32  ;;  %vm14232_vm14 = vnez %v14231_v44  ;;  %v14283_v32 = vld [vmem:[#allocation177_spill] sm:$0xff] }
 0x852   : > { %5659 = vmatpush.msk.msra.mxu3 %vm13942_vm1, %v14224_v19  ;;  %v14288_v19 = vld [vmem:[#allocation83_spill] sm:$0xff] }
 0x853   : > { %5650 = vmatpush.msk.msra.mxu2 %vm14223_vm6, %v14221_v56  ;;  %vm14236_vm6 = vnez %v14235_v36  ;;  %v14286_v56 = vld [vmem:[#allocation174_spill] sm:$0xff] }
 0x854   : > { %5660 = vmatpush.msk.msra.mxu3 %vm14159_vm15, %v14229_v2  ;;  %v14291_v2 = vld [vmem:[#allocation80_spill] sm:$0xff] }
 0x855   : > { %5651 = vmatpush.msk.msra.mxu2 %vm14228_vm0, %v14226_v24  ;;  %vm14241_vm0 = vnez %v14240_v15  ;;  %v14289_v24 = vld [vmem:[#allocation171_spill] sm:$0xff] }
 0x856   : > { %5661 = vmatpush.msk.msra.mxu3 %vm14158_vm11, %v14233_v1  ;;  %v14294_v1 = vld [vmem:[#allocation53_spill] sm:$0xff] }
 0x857   : > { %5652 = vmatpush.msk.msra.mxu2 %vm14232_vm14, %v14230_v52  ;;  %vm14246_vm14 = vnez %v14245_v47  ;;  %v14292_v52 = vld [vmem:[#allocation26_spill] sm:$0xff] }
 0x858   : > { %5662 = vmatpush.msk.msra.mxu3 %vm13856_vm2, %v14237_v16  ;;  %v14296_v16 = vld [vmem:[#allocation74_spill] sm:$0xff] }
 0x859   : > { %5653 = vmatpush.msk.msra.mxu2 %vm14236_vm6, %v14234_v40  ;;  %v14295_v40 = vld [vmem:[#allocation73_spill] sm:$0xff] }
 0x85a   : > { %5663 = vmatpush.msk.msra.mxu3 %vm13859_vm4, %v14242_v58  ;;  %vm14252_vm4 = vnez %v14193_v31  ;;  %v14299_v58 = vld [vmem:[#allocation81_spill] sm:$0xff] }
 0x85b   : > { %5654 = vmatpush.msk.msra.mxu2 %vm14241_vm0, %v14239_v42  ;;  %vm14250_vm0 = vnez %v13177_v50  ;;  %v14297_v42 = vld [vmem:[#allocation62_spill] sm:$0xff] }
 0x85c   : > { %5664 = vmatpush.msk.msra.mxu3 %vm13872_vm13, %v14247_v60  ;;  %vm14259_vm13 = vnez %v14258_v35  ;;  %v14303_v60 = vld [vmem:[#allocation132_spill] sm:$0xff] }
 0x85d   : > { %5655 = vmatpush.msk.msra.mxu2 %vm14246_vm14, %v14244_v22  ;;  %vm14255_vm14 = vnez %v14254_v23  ;;  %v14301_v22 = vld [vmem:[#allocation67_spill] sm:$0xff] }
 0x85e   : > { %5806 = vmatmul.lmr.bf16.vlgmr.msra.gmra.1.mxu2  ;;  %5665 = vmatpush.msk.msra.mxu3 %vm14250_vm0, %v14249_v63  ;;  %vm14262_vm0 = vnez %v14156_v48  ;;  %v14306_v63 = vld [vmem:[#allocation18_spill] sm:$0xff] }
 0x85f   : > { %5672 = vmatpush.msk.msra.mxu2 %vm13988_vm3, %v14248_v34  ;;  %v14305_v34 = vld [vmem:[#allocation201_spill] sm:$0xff] }
 0x860   : > { %5666 = vmatpush.msk.msra.mxu3 %vm14255_vm14, %v14253_v33  ;;  %vm14267_vm14 = vnez %v14266_v43  ;;  %v14310_v33 = vld [vmem:[#allocation46_spill] sm:$0xff] }
 0x861   : > { %5673 = vmatpush.msk.msra.mxu2 %vm14252_vm4, %v14251_v3  ;;  %vm14264_vm4 = vnez %v14201_v46  ;;  %v14308_v3 = vld [vmem:[#allocation199_spill] sm:$0xff] }
 0x862   : > { %5667 = vmatpush.msk.msra.mxu3 %vm14259_vm13, %v14257_v9  ;;  %vm14271_vm13 = vnez %v14270_v30  ;;  %v14313_v9 = vld [vmem:[#allocation43_spill] sm:$0xff] }
 0x863   : > { %5674 = vmatpush.msk.msra.mxu2 %vm14196_vm8, %v14256_v6  ;;  %v14312_v6 = vld [vmem:[#allocation197_spill] sm:$0xff] }
 0x864   : > { %5668 = vmatpush.msk.msra.mxu3 %vm14262_vm0, %v14261_v20  ;;  %vm14276_vm0 = vnez %v14275_v21  ;;  %v14321_v20 = vld [vmem:[#allocation115_spill] sm:$0xff] }
 0x865   : > { %5675 = vmatpush.msk.msra.mxu2 %vm14199_vm10, %v14260_v13  ;;  %vm14273_vm10 = vnez %v14207_v17  ;;  %v14317_v13 = vld [vmem:[#allocation40_spill] sm:$0xff]  ;;  %v14334_v17 = vld [vmem:[#allocation178_spill] sm:$0xff] }
 0x866   : > { %5669 = vmatpush.msk.msra.mxu3 %vm14267_vm14, %v14265_v37  ;;  %v14326_v37 = vld [vmem:[#allocation107_spill] sm:$0xff] }
 0x867   : > { %5676 = vmatpush.msk.msra.mxu2 %vm14264_vm4, %v14263_v10  ;;  %vm14278_vm4 = vnez %v14210_v26  ;;  %v14323_v10 = vld [vmem:[#allocation111_spill] sm:$0xff] }
 0x868   : > { %5670 = vmatpush.msk.msra.mxu3 %vm14271_vm13, %v14269_v4  ;;  %vm14281_vm13 = vnez %v14214_v25  ;;  %v14333_v4 = vld [vmem:[#allocation162_spill] sm:$0xff] }
 0x869   : > { %5677 = vmatpush.msk.msra.mxu2 %vm14205_vm12, %v14268_v62  ;;  %v14330_v62 = vld [vmem:[#allocation92_spill] sm:$0xff] }
 0x86a   : > { %5671 = vmatpush.msk.msra.mxu3 %vm14276_vm0, %v14274_v11  ;;  %vm14284_vm0 = vnez %v14218_v14 }
 0x86b   : > { %5678 = vmatpush.msk.msra.mxu2 %vm14273_vm10, %v14272_v57  ;;  %5839 = vmatmul.lmr.bf16.vlgmr.msra.gmra.1.mxu3  ;;  %v14336_v57 = vld [vmem:[#allocation158_spill] sm:$0xff] }
 0x86c   : > { %5688 = vmatpush.msk.msra.mxu3 %vm14166_vm5, %v14279_v51 }
 0x86d   : > { %5679 = vmatpush.msk.msra.mxu2 %vm14278_vm4, %v14277_v28  ;;  %vm14287_vm4 = vnez %v14222_v18  ;;  %v14346_v18 = vld [vmem:[#allocation17_spill] sm:$0xff] }
 0x86e   : > { %5689 = vmatpush.msk.msra.mxu3 %vm14162_vm9, %v14282_v5 }
 0x86f   : > { %5680 = vmatpush.msk.msra.mxu2 %vm14281_vm13, %v14280_v54  ;;  %vm14290_vm13 = vnez %v14227_v38 }
 0x870   : > { %5690 = vmatpush.msk.msra.mxu3 %vm13951_vm7, %v14285_v8 }
 0x871   : > { %5681 = vmatpush.msk.msra.mxu2 %vm14284_vm0, %v14283_v32  ;;  %vm14293_vm0 = vnez %v14231_v44 }
 0x872   : > { %5691 = vmatpush.msk.msra.mxu3 %vm13942_vm1, %v14288_v19 }
 0x873   : > { %5682 = vmatpush.msk.msra.mxu2 %vm14287_vm4, %v14286_v56 }
 0x874   : > { %5692 = vmatpush.msk.msra.mxu3 %vm14159_vm15, %v14291_v2  ;;  %vm14300_vm15 = vnez %v14243_v39 }
 0x875   : > { %5683 = vmatpush.msk.msra.mxu2 %vm14290_vm13, %v14289_v24  ;;  %vm14298_vm13 = vnez %v14240_v15  ;;  %v4717_v24 = vld [vmem:[#allocation4] sm:$0xf] }
 0x876   : > { %5693 = vmatpush.msk.msra.mxu3 %vm14158_vm11, %v14294_v1 }
 0x877   : > { %5684 = vmatpush.msk.msra.mxu2 %vm14293_vm0, %v14292_v52  ;;  %vm14302_vm0 = vnez %v14245_v47 }
 0x878   : > { %5694 = vmatpush.msk.msra.mxu3 %vm13856_vm2, %v14296_v16 }
 0x879   : > { %5685 = vmatpush.msk.msra.mxu2 %vm14236_vm6, %v14295_v40  ;;  %vm14304_vm6 = vnez %v13191_v29 }
 0x87a   : > { %5695 = vmatpush.msk.msra.mxu3 %vm14300_vm15, %v14299_v58  ;;  %vm14309_vm15 = vnez %v14193_v31  ;;  %v14319_v31 = vld [vmem:[#allocation193_spill] sm:$0xff]  ;;  %v14365_v58 = vlaneseq }
 0x87b   : > { %5686 = vmatpush.msk.msra.mxu2 %vm14298_vm13, %v14297_v42  ;;  %vm14307_vm13 = vnez %v13177_v50 }
 0x87c   : > { %5696 = vmatpush.msk.msra.mxu3 %vm14304_vm6, %v14303_v60  ;;  %vm14314_vm6 = vnez %v14258_v35 }
 0x87d   : > { %5687 = vmatpush.msk.msra.mxu2 %vm14302_vm0, %v14301_v22  ;;  %vm14311_vm0 = vnez %v14254_v23 }
 0x87e   : > { %5807 = vmatmul.lmr.bf16.vlgmr.msra.gmra.1.mxu2  ;;  %5697 = vmatpush.msk.msra.mxu3 %vm14307_vm13, %v14306_v63  ;;  %vm14318_vm13 = vnez %v14156_v48  ;;  %v4721_v5 = vpop.permute.xlu0 %4720 }
 0x87f   : > { %5704 = vmatpush.msk.msra.mxu2 %vm13988_vm3, %v14305_v34  ;;  %vm14316_vm3 = vnez %v14198_v12  ;;  %v14325_v12 = vld [vmem:[#allocation189_spill] sm:$0xff]  ;;  %v4723_v56 = vperm.slane %v4721_v5, 0 }
 0x880   : > { %5698 = vmatpush.msk.msra.mxu3 %vm14311_vm0, %v14310_v33 }
 0x881   : > { %5705 = vmatpush.msk.msra.mxu2 %vm14309_vm15, %v14308_v3  ;;  %vm14320_vm15 = vnez %v14201_v46  ;;  %v14328_v46 = vld [vmem:[#allocation185_spill] sm:$0xff]  ;;  %v4724_v1 = vmul.f32 %v4723_v56, %v4717_v24 }
 0x882   : > { %5699 = vmatpush.msk.msra.mxu3 %vm14314_vm6, %v14313_v9 }
 0x883   : > { %5706 = vmatpush.msk.msra.mxu2 %vm14196_vm8, %v14312_v6  ;;  %vm14324_vm8 = vnez %v14270_v30 }
 0x884   : > { %5700 = vmatpush.msk.msra.mxu3 %vm14318_vm13, %v14317_v13 }
 0x885   : > { %5707 = vmatpush.msk.msra.mxu2 %vm14316_vm3, %v14315_v41  ;;  %vm14327_vm3 = vnez %v14275_v21 }
 0x886   : > { %5701 = vmatpush.msk.msra.mxu3 %vm14267_vm14, %v14321_v20 }
 0x887   : > { %5708 = vmatpush.msk.msra.mxu2 %vm14320_vm15, %v14319_v31  ;;  %vm14329_vm15 = vnez %v14210_v26  ;;  %v14337_v26 = vld [vmem:[#allocation175_spill] sm:$0xff] }
 0x888   : > { %5702 = vmatpush.msk.msra.mxu3 %vm14324_vm8, %v14323_v10 }
 0x889   : > { %5709 = vmatpush.msk.msra.mxu2 %vm14205_vm12, %v14322_v53  ;;  %vm14332_vm12 = vnez %v14214_v25  ;;  %v14339_v25 = vld [vmem:[#allocation172_spill] sm:$0xff] }
 0x88a   : > { %5703 = vmatpush.msk.msra.mxu3 %vm14327_vm3, %v14326_v37 }
 0x88b   : > { %5710 = vmatpush.msk.msra.mxu2 %vm14273_vm10, %v14325_v12  ;;  %5840 = vmatmul.lmr.bf16.vlgmr.msra.gmra.1.mxu3  ;;  %vm14335_vm10 = vnez %v14218_v14  ;;  %v14343_v14 = vld [vmem:[#allocation79_spill] sm:$0xff] }
 0x88c   : > { %5720 = vmatpush.msk.msra.mxu3 %vm14166_vm5, %v14330_v62  ;;  %vm14340_vm5 = vnez %v14227_v38  ;;  %v14349_v38 = vld [vmem:[#allocation63_spill] sm:$0xff] }
 0x88d   : > { %5711 = vmatpush.msk.msra.mxu2 %vm14329_vm15, %v14328_v46  ;;  %vm14344_vm15 = vnez %v14231_v44  ;;  %v14353_v44 = vld [vmem:[#allocation104_spill] sm:$0xff] }
 0x88e   : > { %5721 = vmatpush.msk.msra.mxu3 %vm14162_vm9, %v14333_v4  ;;  %vm14342_vm9 = vnez %v13503_v55  ;;  %v14351_v55 = vld [vmem:[#allocation72_spill] sm:$0xff] }
 0x88f   : > { %5712 = vmatpush.msk.msra.mxu2 %vm14332_vm12, %v14331_v27  ;;  %vm14354_vm12 = vnez %v14245_v47  ;;  %v14362_v47 = vld [vmem:[#allocation204_spill] sm:$0xff] }
 0x890   : > { %5722 = vmatpush.msk.msra.mxu3 %vm13951_vm7, %v14336_v57  ;;  %vm14350_vm7 = vnez %v14240_v15  ;;  %v14360_v15 = vld [vmem:[#allocation22_spill] sm:$0xff] }
 0x891   : > { %5713 = vmatpush.msk.msra.mxu2 %vm14335_vm10, %v14334_v17 }
 0x892   : > { %5723 = vmatpush.msk.msra.mxu3 %vm13942_vm1, %v14338_v49  ;;  %vm14352_vm1 = vnez %v14243_v39  ;;  %v14361_v39 = vld [vmem:[#allocation205_spill] sm:$0xff] }
 0x893   : > { %5714 = vmatpush.msk.msra.mxu2 %vm14287_vm4, %v14337_v26  ;;  %vm14347_vm4 = vnez %v14235_v36  ;;  %v14357_v36 = vld [vmem:[#allocation207_spill] sm:$0xff] }
 0x894   : > { %5724 = vmatpush.msk.msra.mxu3 %vm14342_vm9, %v14341_v45 }
 0x895   : > { %5715 = vmatpush.msk.msra.mxu2 %vm14340_vm5, %v14339_v25 }
 0x896   : > { %5725 = vmatpush.msk.msra.mxu3 %vm14158_vm11, %v14345_v59  ;;  %vm14356_vm11 = vnez %v13191_v29  ;;  %v14363_v29 = vld [vmem:[#allocation203_spill] sm:$0xff] }
 0x897   : > { %5716 = vmatpush.msk.msra.mxu2 %vm14344_vm15, %v14343_v14 }
 0x898   : > { %5726 = vmatpush.msk.msra.mxu3 %vm13856_vm2, %v14348_v61  ;;  %vm14358_vm2 = vnez %v13177_v50  ;;  %v14364_v50 = vld [vmem:[#allocation202_spill] sm:$0xff] }
 0x899   : > { %5717 = vmatpush.msk.msra.mxu2 %vm14347_vm4, %v14346_v18 }
 0x89a   : > { %5727 = vmatpush.msk.msra.mxu3 %vm14352_vm1, %v14351_v55 }
 0x89b   : > { %5718 = vmatpush.msk.msra.mxu2 %vm14350_vm7, %v14349_v38 }
 0x89c   : > { %5728 = vmatpush.msk.msra.mxu3 %vm14356_vm11, %v14355_v0 }
 0x89d   : > { %5719 = vmatpush.msk.msra.mxu2 %vm14354_vm12, %v14353_v44 }
 0x89e   : > { %5808 = vmatmul.lmr.bf16.vlgmr.msra.gmra.1.mxu2  ;;  %5729 = vmatpush.msk.msra.mxu3 %vm14358_vm2, %v14357_v36 }
 0x8a0   : > { %5730 = vmatpush.msk.msra.mxu3 %vm14311_vm0, %v14359_v7  ;;  %vm4960_vm0 = vcmask 1041408  }
 0x8a2   : > { %5731 = vmatpush.msk.msra.mxu3 %vm14314_vm6, %v14360_v15  ;;  %vm4958_vm6 = vcmask 1042434  }
 0x8a4   : > { %5732 = vmatpush.msk.msra.mxu3 %vm14318_vm13, %v14361_v39  ;;  %vm4956_vm13 = vcmask 1040384  }
 0x8a6   : > { %5733 = vmatpush.msk.msra.mxu3 %vm14267_vm14, %v14362_v47  ;;  %vm12062_vm14 = vcmp.lt.s32.totalorder %v14365_v58, 512 }
 0x8a8   : > { %5734 = vmatpush.msk.msra.mxu3 %vm14324_vm8, %v14363_v29 }
 0x8aa   : > { %5735 = vmatpush.msk.msra.mxu3 %vm14327_vm3, %v14364_v50 }
 0x8ab   : > { %5841 = vmatmul.lmr.bf16.vlgmr.msra.gmra.1.mxu3 }
 0x8c1   : > { %v4806_v23 = vpop.f32.mrf.mxu2 }
 0x8ce   : > { %v4826_v35 = vpop.f32.mrf.mxu3 }
 0x8cf   : > { %v4827_v21 = vadd.f32 %v4826_v35, %v4806_v23 }
 0x8e1   : > { %v4846_v11 = vpop.f32.mrf.mxu2 }
 0x8ee   : > { %v4866_v28 = vpop.f32.mrf.mxu3 }
 0x8ef   : > { %v4867_v54 = vadd.f32 %v4866_v28, %v4846_v11 }
 0x8f1   : > { %v4953_v19 = vrot.slane %v4867_v54, 7 }
 0x8f3   : > { %v4957_v40 = vsel %vm4956_vm13, %v4827_v21, %v4953_v19 }
 0x901   : > { %v4886_v51 = vpop.f32.mrf.mxu2 }
 0x90e   : > { %v4906_v48 = vpop.f32.mrf.mxu3 }
 0x90f   : > { %v4907_v43 = vadd.f32 %v4906_v48, %v4886_v51 }
 0x911   : > { %v4954_v2 = vrot.slane %v4907_v43, 6 }
 0x921   : > { %v4926_v32 = vpop.f32.mrf.mxu2 }
 0x92e   : > { %v4946_v8 = vpop.f32.mrf.mxu3 }
 0x92f   : > { %v4947_v30 = vadd.f32 %v4946_v8, %v4926_v32 }
 0x931   : > { %v4955_v52 = vrot.slane %v4947_v30, 5 }
 0x933   : > { %v4959_v16 = vsel %vm4958_vm6, %v4954_v2, %v4955_v52  ;;  %4973 = sbr.rel (%p5736_p5) target bundleno = 2499 (0x9c3), region = 64 }
 0x934   : > { %v4961_v42 = vsel %vm4960_vm0, %v4957_v40, %v4959_v16 }
 0x935   : > { %v4963_v60 = vadd.f32 %v4961_v42, %v4724_v1 }
 0x937   : > { %4968 = vst.msk [vmem:[#allocation4] sm:$0xf] %vm12062_vm14, %v4963_v60 }
 0x938   : > { %v4975_v34 = vld [vmem:[#allocation3] sm:$0x1]  ;;  %v6485_v63 = vmov 0  }
 0x939   : > { %6301 = vset.pattern.permute.xlu0 %v6485_v63 }
 0x93a   : > { %4978 = vperm.xlu0 %6301, %v4975_v34  }
 0x93e   : > { %v4974_v10 = vld [vmem:[#allocation4] sm:$0xf] }
 0x9ac   : > { %v4979_v3 = vpop.permute.xlu0 %4978 }
 0x9ad   : > { %v4981_v33 = vperm.slane %v4979_v3, 0 }
 0x9af   : > { %6302 = vrcp.f32 %v4981_v33  ;;  %v4993_v13 = vand.u32 2147483648, %v4981_v33  ;;  %v4991_v20 = vand.u32 2147483647, %v4981_v33  ;;  %vm4987_vm3 = vweird.f32 %v4981_v33 }
 0x9b1   : > { %v4994_v12 = vor.u32 1.1754944e-38, %v4993_v13  ;;  %vm4992_vm5 = vcmp.eq.f32.partialorder %v4991_v20, 8.507059e+37 }
 0x9b5   : > { %v6303_v6 = vpop.eup %6302 }
 0x9b6   : > { %v4983_v9 = vmul.f32 %v6303_v6, %v4981_v33  ;;  %vm4988_vm8 = vweird.f32 %v6303_v6 }
 0x9b7   : > { %vm4989_vm10 = vmor %vm4987_vm3, %vm4988_vm8 }
 0x9b8   : > { %v4984_v41 = vsub.f32 1.0, %v4983_v9 }
 0x9ba   : > { %v4985_v31 = vmul.f32 %v6303_v6, %v4984_v41 }
 0x9bc   : > { %v4986_v53 = vadd.f32 %v6303_v6, %v4985_v31 }
 0x9be   : > { %v4990_v37 = vsel %vm4989_vm10, %v6303_v6, %v4986_v53 }
 0x9bf   : > { %v4995_v46 = vsel %vm4992_vm5, %v4994_v12, %v4990_v37 }
 0x9c0   : > { %v4996_v62 = vmul.f32 %v4995_v46, %v4974_v10 }
 0x9c2   : > { %4997 = vst.msk [vmem:[#allocation13] sm:$0xf] %vm12062_vm14, %v4996_v62 }
 0x9c3 PF: > { %p5866_p8 = scmp.eq.s32.totalorder %s6551_s0, 1  ;;  %s6486_s12 = smov [#allocation13]  }
 0x9c4   : > { %s5004_s13 = sshll.u32 %s6486_s12, 4  ;;  %s5006_s11 = sshll.u32 %s12095_s7, 4  ;;  %s5005_s13 = int_to_ptr.vmem [resolvable:$true] %s5004_s13  ;;  %s5007_s11 = int_to_ptr.hbm [resolvable:$true] %s5006_s11 }
 0x9c5   : > { %5852 = dma.vmem_to_hbm [thread:$0]  (%p5866_p8), %s5005_s13, 64, %s5007_s11, [#allocation9]  }
 0x9c6   : > { %6456 = dma.done.wait (%p5866_p8), [#allocation9], 64  }
 0x9c7   : > { %6458 = vsyncadd (%p5866_p8), [#allocation9], 4294967232 }
 0x9c8 PF: > { %p20_p10 = scmp.ge.s32.totalorder %s6554_s30, 4   ;;  %s14368_s26 = smov %s6465_s27 }
 0x9c9   : > { %s14369_s27 = smov %s6469_s28  ;;  %s14370_s28 = smov %s6564_s10 }
 0x9ca   : > { %s14371_s29 = smov %s6554_s30  ;;  %22 = sbr.rel (!%p20_p10) target bundleno = 7 (0x7), region = 97 }
 0x9cf   :  { %5020 = vsyncpa [#allocation8], 1 }
 0x9d0   :  { %5022 = vsyncpa [#allocation8 + $0x1], 1 }
 0x9d1   :  { %5023 = vsyncpa [#allocation11], 1 }
 0x9d2   :  { %5024 = vsyncpa [#allocation9], 1 }
 0x9d3   :  { %5026 = vsyncpa [#allocation9 + $0x1], 1 }

</bundles_post_ra>
